<compile_context>
chip_gen: v7x
topology: tpu7x:2x2x1
jax: 0.10.0
libtpu: 0.0.40
codegen_flags: <defaults>
</compile_context>

<pallas_src>
import jax
import jax.numpy as jnp
from jax.experimental import pallas as pl
from jax.experimental.pallas import tpu as pltpu


def _round_up(x, m):
    return (x + m - 1) // m * m


# ----------------------------------------------------------------------------------
# Pallas kernel: one bidirectional LSTM layer (both directions fused), time-major,
# batch-blocked (parallel) x time-chunked (arbitrary, state carried in scratch).
# ----------------------------------------------------------------------------------
def _make_bilstm_kernel(TC, Bb, Dp, Hp, Tp, T_real, fused, unroll):
    H4 = 4 * Hp
    n_pad_steps = Tp - T_real  # leading bwd steps that sit in time padding (state frozen there)

    def _sig(x):
        # sigmoid(x) = 0.5*(tanh(x/2)+1): one EUP push per gate instead of exp + reciprocal.
        return 0.5 * jnp.tanh(0.5 * x) + 0.5

    def _cell(gates, c_prev):
        # PyTorch gate order i, f, g, o; all slices are 128-lane aligned (Hp % 128 == 0).
        i_g = _sig(gates[:, 0:Hp])
        f_g = _sig(gates[:, Hp:2 * Hp])
        g_g = jnp.tanh(gates[:, 2 * Hp:3 * Hp])
        o_g = _sig(gates[:, 3 * Hp:4 * Hp])
        c_new = f_g * c_prev + i_g * g_g
        h_new = o_g * jnp.tanh(c_new)
        return h_new, c_new

    def body(x_f_ref, x_b_ref, w_if_ref, w_ib_ref, w_hh_refs, b_ref,
             out_f_ref, out_b_ref, gxf_scr, gxb_scr, h_scr, c_scr):
        c_idx = pl.program_id(1)

        @pl.when(c_idx == 0)
        def _():
            h_scr[...] = jnp.zeros_like(h_scr)
            c_scr[...] = jnp.zeros_like(c_scr)

        # ---- Chunked input projection (bounds the f32 temporary and bf16 gx scratch to O(TC)).
        gxf = jnp.dot(x_f_ref[...].reshape(TC * Bb, Dp), w_if_ref[...],
                      preferred_element_type=jnp.float32) + b_ref[:, 0:H4]
        gxf_scr[...] = gxf.reshape(TC, Bb, H4).astype(jnp.bfloat16)
        gxb = jnp.dot(x_b_ref[...].reshape(TC * Bb, Dp), w_ib_ref[...],
                      preferred_element_type=jnp.float32) + b_ref[:, H4:2 * H4]
        gxb_scr[...] = gxb.reshape(TC, Bb, H4).astype(jnp.bfloat16)

        def step(s, carry):
            tf = s
            tb = TC - 1 - s
            # Two independent recurrence chains (fwd @ chunk-local tf, bwd @ chunk-local tb)
            # interleaved so their MXU/EUP latencies overlap.
            if fused:
                # Hp == 128: one block-diagonal matmul; K = 2*Hp = 256 fills the v6e/v7x MXU.
                rec = jnp.dot(h_scr[...], w_hh_refs[0][...],
                              preferred_element_type=jnp.float32)          # (Bb, 8Hp)
                rec_f = rec[:, 0:H4]
                rec_b = rec[:, H4:2 * H4]
            else:
                # TODO(synk): keep W_hh stationary in MXU weight regs across steps
                # (pltpu.matmul_push_rhs / matmul_acc_lhs) instead of re-pushing via jnp.dot.
                rec_f = jnp.dot(h_scr[:, 0:Hp], w_hh_refs[0][...],
                                preferred_element_type=jnp.float32)
                rec_b = jnp.dot(h_scr[:, Hp:2 * Hp], w_hh_refs[1][...],
                                preferred_element_type=jnp.float32)
            gates_f = gxf_scr[tf].astype(jnp.float32) + rec_f
            gates_b = gxb_scr[tb].astype(jnp.float32) + rec_b
            h_f, c_f = _cell(gates_f, c_scr[:, 0:Hp])
            h_b, c_b = _cell(gates_b, c_scr[:, Hp:2 * Hp])
            if n_pad_steps > 0:
                # Backward chain: its first (Tp - T) global steps are time padding; freeze state.
                keep = ((c_idx * TC + s) >= n_pad_steps).astype(jnp.float32)
                h_b = keep * h_b + (1.0 - keep) * h_scr[:, Hp:2 * Hp].astype(jnp.float32)
                c_b = keep * c_b + (1.0 - keep) * c_scr[:, Hp:2 * Hp]
            # 128-lane-aligned state / output stores.
            h_scr[:, 0:Hp] = h_f.astype(jnp.bfloat16)
            h_scr[:, Hp:2 * Hp] = h_b.astype(jnp.bfloat16)
            c_scr[:, 0:Hp] = c_f
            c_scr[:, Hp:2 * Hp] = c_b
            out_f_ref[tf] = h_f.astype(jnp.bfloat16)
            out_b_ref[tb] = h_b.astype(jnp.bfloat16)
            return carry

        jax.lax.fori_loop(0, TC, step, 0, unroll=unroll)

    if fused:
        def kernel(x_f_ref, x_b_ref, w_if_ref, w_ib_ref, w_bd_ref, b_ref,
                   out_f_ref, out_b_ref, gxf_scr, gxb_scr, h_scr, c_scr):
            body(x_f_ref, x_b_ref, w_if_ref, w_ib_ref, (w_bd_ref,), b_ref,
                 out_f_ref, out_b_ref, gxf_scr, gxb_scr, h_scr, c_scr)
    else:
        def kernel(x_f_ref, x_b_ref, w_if_ref, w_ib_ref, w_hf_ref, w_hb_ref, b_ref,
                   out_f_ref, out_b_ref, gxf_scr, gxb_scr, h_scr, c_scr):
            body(x_f_ref, x_b_ref, w_if_ref, w_ib_ref, (w_hf_ref, w_hb_ref), b_ref,
                 out_f_ref, out_b_ref, gxf_scr, gxb_scr, h_scr, c_scr)
    return kernel


def _vmem_bytes_est(TC, Bb, Dp, Hp, fused):
    x_b = 2 * 2 * TC * Bb * Dp * 2              # two x chunk inputs, double-buffered, bf16
    out_b = 2 * 2 * TC * Bb * Hp * 2            # two output chunks, double-buffered, bf16
    wih_b = 2 * 2 * Dp * 4 * Hp * 2             # W_ih fwd+bwd, double-buffered, bf16
    whh_b = 2 * ((2 * Hp) * (8 * Hp) if fused else 2 * Hp * 4 * Hp) * 2
    gx_b = 2 * TC * Bb * 4 * Hp * 2             # bf16 gate scratch (both directions)
    tmp_b = 2 * TC * Bb * 4 * Hp * 4            # f32 projection results before the bf16 cast
    st_b = Bb * 2 * Hp * (2 + 4)                # h (bf16) + c (f32) state
    bias = 2 * 8 * Hp * 4
    return x_b + out_b + wih_b + whh_b + gx_b + tmp_b + st_b + bias


def _vmem_limit_bytes(est_bytes):
    # Generation-aware limit (v5e/v6e: 128 MiB physical, v7x: 64 MiB) with headroom.
    try:
        cap = pltpu.get_tpu_info().vmem_capacity_bytes
    except Exception:
        cap = 64 << 20
    want = 2 * est_bytes + (8 << 20)
    return int(max(16 << 20, min(want, cap - (12 << 20))))


def _pick_time_chunk(T, Bb, Dp, Hp):
    # Cap the chunk-scaled working set (x chunks, out chunks, gx scratch, f32 proj temps).
    try:
        cap = pltpu.get_tpu_info().vmem_capacity_bytes
    except Exception:
        cap = 64 << 20
    budget = cap // 4
    per_t = Bb * (8 * Dp + 56 * Hp)
    return int(max(1, min(T, budget // max(per_t, 1), 256)))


def _bilstm_layer(x_tbd_bf16, lp, T, Bp, Bb, time_chunk=None):
    """x_tbd_bf16: (T, Bp, Dp) bf16. Returns (out_f, out_b), each (T, Bp, Hp) bf16."""
    Dp, Hp, fused = lp["Dp"], lp["Hp"], lp["fused"]
    TC = _pick_time_chunk(T, Bb, Dp, Hp) if time_chunk is None else int(min(time_chunk, T))
    nc = pl.cdiv(T, TC)
    Tp = nc * TC
    if Tp != T:
        x_tbd_bf16 = jnp.pad(x_tbd_bf16, ((0, Tp - T), (0, 0), (0, 0)))
    nb = Bp // Bb
    unroll = True if TC <= 8 else (2 if Hp >= 512 else 4)

    kernel = _make_bilstm_kernel(TC, Bb, Dp, Hp, Tp, T, fused, unroll)

    w_in = [lp["w_ih_f"], lp["w_ih_b"]]
    w_specs = [pl.BlockSpec((Dp, 4 * Hp), lambda b, c: (0, 0)),
               pl.BlockSpec((Dp, 4 * Hp), lambda b, c: (0, 0))]
    if fused:
        w_in.append(lp["w_hh_bd"])
        w_specs.append(pl.BlockSpec((2 * Hp, 8 * Hp), lambda b, c: (0, 0)))
    else:
        w_in += [lp["w_hh_f"], lp["w_hh_b"]]
        w_specs += [pl.BlockSpec((Hp, 4 * Hp), lambda b, c: (0, 0)),
                    pl.BlockSpec((Hp, 4 * Hp), lambda b, c: (0, 0))]
    w_in.append(lp["b_both"])
    w_specs.append(pl.BlockSpec((1, 8 * Hp), lambda b, c: (0, 0)))

    out_f, out_b = pl.pallas_call(
        kernel,
        out_shape=(jax.ShapeDtypeStruct((Tp, Bp, Hp), jnp.bfloat16),
                   jax.ShapeDtypeStruct((Tp, Bp, Hp), jnp.bfloat16)),
        grid=(nb, nc),
        in_specs=[
            pl.BlockSpec((TC, Bb, Dp), lambda b, c: (c, b, 0)),           # x, fwd-order chunks
            pl.BlockSpec((TC, Bb, Dp), lambda b, c: (nc - 1 - c, b, 0)),  # x, reversed chunks (bwd)
        ] + w_specs,
        out_specs=(
            pl.BlockSpec((TC, Bb, Hp), lambda b, c: (c, b, 0)),           # h_fwd chunk
            pl.BlockSpec((TC, Bb, Hp), lambda b, c: (nc - 1 - c, b, 0)),  # h_bwd chunk
        ),
        scratch_shapes=[
            pltpu.VMEM((TC, Bb, 4 * Hp), jnp.bfloat16),   # gx fwd chunk
            pltpu.VMEM((TC, Bb, 4 * Hp), jnp.bfloat16),   # gx bwd chunk
            pltpu.VMEM((Bb, 2 * Hp), jnp.bfloat16),       # [h_fwd | h_bwd]
            pltpu.VMEM((Bb, 2 * Hp), jnp.float32),        # [c_fwd | c_bwd]
        ],
        compiler_params=pltpu.CompilerParams(
            dimension_semantics=("parallel", "arbitrary"),
            vmem_limit_bytes=_vmem_limit_bytes(_vmem_bytes_est(TC, Bb, Dp, Hp, fused)),
        ),
    )(x_tbd_bf16, x_tbd_bf16, *w_in)
    # TODO(synk): on v7x with tiny batch (single parallel grid step), split the fwd/bwd chains
    # across the two TensorCores via core_map instead of relying on batch parallelism.
    return out_f[:T], out_b[:T]


# ----------------------------------------------------------------------------------
# Parameter packing: PyTorch-layout weights -> padded, lane-aligned kernel layout.
# ----------------------------------------------------------------------------------
def _pad_gate_rows(w, H, Hp):
    """w: (4H, X) -> (4Hp, X); each gate block padded to Hp rows (PyTorch order i,f,g,o)."""
    out = jnp.zeros((4 * Hp, w.shape[1]), w.dtype)
    for g in range(4):
        out = out.at[g * Hp:g * Hp + H, :].set(w[g * H:(g + 1) * H, :])
    return out


def _pad_gate_vec(b, H, Hp):
    out = jnp.zeros((4 * Hp,), b.dtype)
    for g in range(4):
        out = out.at[g * Hp:g * Hp + H].set(b[g * H:(g + 1) * H])
    return out


def _scatter_input_cols(w, segments, Dp):
    """w: (R, Din_real) -> (R, Dp); segments = [(src_start, length, dst_start), ...]."""
    out = jnp.zeros((w.shape[0], Dp), w.dtype)
    for s, n, d in segments:
        out = out.at[:, d:d + n].set(w[:, s:s + n])
    return out


def init_raw_lstm_params(key, in_size, hidden):
    """Deterministic PyTorch-style init: U(-1/sqrt(H), 1/sqrt(H)), PyTorch layouts."""
    k = 1.0 / jnp.sqrt(jnp.float32(hidden))
    k0, k1, k2, k3 = jax.random.split(key, 4)
    return {
        "w_ih": jax.random.uniform(k0, (4 * hidden, in_size), jnp.float32, -k, k),
        "w_hh": jax.random.uniform(k1, (4 * hidden, hidden), jnp.float32, -k, k),
        "b_ih": jax.random.uniform(k2, (4 * hidden,), jnp.float32, -k, k),
        "b_hh": jax.random.uniform(k3, (4 * hidden,), jnp.float32, -k, k),
    }


def pack_encoder_params(raw_layers, in_size):
    """Pack the raw bidirectional-LSTM stack into padded, bf16 kernel layouts."""
    packed = []
    Dp = _round_up(in_size, 128)          # lane-align the first layer's projection K dim
    segments = [(0, in_size, 0)]
    for lyr in raw_layers:
        H = lyr["fwd"]["w_hh"].shape[1]
        Hp = _round_up(H, 128)
        fused = (Hp == 128)               # block-diag recurrence only pays off at K = 2*Hp = 256

        def pack_dir(p):
            w_ih = _scatter_input_cols(_pad_gate_rows(p["w_ih"], H, Hp), segments, Dp)     # (4Hp, Dp)
            w_hh = _scatter_input_cols(_pad_gate_rows(p["w_hh"], H, Hp), [(0, H, 0)], Hp)  # (4Hp, Hp)
            b = _pad_gate_vec(p["b_ih"] + p["b_hh"], H, Hp)                                # (4Hp,)
            return w_ih.T, w_hh.T, b

        wih_f, whh_f, b_f = pack_dir(lyr["fwd"])
        wih_b, whh_b, b_b = pack_dir(lyr["bwd"])
        entry = {
            "w_ih_f": wih_f.astype(jnp.bfloat16),                                 # (Dp, 4Hp)
            "w_ih_b": wih_b.astype(jnp.bfloat16),                                 # (Dp, 4Hp)
            "b_both": jnp.concatenate([b_f, b_b])[None, :].astype(jnp.float32),   # (1, 8Hp)
            "H": H, "Hp": Hp, "Dp": Dp, "fused": fused,
        }
        if fused:
            w_bd = jnp.zeros((2 * Hp, 8 * Hp), jnp.float32)
            w_bd = w_bd.at[0:Hp, 0:4 * Hp].set(whh_f)
            w_bd = w_bd.at[Hp:2 * Hp, 4 * Hp:8 * Hp].set(whh_b)
            entry["w_hh_bd"] = w_bd.astype(jnp.bfloat16)                          # (2Hp, 8Hp)
        else:
            entry["w_hh_f"] = whh_f.astype(jnp.bfloat16)                          # (Hp, 4Hp)
            entry["w_hh_b"] = whh_b.astype(jnp.bfloat16)                          # (Hp, 4Hp)
        packed.append(entry)
        # Next layer consumes the padded [h_fwd(Hp) | h_bwd(Hp)] layout directly.
        segments = [(0, H, 0), (H, H, Hp)]
        Dp = 2 * Hp
    return packed


# ----------------------------------------------------------------------------------
# Encoder forward (batch_first, matching the PyTorch module's eval-mode semantics).
# ----------------------------------------------------------------------------------
def standard_rnn_encoder(x_btd, packed_layers, input_len=None, time_chunk=None):
    assert x_btd.ndim == 3, "input must be 3-dim tensor (batch x seq_len x ndim)"
    B, T, Din = x_btd.shape
    if input_len is None:
        input_len = [T] * B
    # TODO(synk): per-example input_len masking (pack_padded_sequence semantics) not implemented;
    # both directions run over the full max length (exact when all lengths == T).

    Bb = _round_up(B, 8) if B <= 128 else 128      # batch block = M dim of the per-step matmul
    Bp = _round_up(B, Bb)
    Dp0 = packed_layers[0]["Dp"]
    x = jnp.pad(x_btd, ((0, Bp - B), (0, 0), (0, Dp0 - Din)))
    cur = jnp.transpose(x, (1, 0, 2)).astype(jnp.bfloat16)      # time-major (T, Bp, Dp0) bf16

    for lp in packed_layers:
        out_f, out_b = _bilstm_layer(cur, lp, T, Bp, Bb, time_chunk)   # (T, Bp, Hp) bf16 each
        # F.dropout(res, p, training): identity in eval mode.
        # TODO(synk): training-mode dropout (p=0.25) not implemented (eval semantics used).
        # downsampling {'type': 'none'}: identity on (res, res_len).
        cur = jnp.concatenate([out_f, out_b], axis=-1)                 # (T, Bp, 2Hp) bf16
        # TODO(synk): fuse this inter-layer concat away by letting the next layer consume
        # (out_f, out_b) as two inputs with a split W_ih.

    H, Hp = packed_layers[-1]["H"], packed_layers[-1]["Hp"]
    out_bt = jnp.transpose(cur, (1, 0, 2))[:B]                         # (B, T, 2Hp) bf16
    enc = jnp.concatenate([out_bt[:, :, :H], out_bt[:, :, Hp:Hp + H]],
                          axis=-1).astype(jnp.float32)
    return {"enc_output": enc, "enc_len": input_len}


# ----------------------------------------------------------------------------------
# Pure-JAX reference (mirrors the kernel's precision pattern: bf16 projection/W_hh/h, f32 cell).
# ----------------------------------------------------------------------------------
def _bf16(x):
    return x.astype(jnp.bfloat16).astype(jnp.float32)


def _lstm_ref_direction(x, p, reverse):
    B, T, _ = x.shape
    H = p["w_hh"].shape[1]
    gx = jnp.einsum("btd,gd->btg", _bf16(x), _bf16(p["w_ih"]),
                    precision=jax.lax.Precision.HIGHEST) + (p["b_ih"] + p["b_hh"])
    gx = _bf16(gx)
    w_hh_t = _bf16(p["w_hh"].T)
    h = jnp.zeros((B, H), jnp.float32)
    c = jnp.zeros((B, H), jnp.float32)
    outs = [None] * T
    order = range(T - 1, -1, -1) if reverse else range(T)

    def sig(v):
        return 0.5 * jnp.tanh(0.5 * v) + 0.5

    for t in order:
        gates = gx[:, t] + jnp.dot(_bf16(h), w_hh_t, precision=jax.lax.Precision.HIGHEST)
        i_g = sig(gates[:, 0 * H:1 * H])
        f_g = sig(gates[:, 1 * H:2 * H])
        g_g = jnp.tanh(gates[:, 2 * H:3 * H])
        o_g = sig(gates[:, 3 * H:4 * H])
        c = f_g * c + i_g * g_g
        h = _bf16(o_g * jnp.tanh(c))
        outs[t] = h
    return jnp.stack(outs, axis=1)


def encoder_ref(x, raw_layers):
    res = x
    for lyr in raw_layers:
        f = _lstm_ref_direction(res, lyr["fwd"], reverse=False)
        b = _lstm_ref_direction(res, lyr["bwd"], reverse=True)
        res = jnp.concatenate([f, b], axis=-1)
    return res


if __name__ == "__main__":
    key = jax.random.PRNGKey(0)

    def build(key, in_size, rnn_sizes):
        raw = []
        prev = in_size
        for Hsz in rnn_sizes:
            key, kf, kb = jax.random.split(key, 3)
            raw.append({"fwd": init_raw_lstm_params(kf, prev, Hsz),
                        "bwd": init_raw_lstm_params(kb, prev, Hsz)})
            prev = 2 * Hsz
        return key, raw

    # ---- Config A: 2-layer stack, H=32 -> Hp=128 (fused block-diagonal recurrence path).
    B, T, in_size = 2, 8, 16
    rnn_sizes = [32, 32]
    key, kx = jax.random.split(key)
    x = jax.random.normal(kx, (B, T, in_size), jnp.float32)
    key, raw = build(key, in_size, rnn_sizes)
    packed = pack_encoder_params(raw, in_size)
    out = standard_rnn_encoder(x, packed)
    enc = jax.block_until_ready(out["enc_output"])
    assert enc.shape == (B, T, 2 * rnn_sizes[-1])
    assert out["enc_len"] == [T] * B
    ref = jax.block_until_ready(encoder_ref(x, raw))
    err = float(jnp.max(jnp.abs(enc - ref)))
    assert err < 5e-2, f"config A: max abs err vs reference: {err}"

    # ---- Config B: single layer, H=160 -> Hp=256 (general two-matmul recurrence path);
    # T=12 with time_chunk=8 exercises multi-chunk streaming + the bwd time-padding mask.
    B2, T2, in2 = 3, 12, 16
    key, kx2 = jax.random.split(key)
    x2 = jax.random.normal(kx2, (B2, T2, in2), jnp.float32)
    key, raw2 = build(key, in2, [160])
    packed2 = pack_encoder_params(raw2, in2)
    out2 = standard_rnn_encoder(x2, packed2, time_chunk=8)
    enc2 = jax.block_until_ready(out2["enc_output"])
    assert enc2.shape == (B2, T2, 2 * 160)
    assert out2["enc_len"] == [T2] * B2
    ref2 = jax.block_until_ready(encoder_ref(x2, raw2))
    err2 = float(jnp.max(jnp.abs(enc2 - ref2)))
    assert err2 < 5e-2, f"config B: max abs err vs reference: {err2}"

    print("KERNEL_OK")
</pallas_src>

<mosaic_0001>
module attributes {stable_mosaic.version = 11 : i64} {
  func.func @kernel(%arg0: i32, %arg1: i32, %arg2: memref<8x8x128xbf16, #tpu.memory_space<vmem>>, %arg3: memref<8x8x128xbf16, #tpu.memory_space<vmem>>, %arg4: memref<128x512xbf16, #tpu.memory_space<vmem>>, %arg5: memref<128x512xbf16, #tpu.memory_space<vmem>>, %arg6: memref<256x1024xbf16, #tpu.memory_space<vmem>>, %arg7: memref<1x1024xf32, #tpu.memory_space<vmem>>, %arg8: memref<8x8x128xbf16, #tpu.memory_space<vmem>>, %arg9: memref<8x8x128xbf16, #tpu.memory_space<vmem>>, %arg10: memref<8x8x512xbf16, #tpu.memory_space<vmem>>, %arg11: memref<8x8x512xbf16, #tpu.memory_space<vmem>>, %arg12: memref<8x256xbf16, #tpu.memory_space<vmem>>, %arg13: memref<8x256xf32, #tpu.memory_space<vmem>>) attributes {dimension_semantics = [#tpu.dimension_semantics<parallel>, #tpu.dimension_semantics<arbitrary>], iteration_bounds = array<i64: 1, 1>, scalar_prefetch = 0 : i64, scratch_operands = 4 : i64, tpu.core_type = #tpu.core_type<tc>, window_params = [{transform_indices = @transform_0, window_bounds = array<i64: 8, 8, 128>}, {transform_indices = @transform_1, window_bounds = array<i64: 8, 8, 128>}, {pipeline_mode = #tpu.pipeline_mode<synchronous>, transform_indices = @transform_2, window_bounds = array<i64: 128, 512>}, {pipeline_mode = #tpu.pipeline_mode<synchronous>, transform_indices = @transform_3, window_bounds = array<i64: 128, 512>}, {pipeline_mode = #tpu.pipeline_mode<synchronous>, transform_indices = @transform_4, window_bounds = array<i64: 256, 1024>}, {pipeline_mode = #tpu.pipeline_mode<synchronous>, transform_indices = @transform_5, window_bounds = array<i64: 1, 1024>}, {transform_indices = @transform_6, window_bounds = array<i64: 8, 8, 128>}, {transform_indices = @transform_7, window_bounds = array<i64: 8, 8, 128>}]} {
    %c0_i32 = arith.constant 0 : i32
    %0 = arith.cmpi eq, %arg1, %c0_i32 : i32
    %1 = arith.extui %0 : i1 to i32
    %c0_i32_0 = arith.constant 0 : i32
    %2 = arith.cmpi ne, %1, %c0_i32_0 : i32
    scf.if %2 {
      %cst_372 = arith.constant 0.000000e+00 : bf16
      %791 = vector.broadcast %cst_372 : bf16 to vector<8x256xbf16>
      %c0_373 = arith.constant 0 : index
      %c0_374 = arith.constant 0 : index
      %792 = vector.load %arg12[%c0_373, %c0_374] : memref<8x256xbf16, #tpu.memory_space<vmem>>, vector<8x256xbf16>
      tpu.vector_store %arg12[%c0_373, %c0_374], %791 {strides = array<i32>} : memref<8x256xbf16, #tpu.memory_space<vmem>>, vector<8x256xbf16>,
      %cst_375 = arith.constant 0.000000e+00 : f32
      %793 = vector.broadcast %cst_375 : f32 to vector<8x256xf32>
      %c0_376 = arith.constant 0 : index
      %c0_377 = arith.constant 0 : index
      %794 = vector.load %arg13[%c0_376, %c0_377] : memref<8x256xf32, #tpu.memory_space<vmem>>, vector<8x256xf32>
      tpu.vector_store %arg13[%c0_376, %c0_377], %793 {strides = array<i32>} : memref<8x256xf32, #tpu.memory_space<vmem>>, vector<8x256xf32>,
    } else {
    }
    %c0 = arith.constant 0 : index
    %c0_1 = arith.constant 0 : index
    %c0_2 = arith.constant 0 : index
    %3 = vector.load %arg2[%c0, %c0_1, %c0_2] : memref<8x8x128xbf16, #tpu.memory_space<vmem>>, vector<8x8x128xbf16>
    %4 = vector.shape_cast %3 : vector<8x8x128xbf16> to vector<64x128xbf16>
    %c0_3 = arith.constant 0 : index
    %c0_4 = arith.constant 0 : index
    %5 = vector.load %arg4[%c0_3, %c0_4] : memref<128x512xbf16, #tpu.memory_space<vmem>>, vector<128x512xbf16>
    %cst = arith.constant dense<0.000000e+00> : vector<64x512xf32>
    %6 = tpu.matmul %4, %5, %cst {dimension_numbers = #tpu.dot_dimension_numbers<[1], [0], [0], [1], [0, 0, 1, 1], [], []>} : vector<64x128xbf16>, vector<128x512xbf16>, vector<64x512xf32> -> vector<64x512xf32>
    %c0_5 = arith.constant 0 : index
    %c0_6 = arith.constant 0 : index
    %7 = vector.load %arg7[%c0_5, %c0_6] : memref<1x1024xf32, #tpu.memory_space<vmem>>, vector<1x512xf32>
    %8 = vector.broadcast %7 : vector<1x512xf32> to vector<64x512xf32>
    %9 = arith.addf %6, %8 : vector<64x512xf32>
    %10 = vector.shape_cast %9 : vector<64x512xf32> to vector<8x8x512xf32>
    %11 = arith.truncf %10 : vector<8x8x512xf32> to vector<8x8x512xbf16>
    %c0_7 = arith.constant 0 : index
    %c0_8 = arith.constant 0 : index
    %c0_9 = arith.constant 0 : index
    %12 = vector.load %arg10[%c0_7, %c0_8, %c0_9] : memref<8x8x512xbf16, #tpu.memory_space<vmem>>, vector<8x8x512xbf16>
    tpu.vector_store %arg10[%c0_7, %c0_8, %c0_9], %11 {strides = array<i32>} : memref<8x8x512xbf16, #tpu.memory_space<vmem>>, vector<8x8x512xbf16>,
    %c0_10 = arith.constant 0 : index
    %c0_11 = arith.constant 0 : index
    %c0_12 = arith.constant 0 : index
    %13 = vector.load %arg3[%c0_10, %c0_11, %c0_12] : memref<8x8x128xbf16, #tpu.memory_space<vmem>>, vector<8x8x128xbf16>
    %14 = vector.shape_cast %13 : vector<8x8x128xbf16> to vector<64x128xbf16>
    %c0_13 = arith.constant 0 : index
    %c0_14 = arith.constant 0 : index
    %15 = vector.load %arg5[%c0_13, %c0_14] : memref<128x512xbf16, #tpu.memory_space<vmem>>, vector<128x512xbf16>
    %cst_15 = arith.constant dense<0.000000e+00> : vector<64x512xf32>
    %16 = tpu.matmul %14, %15, %cst_15 {dimension_numbers = #tpu.dot_dimension_numbers<[1], [0], [0], [1], [0, 0, 1, 1], [], []>} : vector<64x128xbf16>, vector<128x512xbf16>, vector<64x512xf32> -> vector<64x512xf32>
    %c0_16 = arith.constant 0 : index
    %c512 = arith.constant 512 : index
    %17 = vector.load %arg7[%c0_16, %c512] : memref<1x1024xf32, #tpu.memory_space<vmem>>, vector<1x512xf32>
    %18 = vector.broadcast %17 : vector<1x512xf32> to vector<64x512xf32>
    %19 = arith.addf %16, %18 : vector<64x512xf32>
    %20 = vector.shape_cast %19 : vector<64x512xf32> to vector<8x8x512xf32>
    %21 = arith.truncf %20 : vector<8x8x512xf32> to vector<8x8x512xbf16>
    %c0_17 = arith.constant 0 : index
    %c0_18 = arith.constant 0 : index
    %c0_19 = arith.constant 0 : index
    %22 = vector.load %arg11[%c0_17, %c0_18, %c0_19] : memref<8x8x512xbf16, #tpu.memory_space<vmem>>, vector<8x8x512xbf16>
    tpu.vector_store %arg11[%c0_17, %c0_18, %c0_19], %21 {strides = array<i32>} : memref<8x8x512xbf16, #tpu.memory_space<vmem>>, vector<8x8x512xbf16>,
    %c0_i32_20 = arith.constant 0 : i32
    %c7_i32 = arith.constant 7 : i32
    %23 = arith.subi %c7_i32, %c0_i32_20 : i32
    %c0_21 = arith.constant 0 : index
    %c0_22 = arith.constant 0 : index
    %24 = vector.load %arg12[%c0_21, %c0_22] : memref<8x256xbf16, #tpu.memory_space<vmem>>, vector<8x256xbf16>
    %c0_23 = arith.constant 0 : index
    %c0_24 = arith.constant 0 : index
    %25 = vector.load %arg6[%c0_23, %c0_24] : memref<256x1024xbf16, #tpu.memory_space<vmem>>, vector<256x1024xbf16>
    %cst_25 = arith.constant dense<0.000000e+00> : vector<8x1024xf32>
    %26 = tpu.matmul %24, %25, %cst_25 {dimension_numbers = #tpu.dot_dimension_numbers<[1], [0], [0], [1], [0, 0, 1, 1], [], []>} : vector<8x256xbf16>, vector<256x1024xbf16>, vector<8x1024xf32> -> vector<8x1024xf32>
    %27 = vector.extract_strided_slice %26 {offsets = [0, 0], sizes = [8, 512], strides = [1, 1]} : vector<8x1024xf32> to vector<8x512xf32>
    %28 = vector.extract_strided_slice %26 {offsets = [0, 512], sizes = [8, 512], strides = [1, 1]} : vector<8x1024xf32> to vector<8x512xf32>
    %29 = arith.index_cast %c0_i32_20 : i32 to index
    %c0_26 = arith.constant 0 : index
    %c0_27 = arith.constant 0 : index
    %30 = vector.load %arg10[%29, %c0_26, %c0_27] : memref<8x8x512xbf16, #tpu.memory_space<vmem>>, vector<1x8x512xbf16>
    %31 = vector.shape_cast %30 : vector<1x8x512xbf16> to vector<8x512xbf16>
    %32 = arith.extf %31 : vector<8x512xbf16> to vector<8x512xf32>
    %33 = arith.addf %32, %27 : vector<8x512xf32>
    %34 = arith.index_cast %23 : i32 to index
    %c0_28 = arith.constant 0 : index
    %c0_29 = arith.constant 0 : index
    %35 = vector.load %arg11[%34, %c0_28, %c0_29] : memref<8x8x512xbf16, #tpu.memory_space<vmem>>, vector<1x8x512xbf16>
    %36 = vector.shape_cast %35 : vector<1x8x512xbf16> to vector<8x512xbf16>
    %37 = arith.extf %36 : vector<8x512xbf16> to vector<8x512xf32>
    %38 = arith.addf %37, %28 : vector<8x512xf32>
    %c0_30 = arith.constant 0 : index
    %c0_31 = arith.constant 0 : index
    %39 = vector.load %arg13[%c0_30, %c0_31] : memref<8x256xf32, #tpu.memory_space<vmem>>, vector<8x128xf32>
    %40 = vector.extract_strided_slice %33 {offsets = [0, 0], sizes = [8, 128], strides = [1, 1]} : vector<8x512xf32> to vector<8x128xf32>
    %cst_32 = arith.constant 5.000000e-01 : f32
    %41 = vector.broadcast %cst_32 : f32 to vector<8x128xf32>
    %42 = arith.mulf %41, %40 : vector<8x128xf32>
    %43 = math.tanh %42 : vector<8x128xf32>
    %cst_33 = arith.constant 5.000000e-01 : f32
    %44 = vector.broadcast %cst_33 : f32 to vector<8x128xf32>
    %45 = arith.mulf %44, %43 : vector<8x128xf32>
    %cst_34 = arith.constant 5.000000e-01 : f32
    %46 = vector.broadcast %cst_34 : f32 to vector<8x128xf32>
    %47 = arith.addf %45, %46 : vector<8x128xf32>
    %48 = vector.extract_strided_slice %33 {offsets = [0, 128], sizes = [8, 128], strides = [1, 1]} : vector<8x512xf32> to vector<8x128xf32>
    %cst_35 = arith.constant 5.000000e-01 : f32
    %49 = vector.broadcast %cst_35 : f32 to vector<8x128xf32>
    %50 = arith.mulf %49, %48 : vector<8x128xf32>
    %51 = math.tanh %50 : vector<8x128xf32>
    %cst_36 = arith.constant 5.000000e-01 : f32
    %52 = vector.broadcast %cst_36 : f32 to vector<8x128xf32>
    %53 = arith.mulf %52, %51 : vector<8x128xf32>
    %cst_37 = arith.constant 5.000000e-01 : f32
    %54 = vector.broadcast %cst_37 : f32 to vector<8x128xf32>
    %55 = arith.addf %53, %54 : vector<8x128xf32>
    %56 = vector.extract_strided_slice %33 {offsets = [0, 256], sizes = [8, 128], strides = [1, 1]} : vector<8x512xf32> to vector<8x128xf32>
    %57 = math.tanh %56 : vector<8x128xf32>
    %58 = vector.extract_strided_slice %33 {offsets = [0, 384], sizes = [8, 128], strides = [1, 1]} : vector<8x512xf32> to vector<8x128xf32>
    %cst_38 = arith.constant 5.000000e-01 : f32
    %59 = vector.broadcast %cst_38 : f32 to vector<8x128xf32>
    %60 = arith.mulf %59, %58 : vector<8x128xf32>
    %61 = math.tanh %60 : vector<8x128xf32>
    %cst_39 = arith.constant 5.000000e-01 : f32
    %62 = vector.broadcast %cst_39 : f32 to vector<8x128xf32>
    %63 = arith.mulf %62, %61 : vector<8x128xf32>
    %cst_40 = arith.constant 5.000000e-01 : f32
    %64 = vector.broadcast %cst_40 : f32 to vector<8x128xf32>
    %65 = arith.addf %63, %64 : vector<8x128xf32>
    %66 = arith.mulf %55, %39 : vector<8x128xf32>
    %67 = arith.mulf %47, %57 : vector<8x128xf32>
    %68 = arith.addf %66, %67 : vector<8x128xf32>
    %69 = math.tanh %68 : vector<8x128xf32>
    %70 = arith.mulf %65, %69 : vector<8x128xf32>
    %c0_41 = arith.constant 0 : index
    %c128 = arith.constant 128 : index
    %71 = vector.load %arg13[%c0_41, %c128] : memref<8x256xf32, #tpu.memory_space<vmem>>, vector<8x128xf32>
    %72 = vector.extract_strided_slice %38 {offsets = [0, 0], sizes = [8, 128], strides = [1, 1]} : vector<8x512xf32> to vector<8x128xf32>
    %cst_42 = arith.constant 5.000000e-01 : f32
    %73 = vector.broadcast %cst_42 : f32 to vector<8x128xf32>
    %74 = arith.mulf %73, %72 : vector<8x128xf32>
    %75 = math.tanh %74 : vector<8x128xf32>
    %cst_43 = arith.constant 5.000000e-01 : f32
    %76 = vector.broadcast %cst_43 : f32 to vector<8x128xf32>
    %77 = arith.mulf %76, %75 : vector<8x128xf32>
    %cst_44 = arith.constant 5.000000e-01 : f32
    %78 = vector.broadcast %cst_44 : f32 to vector<8x128xf32>
    %79 = arith.addf %77, %78 : vector<8x128xf32>
    %80 = vector.extract_strided_slice %38 {offsets = [0, 128], sizes = [8, 128], strides = [1, 1]} : vector<8x512xf32> to vector<8x128xf32>
    %cst_45 = arith.constant 5.000000e-01 : f32
    %81 = vector.broadcast %cst_45 : f32 to vector<8x128xf32>
    %82 = arith.mulf %81, %80 : vector<8x128xf32>
    %83 = math.tanh %82 : vector<8x128xf32>
    %cst_46 = arith.constant 5.000000e-01 : f32
    %84 = vector.broadcast %cst_46 : f32 to vector<8x128xf32>
    %85 = arith.mulf %84, %83 : vector<8x128xf32>
    %cst_47 = arith.constant 5.000000e-01 : f32
    %86 = vector.broadcast %cst_47 : f32 to vector<8x128xf32>
    %87 = arith.addf %85, %86 : vector<8x128xf32>
    %88 = vector.extract_strided_slice %38 {offsets = [0, 256], sizes = [8, 128], strides = [1, 1]} : vector<8x512xf32> to vector<8x128xf32>
    %89 = math.tanh %88 : vector<8x128xf32>
    %90 = vector.extract_strided_slice %38 {offsets = [0, 384], sizes = [8, 128], strides = [1, 1]} : vector<8x512xf32> to vector<8x128xf32>
    %cst_48 = arith.constant 5.000000e-01 : f32
    %91 = vector.broadcast %cst_48 : f32 to vector<8x128xf32>
    %92 = arith.mulf %91, %90 : vector<8x128xf32>
    %93 = math.tanh %92 : vector<8x128xf32>
    %cst_49 = arith.constant 5.000000e-01 : f32
    %94 = vector.broadcast %cst_49 : f32 to vector<8x128xf32>
    %95 = arith.mulf %94, %93 : vector<8x128xf32>
    %cst_50 = arith.constant 5.000000e-01 : f32
    %96 = vector.broadcast %cst_50 : f32 to vector<8x128xf32>
    %97 = arith.addf %95, %96 : vector<8x128xf32>
    %98 = arith.mulf %87, %71 : vector<8x128xf32>
    %99 = arith.mulf %79, %89 : vector<8x128xf32>
    %100 = arith.addf %98, %99 : vector<8x128xf32>
    %101 = math.tanh %100 : vector<8x128xf32>
    %102 = arith.mulf %97, %101 : vector<8x128xf32>
    %103 = arith.truncf %70 : vector<8x128xf32> to vector<8x128xbf16>
    %c0_51 = arith.constant 0 : index
    %c0_52 = arith.constant 0 : index
    %104 = vector.load %arg12[%c0_51, %c0_52] : memref<8x256xbf16, #tpu.memory_space<vmem>>, vector<8x128xbf16>
    tpu.vector_store %arg12[%c0_51, %c0_52], %103 {strides = array<i32>} : memref<8x256xbf16, #tpu.memory_space<vmem>>, vector<8x128xbf16>,
    %105 = arith.truncf %102 : vector<8x128xf32> to vector<8x128xbf16>
    %c0_53 = arith.constant 0 : index
    %c128_54 = arith.constant 128 : index
    %106 = vector.load %arg12[%c0_53, %c128_54] : memref<8x256xbf16, #tpu.memory_space<vmem>>, vector<8x128xbf16>
    tpu.vector_store %arg12[%c0_53, %c128_54], %105 {strides = array<i32>} : memref<8x256xbf16, #tpu.memory_space<vmem>>, vector<8x128xbf16>,
    %c0_55 = arith.constant 0 : index
    %c0_56 = arith.constant 0 : index
    %107 = vector.load %arg13[%c0_55, %c0_56] : memref<8x256xf32, #tpu.memory_space<vmem>>, vector<8x128xf32>
    tpu.vector_store %arg13[%c0_55, %c0_56], %68 {strides = array<i32>} : memref<8x256xf32, #tpu.memory_space<vmem>>, vector<8x128xf32>,
    %c0_57 = arith.constant 0 : index
    %c128_58 = arith.constant 128 : index
    %108 = vector.load %arg13[%c0_57, %c128_58] : memref<8x256xf32, #tpu.memory_space<vmem>>, vector<8x128xf32>
    tpu.vector_store %arg13[%c0_57, %c128_58], %100 {strides = array<i32>} : memref<8x256xf32, #tpu.memory_space<vmem>>, vector<8x128xf32>,
    %109 = arith.truncf %70 : vector<8x128xf32> to vector<8x128xbf16>
    %110 = arith.index_cast %c0_i32_20 : i32 to index
    %c0_59 = arith.constant 0 : index
    %c0_60 = arith.constant 0 : index
    %111 = vector.load %arg8[%110, %c0_59, %c0_60] : memref<8x8x128xbf16, #tpu.memory_space<vmem>>, vector<1x8x128xbf16>
    %112 = vector.shape_cast %111 : vector<1x8x128xbf16> to vector<8x128xbf16>
    %113 = vector.shape_cast %109 : vector<8x128xbf16> to vector<1x8x128xbf16>
    tpu.vector_store %arg8[%110, %c0_59, %c0_60], %113 {strides = array<i32>} : memref<8x8x128xbf16, #tpu.memory_space<vmem>>, vector<1x8x128xbf16>,
    %114 = arith.truncf %102 : vector<8x128xf32> to vector<8x128xbf16>
    %115 = arith.index_cast %23 : i32 to index
    %c0_61 = arith.constant 0 : index
    %c0_62 = arith.constant 0 : index
    %116 = vector.load %arg9[%115, %c0_61, %c0_62] : memref<8x8x128xbf16, #tpu.memory_space<vmem>>, vector<1x8x128xbf16>
    %117 = vector.shape_cast %116 : vector<1x8x128xbf16> to vector<8x128xbf16>
    %118 = vector.shape_cast %114 : vector<8x128xbf16> to vector<1x8x128xbf16>
    tpu.vector_store %arg9[%115, %c0_61, %c0_62], %118 {strides = array<i32>} : memref<8x8x128xbf16, #tpu.memory_space<vmem>>, vector<1x8x128xbf16>,
    %c1_i32 = arith.constant 1 : i32
    %c7_i32_63 = arith.constant 7 : i32
    %119 = arith.subi %c7_i32_63, %c1_i32 : i32
    %c0_64 = arith.constant 0 : index
    %c0_65 = arith.constant 0 : index
    %120 = vector.load %arg12[%c0_64, %c0_65] : memref<8x256xbf16, #tpu.memory_space<vmem>>, vector<8x256xbf16>
    %c0_66 = arith.constant 0 : index
    %c0_67 = arith.constant 0 : index
    %121 = vector.load %arg6[%c0_66, %c0_67] : memref<256x1024xbf16, #tpu.memory_space<vmem>>, vector<256x1024xbf16>
    %cst_68 = arith.constant dense<0.000000e+00> : vector<8x1024xf32>
    %122 = tpu.matmul %120, %121, %cst_68 {dimension_numbers = #tpu.dot_dimension_numbers<[1], [0], [0], [1], [0, 0, 1, 1], [], []>} : vector<8x256xbf16>, vector<256x1024xbf16>, vector<8x1024xf32> -> vector<8x1024xf32>
    %123 = vector.extract_strided_slice %122 {offsets = [0, 0], sizes = [8, 512], strides = [1, 1]} : vector<8x1024xf32> to vector<8x512xf32>
    %124 = vector.extract_strided_slice %122 {offsets = [0, 512], sizes = [8, 512], strides = [1, 1]} : vector<8x1024xf32> to vector<8x512xf32>
    %125 = arith.index_cast %c1_i32 : i32 to index
    %c0_69 = arith.constant 0 : index
    %c0_70 = arith.constant 0 : index
    %126 = vector.load %arg10[%125, %c0_69, %c0_70] : memref<8x8x512xbf16, #tpu.memory_space<vmem>>, vector<1x8x512xbf16>
    %127 = vector.shape_cast %126 : vector<1x8x512xbf16> to vector<8x512xbf16>
    %128 = arith.extf %127 : vector<8x512xbf16> to vector<8x512xf32>
    %129 = arith.addf %128, %123 : vector<8x512xf32>
    %130 = arith.index_cast %119 : i32 to index
    %c0_71 = arith.constant 0 : index
    %c0_72 = arith.constant 0 : index
    %131 = vector.load %arg11[%130, %c0_71, %c0_72] : memref<8x8x512xbf16, #tpu.memory_space<vmem>>, vector<1x8x512xbf16>
    %132 = vector.shape_cast %131 : vector<1x8x512xbf16> to vector<8x512xbf16>
    %133 = arith.extf %132 : vector<8x512xbf16> to vector<8x512xf32>
    %134 = arith.addf %133, %124 : vector<8x512xf32>
    %c0_73 = arith.constant 0 : index
    %c0_74 = arith.constant 0 : index
    %135 = vector.load %arg13[%c0_73, %c0_74] : memref<8x256xf32, #tpu.memory_space<vmem>>, vector<8x128xf32>
    %136 = vector.extract_strided_slice %129 {offsets = [0, 0], sizes = [8, 128], strides = [1, 1]} : vector<8x512xf32> to vector<8x128xf32>
    %cst_75 = arith.constant 5.000000e-01 : f32
    %137 = vector.broadcast %cst_75 : f32 to vector<8x128xf32>
    %138 = arith.mulf %137, %136 : vector<8x128xf32>
    %139 = math.tanh %138 : vector<8x128xf32>
    %cst_76 = arith.constant 5.000000e-01 : f32
    %140 = vector.broadcast %cst_76 : f32 to vector<8x128xf32>
    %141 = arith.mulf %140, %139 : vector<8x128xf32>
    %cst_77 = arith.constant 5.000000e-01 : f32
    %142 = vector.broadcast %cst_77 : f32 to vector<8x128xf32>
    %143 = arith.addf %141, %142 : vector<8x128xf32>
    %144 = vector.extract_strided_slice %129 {offsets = [0, 128], sizes = [8, 128], strides = [1, 1]} : vector<8x512xf32> to vector<8x128xf32>
    %cst_78 = arith.constant 5.000000e-01 : f32
    %145 = vector.broadcast %cst_78 : f32 to vector<8x128xf32>
    %146 = arith.mulf %145, %144 : vector<8x128xf32>
    %147 = math.tanh %146 : vector<8x128xf32>
    %cst_79 = arith.constant 5.000000e-01 : f32
    %148 = vector.broadcast %cst_79 : f32 to vector<8x128xf32>
    %149 = arith.mulf %148, %147 : vector<8x128xf32>
    %cst_80 = arith.constant 5.000000e-01 : f32
    %150 = vector.broadcast %cst_80 : f32 to vector<8x128xf32>
    %151 = arith.addf %149, %150 : vector<8x128xf32>
    %152 = vector.extract_strided_slice %129 {offsets = [0, 256], sizes = [8, 128], strides = [1, 1]} : vector<8x512xf32> to vector<8x128xf32>
    %153 = math.tanh %152 : vector<8x128xf32>
    %154 = vector.extract_strided_slice %129 {offsets = [0, 384], sizes = [8, 128], strides = [1, 1]} : vector<8x512xf32> to vector<8x128xf32>
    %cst_81 = arith.constant 5.000000e-01 : f32
    %155 = vector.broadcast %cst_81 : f32 to vector<8x128xf32>
    %156 = arith.mulf %155, %154 : vector<8x128xf32>
    %157 = math.tanh %156 : vector<8x128xf32>
    %cst_82 = arith.constant 5.000000e-01 : f32
    %158 = vector.broadcast %cst_82 : f32 to vector<8x128xf32>
    %159 = arith.mulf %158, %157 : vector<8x128xf32>
    %cst_83 = arith.constant 5.000000e-01 : f32
    %160 = vector.broadcast %cst_83 : f32 to vector<8x128xf32>
    %161 = arith.addf %159, %160 : vector<8x128xf32>
    %162 = arith.mulf %151, %135 : vector<8x128xf32>
    %163 = arith.mulf %143, %153 : vector<8x128xf32>
    %164 = arith.addf %162, %163 : vector<8x128xf32>
    %165 = math.tanh %164 : vector<8x128xf32>
    %166 = arith.mulf %161, %165 : vector<8x128xf32>
    %c0_84 = arith.constant 0 : index
    %c128_85 = arith.constant 128 : index
    %167 = vector.load %arg13[%c0_84, %c128_85] : memref<8x256xf32, #tpu.memory_space<vmem>>, vector<8x128xf32>
    %168 = vector.extract_strided_slice %134 {offsets = [0, 0], sizes = [8, 128], strides = [1, 1]} : vector<8x512xf32> to vector<8x128xf32>
    %cst_86 = arith.constant 5.000000e-01 : f32
    %169 = vector.broadcast %cst_86 : f32 to vector<8x128xf32>
    %170 = arith.mulf %169, %168 : vector<8x128xf32>
    %171 = math.tanh %170 : vector<8x128xf32>
    %cst_87 = arith.constant 5.000000e-01 : f32
    %172 = vector.broadcast %cst_87 : f32 to vector<8x128xf32>
    %173 = arith.mulf %172, %171 : vector<8x128xf32>
    %cst_88 = arith.constant 5.000000e-01 : f32
    %174 = vector.broadcast %cst_88 : f32 to vector<8x128xf32>
    %175 = arith.addf %173, %174 : vector<8x128xf32>
    %176 = vector.extract_strided_slice %134 {offsets = [0, 128], sizes = [8, 128], strides = [1, 1]} : vector<8x512xf32> to vector<8x128xf32>
    %cst_89 = arith.constant 5.000000e-01 : f32
    %177 = vector.broadcast %cst_89 : f32 to vector<8x128xf32>
    %178 = arith.mulf %177, %176 : vector<8x128xf32>
    %179 = math.tanh %178 : vector<8x128xf32>
    %cst_90 = arith.constant 5.000000e-01 : f32
    %180 = vector.broadcast %cst_90 : f32 to vector<8x128xf32>
    %181 = arith.mulf %180, %179 : vector<8x128xf32>
    %cst_91 = arith.constant 5.000000e-01 : f32
    %182 = vector.broadcast %cst_91 : f32 to vector<8x128xf32>
    %183 = arith.addf %181, %182 : vector<8x128xf32>
    %184 = vector.extract_strided_slice %134 {offsets = [0, 256], sizes = [8, 128], strides = [1, 1]} : vector<8x512xf32> to vector<8x128xf32>
    %185 = math.tanh %184 : vector<8x128xf32>
    %186 = vector.extract_strided_slice %134 {offsets = [0, 384], sizes = [8, 128], strides = [1, 1]} : vector<8x512xf32> to vector<8x128xf32>
    %cst_92 = arith.constant 5.000000e-01 : f32
    %187 = vector.broadcast %cst_92 : f32 to vector<8x128xf32>
    %188 = arith.mulf %187, %186 : vector<8x128xf32>
    %189 = math.tanh %188 : vector<8x128xf32>
    %cst_93 = arith.constant 5.000000e-01 : f32
    %190 = vector.broadcast %cst_93 : f32 to vector<8x128xf32>
    %191 = arith.mulf %190, %189 : vector<8x128xf32>
    %cst_94 = arith.constant 5.000000e-01 : f32
    %192 = vector.broadcast %cst_94 : f32 to vector<8x128xf32>
    %193 = arith.addf %191, %192 : vector<8x128xf32>
    %194 = arith.mulf %183, %167 : vector<8x128xf32>
    %195 = arith.mulf %175, %185 : vector<8x128xf32>
    %196 = arith.addf %194, %195 : vector<8x128xf32>
    %197 = math.tanh %196 : vector<8x128xf32>
    %198 = arith.mulf %193, %197 : vector<8x128xf32>
    %199 = arith.truncf %166 : vector<8x128xf32> to vector<8x128xbf16>
    %c0_95 = arith.constant 0 : index
    %c0_96 = arith.constant 0 : index
    %200 = vector.load %arg12[%c0_95, %c0_96] : memref<8x256xbf16, #tpu.memory_space<vmem>>, vector<8x128xbf16>
    tpu.vector_store %arg12[%c0_95, %c0_96], %199 {strides = array<i32>} : memref<8x256xbf16, #tpu.memory_space<vmem>>, vector<8x128xbf16>,
    %201 = arith.truncf %198 : vector<8x128xf32> to vector<8x128xbf16>
    %c0_97 = arith.constant 0 : index
    %c128_98 = arith.constant 128 : index
    %202 = vector.load %arg12[%c0_97, %c128_98] : memref<8x256xbf16, #tpu.memory_space<vmem>>, vector<8x128xbf16>
    tpu.vector_store %arg12[%c0_97, %c128_98], %201 {strides = array<i32>} : memref<8x256xbf16, #tpu.memory_space<vmem>>, vector<8x128xbf16>,
    %c0_99 = arith.constant 0 : index
    %c0_100 = arith.constant 0 : index
    %203 = vector.load %arg13[%c0_99, %c0_100] : memref<8x256xf32, #tpu.memory_space<vmem>>, vector<8x128xf32>
    tpu.vector_store %arg13[%c0_99, %c0_100], %164 {strides = array<i32>} : memref<8x256xf32, #tpu.memory_space<vmem>>, vector<8x128xf32>,
    %c0_101 = arith.constant 0 : index
    %c128_102 = arith.constant 128 : index
    %204 = vector.load %arg13[%c0_101, %c128_102] : memref<8x256xf32, #tpu.memory_space<vmem>>, vector<8x128xf32>
    tpu.vector_store %arg13[%c0_101, %c128_102], %196 {strides = array<i32>} : memref<8x256xf32, #tpu.memory_space<vmem>>, vector<8x128xf32>,
    %205 = arith.truncf %166 : vector<8x128xf32> to vector<8x128xbf16>
    %206 = arith.index_cast %c1_i32 : i32 to index
    %c0_103 = arith.constant 0 : index
    %c0_104 = arith.constant 0 : index
    %207 = vector.load %arg8[%206, %c0_103, %c0_104] : memref<8x8x128xbf16, #tpu.memory_space<vmem>>, vector<1x8x128xbf16>
    %208 = vector.shape_cast %207 : vector<1x8x128xbf16> to vector<8x128xbf16>
    %209 = vector.shape_cast %205 : vector<8x128xbf16> to vector<1x8x128xbf16>
    tpu.vector_store %arg8[%206, %c0_103, %c0_104], %209 {strides = array<i32>} : memref<8x8x128xbf16, #tpu.memory_space<vmem>>, vector<1x8x128xbf16>,
    %210 = arith.truncf %198 : vector<8x128xf32> to vector<8x128xbf16>
    %211 = arith.index_cast %119 : i32 to index
    %c0_105 = arith.constant 0 : index
    %c0_106 = arith.constant 0 : index
    %212 = vector.load %arg9[%211, %c0_105, %c0_106] : memref<8x8x128xbf16, #tpu.memory_space<vmem>>, vector<1x8x128xbf16>
    %213 = vector.shape_cast %212 : vector<1x8x128xbf16> to vector<8x128xbf16>
    %214 = vector.shape_cast %210 : vector<8x128xbf16> to vector<1x8x128xbf16>
    tpu.vector_store %arg9[%211, %c0_105, %c0_106], %214 {strides = array<i32>} : memref<8x8x128xbf16, #tpu.memory_space<vmem>>, vector<1x8x128xbf16>,
    %c2_i32 = arith.constant 2 : i32
    %c7_i32_107 = arith.constant 7 : i32
    %215 = arith.subi %c7_i32_107, %c2_i32 : i32
    %c0_108 = arith.constant 0 : index
    %c0_109 = arith.constant 0 : index
    %216 = vector.load %arg12[%c0_108, %c0_109] : memref<8x256xbf16, #tpu.memory_space<vmem>>, vector<8x256xbf16>
    %c0_110 = arith.constant 0 : index
    %c0_111 = arith.constant 0 : index
    %217 = vector.load %arg6[%c0_110, %c0_111] : memref<256x1024xbf16, #tpu.memory_space<vmem>>, vector<256x1024xbf16>
    %cst_112 = arith.constant dense<0.000000e+00> : vector<8x1024xf32>
    %218 = tpu.matmul %216, %217, %cst_112 {dimension_numbers = #tpu.dot_dimension_numbers<[1], [0], [0], [1], [0, 0, 1, 1], [], []>} : vector<8x256xbf16>, vector<256x1024xbf16>, vector<8x1024xf32> -> vector<8x1024xf32>
    %219 = vector.extract_strided_slice %218 {offsets = [0, 0], sizes = [8, 512], strides = [1, 1]} : vector<8x1024xf32> to vector<8x512xf32>
    %220 = vector.extract_strided_slice %218 {offsets = [0, 512], sizes = [8, 512], strides = [1, 1]} : vector<8x1024xf32> to vector<8x512xf32>
    %221 = arith.index_cast %c2_i32 : i32 to index
    %c0_113 = arith.constant 0 : index
    %c0_114 = arith.constant 0 : index
    %222 = vector.load %arg10[%221, %c0_113, %c0_114] : memref<8x8x512xbf16, #tpu.memory_space<vmem>>, vector<1x8x512xbf16>
    %223 = vector.shape_cast %222 : vector<1x8x512xbf16> to vector<8x512xbf16>
    %224 = arith.extf %223 : vector<8x512xbf16> to vector<8x512xf32>
    %225 = arith.addf %224, %219 : vector<8x512xf32>
    %226 = arith.index_cast %215 : i32 to index
    %c0_115 = arith.constant 0 : index
    %c0_116 = arith.constant 0 : index
    %227 = vector.load %arg11[%226, %c0_115, %c0_116] : memref<8x8x512xbf16, #tpu.memory_space<vmem>>, vector<1x8x512xbf16>
    %228 = vector.shape_cast %227 : vector<1x8x512xbf16> to vector<8x512xbf16>
    %229 = arith.extf %228 : vector<8x512xbf16> to vector<8x512xf32>
    %230 = arith.addf %229, %220 : vector<8x512xf32>
    %c0_117 = arith.constant 0 : index
    %c0_118 = arith.constant 0 : index
    %231 = vector.load %arg13[%c0_117, %c0_118] : memref<8x256xf32, #tpu.memory_space<vmem>>, vector<8x128xf32>
    %232 = vector.extract_strided_slice %225 {offsets = [0, 0], sizes = [8, 128], strides = [1, 1]} : vector<8x512xf32> to vector<8x128xf32>
    %cst_119 = arith.constant 5.000000e-01 : f32
    %233 = vector.broadcast %cst_119 : f32 to vector<8x128xf32>
    %234 = arith.mulf %233, %232 : vector<8x128xf32>
    %235 = math.tanh %234 : vector<8x128xf32>
    %cst_120 = arith.constant 5.000000e-01 : f32
    %236 = vector.broadcast %cst_120 : f32 to vector<8x128xf32>
    %237 = arith.mulf %236, %235 : vector<8x128xf32>
    %cst_121 = arith.constant 5.000000e-01 : f32
    %238 = vector.broadcast %cst_121 : f32 to vector<8x128xf32>
    %239 = arith.addf %237, %238 : vector<8x128xf32>
    %240 = vector.extract_strided_slice %225 {offsets = [0, 128], sizes = [8, 128], strides = [1, 1]} : vector<8x512xf32> to vector<8x128xf32>
    %cst_122 = arith.constant 5.000000e-01 : f32
    %241 = vector.broadcast %cst_122 : f32 to vector<8x128xf32>
    %242 = arith.mulf %241, %240 : vector<8x128xf32>
    %243 = math.tanh %242 : vector<8x128xf32>
    %cst_123 = arith.constant 5.000000e-01 : f32
    %244 = vector.broadcast %cst_123 : f32 to vector<8x128xf32>
    %245 = arith.mulf %244, %243 : vector<8x128xf32>
    %cst_124 = arith.constant 5.000000e-01 : f32
    %246 = vector.broadcast %cst_124 : f32 to vector<8x128xf32>
    %247 = arith.addf %245, %246 : vector<8x128xf32>
    %248 = vector.extract_strided_slice %225 {offsets = [0, 256], sizes = [8, 128], strides = [1, 1]} : vector<8x512xf32> to vector<8x128xf32>
    %249 = math.tanh %248 : vector<8x128xf32>
    %250 = vector.extract_strided_slice %225 {offsets = [0, 384], sizes = [8, 128], strides = [1, 1]} : vector<8x512xf32> to vector<8x128xf32>
    %cst_125 = arith.constant 5.000000e-01 : f32
    %251 = vector.broadcast %cst_125 : f32 to vector<8x128xf32>
    %252 = arith.mulf %251, %250 : vector<8x128xf32>
    %253 = math.tanh %252 : vector<8x128xf32>
    %cst_126 = arith.constant 5.000000e-01 : f32
    %254 = vector.broadcast %cst_126 : f32 to vector<8x128xf32>
    %255 = arith.mulf %254, %253 : vector<8x128xf32>
    %cst_127 = arith.constant 5.000000e-01 : f32
    %256 = vector.broadcast %cst_127 : f32 to vector<8x128xf32>
    %257 = arith.addf %255, %256 : vector<8x128xf32>
    %258 = arith.mulf %247, %231 : vector<8x128xf32>
    %259 = arith.mulf %239, %249 : vector<8x128xf32>
    %260 = arith.addf %258, %259 : vector<8x128xf32>
    %261 = math.tanh %260 : vector<8x128xf32>
    %262 = arith.mulf %257, %261 : vector<8x128xf32>
    %c0_128 = arith.constant 0 : index
    %c128_129 = arith.constant 128 : index
    %263 = vector.load %arg13[%c0_128, %c128_129] : memref<8x256xf32, #tpu.memory_space<vmem>>, vector<8x128xf32>
    %264 = vector.extract_strided_slice %230 {offsets = [0, 0], sizes = [8, 128], strides = [1, 1]} : vector<8x512xf32> to vector<8x128xf32>
    %cst_130 = arith.constant 5.000000e-01 : f32
    %265 = vector.broadcast %cst_130 : f32 to vector<8x128xf32>
    %266 = arith.mulf %265, %264 : vector<8x128xf32>
    %267 = math.tanh %266 : vector<8x128xf32>
    %cst_131 = arith.constant 5.000000e-01 : f32
    %268 = vector.broadcast %cst_131 : f32 to vector<8x128xf32>
    %269 = arith.mulf %268, %267 : vector<8x128xf32>
    %cst_132 = arith.constant 5.000000e-01 : f32
    %270 = vector.broadcast %cst_132 : f32 to vector<8x128xf32>
    %271 = arith.addf %269, %270 : vector<8x128xf32>
    %272 = vector.extract_strided_slice %230 {offsets = [0, 128], sizes = [8, 128], strides = [1, 1]} : vector<8x512xf32> to vector<8x128xf32>
    %cst_133 = arith.constant 5.000000e-01 : f32
    %273 = vector.broadcast %cst_133 : f32 to vector<8x128xf32>
    %274 = arith.mulf %273, %272 : vector<8x128xf32>
    %275 = math.tanh %274 : vector<8x128xf32>
    %cst_134 = arith.constant 5.000000e-01 : f32
    %276 = vector.broadcast %cst_134 : f32 to vector<8x128xf32>
    %277 = arith.mulf %276, %275 : vector<8x128xf32>
    %cst_135 = arith.constant 5.000000e-01 : f32
    %278 = vector.broadcast %cst_135 : f32 to vector<8x128xf32>
    %279 = arith.addf %277, %278 : vector<8x128xf32>
    %280 = vector.extract_strided_slice %230 {offsets = [0, 256], sizes = [8, 128], strides = [1, 1]} : vector<8x512xf32> to vector<8x128xf32>
    %281 = math.tanh %280 : vector<8x128xf32>
    %282 = vector.extract_strided_slice %230 {offsets = [0, 384], sizes = [8, 128], strides = [1, 1]} : vector<8x512xf32> to vector<8x128xf32>
    %cst_136 = arith.constant 5.000000e-01 : f32
    %283 = vector.broadcast %cst_136 : f32 to vector<8x128xf32>
    %284 = arith.mulf %283, %282 : vector<8x128xf32>
    %285 = math.tanh %284 : vector<8x128xf32>
    %cst_137 = arith.constant 5.000000e-01 : f32
    %286 = vector.broadcast %cst_137 : f32 to vector<8x128xf32>
    %287 = arith.mulf %286, %285 : vector<8x128xf32>
    %cst_138 = arith.constant 5.000000e-01 : f32
    %288 = vector.broadcast %cst_138 : f32 to vector<8x128xf32>
    %289 = arith.addf %287, %288 : vector<8x128xf32>
    %290 = arith.mulf %279, %263 : vector<8x128xf32>
    %291 = arith.mulf %271, %281 : vector<8x128xf32>
    %292 = arith.addf %290, %291 : vector<8x128xf32>
    %293 = math.tanh %292 : vector<8x128xf32>
    %294 = arith.mulf %289, %293 : vector<8x128xf32>
    %295 = arith.truncf %262 : vector<8x128xf32> to vector<8x128xbf16>
    %c0_139 = arith.constant 0 : index
    %c0_140 = arith.constant 0 : index
    %296 = vector.load %arg12[%c0_139, %c0_140] : memref<8x256xbf16, #tpu.memory_space<vmem>>, vector<8x128xbf16>
    tpu.vector_store %arg12[%c0_139, %c0_140], %295 {strides = array<i32>} : memref<8x256xbf16, #tpu.memory_space<vmem>>, vector<8x128xbf16>,
    %297 = arith.truncf %294 : vector<8x128xf32> to vector<8x128xbf16>
    %c0_141 = arith.constant 0 : index
    %c128_142 = arith.constant 128 : index
    %298 = vector.load %arg12[%c0_141, %c128_142] : memref<8x256xbf16, #tpu.memory_space<vmem>>, vector<8x128xbf16>
    tpu.vector_store %arg12[%c0_141, %c128_142], %297 {strides = array<i32>} : memref<8x256xbf16, #tpu.memory_space<vmem>>, vector<8x128xbf16>,
    %c0_143 = arith.constant 0 : index
    %c0_144 = arith.constant 0 : index
    %299 = vector.load %arg13[%c0_143, %c0_144] : memref<8x256xf32, #tpu.memory_space<vmem>>, vector<8x128xf32>
    tpu.vector_store %arg13[%c0_143, %c0_144], %260 {strides = array<i32>} : memref<8x256xf32, #tpu.memory_space<vmem>>, vector<8x128xf32>,
    %c0_145 = arith.constant 0 : index
    %c128_146 = arith.constant 128 : index
    %300 = vector.load %arg13[%c0_145, %c128_146] : memref<8x256xf32, #tpu.memory_space<vmem>>, vector<8x128xf32>
    tpu.vector_store %arg13[%c0_145, %c128_146], %292 {strides = array<i32>} : memref<8x256xf32, #tpu.memory_space<vmem>>, vector<8x128xf32>,
    %301 = arith.truncf %262 : vector<8x128xf32> to vector<8x128xbf16>
    %302 = arith.index_cast %c2_i32 : i32 to index
    %c0_147 = arith.constant 0 : index
    %c0_148 = arith.constant 0 : index
    %303 = vector.load %arg8[%302, %c0_147, %c0_148] : memref<8x8x128xbf16, #tpu.memory_space<vmem>>, vector<1x8x128xbf16>
    %304 = vector.shape_cast %303 : vector<1x8x128xbf16> to vector<8x128xbf16>
    %305 = vector.shape_cast %301 : vector<8x128xbf16> to vector<1x8x128xbf16>
    tpu.vector_store %arg8[%302, %c0_147, %c0_148], %305 {strides = array<i32>} : memref<8x8x128xbf16, #tpu.memory_space<vmem>>, vector<1x8x128xbf16>,
    %306 = arith.truncf %294 : vector<8x128xf32> to vector<8x128xbf16>
    %307 = arith.index_cast %215 : i32 to index
    %c0_149 = arith.constant 0 : index
    %c0_150 = arith.constant 0 : index
    %308 = vector.load %arg9[%307, %c0_149, %c0_150] : memref<8x8x128xbf16, #tpu.memory_space<vmem>>, vector<1x8x128xbf16>
    %309 = vector.shape_cast %308 : vector<1x8x128xbf16> to vector<8x128xbf16>
    %310 = vector.shape_cast %306 : vector<8x128xbf16> to vector<1x8x128xbf16>
    tpu.vector_store %arg9[%307, %c0_149, %c0_150], %310 {strides = array<i32>} : memref<8x8x128xbf16, #tpu.memory_space<vmem>>, vector<1x8x128xbf16>,
    %c3_i32 = arith.constant 3 : i32
    %c7_i32_151 = arith.constant 7 : i32
    %311 = arith.subi %c7_i32_151, %c3_i32 : i32
    %c0_152 = arith.constant 0 : index
    %c0_153 = arith.constant 0 : index
    %312 = vector.load %arg12[%c0_152, %c0_153] : memref<8x256xbf16, #tpu.memory_space<vmem>>, vector<8x256xbf16>
    %c0_154 = arith.constant 0 : index
    %c0_155 = arith.constant 0 : index
    %313 = vector.load %arg6[%c0_154, %c0_155] : memref<256x1024xbf16, #tpu.memory_space<vmem>>, vector<256x1024xbf16>
    %cst_156 = arith.constant dense<0.000000e+00> : vector<8x1024xf32>
    %314 = tpu.matmul %312, %313, %cst_156 {dimension_numbers = #tpu.dot_dimension_numbers<[1], [0], [0], [1], [0, 0, 1, 1], [], []>} : vector<8x256xbf16>, vector<256x1024xbf16>, vector<8x1024xf32> -> vector<8x1024xf32>
    %315 = vector.extract_strided_slice %314 {offsets = [0, 0], sizes = [8, 512], strides = [1, 1]} : vector<8x1024xf32> to vector<8x512xf32>
    %316 = vector.extract_strided_slice %314 {offsets = [0, 512], sizes = [8, 512], strides = [1, 1]} : vector<8x1024xf32> to vector<8x512xf32>
    %317 = arith.index_cast %c3_i32 : i32 to index
    %c0_157 = arith.constant 0 : index
    %c0_158 = arith.constant 0 : index
    %318 = vector.load %arg10[%317, %c0_157, %c0_158] : memref<8x8x512xbf16, #tpu.memory_space<vmem>>, vector<1x8x512xbf16>
    %319 = vector.shape_cast %318 : vector<1x8x512xbf16> to vector<8x512xbf16>
    %320 = arith.extf %319 : vector<8x512xbf16> to vector<8x512xf32>
    %321 = arith.addf %320, %315 : vector<8x512xf32>
    %322 = arith.index_cast %311 : i32 to index
    %c0_159 = arith.constant 0 : index
    %c0_160 = arith.constant 0 : index
    %323 = vector.load %arg11[%322, %c0_159, %c0_160] : memref<8x8x512xbf16, #tpu.memory_space<vmem>>, vector<1x8x512xbf16>
    %324 = vector.shape_cast %323 : vector<1x8x512xbf16> to vector<8x512xbf16>
    %325 = arith.extf %324 : vector<8x512xbf16> to vector<8x512xf32>
    %326 = arith.addf %325, %316 : vector<8x512xf32>
    %c0_161 = arith.constant 0 : index
    %c0_162 = arith.constant 0 : index
    %327 = vector.load %arg13[%c0_161, %c0_162] : memref<8x256xf32, #tpu.memory_space<vmem>>, vector<8x128xf32>
    %328 = vector.extract_strided_slice %321 {offsets = [0, 0], sizes = [8, 128], strides = [1, 1]} : vector<8x512xf32> to vector<8x128xf32>
    %cst_163 = arith.constant 5.000000e-01 : f32
    %329 = vector.broadcast %cst_163 : f32 to vector<8x128xf32>
    %330 = arith.mulf %329, %328 : vector<8x128xf32>
    %331 = math.tanh %330 : vector<8x128xf32>
    %cst_164 = arith.constant 5.000000e-01 : f32
    %332 = vector.broadcast %cst_164 : f32 to vector<8x128xf32>
    %333 = arith.mulf %332, %331 : vector<8x128xf32>
    %cst_165 = arith.constant 5.000000e-01 : f32
    %334 = vector.broadcast %cst_165 : f32 to vector<8x128xf32>
    %335 = arith.addf %333, %334 : vector<8x128xf32>
    %336 = vector.extract_strided_slice %321 {offsets = [0, 128], sizes = [8, 128], strides = [1, 1]} : vector<8x512xf32> to vector<8x128xf32>
    %cst_166 = arith.constant 5.000000e-01 : f32
    %337 = vector.broadcast %cst_166 : f32 to vector<8x128xf32>
    %338 = arith.mulf %337, %336 : vector<8x128xf32>
    %339 = math.tanh %338 : vector<8x128xf32>
    %cst_167 = arith.constant 5.000000e-01 : f32
    %340 = vector.broadcast %cst_167 : f32 to vector<8x128xf32>
    %341 = arith.mulf %340, %339 : vector<8x128xf32>
    %cst_168 = arith.constant 5.000000e-01 : f32
    %342 = vector.broadcast %cst_168 : f32 to vector<8x128xf32>
    %343 = arith.addf %341, %342 : vector<8x128xf32>
    %344 = vector.extract_strided_slice %321 {offsets = [0, 256], sizes = [8, 128], strides = [1, 1]} : vector<8x512xf32> to vector<8x128xf32>
    %345 = math.tanh %344 : vector<8x128xf32>
    %346 = vector.extract_strided_slice %321 {offsets = [0, 384], sizes = [8, 128], strides = [1, 1]} : vector<8x512xf32> to vector<8x128xf32>
    %cst_169 = arith.constant 5.000000e-01 : f32
    %347 = vector.broadcast %cst_169 : f32 to vector<8x128xf32>
    %348 = arith.mulf %347, %346 : vector<8x128xf32>
    %349 = math.tanh %348 : vector<8x128xf32>
    %cst_170 = arith.constant 5.000000e-01 : f32
    %350 = vector.broadcast %cst_170 : f32 to vector<8x128xf32>
    %351 = arith.mulf %350, %349 : vector<8x128xf32>
    %cst_171 = arith.constant 5.000000e-01 : f32
    %352 = vector.broadcast %cst_171 : f32 to vector<8x128xf32>
    %353 = arith.addf %351, %352 : vector<8x128xf32>
    %354 = arith.mulf %343, %327 : vector<8x128xf32>
    %355 = arith.mulf %335, %345 : vector<8x128xf32>
    %356 = arith.addf %354, %355 : vector<8x128xf32>
    %357 = math.tanh %356 : vector<8x128xf32>
    %358 = arith.mulf %353, %357 : vector<8x128xf32>
    %c0_172 = arith.constant 0 : index
    %c128_173 = arith.constant 128 : index
    %359 = vector.load %arg13[%c0_172, %c128_173] : memref<8x256xf32, #tpu.memory_space<vmem>>, vector<8x128xf32>
    %360 = vector.extract_strided_slice %326 {offsets = [0, 0], sizes = [8, 128], strides = [1, 1]} : vector<8x512xf32> to vector<8x128xf32>
    %cst_174 = arith.constant 5.000000e-01 : f32
    %361 = vector.broadcast %cst_174 : f32 to vector<8x128xf32>
    %362 = arith.mulf %361, %360 : vector<8x128xf32>
    %363 = math.tanh %362 : vector<8x128xf32>
    %cst_175 = arith.constant 5.000000e-01 : f32
    %364 = vector.broadcast %cst_175 : f32 to vector<8x128xf32>
    %365 = arith.mulf %364, %363 : vector<8x128xf32>
    %cst_176 = arith.constant 5.000000e-01 : f32
    %366 = vector.broadcast %cst_176 : f32 to vector<8x128xf32>
    %367 = arith.addf %365, %366 : vector<8x128xf32>
    %368 = vector.extract_strided_slice %326 {offsets = [0, 128], sizes = [8, 128], strides = [1, 1]} : vector<8x512xf32> to vector<8x128xf32>
    %cst_177 = arith.constant 5.000000e-01 : f32
    %369 = vector.broadcast %cst_177 : f32 to vector<8x128xf32>
    %370 = arith.mulf %369, %368 : vector<8x128xf32>
    %371 = math.tanh %370 : vector<8x128xf32>
    %cst_178 = arith.constant 5.000000e-01 : f32
    %372 = vector.broadcast %cst_178 : f32 to vector<8x128xf32>
    %373 = arith.mulf %372, %371 : vector<8x128xf32>
    %cst_179 = arith.constant 5.000000e-01 : f32
    %374 = vector.broadcast %cst_179 : f32 to vector<8x128xf32>
    %375 = arith.addf %373, %374 : vector<8x128xf32>
    %376 = vector.extract_strided_slice %326 {offsets = [0, 256], sizes = [8, 128], strides = [1, 1]} : vector<8x512xf32> to vector<8x128xf32>
    %377 = math.tanh %376 : vector<8x128xf32>
    %378 = vector.extract_strided_slice %326 {offsets = [0, 384], sizes = [8, 128], strides = [1, 1]} : vector<8x512xf32> to vector<8x128xf32>
    %cst_180 = arith.constant 5.000000e-01 : f32
    %379 = vector.broadcast %cst_180 : f32 to vector<8x128xf32>
    %380 = arith.mulf %379, %378 : vector<8x128xf32>
    %381 = math.tanh %380 : vector<8x128xf32>
    %cst_181 = arith.constant 5.000000e-01 : f32
    %382 = vector.broadcast %cst_181 : f32 to vector<8x128xf32>
    %383 = arith.mulf %382, %381 : vector<8x128xf32>
    %cst_182 = arith.constant 5.000000e-01 : f32
    %384 = vector.broadcast %cst_182 : f32 to vector<8x128xf32>
    %385 = arith.addf %383, %384 : vector<8x128xf32>
    %386 = arith.mulf %375, %359 : vector<8x128xf32>
    %387 = arith.mulf %367, %377 : vector<8x128xf32>
    %388 = arith.addf %386, %387 : vector<8x128xf32>
    %389 = math.tanh %388 : vector<8x128xf32>
    %390 = arith.mulf %385, %389 : vector<8x128xf32>
    %391 = arith.truncf %358 : vector<8x128xf32> to vector<8x128xbf16>
    %c0_183 = arith.constant 0 : index
    %c0_184 = arith.constant 0 : index
    %392 = vector.load %arg12[%c0_183, %c0_184] : memref<8x256xbf16, #tpu.memory_space<vmem>>, vector<8x128xbf16>
    tpu.vector_store %arg12[%c0_183, %c0_184], %391 {strides = array<i32>} : memref<8x256xbf16, #tpu.memory_space<vmem>>, vector<8x128xbf16>,
    %393 = arith.truncf %390 : vector<8x128xf32> to vector<8x128xbf16>
    %c0_185 = arith.constant 0 : index
    %c128_186 = arith.constant 128 : index
    %394 = vector.load %arg12[%c0_185, %c128_186] : memref<8x256xbf16, #tpu.memory_space<vmem>>, vector<8x128xbf16>
    tpu.vector_store %arg12[%c0_185, %c128_186], %393 {strides = array<i32>} : memref<8x256xbf16, #tpu.memory_space<vmem>>, vector<8x128xbf16>,
    %c0_187 = arith.constant 0 : index
    %c0_188 = arith.constant 0 : index
    %395 = vector.load %arg13[%c0_187, %c0_188] : memref<8x256xf32, #tpu.memory_space<vmem>>, vector<8x128xf32>
    tpu.vector_store %arg13[%c0_187, %c0_188], %356 {strides = array<i32>} : memref<8x256xf32, #tpu.memory_space<vmem>>, vector<8x128xf32>,
    %c0_189 = arith.constant 0 : index
    %c128_190 = arith.constant 128 : index
    %396 = vector.load %arg13[%c0_189, %c128_190] : memref<8x256xf32, #tpu.memory_space<vmem>>, vector<8x128xf32>
    tpu.vector_store %arg13[%c0_189, %c128_190], %388 {strides = array<i32>} : memref<8x256xf32, #tpu.memory_space<vmem>>, vector<8x128xf32>,
    %397 = arith.truncf %358 : vector<8x128xf32> to vector<8x128xbf16>
    %398 = arith.index_cast %c3_i32 : i32 to index
    %c0_191 = arith.constant 0 : index
    %c0_192 = arith.constant 0 : index
    %399 = vector.load %arg8[%398, %c0_191, %c0_192] : memref<8x8x128xbf16, #tpu.memory_space<vmem>>, vector<1x8x128xbf16>
    %400 = vector.shape_cast %399 : vector<1x8x128xbf16> to vector<8x128xbf16>
    %401 = vector.shape_cast %397 : vector<8x128xbf16> to vector<1x8x128xbf16>
    tpu.vector_store %arg8[%398, %c0_191, %c0_192], %401 {strides = array<i32>} : memref<8x8x128xbf16, #tpu.memory_space<vmem>>, vector<1x8x128xbf16>,
    %402 = arith.truncf %390 : vector<8x128xf32> to vector<8x128xbf16>
    %403 = arith.index_cast %311 : i32 to index
    %c0_193 = arith.constant 0 : index
    %c0_194 = arith.constant 0 : index
    %404 = vector.load %arg9[%403, %c0_193, %c0_194] : memref<8x8x128xbf16, #tpu.memory_space<vmem>>, vector<1x8x128xbf16>
    %405 = vector.shape_cast %404 : vector<1x8x128xbf16> to vector<8x128xbf16>
    %406 = vector.shape_cast %402 : vector<8x128xbf16> to vector<1x8x128xbf16>
    tpu.vector_store %arg9[%403, %c0_193, %c0_194], %406 {strides = array<i32>} : memref<8x8x128xbf16, #tpu.memory_space<vmem>>, vector<1x8x128xbf16>,
    %c4_i32 = arith.constant 4 : i32
    %c7_i32_195 = arith.constant 7 : i32
    %407 = arith.subi %c7_i32_195, %c4_i32 : i32
    %c0_196 = arith.constant 0 : index
    %c0_197 = arith.constant 0 : index
    %408 = vector.load %arg12[%c0_196, %c0_197] : memref<8x256xbf16, #tpu.memory_space<vmem>>, vector<8x256xbf16>
    %c0_198 = arith.constant 0 : index
    %c0_199 = arith.constant 0 : index
    %409 = vector.load %arg6[%c0_198, %c0_199] : memref<256x1024xbf16, #tpu.memory_space<vmem>>, vector<256x1024xbf16>
    %cst_200 = arith.constant dense<0.000000e+00> : vector<8x1024xf32>
    %410 = tpu.matmul %408, %409, %cst_200 {dimension_numbers = #tpu.dot_dimension_numbers<[1], [0], [0], [1], [0, 0, 1, 1], [], []>} : vector<8x256xbf16>, vector<256x1024xbf16>, vector<8x1024xf32> -> vector<8x1024xf32>
    %411 = vector.extract_strided_slice %410 {offsets = [0, 0], sizes = [8, 512], strides = [1, 1]} : vector<8x1024xf32> to vector<8x512xf32>
    %412 = vector.extract_strided_slice %410 {offsets = [0, 512], sizes = [8, 512], strides = [1, 1]} : vector<8x1024xf32> to vector<8x512xf32>
    %413 = arith.index_cast %c4_i32 : i32 to index
    %c0_201 = arith.constant 0 : index
    %c0_202 = arith.constant 0 : index
    %414 = vector.load %arg10[%413, %c0_201, %c0_202] : memref<8x8x512xbf16, #tpu.memory_space<vmem>>, vector<1x8x512xbf16>
    %415 = vector.shape_cast %414 : vector<1x8x512xbf16> to vector<8x512xbf16>
    %416 = arith.extf %415 : vector<8x512xbf16> to vector<8x512xf32>
    %417 = arith.addf %416, %411 : vector<8x512xf32>
    %418 = arith.index_cast %407 : i32 to index
    %c0_203 = arith.constant 0 : index
    %c0_204 = arith.constant 0 : index
    %419 = vector.load %arg11[%418, %c0_203, %c0_204] : memref<8x8x512xbf16, #tpu.memory_space<vmem>>, vector<1x8x512xbf16>
    %420 = vector.shape_cast %419 : vector<1x8x512xbf16> to vector<8x512xbf16>
    %421 = arith.extf %420 : vector<8x512xbf16> to vector<8x512xf32>
    %422 = arith.addf %421, %412 : vector<8x512xf32>
    %c0_205 = arith.constant 0 : index
    %c0_206 = arith.constant 0 : index
    %423 = vector.load %arg13[%c0_205, %c0_206] : memref<8x256xf32, #tpu.memory_space<vmem>>, vector<8x128xf32>
    %424 = vector.extract_strided_slice %417 {offsets = [0, 0], sizes = [8, 128], strides = [1, 1]} : vector<8x512xf32> to vector<8x128xf32>
    %cst_207 = arith.constant 5.000000e-01 : f32
    %425 = vector.broadcast %cst_207 : f32 to vector<8x128xf32>
    %426 = arith.mulf %425, %424 : vector<8x128xf32>
    %427 = math.tanh %426 : vector<8x128xf32>
    %cst_208 = arith.constant 5.000000e-01 : f32
    %428 = vector.broadcast %cst_208 : f32 to vector<8x128xf32>
    %429 = arith.mulf %428, %427 : vector<8x128xf32>
    %cst_209 = arith.constant 5.000000e-01 : f32
    %430 = vector.broadcast %cst_209 : f32 to vector<8x128xf32>
    %431 = arith.addf %429, %430 : vector<8x128xf32>
    %432 = vector.extract_strided_slice %417 {offsets = [0, 128], sizes = [8, 128], strides = [1, 1]} : vector<8x512xf32> to vector<8x128xf32>
    %cst_210 = arith.constant 5.000000e-01 : f32
    %433 = vector.broadcast %cst_210 : f32 to vector<8x128xf32>
    %434 = arith.mulf %433, %432 : vector<8x128xf32>
    %435 = math.tanh %434 : vector<8x128xf32>
    %cst_211 = arith.constant 5.000000e-01 : f32
    %436 = vector.broadcast %cst_211 : f32 to vector<8x128xf32>
    %437 = arith.mulf %436, %435 : vector<8x128xf32>
    %cst_212 = arith.constant 5.000000e-01 : f32
    %438 = vector.broadcast %cst_212 : f32 to vector<8x128xf32>
    %439 = arith.addf %437, %438 : vector<8x128xf32>
    %440 = vector.extract_strided_slice %417 {offsets = [0, 256], sizes = [8, 128], strides = [1, 1]} : vector<8x512xf32> to vector<8x128xf32>
    %441 = math.tanh %440 : vector<8x128xf32>
    %442 = vector.extract_strided_slice %417 {offsets = [0, 384], sizes = [8, 128], strides = [1, 1]} : vector<8x512xf32> to vector<8x128xf32>
    %cst_213 = arith.constant 5.000000e-01 : f32
    %443 = vector.broadcast %cst_213 : f32 to vector<8x128xf32>
    %444 = arith.mulf %443, %442 : vector<8x128xf32>
    %445 = math.tanh %444 : vector<8x128xf32>
    %cst_214 = arith.constant 5.000000e-01 : f32
    %446 = vector.broadcast %cst_214 : f32 to vector<8x128xf32>
    %447 = arith.mulf %446, %445 : vector<8x128xf32>
    %cst_215 = arith.constant 5.000000e-01 : f32
    %448 = vector.broadcast %cst_215 : f32 to vector<8x128xf32>
    %449 = arith.addf %447, %448 : vector<8x128xf32>
    %450 = arith.mulf %439, %423 : vector<8x128xf32>
    %451 = arith.mulf %431, %441 : vector<8x128xf32>
    %452 = arith.addf %450, %451 : vector<8x128xf32>
    %453 = math.tanh %452 : vector<8x128xf32>
    %454 = arith.mulf %449, %453 : vector<8x128xf32>
    %c0_216 = arith.constant 0 : index
    %c128_217 = arith.constant 128 : index
    %455 = vector.load %arg13[%c0_216, %c128_217] : memref<8x256xf32, #tpu.memory_space<vmem>>, vector<8x128xf32>
    %456 = vector.extract_strided_slice %422 {offsets = [0, 0], sizes = [8, 128], strides = [1, 1]} : vector<8x512xf32> to vector<8x128xf32>
    %cst_218 = arith.constant 5.000000e-01 : f32
    %457 = vector.broadcast %cst_218 : f32 to vector<8x128xf32>
    %458 = arith.mulf %457, %456 : vector<8x128xf32>
    %459 = math.tanh %458 : vector<8x128xf32>
    %cst_219 = arith.constant 5.000000e-01 : f32
    %460 = vector.broadcast %cst_219 : f32 to vector<8x128xf32>
    %461 = arith.mulf %460, %459 : vector<8x128xf32>
    %cst_220 = arith.constant 5.000000e-01 : f32
    %462 = vector.broadcast %cst_220 : f32 to vector<8x128xf32>
    %463 = arith.addf %461, %462 : vector<8x128xf32>
    %464 = vector.extract_strided_slice %422 {offsets = [0, 128], sizes = [8, 128], strides = [1, 1]} : vector<8x512xf32> to vector<8x128xf32>
    %cst_221 = arith.constant 5.000000e-01 : f32
    %465 = vector.broadcast %cst_221 : f32 to vector<8x128xf32>
    %466 = arith.mulf %465, %464 : vector<8x128xf32>
    %467 = math.tanh %466 : vector<8x128xf32>
    %cst_222 = arith.constant 5.000000e-01 : f32
    %468 = vector.broadcast %cst_222 : f32 to vector<8x128xf32>
    %469 = arith.mulf %468, %467 : vector<8x128xf32>
    %cst_223 = arith.constant 5.000000e-01 : f32
    %470 = vector.broadcast %cst_223 : f32 to vector<8x128xf32>
    %471 = arith.addf %469, %470 : vector<8x128xf32>
    %472 = vector.extract_strided_slice %422 {offsets = [0, 256], sizes = [8, 128], strides = [1, 1]} : vector<8x512xf32> to vector<8x128xf32>
    %473 = math.tanh %472 : vector<8x128xf32>
    %474 = vector.extract_strided_slice %422 {offsets = [0, 384], sizes = [8, 128], strides = [1, 1]} : vector<8x512xf32> to vector<8x128xf32>
    %cst_224 = arith.constant 5.000000e-01 : f32
    %475 = vector.broadcast %cst_224 : f32 to vector<8x128xf32>
    %476 = arith.mulf %475, %474 : vector<8x128xf32>
    %477 = math.tanh %476 : vector<8x128xf32>
    %cst_225 = arith.constant 5.000000e-01 : f32
    %478 = vector.broadcast %cst_225 : f32 to vector<8x128xf32>
    %479 = arith.mulf %478, %477 : vector<8x128xf32>
    %cst_226 = arith.constant 5.000000e-01 : f32
    %480 = vector.broadcast %cst_226 : f32 to vector<8x128xf32>
    %481 = arith.addf %479, %480 : vector<8x128xf32>
    %482 = arith.mulf %471, %455 : vector<8x128xf32>
    %483 = arith.mulf %463, %473 : vector<8x128xf32>
    %484 = arith.addf %482, %483 : vector<8x128xf32>
    %485 = math.tanh %484 : vector<8x128xf32>
    %486 = arith.mulf %481, %485 : vector<8x128xf32>
    %487 = arith.truncf %454 : vector<8x128xf32> to vector<8x128xbf16>
    %c0_227 = arith.constant 0 : index
    %c0_228 = arith.constant 0 : index
    %488 = vector.load %arg12[%c0_227, %c0_228] : memref<8x256xbf16, #tpu.memory_space<vmem>>, vector<8x128xbf16>
    tpu.vector_store %arg12[%c0_227, %c0_228], %487 {strides = array<i32>} : memref<8x256xbf16, #tpu.memory_space<vmem>>, vector<8x128xbf16>,
    %489 = arith.truncf %486 : vector<8x128xf32> to vector<8x128xbf16>
    %c0_229 = arith.constant 0 : index
    %c128_230 = arith.constant 128 : index
    %490 = vector.load %arg12[%c0_229, %c128_230] : memref<8x256xbf16, #tpu.memory_space<vmem>>, vector<8x128xbf16>
    tpu.vector_store %arg12[%c0_229, %c128_230], %489 {strides = array<i32>} : memref<8x256xbf16, #tpu.memory_space<vmem>>, vector<8x128xbf16>,
    %c0_231 = arith.constant 0 : index
    %c0_232 = arith.constant 0 : index
    %491 = vector.load %arg13[%c0_231, %c0_232] : memref<8x256xf32, #tpu.memory_space<vmem>>, vector<8x128xf32>
    tpu.vector_store %arg13[%c0_231, %c0_232], %452 {strides = array<i32>} : memref<8x256xf32, #tpu.memory_space<vmem>>, vector<8x128xf32>,
    %c0_233 = arith.constant 0 : index
    %c128_234 = arith.constant 128 : index
    %492 = vector.load %arg13[%c0_233, %c128_234] : memref<8x256xf32, #tpu.memory_space<vmem>>, vector<8x128xf32>
    tpu.vector_store %arg13[%c0_233, %c128_234], %484 {strides = array<i32>} : memref<8x256xf32, #tpu.memory_space<vmem>>, vector<8x128xf32>,
    %493 = arith.truncf %454 : vector<8x128xf32> to vector<8x128xbf16>
    %494 = arith.index_cast %c4_i32 : i32 to index
    %c0_235 = arith.constant 0 : index
    %c0_236 = arith.constant 0 : index
    %495 = vector.load %arg8[%494, %c0_235, %c0_236] : memref<8x8x128xbf16, #tpu.memory_space<vmem>>, vector<1x8x128xbf16>
    %496 = vector.shape_cast %495 : vector<1x8x128xbf16> to vector<8x128xbf16>
    %497 = vector.shape_cast %493 : vector<8x128xbf16> to vector<1x8x128xbf16>
    tpu.vector_store %arg8[%494, %c0_235, %c0_236], %497 {strides = array<i32>} : memref<8x8x128xbf16, #tpu.memory_space<vmem>>, vector<1x8x128xbf16>,
    %498 = arith.truncf %486 : vector<8x128xf32> to vector<8x128xbf16>
    %499 = arith.index_cast %407 : i32 to index
    %c0_237 = arith.constant 0 : index
    %c0_238 = arith.constant 0 : index
    %500 = vector.load %arg9[%499, %c0_237, %c0_238] : memref<8x8x128xbf16, #tpu.memory_space<vmem>>, vector<1x8x128xbf16>
    %501 = vector.shape_cast %500 : vector<1x8x128xbf16> to vector<8x128xbf16>
    %502 = vector.shape_cast %498 : vector<8x128xbf16> to vector<1x8x128xbf16>
    tpu.vector_store %arg9[%499, %c0_237, %c0_238], %502 {strides = array<i32>} : memref<8x8x128xbf16, #tpu.memory_space<vmem>>, vector<1x8x128xbf16>,
    %c5_i32 = arith.constant 5 : i32
    %c7_i32_239 = arith.constant 7 : i32
    %503 = arith.subi %c7_i32_239, %c5_i32 : i32
    %c0_240 = arith.constant 0 : index
    %c0_241 = arith.constant 0 : index
    %504 = vector.load %arg12[%c0_240, %c0_241] : memref<8x256xbf16, #tpu.memory_space<vmem>>, vector<8x256xbf16>
    %c0_242 = arith.constant 0 : index
    %c0_243 = arith.constant 0 : index
    %505 = vector.load %arg6[%c0_242, %c0_243] : memref<256x1024xbf16, #tpu.memory_space<vmem>>, vector<256x1024xbf16>
    %cst_244 = arith.constant dense<0.000000e+00> : vector<8x1024xf32>
    %506 = tpu.matmul %504, %505, %cst_244 {dimension_numbers = #tpu.dot_dimension_numbers<[1], [0], [0], [1], [0, 0, 1, 1], [], []>} : vector<8x256xbf16>, vector<256x1024xbf16>, vector<8x1024xf32> -> vector<8x1024xf32>
    %507 = vector.extract_strided_slice %506 {offsets = [0, 0], sizes = [8, 512], strides = [1, 1]} : vector<8x1024xf32> to vector<8x512xf32>
    %508 = vector.extract_strided_slice %506 {offsets = [0, 512], sizes = [8, 512], strides = [1, 1]} : vector<8x1024xf32> to vector<8x512xf32>
    %509 = arith.index_cast %c5_i32 : i32 to index
    %c0_245 = arith.constant 0 : index
    %c0_246 = arith.constant 0 : index
    %510 = vector.load %arg10[%509, %c0_245, %c0_246] : memref<8x8x512xbf16, #tpu.memory_space<vmem>>, vector<1x8x512xbf16>
    %511 = vector.shape_cast %510 : vector<1x8x512xbf16> to vector<8x512xbf16>
    %512 = arith.extf %511 : vector<8x512xbf16> to vector<8x512xf32>
    %513 = arith.addf %512, %507 : vector<8x512xf32>
    %514 = arith.index_cast %503 : i32 to index
    %c0_247 = arith.constant 0 : index
    %c0_248 = arith.constant 0 : index
    %515 = vector.load %arg11[%514, %c0_247, %c0_248] : memref<8x8x512xbf16, #tpu.memory_space<vmem>>, vector<1x8x512xbf16>
    %516 = vector.shape_cast %515 : vector<1x8x512xbf16> to vector<8x512xbf16>
    %517 = arith.extf %516 : vector<8x512xbf16> to vector<8x512xf32>
    %518 = arith.addf %517, %508 : vector<8x512xf32>
    %c0_249 = arith.constant 0 : index
    %c0_250 = arith.constant 0 : index
    %519 = vector.load %arg13[%c0_249, %c0_250] : memref<8x256xf32, #tpu.memory_space<vmem>>, vector<8x128xf32>
    %520 = vector.extract_strided_slice %513 {offsets = [0, 0], sizes = [8, 128], strides = [1, 1]} : vector<8x512xf32> to vector<8x128xf32>
    %cst_251 = arith.constant 5.000000e-01 : f32
    %521 = vector.broadcast %cst_251 : f32 to vector<8x128xf32>
    %522 = arith.mulf %521, %520 : vector<8x128xf32>
    %523 = math.tanh %522 : vector<8x128xf32>
    %cst_252 = arith.constant 5.000000e-01 : f32
    %524 = vector.broadcast %cst_252 : f32 to vector<8x128xf32>
    %525 = arith.mulf %524, %523 : vector<8x128xf32>
    %cst_253 = arith.constant 5.000000e-01 : f32
    %526 = vector.broadcast %cst_253 : f32 to vector<8x128xf32>
    %527 = arith.addf %525, %526 : vector<8x128xf32>
    %528 = vector.extract_strided_slice %513 {offsets = [0, 128], sizes = [8, 128], strides = [1, 1]} : vector<8x512xf32> to vector<8x128xf32>
    %cst_254 = arith.constant 5.000000e-01 : f32
    %529 = vector.broadcast %cst_254 : f32 to vector<8x128xf32>
    %530 = arith.mulf %529, %528 : vector<8x128xf32>
    %531 = math.tanh %530 : vector<8x128xf32>
    %cst_255 = arith.constant 5.000000e-01 : f32
    %532 = vector.broadcast %cst_255 : f32 to vector<8x128xf32>
    %533 = arith.mulf %532, %531 : vector<8x128xf32>
    %cst_256 = arith.constant 5.000000e-01 : f32
    %534 = vector.broadcast %cst_256 : f32 to vector<8x128xf32>
    %535 = arith.addf %533, %534 : vector<8x128xf32>
    %536 = vector.extract_strided_slice %513 {offsets = [0, 256], sizes = [8, 128], strides = [1, 1]} : vector<8x512xf32> to vector<8x128xf32>
    %537 = math.tanh %536 : vector<8x128xf32>
    %538 = vector.extract_strided_slice %513 {offsets = [0, 384], sizes = [8, 128], strides = [1, 1]} : vector<8x512xf32> to vector<8x128xf32>
    %cst_257 = arith.constant 5.000000e-01 : f32
    %539 = vector.broadcast %cst_257 : f32 to vector<8x128xf32>
    %540 = arith.mulf %539, %538 : vector<8x128xf32>
    %541 = math.tanh %540 : vector<8x128xf32>
    %cst_258 = arith.constant 5.000000e-01 : f32
    %542 = vector.broadcast %cst_258 : f32 to vector<8x128xf32>
    %543 = arith.mulf %542, %541 : vector<8x128xf32>
    %cst_259 = arith.constant 5.000000e-01 : f32
    %544 = vector.broadcast %cst_259 : f32 to vector<8x128xf32>
    %545 = arith.addf %543, %544 : vector<8x128xf32>
    %546 = arith.mulf %535, %519 : vector<8x128xf32>
    %547 = arith.mulf %527, %537 : vector<8x128xf32>
    %548 = arith.addf %546, %547 : vector<8x128xf32>
    %549 = math.tanh %548 : vector<8x128xf32>
    %550 = arith.mulf %545, %549 : vector<8x128xf32>
    %c0_260 = arith.constant 0 : index
    %c128_261 = arith.constant 128 : index
    %551 = vector.load %arg13[%c0_260, %c128_261] : memref<8x256xf32, #tpu.memory_space<vmem>>, vector<8x128xf32>
    %552 = vector.extract_strided_slice %518 {offsets = [0, 0], sizes = [8, 128], strides = [1, 1]} : vector<8x512xf32> to vector<8x128xf32>
    %cst_262 = arith.constant 5.000000e-01 : f32
    %553 = vector.broadcast %cst_262 : f32 to vector<8x128xf32>
    %554 = arith.mulf %553, %552 : vector<8x128xf32>
    %555 = math.tanh %554 : vector<8x128xf32>
    %cst_263 = arith.constant 5.000000e-01 : f32
    %556 = vector.broadcast %cst_263 : f32 to vector<8x128xf32>
    %557 = arith.mulf %556, %555 : vector<8x128xf32>
    %cst_264 = arith.constant 5.000000e-01 : f32
    %558 = vector.broadcast %cst_264 : f32 to vector<8x128xf32>
    %559 = arith.addf %557, %558 : vector<8x128xf32>
    %560 = vector.extract_strided_slice %518 {offsets = [0, 128], sizes = [8, 128], strides = [1, 1]} : vector<8x512xf32> to vector<8x128xf32>
    %cst_265 = arith.constant 5.000000e-01 : f32
    %561 = vector.broadcast %cst_265 : f32 to vector<8x128xf32>
    %562 = arith.mulf %561, %560 : vector<8x128xf32>
    %563 = math.tanh %562 : vector<8x128xf32>
    %cst_266 = arith.constant 5.000000e-01 : f32
    %564 = vector.broadcast %cst_266 : f32 to vector<8x128xf32>
    %565 = arith.mulf %564, %563 : vector<8x128xf32>
    %cst_267 = arith.constant 5.000000e-01 : f32
    %566 = vector.broadcast %cst_267 : f32 to vector<8x128xf32>
    %567 = arith.addf %565, %566 : vector<8x128xf32>
    %568 = vector.extract_strided_slice %518 {offsets = [0, 256], sizes = [8, 128], strides = [1, 1]} : vector<8x512xf32> to vector<8x128xf32>
    %569 = math.tanh %568 : vector<8x128xf32>
    %570 = vector.extract_strided_slice %518 {offsets = [0, 384], sizes = [8, 128], strides = [1, 1]} : vector<8x512xf32> to vector<8x128xf32>
    %cst_268 = arith.constant 5.000000e-01 : f32
    %571 = vector.broadcast %cst_268 : f32 to vector<8x128xf32>
    %572 = arith.mulf %571, %570 : vector<8x128xf32>
    %573 = math.tanh %572 : vector<8x128xf32>
    %cst_269 = arith.constant 5.000000e-01 : f32
    %574 = vector.broadcast %cst_269 : f32 to vector<8x128xf32>
    %575 = arith.mulf %574, %573 : vector<8x128xf32>
    %cst_270 = arith.constant 5.000000e-01 : f32
    %576 = vector.broadcast %cst_270 : f32 to vector<8x128xf32>
    %577 = arith.addf %575, %576 : vector<8x128xf32>
    %578 = arith.mulf %567, %551 : vector<8x128xf32>
    %579 = arith.mulf %559, %569 : vector<8x128xf32>
    %580 = arith.addf %578, %579 : vector<8x128xf32>
    %581 = math.tanh %580 : vector<8x128xf32>
    %582 = arith.mulf %577, %581 : vector<8x128xf32>
    %583 = arith.truncf %550 : vector<8x128xf32> to vector<8x128xbf16>
    %c0_271 = arith.constant 0 : index
    %c0_272 = arith.constant 0 : index
    %584 = vector.load %arg12[%c0_271, %c0_272] : memref<8x256xbf16, #tpu.memory_space<vmem>>, vector<8x128xbf16>
    tpu.vector_store %arg12[%c0_271, %c0_272], %583 {strides = array<i32>} : memref<8x256xbf16, #tpu.memory_space<vmem>>, vector<8x128xbf16>,
    %585 = arith.truncf %582 : vector<8x128xf32> to vector<8x128xbf16>
    %c0_273 = arith.constant 0 : index
    %c128_274 = arith.constant 128 : index
    %586 = vector.load %arg12[%c0_273, %c128_274] : memref<8x256xbf16, #tpu.memory_space<vmem>>, vector<8x128xbf16>
    tpu.vector_store %arg12[%c0_273, %c128_274], %585 {strides = array<i32>} : memref<8x256xbf16, #tpu.memory_space<vmem>>, vector<8x128xbf16>,
    %c0_275 = arith.constant 0 : index
    %c0_276 = arith.constant 0 : index
    %587 = vector.load %arg13[%c0_275, %c0_276] : memref<8x256xf32, #tpu.memory_space<vmem>>, vector<8x128xf32>
    tpu.vector_store %arg13[%c0_275, %c0_276], %548 {strides = array<i32>} : memref<8x256xf32, #tpu.memory_space<vmem>>, vector<8x128xf32>,
    %c0_277 = arith.constant 0 : index
    %c128_278 = arith.constant 128 : index
    %588 = vector.load %arg13[%c0_277, %c128_278] : memref<8x256xf32, #tpu.memory_space<vmem>>, vector<8x128xf32>
    tpu.vector_store %arg13[%c0_277, %c128_278], %580 {strides = array<i32>} : memref<8x256xf32, #tpu.memory_space<vmem>>, vector<8x128xf32>,
    %589 = arith.truncf %550 : vector<8x128xf32> to vector<8x128xbf16>
    %590 = arith.index_cast %c5_i32 : i32 to index
    %c0_279 = arith.constant 0 : index
    %c0_280 = arith.constant 0 : index
    %591 = vector.load %arg8[%590, %c0_279, %c0_280] : memref<8x8x128xbf16, #tpu.memory_space<vmem>>, vector<1x8x128xbf16>
    %592 = vector.shape_cast %591 : vector<1x8x128xbf16> to vector<8x128xbf16>
    %593 = vector.shape_cast %589 : vector<8x128xbf16> to vector<1x8x128xbf16>
    tpu.vector_store %arg8[%590, %c0_279, %c0_280], %593 {strides = array<i32>} : memref<8x8x128xbf16, #tpu.memory_space<vmem>>, vector<1x8x128xbf16>,
    %594 = arith.truncf %582 : vector<8x128xf32> to vector<8x128xbf16>
    %595 = arith.index_cast %503 : i32 to index
    %c0_281 = arith.constant 0 : index
    %c0_282 = arith.constant 0 : index
    %596 = vector.load %arg9[%595, %c0_281, %c0_282] : memref<8x8x128xbf16, #tpu.memory_space<vmem>>, vector<1x8x128xbf16>
    %597 = vector.shape_cast %596 : vector<1x8x128xbf16> to vector<8x128xbf16>
    %598 = vector.shape_cast %594 : vector<8x128xbf16> to vector<1x8x128xbf16>
    tpu.vector_store %arg9[%595, %c0_281, %c0_282], %598 {strides = array<i32>} : memref<8x8x128xbf16, #tpu.memory_space<vmem>>, vector<1x8x128xbf16>,
    %c6_i32 = arith.constant 6 : i32
    %c7_i32_283 = arith.constant 7 : i32
    %599 = arith.subi %c7_i32_283, %c6_i32 : i32
    %c0_284 = arith.constant 0 : index
    %c0_285 = arith.constant 0 : index
    %600 = vector.load %arg12[%c0_284, %c0_285] : memref<8x256xbf16, #tpu.memory_space<vmem>>, vector<8x256xbf16>
    %c0_286 = arith.constant 0 : index
    %c0_287 = arith.constant 0 : index
    %601 = vector.load %arg6[%c0_286, %c0_287] : memref<256x1024xbf16, #tpu.memory_space<vmem>>, vector<256x1024xbf16>
    %cst_288 = arith.constant dense<0.000000e+00> : vector<8x1024xf32>
    %602 = tpu.matmul %600, %601, %cst_288 {dimension_numbers = #tpu.dot_dimension_numbers<[1], [0], [0], [1], [0, 0, 1, 1], [], []>} : vector<8x256xbf16>, vector<256x1024xbf16>, vector<8x1024xf32> -> vector<8x1024xf32>
    %603 = vector.extract_strided_slice %602 {offsets = [0, 0], sizes = [8, 512], strides = [1, 1]} : vector<8x1024xf32> to vector<8x512xf32>
    %604 = vector.extract_strided_slice %602 {offsets = [0, 512], sizes = [8, 512], strides = [1, 1]} : vector<8x1024xf32> to vector<8x512xf32>
    %605 = arith.index_cast %c6_i32 : i32 to index
    %c0_289 = arith.constant 0 : index
    %c0_290 = arith.constant 0 : index
    %606 = vector.load %arg10[%605, %c0_289, %c0_290] : memref<8x8x512xbf16, #tpu.memory_space<vmem>>, vector<1x8x512xbf16>
    %607 = vector.shape_cast %606 : vector<1x8x512xbf16> to vector<8x512xbf16>
    %608 = arith.extf %607 : vector<8x512xbf16> to vector<8x512xf32>
    %609 = arith.addf %608, %603 : vector<8x512xf32>
    %610 = arith.index_cast %599 : i32 to index
    %c0_291 = arith.constant 0 : index
    %c0_292 = arith.constant 0 : index
    %611 = vector.load %arg11[%610, %c0_291, %c0_292] : memref<8x8x512xbf16, #tpu.memory_space<vmem>>, vector<1x8x512xbf16>
    %612 = vector.shape_cast %611 : vector<1x8x512xbf16> to vector<8x512xbf16>
    %613 = arith.extf %612 : vector<8x512xbf16> to vector<8x512xf32>
    %614 = arith.addf %613, %604 : vector<8x512xf32>
    %c0_293 = arith.constant 0 : index
    %c0_294 = arith.constant 0 : index
    %615 = vector.load %arg13[%c0_293, %c0_294] : memref<8x256xf32, #tpu.memory_space<vmem>>, vector<8x128xf32>
    %616 = vector.extract_strided_slice %609 {offsets = [0, 0], sizes = [8, 128], strides = [1, 1]} : vector<8x512xf32> to vector<8x128xf32>
    %cst_295 = arith.constant 5.000000e-01 : f32
    %617 = vector.broadcast %cst_295 : f32 to vector<8x128xf32>
    %618 = arith.mulf %617, %616 : vector<8x128xf32>
    %619 = math.tanh %618 : vector<8x128xf32>
    %cst_296 = arith.constant 5.000000e-01 : f32
    %620 = vector.broadcast %cst_296 : f32 to vector<8x128xf32>
    %621 = arith.mulf %620, %619 : vector<8x128xf32>
    %cst_297 = arith.constant 5.000000e-01 : f32
    %622 = vector.broadcast %cst_297 : f32 to vector<8x128xf32>
    %623 = arith.addf %621, %622 : vector<8x128xf32>
    %624 = vector.extract_strided_slice %609 {offsets = [0, 128], sizes = [8, 128], strides = [1, 1]} : vector<8x512xf32> to vector<8x128xf32>
    %cst_298 = arith.constant 5.000000e-01 : f32
    %625 = vector.broadcast %cst_298 : f32 to vector<8x128xf32>
    %626 = arith.mulf %625, %624 : vector<8x128xf32>
    %627 = math.tanh %626 : vector<8x128xf32>
    %cst_299 = arith.constant 5.000000e-01 : f32
    %628 = vector.broadcast %cst_299 : f32 to vector<8x128xf32>
    %629 = arith.mulf %628, %627 : vector<8x128xf32>
    %cst_300 = arith.constant 5.000000e-01 : f32
    %630 = vector.broadcast %cst_300 : f32 to vector<8x128xf32>
    %631 = arith.addf %629, %630 : vector<8x128xf32>
    %632 = vector.extract_strided_slice %609 {offsets = [0, 256], sizes = [8, 128], strides = [1, 1]} : vector<8x512xf32> to vector<8x128xf32>
    %633 = math.tanh %632 : vector<8x128xf32>
    %634 = vector.extract_strided_slice %609 {offsets = [0, 384], sizes = [8, 128], strides = [1, 1]} : vector<8x512xf32> to vector<8x128xf32>
    %cst_301 = arith.constant 5.000000e-01 : f32
    %635 = vector.broadcast %cst_301 : f32 to vector<8x128xf32>
    %636 = arith.mulf %635, %634 : vector<8x128xf32>
    %637 = math.tanh %636 : vector<8x128xf32>
    %cst_302 = arith.constant 5.000000e-01 : f32
    %638 = vector.broadcast %cst_302 : f32 to vector<8x128xf32>
    %639 = arith.mulf %638, %637 : vector<8x128xf32>
    %cst_303 = arith.constant 5.000000e-01 : f32
    %640 = vector.broadcast %cst_303 : f32 to vector<8x128xf32>
    %641 = arith.addf %639, %640 : vector<8x128xf32>
    %642 = arith.mulf %631, %615 : vector<8x128xf32>
    %643 = arith.mulf %623, %633 : vector<8x128xf32>
    %644 = arith.addf %642, %643 : vector<8x128xf32>
    %645 = math.tanh %644 : vector<8x128xf32>
    %646 = arith.mulf %641, %645 : vector<8x128xf32>
    %c0_304 = arith.constant 0 : index
    %c128_305 = arith.constant 128 : index
    %647 = vector.load %arg13[%c0_304, %c128_305] : memref<8x256xf32, #tpu.memory_space<vmem>>, vector<8x128xf32>
    %648 = vector.extract_strided_slice %614 {offsets = [0, 0], sizes = [8, 128], strides = [1, 1]} : vector<8x512xf32> to vector<8x128xf32>
    %cst_306 = arith.constant 5.000000e-01 : f32
    %649 = vector.broadcast %cst_306 : f32 to vector<8x128xf32>
    %650 = arith.mulf %649, %648 : vector<8x128xf32>
    %651 = math.tanh %650 : vector<8x128xf32>
    %cst_307 = arith.constant 5.000000e-01 : f32
    %652 = vector.broadcast %cst_307 : f32 to vector<8x128xf32>
    %653 = arith.mulf %652, %651 : vector<8x128xf32>
    %cst_308 = arith.constant 5.000000e-01 : f32
    %654 = vector.broadcast %cst_308 : f32 to vector<8x128xf32>
    %655 = arith.addf %653, %654 : vector<8x128xf32>
    %656 = vector.extract_strided_slice %614 {offsets = [0, 128], sizes = [8, 128], strides = [1, 1]} : vector<8x512xf32> to vector<8x128xf32>
    %cst_309 = arith.constant 5.000000e-01 : f32
    %657 = vector.broadcast %cst_309 : f32 to vector<8x128xf32>
    %658 = arith.mulf %657, %656 : vector<8x128xf32>
    %659 = math.tanh %658 : vector<8x128xf32>
    %cst_310 = arith.constant 5.000000e-01 : f32
    %660 = vector.broadcast %cst_310 : f32 to vector<8x128xf32>
    %661 = arith.mulf %660, %659 : vector<8x128xf32>
    %cst_311 = arith.constant 5.000000e-01 : f32
    %662 = vector.broadcast %cst_311 : f32 to vector<8x128xf32>
    %663 = arith.addf %661, %662 : vector<8x128xf32>
    %664 = vector.extract_strided_slice %614 {offsets = [0, 256], sizes = [8, 128], strides = [1, 1]} : vector<8x512xf32> to vector<8x128xf32>
    %665 = math.tanh %664 : vector<8x128xf32>
    %666 = vector.extract_strided_slice %614 {offsets = [0, 384], sizes = [8, 128], strides = [1, 1]} : vector<8x512xf32> to vector<8x128xf32>
    %cst_312 = arith.constant 5.000000e-01 : f32
    %667 = vector.broadcast %cst_312 : f32 to vector<8x128xf32>
    %668 = arith.mulf %667, %666 : vector<8x128xf32>
    %669 = math.tanh %668 : vector<8x128xf32>
    %cst_313 = arith.constant 5.000000e-01 : f32
    %670 = vector.broadcast %cst_313 : f32 to vector<8x128xf32>
    %671 = arith.mulf %670, %669 : vector<8x128xf32>
    %cst_314 = arith.constant 5.000000e-01 : f32
    %672 = vector.broadcast %cst_314 : f32 to vector<8x128xf32>
    %673 = arith.addf %671, %672 : vector<8x128xf32>
    %674 = arith.mulf %663, %647 : vector<8x128xf32>
    %675 = arith.mulf %655, %665 : vector<8x128xf32>
    %676 = arith.addf %674, %675 : vector<8x128xf32>
    %677 = math.tanh %676 : vector<8x128xf32>
    %678 = arith.mulf %673, %677 : vector<8x128xf32>
    %679 = arith.truncf %646 : vector<8x128xf32> to vector<8x128xbf16>
    %c0_315 = arith.constant 0 : index
    %c0_316 = arith.constant 0 : index
    %680 = vector.load %arg12[%c0_315, %c0_316] : memref<8x256xbf16, #tpu.memory_space<vmem>>, vector<8x128xbf16>
    tpu.vector_store %arg12[%c0_315, %c0_316], %679 {strides = array<i32>} : memref<8x256xbf16, #tpu.memory_space<vmem>>, vector<8x128xbf16>,
    %681 = arith.truncf %678 : vector<8x128xf32> to vector<8x128xbf16>
    %c0_317 = arith.constant 0 : index
    %c128_318 = arith.constant 128 : index
    %682 = vector.load %arg12[%c0_317, %c128_318] : memref<8x256xbf16, #tpu.memory_space<vmem>>, vector<8x128xbf16>
    tpu.vector_store %arg12[%c0_317, %c128_318], %681 {strides = array<i32>} : memref<8x256xbf16, #tpu.memory_space<vmem>>, vector<8x128xbf16>,
    %c0_319 = arith.constant 0 : index
    %c0_320 = arith.constant 0 : index
    %683 = vector.load %arg13[%c0_319, %c0_320] : memref<8x256xf32, #tpu.memory_space<vmem>>, vector<8x128xf32>
    tpu.vector_store %arg13[%c0_319, %c0_320], %644 {strides = array<i32>} : memref<8x256xf32, #tpu.memory_space<vmem>>, vector<8x128xf32>,
    %c0_321 = arith.constant 0 : index
    %c128_322 = arith.constant 128 : index
    %684 = vector.load %arg13[%c0_321, %c128_322] : memref<8x256xf32, #tpu.memory_space<vmem>>, vector<8x128xf32>
    tpu.vector_store %arg13[%c0_321, %c128_322], %676 {strides = array<i32>} : memref<8x256xf32, #tpu.memory_space<vmem>>, vector<8x128xf32>,
    %685 = arith.truncf %646 : vector<8x128xf32> to vector<8x128xbf16>
    %686 = arith.index_cast %c6_i32 : i32 to index
    %c0_323 = arith.constant 0 : index
    %c0_324 = arith.constant 0 : index
    %687 = vector.load %arg8[%686, %c0_323, %c0_324] : memref<8x8x128xbf16, #tpu.memory_space<vmem>>, vector<1x8x128xbf16>
    %688 = vector.shape_cast %687 : vector<1x8x128xbf16> to vector<8x128xbf16>
    %689 = vector.shape_cast %685 : vector<8x128xbf16> to vector<1x8x128xbf16>
    tpu.vector_store %arg8[%686, %c0_323, %c0_324], %689 {strides = array<i32>} : memref<8x8x128xbf16, #tpu.memory_space<vmem>>, vector<1x8x128xbf16>,
    %690 = arith.truncf %678 : vector<8x128xf32> to vector<8x128xbf16>
    %691 = arith.index_cast %599 : i32 to index
    %c0_325 = arith.constant 0 : index
    %c0_326 = arith.constant 0 : index
    %692 = vector.load %arg9[%691, %c0_325, %c0_326] : memref<8x8x128xbf16, #tpu.memory_space<vmem>>, vector<1x8x128xbf16>
    %693 = vector.shape_cast %692 : vector<1x8x128xbf16> to vector<8x128xbf16>
    %694 = vector.shape_cast %690 : vector<8x128xbf16> to vector<1x8x128xbf16>
    tpu.vector_store %arg9[%691, %c0_325, %c0_326], %694 {strides = array<i32>} : memref<8x8x128xbf16, #tpu.memory_space<vmem>>, vector<1x8x128xbf16>,
    %c7_i32_327 = arith.constant 7 : i32
    %c7_i32_328 = arith.constant 7 : i32
    %695 = arith.subi %c7_i32_328, %c7_i32_327 : i32
    %c0_329 = arith.constant 0 : index
    %c0_330 = arith.constant 0 : index
    %696 = vector.load %arg12[%c0_329, %c0_330] : memref<8x256xbf16, #tpu.memory_space<vmem>>, vector<8x256xbf16>
    %c0_331 = arith.constant 0 : index
    %c0_332 = arith.constant 0 : index
    %697 = vector.load %arg6[%c0_331, %c0_332] : memref<256x1024xbf16, #tpu.memory_space<vmem>>, vector<256x1024xbf16>
    %cst_333 = arith.constant dense<0.000000e+00> : vector<8x1024xf32>
    %698 = tpu.matmul %696, %697, %cst_333 {dimension_numbers = #tpu.dot_dimension_numbers<[1], [0], [0], [1], [0, 0, 1, 1], [], []>} : vector<8x256xbf16>, vector<256x1024xbf16>, vector<8x1024xf32> -> vector<8x1024xf32>
    %699 = vector.extract_strided_slice %698 {offsets = [0, 0], sizes = [8, 512], strides = [1, 1]} : vector<8x1024xf32> to vector<8x512xf32>
    %700 = vector.extract_strided_slice %698 {offsets = [0, 512], sizes = [8, 512], strides = [1, 1]} : vector<8x1024xf32> to vector<8x512xf32>
    %701 = arith.index_cast %c7_i32_327 : i32 to index
    %c0_334 = arith.constant 0 : index
    %c0_335 = arith.constant 0 : index
    %702 = vector.load %arg10[%701, %c0_334, %c0_335] : memref<8x8x512xbf16, #tpu.memory_space<vmem>>, vector<1x8x512xbf16>
    %703 = vector.shape_cast %702 : vector<1x8x512xbf16> to vector<8x512xbf16>
    %704 = arith.extf %703 : vector<8x512xbf16> to vector<8x512xf32>
    %705 = arith.addf %704, %699 : vector<8x512xf32>
    %706 = arith.index_cast %695 : i32 to index
    %c0_336 = arith.constant 0 : index
    %c0_337 = arith.constant 0 : index
    %707 = vector.load %arg11[%706, %c0_336, %c0_337] : memref<8x8x512xbf16, #tpu.memory_space<vmem>>, vector<1x8x512xbf16>
    %708 = vector.shape_cast %707 : vector<1x8x512xbf16> to vector<8x512xbf16>
    %709 = arith.extf %708 : vector<8x512xbf16> to vector<8x512xf32>
    %710 = arith.addf %709, %700 : vector<8x512xf32>
    %c0_338 = arith.constant 0 : index
    %c0_339 = arith.constant 0 : index
    %711 = vector.load %arg13[%c0_338, %c0_339] : memref<8x256xf32, #tpu.memory_space<vmem>>, vector<8x128xf32>
    %712 = vector.extract_strided_slice %705 {offsets = [0, 0], sizes = [8, 128], strides = [1, 1]} : vector<8x512xf32> to vector<8x128xf32>
    %cst_340 = arith.constant 5.000000e-01 : f32
    %713 = vector.broadcast %cst_340 : f32 to vector<8x128xf32>
    %714 = arith.mulf %713, %712 : vector<8x128xf32>
    %715 = math.tanh %714 : vector<8x128xf32>
    %cst_341 = arith.constant 5.000000e-01 : f32
    %716 = vector.broadcast %cst_341 : f32 to vector<8x128xf32>
    %717 = arith.mulf %716, %715 : vector<8x128xf32>
    %cst_342 = arith.constant 5.000000e-01 : f32
    %718 = vector.broadcast %cst_342 : f32 to vector<8x128xf32>
    %719 = arith.addf %717, %718 : vector<8x128xf32>
    %720 = vector.extract_strided_slice %705 {offsets = [0, 128], sizes = [8, 128], strides = [1, 1]} : vector<8x512xf32> to vector<8x128xf32>
    %cst_343 = arith.constant 5.000000e-01 : f32
    %721 = vector.broadcast %cst_343 : f32 to vector<8x128xf32>
    %722 = arith.mulf %721, %720 : vector<8x128xf32>
    %723 = math.tanh %722 : vector<8x128xf32>
    %cst_344 = arith.constant 5.000000e-01 : f32
    %724 = vector.broadcast %cst_344 : f32 to vector<8x128xf32>
    %725 = arith.mulf %724, %723 : vector<8x128xf32>
    %cst_345 = arith.constant 5.000000e-01 : f32
    %726 = vector.broadcast %cst_345 : f32 to vector<8x128xf32>
    %727 = arith.addf %725, %726 : vector<8x128xf32>
    %728 = vector.extract_strided_slice %705 {offsets = [0, 256], sizes = [8, 128], strides = [1, 1]} : vector<8x512xf32> to vector<8x128xf32>
    %729 = math.tanh %728 : vector<8x128xf32>
    %730 = vector.extract_strided_slice %705 {offsets = [0, 384], sizes = [8, 128], strides = [1, 1]} : vector<8x512xf32> to vector<8x128xf32>
    %cst_346 = arith.constant 5.000000e-01 : f32
    %731 = vector.broadcast %cst_346 : f32 to vector<8x128xf32>
    %732 = arith.mulf %731, %730 : vector<8x128xf32>
    %733 = math.tanh %732 : vector<8x128xf32>
    %cst_347 = arith.constant 5.000000e-01 : f32
    %734 = vector.broadcast %cst_347 : f32 to vector<8x128xf32>
    %735 = arith.mulf %734, %733 : vector<8x128xf32>
    %cst_348 = arith.constant 5.000000e-01 : f32
    %736 = vector.broadcast %cst_348 : f32 to vector<8x128xf32>
    %737 = arith.addf %735, %736 : vector<8x128xf32>
    %738 = arith.mulf %727, %711 : vector<8x128xf32>
    %739 = arith.mulf %719, %729 : vector<8x128xf32>
    %740 = arith.addf %738, %739 : vector<8x128xf32>
    %741 = math.tanh %740 : vector<8x128xf32>
    %742 = arith.mulf %737, %741 : vector<8x128xf32>
    %c0_349 = arith.constant 0 : index
    %c128_350 = arith.constant 128 : index
    %743 = vector.load %arg13[%c0_349, %c128_350] : memref<8x256xf32, #tpu.memory_space<vmem>>, vector<8x128xf32>
    %744 = vector.extract_strided_slice %710 {offsets = [0, 0], sizes = [8, 128], strides = [1, 1]} : vector<8x512xf32> to vector<8x128xf32>
    %cst_351 = arith.constant 5.000000e-01 : f32
    %745 = vector.broadcast %cst_351 : f32 to vector<8x128xf32>
    %746 = arith.mulf %745, %744 : vector<8x128xf32>
    %747 = math.tanh %746 : vector<8x128xf32>
    %cst_352 = arith.constant 5.000000e-01 : f32
    %748 = vector.broadcast %cst_352 : f32 to vector<8x128xf32>
    %749 = arith.mulf %748, %747 : vector<8x128xf32>
    %cst_353 = arith.constant 5.000000e-01 : f32
    %750 = vector.broadcast %cst_353 : f32 to vector<8x128xf32>
    %751 = arith.addf %749, %750 : vector<8x128xf32>
    %752 = vector.extract_strided_slice %710 {offsets = [0, 128], sizes = [8, 128], strides = [1, 1]} : vector<8x512xf32> to vector<8x128xf32>
    %cst_354 = arith.constant 5.000000e-01 : f32
    %753 = vector.broadcast %cst_354 : f32 to vector<8x128xf32>
    %754 = arith.mulf %753, %752 : vector<8x128xf32>
    %755 = math.tanh %754 : vector<8x128xf32>
    %cst_355 = arith.constant 5.000000e-01 : f32
    %756 = vector.broadcast %cst_355 : f32 to vector<8x128xf32>
    %757 = arith.mulf %756, %755 : vector<8x128xf32>
    %cst_356 = arith.constant 5.000000e-01 : f32
    %758 = vector.broadcast %cst_356 : f32 to vector<8x128xf32>
    %759 = arith.addf %757, %758 : vector<8x128xf32>
    %760 = vector.extract_strided_slice %710 {offsets = [0, 256], sizes = [8, 128], strides = [1, 1]} : vector<8x512xf32> to vector<8x128xf32>
    %761 = math.tanh %760 : vector<8x128xf32>
    %762 = vector.extract_strided_slice %710 {offsets = [0, 384], sizes = [8, 128], strides = [1, 1]} : vector<8x512xf32> to vector<8x128xf32>
    %cst_357 = arith.constant 5.000000e-01 : f32
    %763 = vector.broadcast %cst_357 : f32 to vector<8x128xf32>
    %764 = arith.mulf %763, %762 : vector<8x128xf32>
    %765 = math.tanh %764 : vector<8x128xf32>
    %cst_358 = arith.constant 5.000000e-01 : f32
    %766 = vector.broadcast %cst_358 : f32 to vector<8x128xf32>
    %767 = arith.mulf %766, %765 : vector<8x128xf32>
    %cst_359 = arith.constant 5.000000e-01 : f32
    %768 = vector.broadcast %cst_359 : f32 to vector<8x128xf32>
    %769 = arith.addf %767, %768 : vector<8x128xf32>
    %770 = arith.mulf %759, %743 : vector<8x128xf32>
    %771 = arith.mulf %751, %761 : vector<8x128xf32>
    %772 = arith.addf %770, %771 : vector<8x128xf32>
    %773 = math.tanh %772 : vector<8x128xf32>
    %774 = arith.mulf %769, %773 : vector<8x128xf32>
    %775 = arith.truncf %742 : vector<8x128xf32> to vector<8x128xbf16>
    %c0_360 = arith.constant 0 : index
    %c0_361 = arith.constant 0 : index
    %776 = vector.load %arg12[%c0_360, %c0_361] : memref<8x256xbf16, #tpu.memory_space<vmem>>, vector<8x128xbf16>
    tpu.vector_store %arg12[%c0_360, %c0_361], %775 {strides = array<i32>} : memref<8x256xbf16, #tpu.memory_space<vmem>>, vector<8x128xbf16>,
    %777 = arith.truncf %774 : vector<8x128xf32> to vector<8x128xbf16>
    %c0_362 = arith.constant 0 : index
    %c128_363 = arith.constant 128 : index
    %778 = vector.load %arg12[%c0_362, %c128_363] : memref<8x256xbf16, #tpu.memory_space<vmem>>, vector<8x128xbf16>
    tpu.vector_store %arg12[%c0_362, %c128_363], %777 {strides = array<i32>} : memref<8x256xbf16, #tpu.memory_space<vmem>>, vector<8x128xbf16>,
    %c0_364 = arith.constant 0 : index
    %c0_365 = arith.constant 0 : index
    %779 = vector.load %arg13[%c0_364, %c0_365] : memref<8x256xf32, #tpu.memory_space<vmem>>, vector<8x128xf32>
    tpu.vector_store %arg13[%c0_364, %c0_365], %740 {strides = array<i32>} : memref<8x256xf32, #tpu.memory_space<vmem>>, vector<8x128xf32>,
    %c0_366 = arith.constant 0 : index
    %c128_367 = arith.constant 128 : index
    %780 = vector.load %arg13[%c0_366, %c128_367] : memref<8x256xf32, #tpu.memory_space<vmem>>, vector<8x128xf32>
    tpu.vector_store %arg13[%c0_366, %c128_367], %772 {strides = array<i32>} : memref<8x256xf32, #tpu.memory_space<vmem>>, vector<8x128xf32>,
    %781 = arith.truncf %742 : vector<8x128xf32> to vector<8x128xbf16>
    %782 = arith.index_cast %c7_i32_327 : i32 to index
    %c0_368 = arith.constant 0 : index
    %c0_369 = arith.constant 0 : index
    %783 = vector.load %arg8[%782, %c0_368, %c0_369] : memref<8x8x128xbf16, #tpu.memory_space<vmem>>, vector<1x8x128xbf16>
    %784 = vector.shape_cast %783 : vector<1x8x128xbf16> to vector<8x128xbf16>
    %785 = vector.shape_cast %781 : vector<8x128xbf16> to vector<1x8x128xbf16>
    tpu.vector_store %arg8[%782, %c0_368, %c0_369], %785 {strides = array<i32>} : memref<8x8x128xbf16, #tpu.memory_space<vmem>>, vector<1x8x128xbf16>,
    %786 = arith.truncf %774 : vector<8x128xf32> to vector<8x128xbf16>
    %787 = arith.index_cast %695 : i32 to index
    %c0_370 = arith.constant 0 : index
    %c0_371 = arith.constant 0 : index
    %788 = vector.load %arg9[%787, %c0_370, %c0_371] : memref<8x8x128xbf16, #tpu.memory_space<vmem>>, vector<1x8x128xbf16>
    %789 = vector.shape_cast %788 : vector<1x8x128xbf16> to vector<8x128xbf16>
    %790 = vector.shape_cast %786 : vector<8x128xbf16> to vector<1x8x128xbf16>
    tpu.vector_store %arg9[%787, %c0_370, %c0_371], %790 {strides = array<i32>} : memref<8x8x128xbf16, #tpu.memory_space<vmem>>, vector<1x8x128xbf16>,
    %c8_i32 = arith.constant 8 : i32
    return
  }
  func.func @transform_0(%arg0: i32, %arg1: i32) -> (i32, i32, i32) {
    %c0_i32 = arith.constant 0 : i32
    %c0_i32_0 = arith.constant 0 : i32
    return %arg1, %arg0, %c0_i32 : i32, i32, i32
  }
  func.func @transform_1(%arg0: i32, %arg1: i32) -> (i32, i32, i32) {
    %c0_i32 = arith.constant 0 : i32
    %0 = arith.subi %c0_i32, %arg1 : i32
    %c0_i32_0 = arith.constant 0 : i32
    %c0_i32_1 = arith.constant 0 : i32
    return %0, %arg0, %c0_i32_0 : i32, i32, i32
  }
  func.func @transform_2(%arg0: i32, %arg1: i32) -> (i32, i32) {
    %c0_i32 = arith.constant 0 : i32
    %c0_i32_0 = arith.constant 0 : i32
    %c0_i32_1 = arith.constant 0 : i32
    return %c0_i32, %c0_i32_0 : i32, i32
  }
  func.func @transform_3(%arg0: i32, %arg1: i32) -> (i32, i32) {
    %c0_i32 = arith.constant 0 : i32
    %c0_i32_0 = arith.constant 0 : i32
    %c0_i32_1 = arith.constant 0 : i32
    return %c0_i32, %c0_i32_0 : i32, i32
  }
  func.func @transform_4(%arg0: i32, %arg1: i32) -> (i32, i32) {
    %c0_i32 = arith.constant 0 : i32
    %c0_i32_0 = arith.constant 0 : i32
    %c0_i32_1 = arith.constant 0 : i32
    return %c0_i32, %c0_i32_0 : i32, i32
  }
  func.func @transform_5(%arg0: i32, %arg1: i32) -> (i32, i32) {
    %c0_i32 = arith.constant 0 : i32
    %c0_i32_0 = arith.constant 0 : i32
    %c0_i32_1 = arith.constant 0 : i32
    return %c0_i32, %c0_i32_0 : i32, i32
  }
  func.func @transform_6(%arg0: i32, %arg1: i32) -> (i32, i32, i32) {
    %c0_i32 = arith.constant 0 : i32
    %c0_i32_0 = arith.constant 0 : i32
    return %arg1, %arg0, %c0_i32 : i32, i32, i32
  }
  func.func @transform_7(%arg0: i32, %arg1: i32) -> (i32, i32, i32) {
    %c0_i32 = arith.constant 0 : i32
    %0 = arith.subi %c0_i32, %arg1 : i32
    %c0_i32_0 = arith.constant 0 : i32
    %c0_i32_1 = arith.constant 0 : i32
    return %0, %arg0, %c0_i32_0 : i32, i32, i32
  }
}

</mosaic_0001>

<bundles_post_ra>
// kernel: tpu_custom_call.1
= control target key start
LH: loop header
LB: loop body
LE: loop exit
PB: predicated region body
PF: predicated region fallthrough
CT: control target
= control target key end

     0   :  { %13 = vsyncpa [#allocation7], 0  ;;  %s13061_s0 = inlined_call_operand.hbm [shape: bf16[8,8,128], index: 0, kind: input, shape index: {}]   ;;  %s13062_s1 = inlined_call_operand.hbm [shape: bf16[8,8,128], index: 1, kind: input, shape index: {}]   ;;  %s13063_s2 = inlined_call_operand.hbm [shape: bf16[128,512], index: 2, kind: input, shape index: {}]   ;;  %s13064_s3 = inlined_call_operand.hbm [shape: bf16[128,512], index: 3, kind: input, shape index: {}]   ;;  %s13065_s4 = inlined_call_operand.hbm [shape: bf16[256,1024], index: 4, kind: input, shape index: {}]   ;;  %s13066_s5 = inlined_call_operand.vmem [shape: f32[1,1024], index: 5, kind: input, shape index: {}]   ;;  %s13067_s6 = inlined_call_operand.hbm [shape: bf16[8,8,128], index: 6, kind: output, shape index: {0}]   ;;  %s13068_s7 = inlined_call_operand.hbm [shape: bf16[8,8,128], index: 7, kind: output, shape index: {1}]  }
   0x1   :  { %14 = vsyncpa [#allocation10], 0 }
   0x2   :  { %15 = vsyncpa [#allocation13], 0 }
   0x3   :  { %16 = vsyncpa [#allocation8], 0 }
   0x4   :  { %17 = vsyncpa [#allocation17], 0  ;;  %s10974_s24 = smov [#allocation9]   ;;  %s10810_s28 = scalar_lea.hbm %s13062_s1, 512 }
   0x5   :  { %s39_s25 = sshll.u32 %s10974_s24, 4  ;;  %p10811_p0 = scmp.ne.s32.totalorder %s13062_s1, %s10810_s28  ;;  %s40_s25 = int_to_ptr.vmem [resolvable:$true] %s39_s25 }
   0x6   :  { %p10814_p1 = scmp.lt.u32.totalorder %s10810_s28, %s13062_s1 }
   0x8   :  { %p10816_p2 = pnand %p10814_p1, %p10811_p0 }
   0xa   :  { %10819 = shalt.err (!%p10816_p2)
}
   0xb   :  { %s10820_s10 = scalar_lea.vmem %s40_s25, 512  ;;  %p10825_p4 = scmp.lt.s32.totalorder %s40_s25, %s40_s25 }
   0xc   :  { %p10821_p3 = scmp.ne.s32.totalorder %s40_s25, %s10820_s10  ;;  %p10826_p5 = scmp.lt.s32.totalorder %s10820_s10, %s10820_s10 }
   0xe   :  { %p10827_p6 = por %p10826_p5, %p10825_p4 }
  0x10   :  { %p10828_p7 = pnand %p10827_p6, %p10821_p3 }
  0x12   :  { %10831 = shalt.err (!%p10828_p7)
}
  0x13   :  { %s10975_s11 = smov 64   ;;  %s10976_s12 = smov 4  }
  0x14   :  { %45 = dma.hbm_to_vmem [thread:$0]  %s13062_s1, 512, %s40_s25, [#allocation10], %s10975_s11, %s10975_s11, %s10976_s12  }
  0x15   :  { %s10977_s15 = smov [#allocation12]   ;;  %s10978_s17 = smov [#allocation6]  }
  0x16   :  { %s63_s16 = sshll.u32 %s10977_s15, 4  ;;  %s23_s18 = sshll.u32 %s10978_s17, 4  ;;  %s64_s16 = int_to_ptr.vmem [resolvable:$true] %s63_s16  ;;  %s24_s18 = int_to_ptr.vmem [resolvable:$true] %s23_s18 }
  0x17   :  { %s10832_s21 = scalar_lea.hbm %s13064_s3, 4096 }
  0x18   :  { %p10833_p8 = scmp.ne.s32.totalorder %s13064_s3, %s10832_s21  ;;  %p10836_p9 = scmp.lt.u32.totalorder %s10832_s21, %s13064_s3 }
  0x1a   :  { %p10838_p10 = pnand %p10836_p9, %p10833_p8 }
  0x1c   :  { %10841 = shalt.err (!%p10838_p10)
}
  0x1d   :  { %s10842_s1 = scalar_lea.vmem %s64_s16, 4096  ;;  %p10847_p12 = scmp.lt.s32.totalorder %s64_s16, %s64_s16 }
  0x1e   :  { %p10843_p11 = scmp.ne.s32.totalorder %s64_s16, %s10842_s1  ;;  %p10848_p13 = scmp.lt.s32.totalorder %s10842_s1, %s10842_s1 }
  0x20   :  { %p10849_p0 = por %p10848_p13, %p10847_p12 }
  0x22   :  { %p10850_p1 = pnand %p10849_p0, %p10843_p11 }
  0x24   :  { %10853 = shalt.err (!%p10850_p1)
}
  0x25   :  { %s10979_s25 = smov 256   ;;  %s10980_s27 = smov 16  }
  0x26   :  { %69 = dma.hbm_to_vmem [thread:$0]  %s13064_s3, 4096, %s64_s16, [#allocation13], %s10979_s25, %s10979_s25, %s10980_s27  }
  0x27   :  { %s10854_s9 = scalar_lea.hbm %s13061_s0, 512 }
  0x28   :  { %p10855_p2 = scmp.ne.s32.totalorder %s13061_s0, %s10854_s9  ;;  %p10858_p3 = scmp.lt.u32.totalorder %s10854_s9, %s13061_s0 }
  0x2a   :  { %p10860_p4 = pnand %p10858_p3, %p10855_p2 }
  0x2c   :  { %10863 = shalt.err (!%p10860_p4)
}
  0x2d   :  { %s10864_s17 = scalar_lea.vmem %s24_s18, 512  ;;  %p10869_p6 = scmp.lt.s32.totalorder %s24_s18, %s24_s18 }
  0x2e   :  { %p10865_p5 = scmp.ne.s32.totalorder %s24_s18, %s10864_s17  ;;  %p10870_p7 = scmp.lt.s32.totalorder %s10864_s17, %s10864_s17 }
  0x30   :  { %p10871_p8 = por %p10870_p7, %p10869_p6 }
  0x32   :  { %p10872_p9 = pnand %p10871_p8, %p10865_p5 }
  0x34   :  { %10875 = shalt.err (!%p10872_p9)
}
  0x35   :  { %29 = dma.hbm_to_vmem [thread:$0]  %s13061_s0, 512, %s24_s18, [#allocation7], %s10975_s11, %s10975_s11, %s10976_s12  }
  0x36   :  { %s10981_s19 = smov [#allocation11]   ;;  %s10982_s21 = smov [#allocation14]  }
  0x37   :  { %s51_s20 = sshll.u32 %s10981_s19, 4  ;;  %s75_s22 = sshll.u32 %s10982_s21, 4  ;;  %s52_s20 = int_to_ptr.vmem [resolvable:$true] %s51_s20  ;;  %s76_s22 = int_to_ptr.vmem [resolvable:$true] %s75_s22 }
  0x38   :  { %s10876_s26 = scalar_lea.hbm %s13063_s2, 4096 }
  0x39   :  { %p10877_p10 = scmp.ne.s32.totalorder %s13063_s2, %s10876_s26  ;;  %p10880_p11 = scmp.lt.u32.totalorder %s10876_s26, %s13063_s2 }
  0x3b   :  { %p10882_p12 = pnand %p10880_p11, %p10877_p10 }
  0x3d   :  { %10885 = shalt.err (!%p10882_p12)
}
  0x3e   :  { %s10886_s0 = scalar_lea.vmem %s52_s20, 4096  ;;  %p10891_p0 = scmp.lt.s32.totalorder %s52_s20, %s52_s20 }
  0x3f   :  { %p10887_p13 = scmp.ne.s32.totalorder %s52_s20, %s10886_s0  ;;  %p10892_p1 = scmp.lt.s32.totalorder %s10886_s0, %s10886_s0 }
  0x41   :  { %p10893_p2 = por %p10892_p1, %p10891_p0 }
  0x43   :  { %p10894_p3 = pnand %p10893_p2, %p10887_p13 }
  0x45   :  { %10897 = shalt.err (!%p10894_p3)
}
  0x46   :  { %57 = dma.hbm_to_vmem [thread:$0]  %s13063_s2, 4096, %s52_s20, [#allocation10], %s10979_s25, %s10979_s25, %s10980_s27  }
  0x47   :  { %s10898_s13 = scalar_lea.hbm %s13065_s4, 16384 }
  0x48   :  { %p10899_p4 = scmp.ne.s32.totalorder %s13065_s4, %s10898_s13  ;;  %p10902_p5 = scmp.lt.u32.totalorder %s10898_s13, %s13065_s4 }
  0x4a   :  { %p10904_p6 = pnand %p10902_p5, %p10899_p4 }
  0x4c   :  { %10907 = shalt.err (!%p10904_p6)
}
  0x4d   :  { %s10908_s16 = scalar_lea.vmem %s76_s22, 16384  ;;  %p10913_p8 = scmp.lt.s32.totalorder %s76_s22, %s76_s22 }
  0x4e   :  { %p10909_p7 = scmp.ne.s32.totalorder %s76_s22, %s10908_s16  ;;  %p10914_p9 = scmp.lt.s32.totalorder %s10908_s16, %s10908_s16 }
  0x50   :  { %p10915_p10 = por %p10914_p9, %p10913_p8 }
  0x52   :  { %p10916_p11 = pnand %p10915_p10, %p10909_p7 }
  0x54   :  { %10919 = shalt.err (!%p10916_p11)
}
  0x55   :  { %s10983_s2 = smov 512   ;;  %s10984_s25 = smov 32  }
  0x56   :  { %81 = dma.hbm_to_vmem [thread:$0]  %s13065_s4, 16384, %s76_s22, [#allocation13], %s10983_s2, %s10983_s2, %s10984_s25  }
  0x57   :  { %10964 = dma.done.wait [#allocation7], 512  }
  0x58   :  { %10965 = vsyncadd [#allocation7], 4294966784 }
  0x59   :  { %10966 = dma.done.wait [#allocation10], 4608  }
  0x5a   :  { %10967 = vsyncadd [#allocation10], 4294962688 }
  0x5b   :  { %10968 = dma.done.wait [#allocation13], 20480  }
  0x5c   :  { %10969 = vsyncadd [#allocation13], 4294946816  ;;  %v10985_v0 = vmov 0   ;;  %v10546_v1 = vld [vmem:[#allocation11 + $0x4] ss:$16 sps:$4 sm:$0xff]   ;;  %v10607_v44 = vld [vmem:[#allocation6 + $0x8] sm:$0xff]  }
  0x5d   :  { %389 = vmatprep.mubr.bf16.mxu0 %v10985_v0  ;;  %462 = vmatprep.mubr.bf16.mxu1 %v10985_v0  ;;  %v10548_v2 = vld [vmem:[#allocation11 + $0xc] ss:$16 sps:$4 sm:$0xff]   ;;  %v10550_v3 = vld [vmem:[#allocation11] ss:$16 sps:$4 sm:$0xff]   ;;  %v10551_v4 = vld [vmem:[#allocation11 + $0x8] ss:$16 sps:$4 sm:$0xff]  }
  0x5e   :  { %357 = vmatprep.subr.bf16.mxu0 %v10546_v1  ;;  %430 = vmatprep.subr.bf16.mxu1 %v10548_v2  ;;  %v10552_v5 = vld [vmem:[#allocation11 + $0x24] ss:$16 sps:$4 sm:$0xff]   ;;  %v10554_v6 = vld [vmem:[#allocation11 + $0x2c] ss:$16 sps:$4 sm:$0xff]   ;;  %v10556_v7 = vld [vmem:[#allocation11 + $0x20] ss:$16 sps:$4 sm:$0xff]  }
  0x5f   :  { %358 = vmatpush1.bf16.msra.mxu0 %v10550_v3  ;;  %431 = vmatpush1.bf16.msra.mxu1 %v10551_v4  ;;  %v10557_v8 = vld [vmem:[#allocation11 + $0x28] ss:$16 sps:$4 sm:$0xff]   ;;  %v10558_v9 = vld [vmem:[#allocation11 + $0x44] ss:$16 sps:$4 sm:$0xff]   ;;  %v10560_v10 = vld [vmem:[#allocation11 + $0x4c] ss:$16 sps:$4 sm:$0xff]  }
  0x60   :  { %359 = vmatprep.subr.bf16.mxu0 %v10552_v5  ;;  %432 = vmatprep.subr.bf16.mxu1 %v10554_v6  ;;  %v10562_v11 = vld [vmem:[#allocation11 + $0x40] ss:$16 sps:$4 sm:$0xff]   ;;  %v10563_v12 = vld [vmem:[#allocation11 + $0x48] ss:$16 sps:$4 sm:$0xff]   ;;  %v10564_v13 = vld [vmem:[#allocation11 + $0x64] ss:$16 sps:$4 sm:$0xff]  }
  0x61   :  { %v10566_v14 = vld [vmem:[#allocation11 + $0x6c] ss:$16 sps:$4 sm:$0xff]   ;;  %v10568_v15 = vld [vmem:[#allocation11 + $0x60] ss:$16 sps:$4 sm:$0xff]   ;;  %v10569_v16 = vld [vmem:[#allocation11 + $0x68] ss:$16 sps:$4 sm:$0xff]  }
  0x62   :  { %v10570_v17 = vld [vmem:[#allocation11 + $0x84] ss:$16 sps:$4 sm:$0xff]   ;;  %v10572_v18 = vld [vmem:[#allocation11 + $0x8c] ss:$16 sps:$4 sm:$0xff]   ;;  %v10574_v19 = vld [vmem:[#allocation11 + $0x80] ss:$16 sps:$4 sm:$0xff]  }
  0x63   :  { %360 = vmatpush1.bf16.msra.mxu0 %v10556_v7  ;;  %433 = vmatpush1.bf16.msra.mxu1 %v10557_v8  ;;  %v10575_v20 = vld [vmem:[#allocation11 + $0x88] ss:$16 sps:$4 sm:$0xff]   ;;  %v10576_v21 = vld [vmem:[#allocation11 + $0xa4] ss:$16 sps:$4 sm:$0xff]   ;;  %v10578_v22 = vld [vmem:[#allocation11 + $0xac] ss:$16 sps:$4 sm:$0xff]  }
  0x64   :  { %361 = vmatprep.subr.bf16.mxu0 %v10558_v9  ;;  %434 = vmatprep.subr.bf16.mxu1 %v10560_v10  ;;  %v10580_v23 = vld [vmem:[#allocation11 + $0xa0] ss:$16 sps:$4 sm:$0xff]   ;;  %v10581_v24 = vld [vmem:[#allocation11 + $0xa8] ss:$16 sps:$4 sm:$0xff]   ;;  %v10582_v25 = vld [vmem:[#allocation11 + $0xc4] ss:$16 sps:$4 sm:$0xff]  }
  0x65   :  { %v10584_v26 = vld [vmem:[#allocation11 + $0xcc] ss:$16 sps:$4 sm:$0xff]   ;;  %v10586_v27 = vld [vmem:[#allocation11 + $0xc0] ss:$16 sps:$4 sm:$0xff]   ;;  %v10587_v28 = vld [vmem:[#allocation11 + $0xc8] ss:$16 sps:$4 sm:$0xff]  }
  0x66   :  { %v10588_v29 = vld [vmem:[#allocation11 + $0xe4] ss:$16 sps:$4 sm:$0xff]   ;;  %v10590_v30 = vld [vmem:[#allocation11 + $0xec] ss:$16 sps:$4 sm:$0xff]   ;;  %v10592_v31 = vld [vmem:[#allocation11 + $0xe0] ss:$16 sps:$4 sm:$0xff]  }
  0x67   :  { %362 = vmatpush1.bf16.msra.mxu0 %v10562_v11  ;;  %435 = vmatpush1.bf16.msra.mxu1 %v10563_v12  ;;  %v10593_v32 = vld [vmem:[#allocation11 + $0xe8] ss:$16 sps:$4 sm:$0xff]   ;;  %v10597_v33 = vld [vmem:[#allocation12 + $0x4] ss:$16 sps:$4 sm:$0xff]   ;;  %v10600_v34 = vld [vmem:[#allocation12 + $0xc] ss:$16 sps:$4 sm:$0xff]  }
  0x68   :  { %363 = vmatprep.subr.bf16.mxu0 %v10564_v13  ;;  %436 = vmatprep.subr.bf16.mxu1 %v10566_v14  ;;  %v10594_v35 = vld [vmem:[#allocation6] sm:$0xff]   ;;  %v10598_v37 = vld [vmem:[#allocation12 + $0x8] ss:$16 sps:$4 sm:$0xff]   ;;  %v10606_v39 = vld [vmem:[#allocation12 + $0x2c] ss:$16 sps:$4 sm:$0xff]  }
  0x69   :  { %v10595_v36 = vld [vmem:[#allocation12] ss:$16 sps:$4 sm:$0xff]   ;;  %v10603_v38 = vld [vmem:[#allocation12 + $0x24] ss:$16 sps:$4 sm:$0xff]   ;;  %v10604_v41 = vld [vmem:[#allocation12 + $0x28] ss:$16 sps:$4 sm:$0xff]  }
  0x6a   :  { %v10601_v40 = vld [vmem:[#allocation12 + $0x20] ss:$16 sps:$4 sm:$0xff]   ;;  %v10610_v42 = vld [vmem:[#allocation12 + $0x44] ss:$16 sps:$4 sm:$0xff]   ;;  %v10613_v43 = vld [vmem:[#allocation12 + $0x4c] ss:$16 sps:$4 sm:$0xff]  }
  0x6b   :  { %364 = vmatpush1.bf16.msra.mxu0 %v10568_v15  ;;  %437 = vmatpush1.bf16.msra.mxu1 %v10569_v16  ;;  %v10608_v45 = vld [vmem:[#allocation12 + $0x40] ss:$16 sps:$4 sm:$0xff]   ;;  %v10611_v46 = vld [vmem:[#allocation12 + $0x48] ss:$16 sps:$4 sm:$0xff]   ;;  %v10616_v47 = vld [vmem:[#allocation12 + $0x64] ss:$16 sps:$4 sm:$0xff]  }
  0x6c   :  { %365 = vmatprep.subr.bf16.mxu0 %v10570_v17  ;;  %438 = vmatprep.subr.bf16.mxu1 %v10572_v18  ;;  %v10619_v48 = vld [vmem:[#allocation12 + $0x6c] ss:$16 sps:$4 sm:$0xff]   ;;  %v10614_v49 = vld [vmem:[#allocation12 + $0x60] ss:$16 sps:$4 sm:$0xff]   ;;  %v10617_v50 = vld [vmem:[#allocation12 + $0x68] ss:$16 sps:$4 sm:$0xff]  }
  0x6d   :  { %v10623_v51 = vld [vmem:[#allocation12 + $0x84] ss:$16 sps:$4 sm:$0xff]   ;;  %v10626_v52 = vld [vmem:[#allocation12 + $0x8c] ss:$16 sps:$4 sm:$0xff]   ;;  %v10621_v54 = vld [vmem:[#allocation12 + $0x80] ss:$16 sps:$4 sm:$0xff]  }
  0x6e   :  { %v10620_v53 = vld [vmem:[#allocation6 + $0x10] sm:$0xff]   ;;  %v10624_v55 = vld [vmem:[#allocation12 + $0x88] ss:$16 sps:$4 sm:$0xff]   ;;  %v10632_v57 = vld [vmem:[#allocation12 + $0xac] ss:$16 sps:$4 sm:$0xff]  }
  0x6f   :  { %366 = vmatpush1.bf16.msra.mxu0 %v10574_v19  ;;  %439 = vmatpush1.bf16.msra.mxu1 %v10575_v20  ;;  %v10629_v56 = vld [vmem:[#allocation12 + $0xa4] ss:$16 sps:$4 sm:$0xff]   ;;  %v10627_v58 = vld [vmem:[#allocation12 + $0xa0] ss:$16 sps:$4 sm:$0xff]   ;;  %v10630_v59 = vld [vmem:[#allocation12 + $0xa8] ss:$16 sps:$4 sm:$0xff]  }
  0x70   :  { %367 = vmatprep.subr.bf16.mxu0 %v10576_v21  ;;  %440 = vmatprep.subr.bf16.mxu1 %v10578_v22  ;;  %v10636_v60 = vld [vmem:[#allocation12 + $0xc4] ss:$16 sps:$4 sm:$0xff]   ;;  %v10639_v61 = vld [vmem:[#allocation12 + $0xcc] ss:$16 sps:$4 sm:$0xff]   ;;  %v10634_v63 = vld [vmem:[#allocation12 + $0xc0] ss:$16 sps:$4 sm:$0xff]  }
  0x71   :  { %v10633_v62 = vld [vmem:[#allocation6 + $0x18] sm:$0xff]   ;;  %v10642_v2 = vld [vmem:[#allocation12 + $0xe4] ss:$16 sps:$4 sm:$0xff]   ;;  %v1185_v6 = vld [vmem:[#allocation14 + $0x8] sm:$0xff] }
  0x72   :  { %v10637_v1 = vld [vmem:[#allocation12 + $0xc8] ss:$16 sps:$4 sm:$0xff]   ;;  %v10645_v3 = vld [vmem:[#allocation12 + $0xec] ss:$16 sps:$4 sm:$0xff]   ;;  %v1184_v4 = vld [vmem:[#allocation14] sm:$0xff] }
  0x73   :  { %368 = vmatpush1.bf16.msra.mxu0 %v10580_v23  ;;  %441 = vmatpush1.bf16.msra.mxu1 %v10581_v24  ;;  %v1188_v5 = vld [vmem:[#allocation14 + $0x20] sm:$0xff]  ;;  %v1189_v7 = vld [vmem:[#allocation14 + $0x28] sm:$0xff] }
  0x74   :  { %369 = vmatprep.subr.bf16.mxu0 %v10582_v25  ;;  %442 = vmatprep.subr.bf16.mxu1 %v10584_v26  ;;  %v10640_v8 = vld [vmem:[#allocation12 + $0xe0] ss:$16 sps:$4 sm:$0xff]   ;;  %v10643_v9 = vld [vmem:[#allocation12 + $0xe8] ss:$16 sps:$4 sm:$0xff]   ;;  %v9409_v10 = vcombine.high %v1184_v4, %v1188_v5  ;;  %v9411_v11 = vcombine.high %v1185_v6, %v1189_v7  ;;  %v9408_v17 = vcombine.low %v1184_v4, %v1188_v5 }
  0x75   :  { %v1192_v12 = vld [vmem:[#allocation14 + $0x40] sm:$0xff]  ;;  %v1193_v14 = vld [vmem:[#allocation14 + $0x48] sm:$0xff]  ;;  %v9410_v18 = vcombine.low %v1185_v6, %v1189_v7  ;;  %v10649_v4 = vld [vmem:[#allocation9 + $0x18] sm:$0xff]  }
  0x76   :  { %v1196_v13 = vld [vmem:[#allocation14 + $0x60] sm:$0xff]  ;;  %v1197_v15 = vld [vmem:[#allocation14 + $0x68] sm:$0xff] }
  0x77   :  { %370 = vmatpush1.bf16.msra.mxu0 %v10586_v27  ;;  %443 = vmatpush1.bf16.msra.mxu1 %v10587_v28  ;;  %v10646_v16 = vld [vmem:[#allocation9] sm:$0xff]   ;;  %v9417_v19 = vcombine.high %v1192_v12, %v1196_v13  ;;  %v9419_v20 = vcombine.high %v1193_v14, %v1197_v15  ;;  %v1201_v23 = vld [vmem:[#allocation14 + $0x88] sm:$0xff]  ;;  %v9416_v25 = vcombine.low %v1192_v12, %v1196_v13 }
  0x78   :  { %371 = vmatprep.subr.bf16.mxu0 %v10588_v29  ;;  %444 = vmatprep.subr.bf16.mxu1 %v10590_v30  ;;  %v1200_v21 = vld [vmem:[#allocation14 + $0x80] sm:$0xff]  ;;  %v1205_v24 = vld [vmem:[#allocation14 + $0xa8] sm:$0xff]  ;;  %v9418_v26 = vcombine.low %v1193_v14, %v1197_v15  ;;  %v11118_v13 = vcombine.high %v10985_v0, %v10985_v0 }
  0x79   :  { %v1204_v22 = vld [vmem:[#allocation14 + $0xa0] sm:$0xff]  ;;  %v9427_v28 = vcombine.high %v1201_v23, %v1205_v24  ;;  %v1253_v12 = vld [vmem:[#allocation14 + $0x228] sm:$0xff] }
  0x7a   :  { %v9425_v27 = vcombine.high %v1200_v21, %v1204_v22  ;;  %v1208_v29 = vld [vmem:[#allocation14 + $0xc0] sm:$0xff] }
  0x7b   :  { %372 = vmatpush1.bf16.msra.mxu0 %v10592_v31  ;;  %445 = vmatpush1.bf16.msra.mxu1 %v10593_v32  ;;  %v1212_v30 = vld [vmem:[#allocation14 + $0xe0] sm:$0xff]  ;;  %v1209_v31 = vld [vmem:[#allocation14 + $0xc8] sm:$0xff] }
  0x7c   :  { %893 = vmatprep.subr.bf16.mxu0 %v10597_v33  ;;  %966 = vmatprep.subr.bf16.mxu1 %v10600_v34  ;;  %v1213_v32 = vld [vmem:[#allocation14 + $0xe8] sm:$0xff]  ;;  %v9424_v34 = vcombine.low %v1200_v21, %v1204_v22 }
  0x7d   :  { %v10647_v33 = vld [vmem:[#allocation9 + $0x8] sm:$0xff]  }
  0x7e   :  { %390 = vmatmul.mubr.bf16.vlgmr.msra.gmra.mrb[0].mxu0 %v10594_v35  ;;  %463 = vmatmul.mubr.bf16.vlgmr.msra.gmra.mrb[0].mxu1 %v10594_v35  ;;  %v9426_v35 = vcombine.low %v1201_v23, %v1205_v24  ;;  %v1261_v21 = vld [vmem:[#allocation14 + $0x268] sm:$0xff] }
  0x7f   :  { %894 = vmatpush1.bf16.msra.mxu0 %v10595_v36  ;;  %967 = vmatpush1.bf16.msra.mxu1 %v10598_v37  ;;  %v9433_v36 = vcombine.high %v1208_v29, %v1212_v30  ;;  %v9435_v37 = vcombine.high %v1209_v31, %v1213_v32 }
  0x80   :  { %895 = vmatprep.subr.bf16.mxu0 %v10603_v38  ;;  %968 = vmatprep.subr.bf16.mxu1 %v10606_v39  ;;  %v1216_v38 = vld [vmem:[#allocation14 + $0x100] sm:$0xff] }
  0x81   :  { %399 = vmatprep.mubr.bf16.mxu0 %v10985_v0  ;;  %472 = vmatprep.mubr.bf16.mxu1 %v10985_v0  ;;  %v1220_v39 = vld [vmem:[#allocation14 + $0x120] sm:$0xff] }
  0x83   :  { %896 = vmatpush1.bf16.msra.mxu0 %v10601_v40  ;;  %969 = vmatpush1.bf16.msra.mxu1 %v10604_v41  ;;  %v1217_v40 = vld [vmem:[#allocation14 + $0x108] sm:$0xff] }
  0x84   :  { %897 = vmatprep.subr.bf16.mxu0 %v10610_v42  ;;  %970 = vmatprep.subr.bf16.mxu1 %v10613_v43  ;;  %v1221_v41 = vld [vmem:[#allocation14 + $0x128] sm:$0xff]  ;;  %v9432_v42 = vcombine.low %v1208_v29, %v1212_v30  ;;  %v9434_v43 = vcombine.low %v1209_v31, %v1213_v32 }
  0x85   :  { %v1269_v29 = vld [vmem:[#allocation14 + $0x2a8] sm:$0xff] }
  0x86   :  { %400 = vmatmul.mubr.bf16.gmra.mrb[4].mxu0 %v10607_v44  ;;  %473 = vmatmul.mubr.bf16.gmra.mrb[4].mxu1 %v10607_v44  ;;  %v9441_v44 = vcombine.high %v1216_v38, %v1220_v39 }
  0x87   :  { %898 = vmatpush1.bf16.msra.mxu0 %v10608_v45  ;;  %971 = vmatpush1.bf16.msra.mxu1 %v10611_v46  ;;  %v9443_v45 = vcombine.high %v1217_v40, %v1221_v41  ;;  %v1224_v46 = vld [vmem:[#allocation14 + $0x140] sm:$0xff] }
  0x88   :  { %899 = vmatprep.subr.bf16.mxu0 %v10616_v47  ;;  %972 = vmatprep.subr.bf16.mxu1 %v10619_v48  ;;  %v1228_v47 = vld [vmem:[#allocation14 + $0x160] sm:$0xff]  ;;  %v1225_v48 = vld [vmem:[#allocation14 + $0x148] sm:$0xff] }
  0x89   :  { %409 = vmatprep.mubr.bf16.mxu0 %v10985_v0  ;;  %482 = vmatprep.mubr.bf16.mxu1 %v10985_v0 }
  0x8b   :  { %900 = vmatpush1.bf16.msra.mxu0 %v10614_v49  ;;  %973 = vmatpush1.bf16.msra.mxu1 %v10617_v50  ;;  %v1229_v49 = vld [vmem:[#allocation14 + $0x168] sm:$0xff]  ;;  %v10648_v50 = vld [vmem:[#allocation9 + $0x10] sm:$0xff]  }
  0x8c   :  { %901 = vmatprep.subr.bf16.mxu0 %v10623_v51  ;;  %974 = vmatprep.subr.bf16.mxu1 %v10626_v52  ;;  %v9440_v51 = vcombine.low %v1216_v38, %v1220_v39  ;;  %v9442_v52 = vcombine.low %v1217_v40, %v1221_v41 }
  0x8e   :  { %410 = vmatmul.mubr.bf16.gmra.mrb[8].mxu0 %v10620_v53  ;;  %483 = vmatmul.mubr.bf16.gmra.mrb[8].mxu1 %v10620_v53  ;;  %v9449_v53 = vcombine.high %v1224_v46, %v1228_v47 }
  0x8f   :  { %902 = vmatpush1.bf16.msra.mxu0 %v10621_v54  ;;  %975 = vmatpush1.bf16.msra.mxu1 %v10624_v55  ;;  %v9451_v54 = vcombine.high %v1225_v48, %v1229_v49  ;;  %v1232_v55 = vld [vmem:[#allocation14 + $0x180] sm:$0xff] }
  0x90   :  { %903 = vmatprep.subr.bf16.mxu0 %v10629_v56  ;;  %976 = vmatprep.subr.bf16.mxu1 %v10632_v57  ;;  %v1236_v56 = vld [vmem:[#allocation14 + $0x1a0] sm:$0xff]  ;;  %v1233_v57 = vld [vmem:[#allocation14 + $0x188] sm:$0xff] }
  0x91   :  { %419 = vmatprep.mubr.bf16.mxu0 %v10985_v0  ;;  %492 = vmatprep.mubr.bf16.mxu1 %v10985_v0  ;;  %v9456_v5 = vcombine.low %v1232_v55, %v1236_v56 }
  0x93   :  { %904 = vmatpush1.bf16.msra.mxu0 %v10627_v58  ;;  %977 = vmatpush1.bf16.msra.mxu1 %v10630_v59  ;;  %v1237_v58 = vld [vmem:[#allocation14 + $0x1a8] sm:$0xff]  ;;  %v9448_v59 = vcombine.low %v1224_v46, %v1228_v47 }
  0x94   :  { %905 = vmatprep.subr.bf16.mxu0 %v10636_v60  ;;  %978 = vmatprep.subr.bf16.mxu1 %v10639_v61  ;;  %v9450_v60 = vcombine.low %v1225_v48, %v1229_v49  ;;  %v9457_v61 = vcombine.high %v1232_v55, %v1236_v56  ;;  %v9458_v6 = vcombine.low %v1233_v57, %v1237_v58 }
  0x96   :  { %420 = vmatmul.mubr.bf16.gmra.mrb[12].mxu0 %v10633_v62  ;;  %493 = vmatmul.mubr.bf16.gmra.mrb[12].mxu1 %v10633_v62  ;;  %v9459_v62 = vcombine.high %v1233_v57, %v1237_v58  ;;  %v1296_v58 = vld [vmem:[#allocation14 + $0x380] sm:$0xff] }
  0x97   :  { %906 = vmatpush1.bf16.msra.mxu0 %v10634_v63  ;;  %979 = vmatpush1.bf16.msra.mxu1 %v10637_v1  ;;  %v1240_v63 = vld [vmem:[#allocation14 + $0x1c0] sm:$0xff] }
  0x98   :  { %907 = vmatprep.subr.bf16.mxu0 %v10642_v2  ;;  %980 = vmatprep.subr.bf16.mxu1 %v10645_v3  ;;  %v1244_v1 = vld [vmem:[#allocation14 + $0x1e0] sm:$0xff]  ;;  %v1241_v2 = vld [vmem:[#allocation14 + $0x1c8] sm:$0xff] }
  0x99   :  { %925 = vmatprep.mubr.bf16.mxu0 %v10985_v0  ;;  %998 = vmatprep.mubr.bf16.mxu1 %v10985_v0  ;;  %v1245_v3 = vld [vmem:[#allocation14 + $0x1e8] sm:$0xff]  ;;  %v9465_v7 = vcombine.high %v1240_v63, %v1244_v1  ;;  %v9464_v14 = vcombine.low %v1240_v63, %v1244_v1 }
  0x9a   :  { %v9466_v15 = vcombine.low %v1241_v2, %v1245_v3 }
  0x9b   :  { %908 = vmatpush1.bf16.msra.mxu0 %v10640_v8  ;;  %981 = vmatpush1.bf16.msra.mxu1 %v10643_v9  ;;  %v9467_v8 = vcombine.high %v1241_v2, %v1245_v3  ;;  %v1248_v9 = vld [vmem:[#allocation14 + $0x200] sm:$0xff] }
  0x9c   :  { %1959 = vmatprep.subr.bf16.mxu0 %v9409_v10  ;;  %2000 = vmatprep.subr.bf16.mxu1 %v9411_v11  ;;  %v1252_v10 = vld [vmem:[#allocation14 + $0x220] sm:$0xff]  ;;  %v1249_v11 = vld [vmem:[#allocation14 + $0x208] sm:$0xff] }
  0x9d   :  { %v9472_v22 = vcombine.low %v1248_v9, %v1252_v10  ;;  %v9474_v23 = vcombine.low %v1249_v11, %v1253_v12  ;;  %v1304_v3 = vld [vmem:[#allocation14 + $0x3c0] sm:$0xff] }
  0x9e   :  { %926 = vmatmul.mubr.bf16.vlgmr.msra.gmra.mrb[16].mxu0 %v10646_v16  ;;  %999 = vmatmul.mubr.bf16.vlgmr.msra.gmra.mrb[16].mxu1 %v10646_v16  ;;  %v9473_v16 = vcombine.high %v1248_v9, %v1252_v10 }
  0x9f   :  { %1960 = vmatpush1.bf16.msra.mxu0 %v9408_v17  ;;  %2001 = vmatpush1.bf16.msra.mxu1 %v9410_v18  ;;  %v9475_v17 = vcombine.high %v1249_v11, %v1253_v12  ;;  %v1256_v18 = vld [vmem:[#allocation14 + $0x240] sm:$0xff]  ;;  %v1186_v11 = vld [vmem:[#allocation14 + $0x10] sm:$0xff] }
  0xa0   :  { %1961 = vmatprep.subr.bf16.mxu0 %v9417_v19  ;;  %2002 = vmatprep.subr.bf16.mxu1 %v9419_v20  ;;  %v1260_v19 = vld [vmem:[#allocation14 + $0x260] sm:$0xff]  ;;  %v1257_v20 = vld [vmem:[#allocation14 + $0x248] sm:$0xff]  ;;  %v1190_v12 = vld [vmem:[#allocation14 + $0x30] sm:$0xff] }
  0xa1   :  { %935 = vmatprep.mubr.bf16.mxu0 %v10985_v0  ;;  %1008 = vmatprep.mubr.bf16.mxu1 %v10985_v0  ;;  %v9481_v24 = vcombine.high %v1256_v18, %v1260_v19  ;;  %v9480_v30 = vcombine.low %v1256_v18, %v1260_v19  ;;  %v9482_v31 = vcombine.low %v1257_v20, %v1261_v21 }
  0xa2   :  { %v9413_v18 = vcombine.high %v1186_v11, %v1190_v12 }
  0xa3   :  { %1962 = vmatpush1.bf16.msra.mxu0 %v9416_v25  ;;  %2003 = vmatpush1.bf16.msra.mxu1 %v9418_v26  ;;  %v9483_v25 = vcombine.high %v1257_v20, %v1261_v21  ;;  %v1264_v26 = vld [vmem:[#allocation14 + $0x280] sm:$0xff]  ;;  %v1194_v20 = vld [vmem:[#allocation14 + $0x50] sm:$0xff] }
  0xa4   :  { %1963 = vmatprep.subr.bf16.mxu0 %v9425_v27  ;;  %2004 = vmatprep.subr.bf16.mxu1 %v9427_v28  ;;  %v1268_v27 = vld [vmem:[#allocation14 + $0x2a0] sm:$0xff]  ;;  %v1265_v28 = vld [vmem:[#allocation14 + $0x288] sm:$0xff]  ;;  %v1198_v21 = vld [vmem:[#allocation14 + $0x70] sm:$0xff] }
  0xa5   :  { %v9489_v32 = vcombine.high %v1264_v26, %v1268_v27  ;;  %v9488_v38 = vcombine.low %v1264_v26, %v1268_v27  ;;  %v9490_v39 = vcombine.low %v1265_v28, %v1269_v29  ;;  %v9421_v27 = vcombine.high %v1194_v20, %v1198_v21 }
  0xa6   :  { %936 = vmatmul.mubr.bf16.gmra.mrb[20].mxu0 %v10647_v33  ;;  %1009 = vmatmul.mubr.bf16.gmra.mrb[20].mxu1 %v10647_v33  ;;  %v9491_v33 = vcombine.high %v1265_v28, %v1269_v29  ;;  %v1202_v29 = vld [vmem:[#allocation14 + $0x90] sm:$0xff] }
  0xa7   :  { %1964 = vmatpush1.bf16.msra.mxu0 %v9424_v34  ;;  %2005 = vmatpush1.bf16.msra.mxu1 %v9426_v35  ;;  %v1272_v34 = vld [vmem:[#allocation14 + $0x2c0] sm:$0xff] }
  0xa8   :  { %1965 = vmatprep.subr.bf16.mxu0 %v9433_v36  ;;  %2006 = vmatprep.subr.bf16.mxu1 %v9435_v37  ;;  %v1276_v35 = vld [vmem:[#allocation14 + $0x2e0] sm:$0xff]  ;;  %v1273_v36 = vld [vmem:[#allocation14 + $0x2c8] sm:$0xff] }
  0xa9   :  { %945 = vmatprep.mubr.bf16.mxu0 %v10985_v0  ;;  %1018 = vmatprep.mubr.bf16.mxu1 %v10985_v0  ;;  %v1277_v37 = vld [vmem:[#allocation14 + $0x2e8] sm:$0xff]  ;;  %v9497_v40 = vcombine.high %v1272_v34, %v1276_v35  ;;  %v9496_v46 = vcombine.low %v1272_v34, %v1276_v35 }
  0xaa   :  { %v9499_v41 = vcombine.high %v1273_v36, %v1277_v37  ;;  %v9498_v47 = vcombine.low %v1273_v36, %v1277_v37  ;;  %v1210_v36 = vld [vmem:[#allocation14 + $0xd0] sm:$0xff] }
  0xab   :  { %1966 = vmatpush1.bf16.msra.mxu0 %v9432_v42  ;;  %2007 = vmatpush1.bf16.msra.mxu1 %v9434_v43  ;;  %v1280_v42 = vld [vmem:[#allocation14 + $0x300] sm:$0xff]  ;;  %v1214_v37 = vld [vmem:[#allocation14 + $0xf0] sm:$0xff] }
  0xac   :  { %1967 = vmatprep.subr.bf16.mxu0 %v9441_v44  ;;  %2008 = vmatprep.subr.bf16.mxu1 %v9443_v45  ;;  %v1284_v43 = vld [vmem:[#allocation14 + $0x320] sm:$0xff]  ;;  %v1281_v44 = vld [vmem:[#allocation14 + $0x308] sm:$0xff] }
  0xad   :  { %v1285_v45 = vld [vmem:[#allocation14 + $0x328] sm:$0xff]  ;;  %v9505_v48 = vcombine.high %v1280_v42, %v1284_v43 }
  0xae   :  { %946 = vmatmul.mubr.bf16.gmra.mrb[24].mxu0 %v10648_v50  ;;  %1019 = vmatmul.mubr.bf16.gmra.mrb[24].mxu1 %v10648_v50  ;;  %v9507_v49 = vcombine.high %v1281_v44, %v1285_v45  ;;  %v1288_v50 = vld [vmem:[#allocation14 + $0x340] sm:$0xff]  ;;  %v9506_v55 = vcombine.low %v1281_v44, %v1285_v45  ;;  %v1218_v44 = vld [vmem:[#allocation14 + $0x110] sm:$0xff] }
  0xaf   :  { %1968 = vmatpush1.bf16.msra.mxu0 %v9440_v51  ;;  %2009 = vmatpush1.bf16.msra.mxu1 %v9442_v52  ;;  %v1292_v51 = vld [vmem:[#allocation14 + $0x360] sm:$0xff]  ;;  %v1289_v52 = vld [vmem:[#allocation14 + $0x348] sm:$0xff]  ;;  %v1222_v45 = vld [vmem:[#allocation14 + $0x130] sm:$0xff] }
  0xb0   :  { %1969 = vmatprep.subr.bf16.mxu0 %v9449_v53  ;;  %2010 = vmatprep.subr.bf16.mxu1 %v9451_v54  ;;  %v1293_v53 = vld [vmem:[#allocation14 + $0x368] sm:$0xff]  ;;  %v9504_v54 = vcombine.low %v1280_v42, %v1284_v43  ;;  %v9513_v56 = vcombine.high %v1288_v50, %v1292_v51  ;;  %v9437_v42 = vcombine.high %v1210_v36, %v1214_v37 }
  0xb1   :  { %955 = vmatprep.mubr.bf16.mxu0 %v10985_v0  ;;  %1028 = vmatprep.mubr.bf16.mxu1 %v10985_v0  ;;  %v9515_v57 = vcombine.high %v1289_v52, %v1293_v53  ;;  %v9514_v63 = vcombine.low %v1289_v52, %v1293_v53  ;;  %v1230_v52 = vld [vmem:[#allocation14 + $0x170] sm:$0xff]  ;;  %v1227_v53 = vld [vmem:[#allocation14 + $0x158] sm:$0xff] }
  0xb3   :  { %1970 = vmatpush1.bf16.msra.mxu0 %v9448_v59  ;;  %2011 = vmatpush1.bf16.msra.mxu1 %v9450_v60  ;;  %v1300_v59 = vld [vmem:[#allocation14 + $0x3a0] sm:$0xff]  ;;  %v1297_v60 = vld [vmem:[#allocation14 + $0x388] sm:$0xff] }
  0xb4   :  { %1971 = vmatprep.subr.bf16.mxu0 %v9457_v61  ;;  %2012 = vmatprep.subr.bf16.mxu1 %v9459_v62  ;;  %v1301_v61 = vld [vmem:[#allocation14 + $0x3a8] sm:$0xff]  ;;  %v9512_v62 = vcombine.low %v1288_v50, %v1292_v51  ;;  %v9521_v1 = vcombine.high %v1296_v58, %v1300_v59  ;;  %v9445_v50 = vcombine.high %v1218_v44, %v1222_v45  ;;  %v1226_v51 = vld [vmem:[#allocation14 + $0x150] sm:$0xff] }
  0xb5   :  { %v9523_v2 = vcombine.high %v1297_v60, %v1301_v61 }
  0xb6   :  { %956 = vmatmul.mubr.bf16.gmra.mrb[28].mxu0 %v10649_v4  ;;  %1029 = vmatmul.mubr.bf16.gmra.mrb[28].mxu1 %v10649_v4  ;;  %v1308_v4 = vld [vmem:[#allocation14 + $0x3e0] sm:$0xff] }
  0xb7   :  { %1972 = vmatpush1.bf16.msra.mxu0 %v9456_v5  ;;  %2013 = vmatpush1.bf16.msra.mxu1 %v9458_v6  ;;  %v1305_v5 = vld [vmem:[#allocation14 + $0x3c8] sm:$0xff]  ;;  %v9529_v9 = vcombine.high %v1304_v3, %v1308_v4 }
  0xb8   :  { %1973 = vmatprep.subr.bf16.mxu0 %v9465_v7  ;;  %2014 = vmatprep.subr.bf16.mxu1 %v9467_v8  ;;  %v1309_v6 = vld [vmem:[#allocation14 + $0x3e8] sm:$0xff]  ;;  %v9520_v7 = vcombine.low %v1296_v58, %v1300_v59  ;;  %v9522_v8 = vcombine.low %v1297_v60, %v1301_v61  ;;  %v1234_v59 = vld [vmem:[#allocation14 + $0x190] sm:$0xff]  ;;  %v1235_v61 = vld [vmem:[#allocation14 + $0x198] sm:$0xff] }
  0xb9   :  { %1991 = vmatprep.mubr.bf16.mxu0 %v11118_v13  ;;  %2032 = vmatprep.mubr.bf16.mxu1 %v11118_v13  ;;  %v9531_v10 = vcombine.high %v1305_v5, %v1309_v6  ;;  %v1238_v60 = vld [vmem:[#allocation14 + $0x1b0] sm:$0xff] }
  0xbb   :  { %1974 = vmatpush1.bf16.msra.mxu0 %v9464_v14  ;;  %2015 = vmatpush1.bf16.msra.mxu1 %v9466_v15  ;;  %v1187_v14 = vld [vmem:[#allocation14 + $0x18] sm:$0xff] }
  0xbc   :  { %1975 = vmatprep.subr.bf16.mxu0 %v9473_v16  ;;  %2016 = vmatprep.subr.bf16.mxu1 %v9475_v17  ;;  %v1191_v15 = vld [vmem:[#allocation14 + $0x38] sm:$0xff]  ;;  %v9528_v16 = vcombine.low %v1304_v3, %v1308_v4  ;;  %v9530_v17 = vcombine.low %v1305_v5, %v1309_v6  ;;  %v1242_v4 = vld [vmem:[#allocation14 + $0x1d0] sm:$0xff] }
  0xbd   :  { %v9415_v19 = vcombine.high %v1187_v14, %v1191_v15  ;;  %v9414_v26 = vcombine.low %v1187_v14, %v1191_v15  ;;  %v1246_v5 = vld [vmem:[#allocation14 + $0x1f0] sm:$0xff]  ;;  %v1243_v6 = vld [vmem:[#allocation14 + $0x1d8] sm:$0xff] }
  0xbe   :  { %v1254_v14 = vld [vmem:[#allocation14 + $0x230] sm:$0xff]  ;;  %v1251_v15 = vld [vmem:[#allocation14 + $0x218] sm:$0xff] }
  0xbf   :  { %1976 = vmatpush1.bf16.msra.mxu0 %v9472_v22  ;;  %2017 = vmatpush1.bf16.msra.mxu1 %v9474_v23  ;;  %v1195_v22 = vld [vmem:[#allocation14 + $0x58] sm:$0xff] }
  0xc0   :  { %1977 = vmatprep.subr.bf16.mxu0 %v9481_v24  ;;  %2018 = vmatprep.subr.bf16.mxu1 %v9483_v25  ;;  %v1199_v23 = vld [vmem:[#allocation14 + $0x78] sm:$0xff]  ;;  %v11124_v24 = vcombine.low %v10985_v0, %v10985_v0  ;;  %v9412_v25 = vcombine.low %v1186_v11, %v1190_v12  ;;  %v9420_v0 = vcombine.low %v1194_v20, %v1198_v21  ;;  %v1250_v12 = vld [vmem:[#allocation14 + $0x210] sm:$0xff] }
  0xc1   :  { %v9423_v28 = vcombine.high %v1195_v22, %v1199_v23  ;;  %v1258_v21 = vld [vmem:[#allocation14 + $0x250] sm:$0xff] }
  0xc3   :  { %1978 = vmatpush1.bf16.msra.mxu0 %v9480_v30  ;;  %2019 = vmatpush1.bf16.msra.mxu1 %v9482_v31  ;;  %v1206_v30 = vld [vmem:[#allocation14 + $0xb0] sm:$0xff]  ;;  %v1203_v31 = vld [vmem:[#allocation14 + $0x98] sm:$0xff] }
  0xc4   :  { %1979 = vmatprep.subr.bf16.mxu0 %v9489_v32  ;;  %2020 = vmatprep.subr.bf16.mxu1 %v9491_v33  ;;  %v1207_v32 = vld [vmem:[#allocation14 + $0xb8] sm:$0xff]  ;;  %v9422_v33 = vcombine.low %v1195_v22, %v1199_v23  ;;  %v9429_v34 = vcombine.high %v1202_v29, %v1206_v30  ;;  %v1262_v22 = vld [vmem:[#allocation14 + $0x270] sm:$0xff] }
  0xc5   :  { %v9431_v35 = vcombine.high %v1203_v31, %v1207_v32  ;;  %v1259_v23 = vld [vmem:[#allocation14 + $0x258] sm:$0xff] }
  0xc7   :  { %1980 = vmatpush1.bf16.msra.mxu0 %v9488_v38  ;;  %2021 = vmatpush1.bf16.msra.mxu1 %v9490_v39  ;;  %v1211_v38 = vld [vmem:[#allocation14 + $0xd8] sm:$0xff] }
  0xc8   :  { %1981 = vmatprep.subr.bf16.mxu0 %v9497_v40  ;;  %2022 = vmatprep.subr.bf16.mxu1 %v9499_v41  ;;  %v1215_v39 = vld [vmem:[#allocation14 + $0xf8] sm:$0xff]  ;;  %v9428_v40 = vcombine.low %v1202_v29, %v1206_v30  ;;  %v9430_v41 = vcombine.low %v1203_v31, %v1207_v32  ;;  %v1266_v30 = vld [vmem:[#allocation14 + $0x290] sm:$0xff] }
  0xc9   :  { %v9439_v43 = vcombine.high %v1211_v38, %v1215_v39  ;;  %v1270_v31 = vld [vmem:[#allocation14 + $0x2b0] sm:$0xff]  ;;  %v1267_v32 = vld [vmem:[#allocation14 + $0x298] sm:$0xff] }
  0xcb   :  { %1982 = vmatpush1.bf16.msra.mxu0 %v9496_v46  ;;  %2023 = vmatpush1.bf16.msra.mxu1 %v9498_v47  ;;  %v1219_v46 = vld [vmem:[#allocation14 + $0x118] sm:$0xff] }
  0xcc   :  { %1983 = vmatprep.subr.bf16.mxu0 %v9505_v48  ;;  %2024 = vmatprep.subr.bf16.mxu1 %v9507_v49  ;;  %v1223_v47 = vld [vmem:[#allocation14 + $0x138] sm:$0xff]  ;;  %v9436_v48 = vcombine.low %v1210_v36, %v1214_v37  ;;  %v9438_v49 = vcombine.low %v1211_v38, %v1215_v39  ;;  %v1274_v37 = vld [vmem:[#allocation14 + $0x2d0] sm:$0xff] }
  0xcd   :  { %v1278_v38 = vld [vmem:[#allocation14 + $0x2f0] sm:$0xff]  ;;  %v1275_v39 = vld [vmem:[#allocation14 + $0x2d8] sm:$0xff] }
  0xcf   :  { %1984 = vmatpush1.bf16.msra.mxu0 %v9504_v54  ;;  %2025 = vmatpush1.bf16.msra.mxu1 %v9506_v55  ;;  %v1231_v54 = vld [vmem:[#allocation14 + $0x178] sm:$0xff]  ;;  %v9444_v55 = vcombine.low %v1218_v44, %v1222_v45  ;;  %v1282_v45 = vld [vmem:[#allocation14 + $0x310] sm:$0xff] }
  0xd0   :  { %1985 = vmatprep.subr.bf16.mxu0 %v9513_v56  ;;  %2026 = vmatprep.subr.bf16.mxu1 %v9515_v57  ;;  %v9446_v56 = vcombine.low %v1219_v46, %v1223_v47  ;;  %v9453_v57 = vcombine.high %v1226_v51, %v1230_v52  ;;  %v9455_v58 = vcombine.high %v1227_v53, %v1231_v54 }
  0xd3   :  { %1986 = vmatpush1.bf16.msra.mxu0 %v9512_v62  ;;  %2027 = vmatpush1.bf16.msra.mxu1 %v9514_v63  ;;  %v1239_v62 = vld [vmem:[#allocation14 + $0x1b8] sm:$0xff]  ;;  %v9452_v63 = vcombine.low %v1226_v51, %v1230_v52  ;;  %v1290_v52 = vld [vmem:[#allocation14 + $0x350] sm:$0xff] }
  0xd4   :  { %1987 = vmatprep.subr.bf16.mxu0 %v9521_v1  ;;  %2028 = vmatprep.subr.bf16.mxu1 %v9523_v2  ;;  %v9454_v1 = vcombine.low %v1227_v53, %v1231_v54  ;;  %v9461_v2 = vcombine.high %v1234_v59, %v1238_v60  ;;  %v9463_v3 = vcombine.high %v1235_v61, %v1239_v62  ;;  %v1294_v53 = vld [vmem:[#allocation14 + $0x370] sm:$0xff]  ;;  %v1291_v54 = vld [vmem:[#allocation14 + $0x358] sm:$0xff] }
  0xd7   :  { %1988 = vmatpush1.bf16.msra.mxu0 %v9520_v7  ;;  %2029 = vmatpush1.bf16.msra.mxu1 %v9522_v8  ;;  %v1247_v7 = vld [vmem:[#allocation14 + $0x1f8] sm:$0xff]  ;;  %v9460_v8 = vcombine.low %v1234_v59, %v1238_v60  ;;  %v1298_v60 = vld [vmem:[#allocation14 + $0x390] sm:$0xff] }
  0xd8   :  { %1989 = vmatprep.subr.bf16.mxu0 %v9529_v9  ;;  %2030 = vmatprep.subr.bf16.mxu1 %v9531_v10  ;;  %v9462_v9 = vcombine.low %v1235_v61, %v1239_v62  ;;  %v9469_v10 = vcombine.high %v1242_v4, %v1246_v5  ;;  %v9471_v11 = vcombine.high %v1243_v6, %v1247_v7  ;;  %v1302_v61 = vld [vmem:[#allocation14 + $0x3b0] sm:$0xff]  ;;  %v1299_v62 = vld [vmem:[#allocation14 + $0x398] sm:$0xff] }
  0xdb   :  { %1990 = vmatpush1.bf16.msra.mxu0 %v9528_v16  ;;  %2031 = vmatpush1.bf16.msra.mxu1 %v9530_v17  ;;  %v1255_v16 = vld [vmem:[#allocation14 + $0x238] sm:$0xff]  ;;  %v9468_v17 = vcombine.low %v1242_v4, %v1246_v5  ;;  %v1306_v5 = vld [vmem:[#allocation14 + $0x3d0] sm:$0xff] }
  0xdc   :  { %2041 = vmatprep.subr.bf16.mxu0 %v9413_v18  ;;  %2082 = vmatprep.subr.bf16.mxu1 %v9415_v19  ;;  %v9470_v18 = vcombine.low %v1243_v6, %v1247_v7  ;;  %v9477_v19 = vcombine.high %v1250_v12, %v1254_v14  ;;  %v9479_v20 = vcombine.high %v1251_v15, %v1255_v16  ;;  %v1310_v6 = vld [vmem:[#allocation14 + $0x3f0] sm:$0xff]  ;;  %v1307_v7 = vld [vmem:[#allocation14 + $0x3d8] sm:$0xff] }
  0xde   :  { %1992 = vmatmul.mubr.bf16.vlgmr.msra.gmra.mrb[32].mxu0 %v11124_v24  ;;  %2033 = vmatmul.mubr.bf16.vlgmr.msra.gmra.mrb[32].mxu1 %v11124_v24 }
  0xdf   :  { %2042 = vmatpush1.bf16.msra.mxu0 %v9412_v25  ;;  %2083 = vmatpush1.bf16.msra.mxu1 %v9414_v26  ;;  %v1263_v25 = vld [vmem:[#allocation14 + $0x278] sm:$0xff]  ;;  %v9476_v26 = vcombine.low %v1250_v12, %v1254_v14  ;;  %v9532_v14 = vcombine.low %v1306_v5, %v1310_v6 }
  0xe0   :  { %2043 = vmatprep.subr.bf16.mxu0 %v9421_v27  ;;  %2084 = vmatprep.subr.bf16.mxu1 %v9423_v28  ;;  %v9478_v27 = vcombine.low %v1251_v15, %v1255_v16  ;;  %v9485_v28 = vcombine.high %v1258_v21, %v1262_v22  ;;  %v9487_v29 = vcombine.high %v1259_v23, %v1263_v25  ;;  %v153_v16 = vlaneseq }
  0xe1   :  { %2073 = vmatprep.mubr.bf16.mxu0 %v11118_v13  ;;  %2114 = vmatprep.mubr.bf16.mxu1 %v11118_v13  ;;  %v9447_v13 = vcombine.high %v1219_v46, %v1223_v47  ;;  %v1286_v46 = vld [vmem:[#allocation14 + $0x330] sm:$0xff]  ;;  %v1283_v47 = vld [vmem:[#allocation14 + $0x318] sm:$0xff] }
  0xe3   :  { %2044 = vmatpush1.bf16.msra.mxu0 %v9420_v0  ;;  %2085 = vmatpush1.bf16.msra.mxu1 %v9422_v33  ;;  %v1271_v0 = vld [vmem:[#allocation14 + $0x2b8] sm:$0xff]  ;;  %v9484_v33 = vcombine.low %v1258_v21, %v1262_v22 }
  0xe4   :  { %2045 = vmatprep.subr.bf16.mxu0 %v9429_v34  ;;  %2086 = vmatprep.subr.bf16.mxu1 %v9431_v35  ;;  %v9486_v34 = vcombine.low %v1259_v23, %v1263_v25  ;;  %v9493_v35 = vcombine.high %v1266_v30, %v1270_v31  ;;  %v9495_v36 = vcombine.high %v1267_v32, %v1271_v0 }
  0xe7   :  { %2046 = vmatpush1.bf16.msra.mxu0 %v9428_v40  ;;  %2087 = vmatpush1.bf16.msra.mxu1 %v9430_v41  ;;  %v1279_v40 = vld [vmem:[#allocation14 + $0x2f8] sm:$0xff]  ;;  %v9492_v41 = vcombine.low %v1266_v30, %v1270_v31 }
  0xe8   :  { %2047 = vmatprep.subr.bf16.mxu0 %v9437_v42  ;;  %2088 = vmatprep.subr.bf16.mxu1 %v9439_v43  ;;  %v9494_v42 = vcombine.low %v1267_v32, %v1271_v0  ;;  %v9501_v43 = vcombine.high %v1274_v37, %v1278_v38  ;;  %v9503_v44 = vcombine.high %v1275_v39, %v1279_v40 }
  0xeb   :  { %2048 = vmatpush1.bf16.msra.mxu0 %v9436_v48  ;;  %2089 = vmatpush1.bf16.msra.mxu1 %v9438_v49  ;;  %v1287_v48 = vld [vmem:[#allocation14 + $0x338] sm:$0xff]  ;;  %v9500_v49 = vcombine.low %v1274_v37, %v1278_v38 }
  0xec   :  { %2049 = vmatprep.subr.bf16.mxu0 %v9445_v50  ;;  %2090 = vmatprep.subr.bf16.mxu1 %v9447_v13  ;;  %v9502_v50 = vcombine.low %v1275_v39, %v1279_v40  ;;  %v9509_v13 = vcombine.high %v1282_v45, %v1286_v46  ;;  %v9511_v51 = vcombine.high %v1283_v47, %v1287_v48 }
  0xef   :  { %2050 = vmatpush1.bf16.msra.mxu0 %v9444_v55  ;;  %2091 = vmatpush1.bf16.msra.mxu1 %v9446_v56  ;;  %v1295_v55 = vld [vmem:[#allocation14 + $0x378] sm:$0xff]  ;;  %v9508_v56 = vcombine.low %v1282_v45, %v1286_v46  ;;  %v2192_v46 = vld [vmem:[#allocation14] sm:$0xff] }
  0xf0   :  { %2051 = vmatprep.subr.bf16.mxu0 %v9453_v57  ;;  %2092 = vmatprep.subr.bf16.mxu1 %v9455_v58  ;;  %v9510_v57 = vcombine.low %v1283_v47, %v1287_v48  ;;  %v9517_v58 = vcombine.high %v1290_v52, %v1294_v53  ;;  %v9519_v59 = vcombine.high %v1291_v54, %v1295_v55  ;;  %v2196_v47 = vld [vmem:[#allocation14 + $0x20] sm:$0xff]  ;;  %v2193_v48 = vld [vmem:[#allocation14 + $0x8] sm:$0xff] }
  0xf3   :  { %2052 = vmatpush1.bf16.msra.mxu0 %v9452_v63  ;;  %2093 = vmatpush1.bf16.msra.mxu1 %v9454_v1  ;;  %v1303_v63 = vld [vmem:[#allocation14 + $0x3b8] sm:$0xff]  ;;  %v9516_v1 = vcombine.low %v1290_v52, %v1294_v53  ;;  %v11175_v52 = vcombine.low %v2192_v46, %v2196_v47 }
  0xf4   :  { %2053 = vmatprep.subr.bf16.mxu0 %v9461_v2  ;;  %2094 = vmatprep.subr.bf16.mxu1 %v9463_v3  ;;  %v9518_v2 = vcombine.low %v1291_v54, %v1295_v55  ;;  %v9525_v3 = vcombine.high %v1298_v60, %v1302_v61  ;;  %v9527_v4 = vcombine.high %v1299_v62, %v1303_v63  ;;  %v2200_v55 = vld [vmem:[#allocation14 + $0x40] sm:$0xff] }
  0xf7   :  { %2054 = vmatpush1.bf16.msra.mxu0 %v9460_v8  ;;  %2095 = vmatpush1.bf16.msra.mxu1 %v9462_v9  ;;  %v1311_v8 = vld [vmem:[#allocation14 + $0x3f8] sm:$0xff]  ;;  %v9524_v9 = vcombine.low %v1298_v60, %v1302_v61 }
  0xf8   :  { %2055 = vmatprep.subr.bf16.mxu0 %v9469_v10  ;;  %2096 = vmatprep.subr.bf16.mxu1 %v9471_v11  ;;  %v9526_v10 = vcombine.low %v1299_v62, %v1303_v63  ;;  %v9533_v11 = vcombine.high %v1306_v5, %v1310_v6  ;;  %v9535_v12 = vcombine.high %v1307_v7, %v1311_v8 }
  0xf9   :  { %v9534_v15 = vcombine.low %v1307_v7, %v1311_v8  ;;  %v2212_v8 = vld [vmem:[#allocation14 + $0xa0] sm:$0xff] }
  0xfb   :  { %2056 = vmatpush1.bf16.msra.mxu0 %v9468_v17  ;;  %2097 = vmatpush1.bf16.msra.mxu1 %v9470_v18  ;;  %v11132_v17 = vshrl.u32 %v153_v16, 7 }
  0xfc   :  { %2057 = vmatprep.subr.bf16.mxu0 %v9477_v19  ;;  %2098 = vmatprep.subr.bf16.mxu1 %v9479_v20  ;;  %v151_v20 = vld [vmem:[%s13066_s5] sm:$0xf] }
  0xfd   :  { %v155_v18 = vsub.s32 0, %v11132_v17  ;;  %v163_v19 = vsub.s32 2, %v11132_v17  ;;  %v159_v21 = vsub.s32 1, %v11132_v17  ;;  %v167_v22 = vsub.s32 3, %v11132_v17 }
  0xff   :  { %2058 = vmatpush1.bf16.msra.mxu0 %v9476_v26  ;;  %2099 = vmatpush1.bf16.msra.mxu1 %v9478_v27  ;;  %v11143_v23 = vrot.slane %v151_v20, %v155_v18  ;;  %v11151_v25 = vrot.slane %v151_v20, %v159_v21  ;;  %v11155_v26 = vrot.slane %v151_v20, %v167_v22 }
 0x100   :  { %2059 = vmatprep.subr.bf16.mxu0 %v9485_v28  ;;  %2100 = vmatprep.subr.bf16.mxu1 %v9487_v29 }
 0x103   :  { %2060 = vmatpush1.bf16.msra.mxu0 %v9484_v33  ;;  %2101 = vmatpush1.bf16.msra.mxu1 %v9486_v34 }
 0x104   :  { %2061 = vmatprep.subr.bf16.mxu0 %v9493_v35  ;;  %2102 = vmatprep.subr.bf16.mxu1 %v9495_v36 }
 0x107   :  { %2062 = vmatpush1.bf16.msra.mxu0 %v9492_v41  ;;  %2103 = vmatpush1.bf16.msra.mxu1 %v9494_v42 }
 0x108   :  { %2063 = vmatprep.subr.bf16.mxu0 %v9501_v43  ;;  %2104 = vmatprep.subr.bf16.mxu1 %v9503_v44 }
 0x10b   :  { %2064 = vmatpush1.bf16.msra.mxu0 %v9500_v49  ;;  %2105 = vmatpush1.bf16.msra.mxu1 %v9502_v50  ;;  %v11173_v49 = vcombine.high %v2192_v46, %v2196_v47  ;;  %v2197_v50 = vld [vmem:[#allocation14 + $0x28] sm:$0xff] }
 0x10c   :  { %2065 = vmatprep.subr.bf16.mxu0 %v9509_v13  ;;  %2106 = vmatprep.subr.bf16.mxu1 %v9511_v51  ;;  %v11177_v53 = vcombine.low %v2193_v48, %v2197_v50  ;;  %v11179_v54 = vcombine.high %v2193_v48, %v2197_v50  ;;  %v2225_v50 = vld [vmem:[#allocation14 + $0x108] sm:$0xff] }
 0x10f   :  { %2066 = vmatpush1.bf16.msra.mxu0 %v9508_v56  ;;  %2107 = vmatpush1.bf16.msra.mxu1 %v9510_v57  ;;  %v2204_v56 = vld [vmem:[#allocation14 + $0x60] sm:$0xff]  ;;  %v2201_v57 = vld [vmem:[#allocation14 + $0x48] sm:$0xff] }
 0x110   :  { %2067 = vmatprep.subr.bf16.mxu0 %v9517_v58  ;;  %2108 = vmatprep.subr.bf16.mxu1 %v9519_v59  ;;  %v11184_v62 = vcombine.low %v2200_v55, %v2204_v56  ;;  %v11186_v63 = vcombine.high %v2200_v55, %v2204_v56 }
 0x113   :  { %2068 = vmatpush1.bf16.msra.mxu0 %v9516_v1  ;;  %2109 = vmatpush1.bf16.msra.mxu1 %v9518_v2  ;;  %v2205_v1 = vld [vmem:[#allocation14 + $0x68] sm:$0xff]  ;;  %v2208_v2 = vld [vmem:[#allocation14 + $0x80] sm:$0xff] }
 0x114   :  { %2069 = vmatprep.subr.bf16.mxu0 %v9525_v3  ;;  %2110 = vmatprep.subr.bf16.mxu1 %v9527_v4  ;;  %v11192_v7 = vcombine.low %v2201_v57, %v2205_v1  ;;  %v11198_v16 = vcombine.high %v2201_v57, %v2205_v1 }
 0x117   :  { %2070 = vmatpush1.bf16.msra.mxu0 %v9524_v9  ;;  %2111 = vmatpush1.bf16.msra.mxu1 %v9526_v10  ;;  %v2209_v9 = vld [vmem:[#allocation14 + $0x88] sm:$0xff] }
 0x118   :  { %2071 = vmatprep.subr.bf16.mxu0 %v9533_v11  ;;  %2112 = vmatprep.subr.bf16.mxu1 %v9535_v12  ;;  %v2213_v10 = vld [vmem:[#allocation14 + $0xa8] sm:$0xff] }
 0x11b   :  { %2072 = vmatpush1.bf16.msra.mxu0 %v9532_v14  ;;  %2113 = vmatpush1.bf16.msra.mxu1 %v9534_v15 }
 0x11c   :  { %2967 = vmatprep.subr.bf16.mxu0 %v11173_v49  ;;  %3008 = vmatprep.subr.bf16.mxu1 %v11179_v54 }
 0x11e   :  { %2074 = vmatmul.mubr.bf16.vlgmr.msra.gmra.mrb[36].mxu0 %v11124_v24  ;;  %2115 = vmatmul.mubr.bf16.vlgmr.msra.gmra.mrb[36].mxu1 %v11124_v24  ;;  %v11147_v24 = vrot.slane %v151_v20, %v163_v19 }
 0x11f   :  { %2968 = vmatpush1.bf16.msra.mxu0 %v11175_v52  ;;  %3009 = vmatpush1.bf16.msra.mxu1 %v11177_v53 }
 0x120   :  { %2969 = vmatprep.subr.bf16.mxu0 %v11186_v63  ;;  %3010 = vmatprep.subr.bf16.mxu1 %v11198_v16 }
 0x123   :  { %2970 = vmatpush1.bf16.msra.mxu0 %v11184_v62  ;;  %3011 = vmatpush1.bf16.msra.mxu1 %v11192_v7 }
 0x151   :  { %v391_v27 = vpop.f32.mrb[0].mxu0  ;;  %v464_v28 = vpop.f32.mrb[0].mxu1 }
 0x152   :  { %v392_v29 = vadd.f32 %v391_v27, %v11143_v23  ;;  %v393_v30 = vpop.f32.mrb[1].mxu0  ;;  %v465_v31 = vadd.f32 %v464_v28, %v11147_v24  ;;  %v466_v32 = vpop.f32.mrb[1].mxu1 }
 0x153   :  { %v394_v0 = vadd.f32 %v393_v30, %v11151_v25  ;;  %v395_v33 = vpop.f32.mrb[2].mxu0  ;;  %v467_v34 = vadd.f32 %v466_v32, %v11155_v26  ;;  %v468_v35 = vpop.f32.mrb[2].mxu1  ;;  %v2216_v30 = vld [vmem:[#allocation14 + $0xc0] sm:$0xff]  ;;  %v11207_v32 = vcombine.high %v2208_v2, %v2212_v8 }
 0x154   :  { %v396_v36 = vadd.f32 %v395_v33, %v11143_v23  ;;  %v397_v37 = vpop.f32.mrb[3].mxu0  ;;  %v469_v38 = vadd.f32 %v468_v35, %v11147_v24  ;;  %v470_v39 = vpop.f32.mrb[3].mxu1  ;;  %v2217_v33 = vld [vmem:[#allocation14 + $0xc8] sm:$0xff] }
 0x155   :  { %v11163_v40 = vpack.c.bf16 %v394_v0, %v392_v29  ;;  %v398_v41 = vadd.f32 %v397_v37, %v11151_v25  ;;  %v11166_v42 = vpack.c.bf16 %v467_v34, %v465_v31  ;;  %v471_v43 = vadd.f32 %v470_v39, %v11155_v26  ;;  %v2220_v31 = vld [vmem:[#allocation14 + $0xe0] sm:$0xff]  ;;  %v2221_v34 = vld [vmem:[#allocation14 + $0xe8] sm:$0xff]  ;;  %2971 = vmatprep.subr.bf16.mxu0 %v11207_v32 }
 0x156   :  { %v11209_v0 = vcombine.high %v2209_v9, %v2213_v10  ;;  %v11216_v37 = vcombine.low %v2208_v2, %v2212_v8  ;;  %v11222_v39 = vcombine.high %v2216_v30, %v2220_v31  ;;  %v11225_v48 = vcombine.high %v2217_v33, %v2221_v34 }
 0x157   :  { %v11169_v44 = vpack.c.bf16 %v398_v41, %v396_v36  ;;  %v11171_v45 = vpack.c.bf16 %v471_v43, %v469_v38  ;;  %v11220_v38 = vcombine.low %v2209_v9, %v2213_v10  ;;  %v2224_v41 = vld [vmem:[#allocation14 + $0x100] sm:$0xff]  ;;  %v11234_v2 = vcombine.low %v2217_v33, %v2221_v34 }
 0x158   :  { %v2228_v43 = vld [vmem:[#allocation14 + $0x120] sm:$0xff]  ;;  %3012 = vmatprep.subr.bf16.mxu1 %v11209_v0  ;;  %2972 = vmatpush1.bf16.msra.mxu0 %v11216_v37 }
 0x159   :  { %13322 = vst [vmem:[#allocation23_spill] sm:$0xff] %v11169_v44  ;;  %13323 = vst [vmem:[#allocation24_spill] sm:$0xff] %v11171_v45  ;;  %v401_v13 = vpop.f32.mrb[4].mxu0  ;;  %v474_v51 = vpop.f32.mrb[4].mxu1  ;;  %3013 = vmatpush1.bf16.msra.mxu1 %v11220_v38  ;;  %2973 = vmatprep.subr.bf16.mxu0 %v11222_v39  ;;  %v11256_v34 = vcombine.low %v2224_v41, %v2228_v43 }
 0x15a   :  { %v402_v58 = vadd.f32 %v401_v13, %v11143_v23  ;;  %v403_v59 = vpop.f32.mrb[5].mxu0  ;;  %v475_v60 = vadd.f32 %v474_v51, %v11147_v24  ;;  %v476_v61 = vpop.f32.mrb[5].mxu1  ;;  %v2229_v13 = vld [vmem:[#allocation14 + $0x128] sm:$0xff]  ;;  %3014 = vmatprep.subr.bf16.mxu1 %v11225_v48 }
 0x15b   :  { %v404_v3 = vadd.f32 %v403_v59, %v11151_v25  ;;  %v405_v4 = vpop.f32.mrb[6].mxu0  ;;  %v477_v5 = vadd.f32 %v476_v61, %v11155_v26  ;;  %v478_v6 = vpop.f32.mrb[6].mxu1  ;;  %v11242_v9 = vcombine.high %v2225_v50, %v2229_v13 }
 0x15c   :  { %v406_v11 = vadd.f32 %v405_v4, %v11143_v23  ;;  %v407_v12 = vpop.f32.mrb[7].mxu0  ;;  %v479_v14 = vadd.f32 %v478_v6, %v11147_v24  ;;  %v480_v15 = vpop.f32.mrb[7].mxu1 }
 0x15d   :  { %v11200_v20 = vpack.c.bf16 %v404_v3, %v402_v58  ;;  %v408_v27 = vadd.f32 %v407_v12, %v11151_v25  ;;  %v11203_v28 = vpack.c.bf16 %v477_v5, %v475_v60  ;;  %v481_v29 = vadd.f32 %v480_v15, %v11155_v26  ;;  %v2232_v15 = vld [vmem:[#allocation14 + $0x140] sm:$0xff]  ;;  %3015 = vmatpush1.bf16.msra.mxu1 %v11234_v2 }
 0x15e   :  { %v11229_v58 = vcombine.low %v2216_v30, %v2220_v31  ;;  %v11236_v3 = vcombine.high %v2224_v41, %v2228_v43  ;;  %v2237_v30 = vld [vmem:[#allocation14 + $0x168] sm:$0xff]  ;;  %3016 = vmatprep.subr.bf16.mxu1 %v11242_v9 }
 0x15f   :  { %13324 = vst [vmem:[#allocation25_spill] sm:$0xff] %v11200_v20  ;;  %13325 = vst [vmem:[#allocation26_spill] sm:$0xff] %v11203_v28  ;;  %v11211_v35 = vpack.c.bf16 %v408_v27, %v406_v11  ;;  %v11213_v36 = vpack.c.bf16 %v481_v29, %v479_v14  ;;  %v2236_v27 = vld [vmem:[#allocation14 + $0x160] sm:$0xff]  ;;  %v2233_v29 = vld [vmem:[#allocation14 + $0x148] sm:$0xff] }
 0x160   :  { %2974 = vmatpush1.bf16.msra.mxu0 %v11229_v58 }
 0x161   :  { %13326 = vst [vmem:[#allocation27_spill] sm:$0xff] %v11211_v35  ;;  %13327 = vst [vmem:[#allocation28_spill] sm:$0xff] %v11213_v36  ;;  %v411_v46 = vpop.f32.mrb[8].mxu0  ;;  %v484_v47 = vpop.f32.mrb[8].mxu1  ;;  %2975 = vmatprep.subr.bf16.mxu0 %v11236_v3 }
 0x162   :  { %v412_v51 = vadd.f32 %v411_v46, %v11143_v23  ;;  %v413_v55 = vpop.f32.mrb[9].mxu0  ;;  %v485_v56 = vadd.f32 %v484_v47, %v11147_v24  ;;  %v486_v57 = vpop.f32.mrb[9].mxu1  ;;  %v11260_v46 = vcombine.low %v2225_v50, %v2229_v13  ;;  %v11262_v47 = vcombine.high %v2232_v15, %v2236_v27 }
 0x163   :  { %v414_v59 = vadd.f32 %v413_v55, %v11151_v25  ;;  %v415_v60 = vpop.f32.mrb[10].mxu0  ;;  %v487_v61 = vadd.f32 %v486_v57, %v11155_v26  ;;  %v488_v1 = vpop.f32.mrb[10].mxu1 }
 0x164   :  { %v416_v4 = vadd.f32 %v415_v60, %v11143_v23  ;;  %v417_v5 = vpop.f32.mrb[11].mxu0  ;;  %v489_v6 = vadd.f32 %v488_v1, %v11147_v24  ;;  %v490_v8 = vpop.f32.mrb[11].mxu1  ;;  %v687_v1 = vld [vmem:[%s13066_s5 + $0x4] sm:$0xf]  ;;  %2976 = vmatpush1.bf16.msra.mxu0 %v11256_v34  ;;  %3017 = vmatpush1.bf16.msra.mxu1 %v11260_v46  ;;  %s10986_s5 = smov [#allocation15]  }
 0x165   :  { %v11244_v10 = vpack.c.bf16 %v414_v59, %v412_v51  ;;  %v418_v11 = vadd.f32 %v417_v5, %v11151_v25  ;;  %v11247_v12 = vpack.c.bf16 %v487_v61, %v485_v56  ;;  %v491_v14 = vadd.f32 %v490_v8, %v11155_v26  ;;  %2977 = vmatprep.subr.bf16.mxu0 %v11262_v47  ;;  %s9264_s23 = sshll.u32 %s10986_s5, 4  ;;  %s9265_s23 = int_to_ptr.vmem [resolvable:$true] %s9264_s23 }
 0x166   :  { %v11265_v56 = vcombine.high %v2233_v29, %v2237_v30  ;;  %s10920_s24 = scalar_lea.vmem %s9265_s23, 512  ;;  %p10925_p13 = scmp.lt.s32.totalorder %s9265_s23, %s9265_s23 }
 0x167   :  { %13328 = vst [vmem:[#allocation29_spill] sm:$0xff] %v11244_v10  ;;  %13329 = vst [vmem:[#allocation30_spill] sm:$0xff] %v11247_v12  ;;  %v11251_v31 = vpack.c.bf16 %v418_v11, %v416_v4  ;;  %v11253_v33 = vpack.c.bf16 %v491_v14, %v489_v6  ;;  %v11275_v4 = vcombine.low %v2232_v15, %v2236_v27  ;;  %p10921_p12 = scmp.ne.s32.totalorder %s9265_s23, %s10920_s24  ;;  %p10926_p0 = scmp.lt.s32.totalorder %s10920_s24, %s10920_s24 }
 0x168   :  { %v11281_v14 = vcombine.low %v2233_v29, %v2237_v30  ;;  %3018 = vmatprep.subr.bf16.mxu1 %v11265_v56  ;;  %v2244_v30 = vld [vmem:[#allocation14 + $0x1a0] sm:$0xff] }
 0x169   :  { %13330 = vst [vmem:[#allocation31_spill] sm:$0xff] %v11251_v31  ;;  %13331 = vst [vmem:[#allocation32_spill] sm:$0xff] %v11253_v33  ;;  %v421_v51 = vpop.f32.mrb[12].mxu0  ;;  %v494_v55 = vpop.f32.mrb[12].mxu1  ;;  %2978 = vmatpush1.bf16.msra.mxu0 %v11275_v4  ;;  %p10927_p1 = por %p10926_p0, %p10925_p13 }
 0x16a   :  { %v422_v57 = vadd.f32 %v421_v51, %v11143_v23  ;;  %v423_v59 = vpop.f32.mrb[13].mxu0  ;;  %v495_v41 = vadd.f32 %v494_v55, %v11147_v24  ;;  %v496_v43 = vpop.f32.mrb[13].mxu1  ;;  %3019 = vmatpush1.bf16.msra.mxu1 %v11281_v14 }
 0x16b   :  { %v424_v60 = vadd.f32 %v423_v59, %v11151_v25  ;;  %v425_v61 = vpop.f32.mrb[14].mxu0  ;;  %v497_v50 = vadd.f32 %v496_v43, %v11155_v26  ;;  %v498_v13 = vpop.f32.mrb[14].mxu1  ;;  %p10928_p2 = pnand %p10927_p1, %p10921_p12 }
 0x16c   :  { %v426_v5 = vadd.f32 %v425_v61, %v11143_v23  ;;  %v427_v6 = vpop.f32.mrb[15].mxu0  ;;  %v499_v8 = vadd.f32 %v498_v13, %v11147_v24  ;;  %v500_v11 = vpop.f32.mrb[15].mxu1  ;;  %v11292_v23 = vrot.slane %v687_v1, %v155_v18  ;;  %v11296_v24 = vrot.slane %v687_v1, %v163_v19  ;;  %v2240_v18 = vld [vmem:[#allocation14 + $0x180] sm:$0xff] }
 0x16d   :  { %v11283_v51 = vpack.c.bf16 %v424_v60, %v422_v57  ;;  %v428_v55 = vadd.f32 %v427_v6, %v11151_v25  ;;  %v11286_v59 = vpack.c.bf16 %v497_v50, %v495_v41  ;;  %v501_v15 = vadd.f32 %v500_v11, %v11155_v26  ;;  %v2241_v57 = vld [vmem:[#allocation14 + $0x188] sm:$0xff] }
 0x16e   :  { %v11304_v25 = vrot.slane %v687_v1, %v159_v21  ;;  %v11308_v26 = vrot.slane %v687_v1, %v167_v22  ;;  %v11312_v19 = vcombine.high %v2240_v18, %v2244_v30  ;;  %v2245_v41 = vld [vmem:[#allocation14 + $0x1a8] sm:$0xff]  ;;  %v11314_v61 = vcombine.low %v2240_v18, %v2244_v30 }
 0x16f   :  { %13332 = vst [vmem:[#allocation33_spill] sm:$0xff] %v11283_v51  ;;  %13333 = vst [vmem:[#allocation34_spill] sm:$0xff] %v11286_v59  ;;  %v11298_v27 = vpack.c.bf16 %v428_v55, %v426_v5  ;;  %v11300_v29 = vpack.c.bf16 %v501_v15, %v499_v8  ;;  %v11316_v21 = vcombine.low %v2241_v57, %v2245_v41  ;;  %v2248_v55 = vld [vmem:[#allocation14 + $0x1c0] sm:$0xff]  ;;  %v2249_v18 = vld [vmem:[#allocation14 + $0x1c8] sm:$0xff] }
 0x170   :  { %v11318_v50 = vcombine.high %v2241_v57, %v2245_v41  ;;  %2979 = vmatprep.subr.bf16.mxu0 %v11312_v19  ;;  %v2252_v15 = vld [vmem:[#allocation14 + $0x1e0] sm:$0xff] }
 0x171   :  { %13334 = vst [vmem:[#allocation35_spill] sm:$0xff] %v11298_v27  ;;  %13335 = vst [vmem:[#allocation36_spill] sm:$0xff] %v11300_v29  ;;  %v927_v43 = vpop.f32.mrb[16].mxu0  ;;  %v1000_v60 = vpop.f32.mrb[16].mxu1  ;;  %2980 = vmatpush1.bf16.msra.mxu0 %v11314_v61  ;;  %v11338_v51 = vcombine.low %v2248_v55, %v2252_v15 }
 0x172   :  { %v928_v17 = vadd.f32 %v927_v43, %v11292_v23  ;;  %v929_v22 = vpop.f32.mrb[17].mxu0  ;;  %v1001_v13 = vadd.f32 %v1000_v60, %v11296_v24  ;;  %v1002_v1 = vpop.f32.mrb[17].mxu1  ;;  %3020 = vmatprep.subr.bf16.mxu1 %v11318_v50  ;;  %v11330_v60 = vcombine.high %v2248_v55, %v2252_v15 }
 0x173   :  { %v930_v5 = vadd.f32 %v929_v22, %v11304_v25  ;;  %v931_v6 = vpop.f32.mrb[18].mxu0  ;;  %v1003_v8 = vadd.f32 %v1002_v1, %v11308_v26  ;;  %v1004_v11 = vpop.f32.mrb[18].mxu1  ;;  %3021 = vmatpush1.bf16.msra.mxu1 %v11316_v21  ;;  %v2253_v22 = vld [vmem:[#allocation14 + $0x1e8] sm:$0xff] }
 0x174   :  { %v932_v30 = vadd.f32 %v931_v6, %v11292_v23  ;;  %v933_v57 = vpop.f32.mrb[19].mxu0  ;;  %v1005_v41 = vadd.f32 %v1004_v11, %v11296_v24  ;;  %v1006_v43 = vpop.f32.mrb[19].mxu1  ;;  %2981 = vmatprep.subr.bf16.mxu0 %v11330_v60  ;;  %v11341_v6 = vcombine.low %v2249_v18, %v2253_v22  ;;  %v11343_v11 = vcombine.high %v2249_v18, %v2253_v22 }
 0x175   :  { %v11332_v1 = vpack.c.bf16 %v930_v5, %v928_v17  ;;  %v934_v29 = vadd.f32 %v933_v57, %v11304_v25  ;;  %v11335_v27 = vpack.c.bf16 %v1003_v8, %v1001_v13  ;;  %v1007_v59 = vadd.f32 %v1006_v43, %v11308_v26  ;;  %v2256_v17 = vld [vmem:[#allocation14 + $0x200] sm:$0xff]  ;;  %2982 = vmatpush1.bf16.msra.mxu0 %v11338_v51  ;;  %v2261_v8 = vld [vmem:[#allocation14 + $0x228] sm:$0xff] }
 0x176   :  { %v2260_v5 = vld [vmem:[#allocation14 + $0x220] sm:$0xff]  ;;  %3022 = vmatprep.subr.bf16.mxu1 %v11343_v11 }
 0x177   :  { %13336 = vst [vmem:[#allocation37_spill] sm:$0xff] %v11332_v1  ;;  %13337 = vst [vmem:[#allocation38_spill] sm:$0xff] %v11335_v27  ;;  %v11345_v33 = vpack.c.bf16 %v934_v29, %v932_v30  ;;  %v11347_v31 = vpack.c.bf16 %v1007_v59, %v1005_v41  ;;  %v2257_v1 = vld [vmem:[#allocation14 + $0x208] sm:$0xff]  ;;  %v11351_v13 = vcombine.high %v2256_v17, %v2260_v5  ;;  %3023 = vmatpush1.bf16.msra.mxu1 %v11341_v6 }
 0x178   :  { %v11354_v18 = vcombine.low %v2256_v17, %v2260_v5  ;;  %v11356_v29 = vcombine.low %v2257_v1, %v2261_v8  ;;  %v11358_v59 = vcombine.high %v2257_v1, %v2261_v8  ;;  %v2264_v17 = vld [vmem:[#allocation14 + $0x240] sm:$0xff]  ;;  %v2265_v1 = vld [vmem:[#allocation14 + $0x248] sm:$0xff] }
 0x179   :  { %13338 = vst [vmem:[#allocation39_spill] sm:$0xff] %v11345_v33  ;;  %13339 = vst [vmem:[#allocation40_spill] sm:$0xff] %v11347_v31  ;;  %v937_v55 = vpop.f32.mrb[20].mxu0  ;;  %v1010_v15 = vpop.f32.mrb[20].mxu1  ;;  %2983 = vmatprep.subr.bf16.mxu0 %v11351_v13  ;;  %v2268_v5 = vld [vmem:[#allocation14 + $0x260] sm:$0xff] }
 0x17a   :  { %v938_v30 = vadd.f32 %v937_v55, %v11292_v23  ;;  %v939_v57 = vpop.f32.mrb[21].mxu0  ;;  %v1011_v41 = vadd.f32 %v1010_v15, %v11296_v24  ;;  %v1012_v43 = vpop.f32.mrb[21].mxu1  ;;  %3024 = vmatprep.subr.bf16.mxu1 %v11358_v59  ;;  %2984 = vmatpush1.bf16.msra.mxu0 %v11354_v18  ;;  %v11369_v10 = vcombine.high %v2264_v17, %v2268_v5 }
 0x17b   :  { %v940_v22 = vadd.f32 %v939_v57, %v11304_v25  ;;  %v941_v27 = vpop.f32.mrb[22].mxu0  ;;  %v1013_v31 = vadd.f32 %v1012_v43, %v11308_v26  ;;  %v1014_v33 = vpop.f32.mrb[22].mxu1  ;;  %v2269_v57 = vld [vmem:[#allocation14 + $0x268] sm:$0xff]  ;;  %3025 = vmatpush1.bf16.msra.mxu1 %v11356_v29 }
 0x17c   :  { %v942_v8 = vadd.f32 %v941_v27, %v11292_v23  ;;  %v943_v55 = vpop.f32.mrb[23].mxu0  ;;  %v1015_v12 = vadd.f32 %v1014_v33, %v11296_v24  ;;  %v1016_v15 = vpop.f32.mrb[23].mxu1  ;;  %13340 = vst [vmem:[#allocation41_spill] sm:$0xff] %v11369_v10  ;;  %v11378_v27 = vcombine.low %v2264_v17, %v2268_v5  ;;  %2985 = vmatprep.subr.bf16.mxu0 %v11369_v10  ;;  %v2277_v17 = vld [vmem:[#allocation14 + $0x2a8] sm:$0xff] }
 0x17d   :  { %v11371_v36 = vpack.c.bf16 %v940_v22, %v938_v30  ;;  %v944_v43 = vadd.f32 %v943_v55, %v11304_v25  ;;  %v11374_v35 = vpack.c.bf16 %v1013_v31, %v1011_v41  ;;  %v1017_v28 = vadd.f32 %v1016_v15, %v11308_v26  ;;  %v2272_v22 = vld [vmem:[#allocation14 + $0x280] sm:$0xff]  ;;  %v2273_v31 = vld [vmem:[#allocation14 + $0x288] sm:$0xff] }
 0x17e   :  { %13343 = vst [vmem:[#allocation44_spill] sm:$0xff] %v11378_v27  ;;  %v11381_v33 = vcombine.low %v2265_v1, %v2269_v57  ;;  %v11383_v20 = vcombine.high %v2265_v1, %v2269_v57  ;;  %v2276_v55 = vld [vmem:[#allocation14 + $0x2a0] sm:$0xff]  ;;  %2986 = vmatpush1.bf16.msra.mxu0 %v11378_v27 }
 0x17f   :  { %13341 = vst [vmem:[#allocation42_spill] sm:$0xff] %v11371_v36  ;;  %13342 = vst [vmem:[#allocation43_spill] sm:$0xff] %v11374_v35  ;;  %v11385_v45 = vpack.c.bf16 %v944_v43, %v942_v8  ;;  %v11387_v30 = vpack.c.bf16 %v1017_v28, %v1015_v12  ;;  %v11391_v41 = vcombine.high %v2272_v22, %v2276_v55 }
 0x180   :  { %13344 = vst [vmem:[#allocation45_spill] sm:$0xff] %v11381_v33  ;;  %13345 = vst [vmem:[#allocation46_spill] sm:$0xff] %v11383_v20  ;;  %3026 = vmatprep.subr.bf16.mxu1 %v11383_v20  ;;  %v11394_v1 = vcombine.low %v2272_v22, %v2276_v55  ;;  %v11396_v8 = vcombine.low %v2273_v31, %v2277_v17  ;;  %v11398_v28 = vcombine.high %v2273_v31, %v2277_v17  ;;  %v2280_v22 = vld [vmem:[#allocation14 + $0x2c0] sm:$0xff]  ;;  %v2281_v31 = vld [vmem:[#allocation14 + $0x2c8] sm:$0xff] }
 0x181   :  { %13346 = vst [vmem:[#allocation47_spill] sm:$0xff] %v11385_v45  ;;  %13347 = vst [vmem:[#allocation48_spill] sm:$0xff] %v11387_v30  ;;  %v947_v5 = vpop.f32.mrb[24].mxu0  ;;  %v1020_v15 = vpop.f32.mrb[24].mxu1  ;;  %3027 = vmatpush1.bf16.msra.mxu1 %v11381_v33  ;;  %2987 = vmatprep.subr.bf16.mxu0 %v11391_v41  ;;  %v2284_v55 = vld [vmem:[#allocation14 + $0x2e0] sm:$0xff] }
 0x182   :  { %13348 = vst [vmem:[#allocation49_spill] sm:$0xff] %v11391_v41  ;;  %13349 = vst [vmem:[#allocation50_spill] sm:$0xff] %v11394_v1  ;;  %v948_v12 = vadd.f32 %v947_v5, %v11292_v23  ;;  %v949_v57 = vpop.f32.mrb[25].mxu0  ;;  %v1021_v43 = vadd.f32 %v1020_v15, %v11296_v24  ;;  %v1022_v35 = vpop.f32.mrb[25].mxu1  ;;  %3028 = vmatprep.subr.bf16.mxu1 %v11398_v28  ;;  %2988 = vmatpush1.bf16.msra.mxu0 %v11394_v1 }
 0x183   :  { %13350 = vst [vmem:[#allocation51_spill] sm:$0xff] %v11398_v28  ;;  %v950_v36 = vadd.f32 %v949_v57, %v11304_v25  ;;  %v951_v30 = vpop.f32.mrb[26].mxu0  ;;  %v1023_v45 = vadd.f32 %v1022_v35, %v11308_v26  ;;  %v1024_v44 = vpop.f32.mrb[26].mxu1  ;;  %v11409_v41 = vcombine.high %v2280_v22, %v2284_v55  ;;  %v2285_v57 = vld [vmem:[#allocation14 + $0x2e8] sm:$0xff] }
 0x184   :  { %v952_v17 = vadd.f32 %v951_v30, %v11292_v23  ;;  %v953_v5 = vpop.f32.mrb[27].mxu0  ;;  %v1025_v33 = vadd.f32 %v1024_v44, %v11296_v24  ;;  %v1026_v15 = vpop.f32.mrb[27].mxu1  ;;  %v11418_v30 = vcombine.low %v2280_v22, %v2284_v55  ;;  %v11421_v44 = vcombine.low %v2281_v31, %v2285_v57  ;;  %v2293_v22 = vld [vmem:[#allocation14 + $0x328] sm:$0xff] }
 0x185   :  { %13351 = vst [vmem:[#allocation52_spill] sm:$0xff] %v11409_v41  ;;  %v11411_v27 = vpack.c.bf16 %v950_v36, %v948_v12  ;;  %v954_v35 = vadd.f32 %v953_v5, %v11304_v25  ;;  %v11414_v20 = vpack.c.bf16 %v1023_v45, %v1021_v43  ;;  %v1027_v28 = vadd.f32 %v1026_v15, %v11308_v26  ;;  %v2288_v12 = vld [vmem:[#allocation14 + $0x300] sm:$0xff]  ;;  %v2289_v45 = vld [vmem:[#allocation14 + $0x308] sm:$0xff] }
 0x186   :  { %3029 = vmatpush1.bf16.msra.mxu1 %v11396_v8  ;;  %13354 = vst [vmem:[#allocation55_spill] sm:$0xff] %v11418_v30  ;;  %2989 = vmatprep.subr.bf16.mxu0 %v11409_v41  ;;  %13355 = vst [vmem:[#allocation56_spill] sm:$0xff] %v11421_v44  ;;  %v11423_v1 = vcombine.high %v2281_v31, %v2285_v57  ;;  %v2292_v5 = vld [vmem:[#allocation14 + $0x320] sm:$0xff] }
 0x187   :  { %13352 = vst [vmem:[#allocation53_spill] sm:$0xff] %v11411_v27  ;;  %13353 = vst [vmem:[#allocation54_spill] sm:$0xff] %v11414_v20  ;;  %v11425_v10 = vpack.c.bf16 %v954_v35, %v952_v17  ;;  %v11427_v36 = vpack.c.bf16 %v1027_v28, %v1025_v33  ;;  %2990 = vmatpush1.bf16.msra.mxu0 %v11418_v30  ;;  %v11431_v43 = vcombine.high %v2288_v12, %v2292_v5 }
 0x188   :  { %13356 = vst [vmem:[#allocation57_spill] sm:$0xff] %v11423_v1  ;;  %3030 = vmatprep.subr.bf16.mxu1 %v11423_v1  ;;  %v11434_v31 = vcombine.low %v2288_v12, %v2292_v5  ;;  %v11436_v17 = vcombine.low %v2289_v45, %v2293_v22  ;;  %v11438_v33 = vcombine.high %v2289_v45, %v2293_v22  ;;  %v2296_v12 = vld [vmem:[#allocation14 + $0x340] sm:$0xff]  ;;  %v2297_v45 = vld [vmem:[#allocation14 + $0x348] sm:$0xff] }
 0x189   :  { %13357 = vst [vmem:[#allocation58_spill] sm:$0xff] %v11425_v10  ;;  %13358 = vst [vmem:[#allocation59_spill] sm:$0xff] %v11427_v36  ;;  %v957_v55 = vpop.f32.mrb[28].mxu0  ;;  %v1030_v15 = vpop.f32.mrb[28].mxu1  ;;  %2991 = vmatprep.subr.bf16.mxu0 %v11431_v43  ;;  %v2300_v5 = vld [vmem:[#allocation14 + $0x360] sm:$0xff] }
 0x18a   :  { %13359 = vst [vmem:[#allocation60_spill] sm:$0xff] %v11431_v43  ;;  %3031 = vmatpush1.bf16.msra.mxu1 %v11421_v44  ;;  %13360 = vst [vmem:[#allocation61_spill] sm:$0xff] %v11434_v31  ;;  %v958_v28 = vadd.f32 %v957_v55, %v11292_v23  ;;  %v959_v57 = vpop.f32.mrb[29].mxu0  ;;  %v1031_v35 = vadd.f32 %v1030_v15, %v11296_v24  ;;  %v1032_v20 = vpop.f32.mrb[29].mxu1  ;;  %v11449_v43 = vcombine.high %v2296_v12, %v2300_v5 }
 0x18b   :  { %13361 = vst [vmem:[#allocation62_spill] sm:$0xff] %v11436_v17  ;;  %13362 = vst [vmem:[#allocation63_spill] sm:$0xff] %v11438_v33  ;;  %v960_v27 = vadd.f32 %v959_v57, %v11304_v25  ;;  %v961_v36 = vpop.f32.mrb[30].mxu0  ;;  %v1033_v10 = vadd.f32 %v1032_v20, %v11308_v26  ;;  %v1034_v44 = vpop.f32.mrb[30].mxu1  ;;  %3032 = vmatprep.subr.bf16.mxu1 %v11438_v33  ;;  %2992 = vmatpush1.bf16.msra.mxu0 %v11434_v31  ;;  %v2301_v57 = vld [vmem:[#allocation14 + $0x368] sm:$0xff] }
 0x18c   :  { %v962_v22 = vadd.f32 %v961_v36, %v11292_v23  ;;  %v963_v55 = vpop.f32.mrb[31].mxu0  ;;  %v1035_v30 = vadd.f32 %v1034_v44, %v11296_v24  ;;  %v1036_v15 = vpop.f32.mrb[31].mxu1  ;;  %13363 = vst [vmem:[#allocation64_spill] sm:$0xff] %v11449_v43  ;;  %v11458_v23 = vcombine.low %v2296_v12, %v2300_v5  ;;  %2993 = vmatprep.subr.bf16.mxu0 %v11449_v43 }
 0x18d   :  { %v11451_v1 = vpack.c.bf16 %v960_v27, %v958_v28  ;;  %v964_v20 = vadd.f32 %v963_v55, %v11304_v25  ;;  %v11454_v41 = vpack.c.bf16 %v1033_v10, %v1031_v35  ;;  %v1037_v33 = vadd.f32 %v1036_v15, %v11308_v26  ;;  %v2304_v28 = vld [vmem:[#allocation14 + $0x380] sm:$0xff]  ;;  %v2305_v10 = vld [vmem:[#allocation14 + $0x388] sm:$0xff] }
 0x18e   :  { %3033 = vmatpush1.bf16.msra.mxu1 %v11436_v17  ;;  %13366 = vst [vmem:[#allocation67_spill] sm:$0xff] %v11458_v23  ;;  %v11461_v24 = vcombine.low %v2297_v45, %v2301_v57  ;;  %v11463_v44 = vcombine.high %v2297_v45, %v2301_v57  ;;  %v2308_v25 = vld [vmem:[#allocation14 + $0x3a0] sm:$0xff]  ;;  %v2309_v35 = vld [vmem:[#allocation14 + $0x3a8] sm:$0xff] }
 0x18f   :  { %13364 = vst [vmem:[#allocation65_spill] sm:$0xff] %v11451_v1  ;;  %13365 = vst [vmem:[#allocation66_spill] sm:$0xff] %v11454_v41  ;;  %v11465_v36 = vpack.c.bf16 %v964_v20, %v962_v22  ;;  %v11467_v27 = vpack.c.bf16 %v1037_v33, %v1035_v30  ;;  %2994 = vmatpush1.bf16.msra.mxu0 %v11458_v23  ;;  %v11471_v26 = vcombine.high %v2304_v28, %v2308_v25  ;;  %v2312_v33 = vld [vmem:[#allocation14 + $0x3c0] sm:$0xff]  ;;  %v2313_v22 = vld [vmem:[#allocation14 + $0x3c8] sm:$0xff] }
 0x190   :  { %13367 = vst [vmem:[#allocation68_spill] sm:$0xff] %v11461_v24  ;;  %13368 = vst [vmem:[#allocation69_spill] sm:$0xff] %v11463_v44  ;;  %3034 = vmatprep.subr.bf16.mxu1 %v11463_v44  ;;  %v11474_v12 = vcombine.low %v2304_v28, %v2308_v25  ;;  %v11477_v5 = vcombine.low %v2305_v10, %v2309_v35  ;;  %v11479_v30 = vcombine.high %v2305_v10, %v2309_v35  ;;  %v2316_v45 = vld [vmem:[#allocation14 + $0x3e0] sm:$0xff]  ;;  %v2317_v15 = vld [vmem:[#allocation14 + $0x3e8] sm:$0xff] }
 0x191   :  { %13369 = vst [vmem:[#allocation70_spill] sm:$0xff] %v11471_v26  ;;  %2995 = vmatprep.subr.bf16.mxu0 %v11471_v26  ;;  %v11483_v55 = vcombine.high %v2312_v33, %v2316_v45  ;;  %v11486_v57 = vcombine.low %v2312_v33, %v2316_v45  ;;  %v11488_v20 = vcombine.low %v2313_v22, %v2317_v15  ;;  %v2194_v25 = vld [vmem:[#allocation14 + $0x10] sm:$0xff]  ;;  %v2195_v35 = vld [vmem:[#allocation14 + $0x18] sm:$0xff] }
 0x192   :  { %3035 = vmatpush1.bf16.msra.mxu1 %v11461_v24  ;;  %13370 = vst [vmem:[#allocation71_spill] sm:$0xff] %v11474_v12  ;;  %13371 = vst [vmem:[#allocation72_spill] sm:$0xff] %v11477_v5  ;;  %v11490_v28 = vcombine.high %v2313_v22, %v2317_v15  ;;  %v2198_v10 = vld [vmem:[#allocation14 + $0x30] sm:$0xff]  ;;  %v2199_v1 = vld [vmem:[#allocation14 + $0x38] sm:$0xff]  ;;  %v2125_v15 = vunpack.c.l.bf16 %v11163_v40 }
 0x193   :  { %13372 = vst [vmem:[#allocation73_spill] sm:$0xff] %v11479_v30  ;;  %3036 = vmatprep.subr.bf16.mxu1 %v11479_v30  ;;  %2996 = vmatpush1.bf16.msra.mxu0 %v11474_v12  ;;  %13373 = vst [vmem:[#allocation74_spill] sm:$0xff] %v11483_v55  ;;  %v11495_v41 = vcombine.high %v2194_v25, %v2198_v10  ;;  %v11498_v33 = vcombine.low %v2194_v25, %v2198_v10 }
 0x194   :  { %13374 = vst [vmem:[#allocation75_spill] sm:$0xff] %v11486_v57  ;;  %13375 = vst [vmem:[#allocation76_spill] sm:$0xff] %v11488_v20  ;;  %2997 = vmatprep.subr.bf16.mxu0 %v11483_v55  ;;  %v11500_v45 = vcombine.low %v2195_v35, %v2199_v1  ;;  %v11502_v22 = vcombine.high %v2195_v35, %v2199_v1 }
 0x195   :  { %13376 = vst [vmem:[#allocation77_spill] sm:$0xff] %v11490_v28  ;;  %13377 = vst [vmem:[#allocation78_spill] sm:$0xff] %v11495_v41 }
 0x196   :  { %3037 = vmatpush1.bf16.msra.mxu1 %v11477_v5  ;;  %13378 = vst [vmem:[#allocation79_spill] sm:$0xff] %v11502_v22  ;;  %v2126_v5 = vunpack.c.h.bf16 %v11163_v40 }
 0x197   :  { %3038 = vmatprep.subr.bf16.mxu1 %v11490_v28  ;;  %2998 = vmatpush1.bf16.msra.mxu0 %v11486_v57  ;;  %v2127_v28 = vunpack.c.l.bf16 %v11166_v42 }
 0x198   :  { %3049 = vmatprep.subr.bf16.mxu0 %v11495_v41 }
 0x19a   :  { %3039 = vmatpush1.bf16.msra.mxu1 %v11488_v20  ;;  %v2128_v20 = vunpack.c.h.bf16 %v11166_v42 }
 0x19b   :  { %3090 = vmatprep.subr.bf16.mxu1 %v11502_v22 }
 0x1b1   :  { %v1993_v57 = vpop.f32.mrb[32].mxu0  ;;  %v2034_v55 = vpop.f32.mrb[32].mxu1 }
 0x1b2   :  { %v2129_v25 = vadd.f32 %v2125_v15, %v1993_v57  ;;  %v2131_v10 = vadd.f32 %v2127_v28, %v2034_v55  ;;  %v1995_v12 = vpop.f32.mrb[33].mxu0  ;;  %v2036_v30 = vpop.f32.mrb[33].mxu1  ;;  %v2137_v15 = vunpack.c.h.bf16 %v11465_v36 }
 0x1b3   :  { %v2130_v1 = vadd.f32 %v2126_v5, %v1995_v12  ;;  %v2132_v35 = vadd.f32 %v2128_v20, %v2036_v30  ;;  %v1997_v26 = vpop.f32.mrb[34].mxu0  ;;  %v2038_v41 = vpop.f32.mrb[34].mxu1 }
 0x1b4   :  { %v2145_v24 = vmul.f32 0.5, %v2129_v25  ;;  %v1998_v22 = vpop.f32.mrb[35].mxu0  ;;  %v2039_v23 = vpop.f32.mrb[35].mxu1  ;;  %v2139_v25 = vunpack.c.h.bf16 %v11467_v27 }
 0x1b5   :  { %v2149_v44 = vmul.f32 0.5, %v2130_v1  ;;  %v2154_v43 = vmul.f32 0.5, %v2132_v35 }
 0x1b6   :  { %10650 = vtanh.f32 %v2145_v24 }
 0x1b7   :  { %10652 = vtanh.f32 %v2149_v44 }
 0x1b8   :  { %10654 = vtanh.f32 %v2131_v10 }
 0x1b9   :  { %10656 = vtanh.f32 %v2154_v43  ;;  %v2136_v43 = vunpack.c.l.bf16 %v11465_v36 }
 0x1c0   :  { %v10651_v17 = vpop.eup %10650 }
 0x1c1   :  { %v10653_v40 = vpop.eup %10652  ;;  %v2147_v31 = vmul.f32 0.5, %v10651_v17 }
 0x1c2   :  { %v2151_v42 = vmul.f32 0.5, %v10653_v40  ;;  %v10655_v57 = vpop.eup %10654 }
 0x1c3   :  { %v2148_v55 = vadd.f32 0.5, %v2147_v31  ;;  %v10657_v41 = vpop.eup %10656  ;;  %v2138_v31 = vunpack.c.l.bf16 %v11467_v27 }
 0x1c4   :  { %v2152_v28 = vadd.f32 0.5, %v2151_v42  ;;  %v2156_v23 = vmul.f32 0.5, %v10657_v41 }
 0x1c5   :  { %v2159_v12 = vmul.f32 %v10655_v57, %v2148_v55 }
 0x1c6   :  { %v2158_v5 = vmul.f32 0.0, %v2152_v28  ;;  %v2157_v24 = vadd.f32 0.5, %v2156_v23 }
 0x1c8   :  { %v11510_v26 = vadd.f32 %v2159_v12, %v2158_v5 }
 0x1ca   :  { %10658 = vtanh.f32 %v11510_v26 }
 0x1d4   :  { %v10659_v44 = vpop.eup %10658 }
 0x1d5   :  { %v2162_v30 = vmul.f32 %v10659_v44, %v2157_v24 }
 0x1d7   :  { %v11513_v20 = vpack.c.bf16 %v2162_v30, %v2162_v30 }
 0x1d9   :  { %2188 = vst [vmem:[#allocation15] sm:$0xf] %v11513_v20 }
 0x1f1   :  { %v2075_v17 = vpop.f32.mrb[36].mxu0  ;;  %v2116_v22 = vpop.f32.mrb[36].mxu1 }
 0x1f2   :  { %v2140_v10 = vadd.f32 %v2136_v43, %v2075_v17  ;;  %v2142_v1 = vadd.f32 %v2138_v31, %v2116_v22  ;;  %v2077_v35 = vpop.f32.mrb[37].mxu0  ;;  %v2118_v40 = vpop.f32.mrb[37].mxu1 }
 0x1f3   :  { %v2141_v42 = vadd.f32 %v2137_v15, %v2077_v35  ;;  %v2143_v55 = vadd.f32 %v2139_v25, %v2118_v40  ;;  %v2079_v57 = vpop.f32.mrb[38].mxu0  ;;  %v2120_v28 = vpop.f32.mrb[38].mxu1 }
 0x1f4   :  { %v2164_v12 = vmul.f32 0.5, %v2140_v10  ;;  %v2080_v5 = vpop.f32.mrb[39].mxu0  ;;  %v2121_v41 = vpop.f32.mrb[39].mxu1  ;;  %v2206_v57 = vld [vmem:[#allocation14 + $0x70] sm:$0xff]  ;;  %v2203_v28 = vld [vmem:[#allocation14 + $0x58] sm:$0xff] }
 0x1f5   :  { %v2168_v23 = vmul.f32 0.5, %v2141_v42  ;;  %v2173_v24 = vmul.f32 0.5, %v2143_v55  ;;  %v2202_v55 = vld [vmem:[#allocation14 + $0x50] sm:$0xff] }
 0x1f6   :  { %10660 = vtanh.f32 %v2164_v12  ;;  %v2207_v12 = vld [vmem:[#allocation14 + $0x78] sm:$0xff]  ;;  %v2210_v41 = vld [vmem:[#allocation14 + $0x90] sm:$0xff] }
 0x1f7   :  { %10662 = vtanh.f32 %v2168_v23  ;;  %v11523_v23 = vcombine.high %v2202_v55, %v2206_v57 }
 0x1f8   :  { %10664 = vtanh.f32 %v2142_v1 }
 0x1f9   :  { %10666 = vtanh.f32 %v2173_v24  ;;  %v11525_v24 = vcombine.high %v2203_v28, %v2207_v12 }
 0x200   :  { %v10661_v44 = vpop.eup %10660 }
 0x201   :  { %v10663_v36 = vpop.eup %10662  ;;  %v2166_v30 = vmul.f32 0.5, %v10661_v44  ;;  %v2214_v44 = vld [vmem:[#allocation14 + $0xb0] sm:$0xff] }
 0x202   :  { %v2170_v27 = vmul.f32 0.5, %v10663_v36  ;;  %v10665_v31 = vpop.eup %10664  ;;  %v2211_v36 = vld [vmem:[#allocation14 + $0x98] sm:$0xff] }
 0x203   :  { %v2167_v43 = vadd.f32 0.5, %v2166_v30  ;;  %v10667_v10 = vpop.eup %10666  ;;  %v2215_v30 = vld [vmem:[#allocation14 + $0xb8] sm:$0xff] }
 0x204   :  { %v2171_v17 = vadd.f32 0.5, %v2170_v27  ;;  %v2175_v35 = vmul.f32 0.5, %v10667_v10  ;;  %v11531_v27 = vcombine.low %v2202_v55, %v2206_v57  ;;  %v2219_v10 = vld [vmem:[#allocation14 + $0xd8] sm:$0xff]  ;;  %v2226_v57 = vld [vmem:[#allocation14 + $0x110] sm:$0xff] }
 0x205   :  { %v2178_v22 = vmul.f32 %v10665_v31, %v2167_v43  ;;  %v11533_v43 = vcombine.low %v2203_v28, %v2207_v12  ;;  %v11535_v31 = vcombine.high %v2210_v41, %v2214_v44  ;;  %v2230_v28 = vld [vmem:[#allocation14 + $0x130] sm:$0xff]  ;;  %v2227_v12 = vld [vmem:[#allocation14 + $0x118] sm:$0xff] }
 0x206   :  { %v2177_v15 = vmul.f32 0.0, %v2171_v17  ;;  %v2176_v40 = vadd.f32 0.5, %v2175_v35  ;;  %13379 = vst [vmem:[#allocation80_spill] sm:$0xff] %v11531_v27  ;;  %v11537_v17 = vcombine.high %v2211_v36, %v2215_v30  ;;  %v2223_v35 = vld [vmem:[#allocation14 + $0xf8] sm:$0xff] }
 0x207   :  { %13380 = vst [vmem:[#allocation81_spill] sm:$0xff] %v11533_v43  ;;  %13381 = vst [vmem:[#allocation82_spill] sm:$0xff] %v11535_v31  ;;  %v11551_v55 = vcombine.high %v2219_v10, %v2223_v35 }
 0x208   :  { %v11520_v25 = vadd.f32 %v2178_v22, %v2177_v15  ;;  %13382 = vst [vmem:[#allocation83_spill] sm:$0xff] %v11537_v17  ;;  %v2218_v22 = vld [vmem:[#allocation14 + $0xd0] sm:$0xff] }
 0x209   :  { %v2222_v15 = vld [vmem:[#allocation14 + $0xf0] sm:$0xff]  ;;  %13386 = vst [vmem:[#allocation87_spill] sm:$0xff] %v11551_v55 }
 0x20a   :  { %10668 = vtanh.f32 %v11520_v25 }
 0x214   :  { %v10669_v42 = vpop.eup %10668 }
 0x215   :  { %v2181_v1 = vmul.f32 %v10669_v42, %v2176_v40  ;;  %v11543_v40 = vcombine.low %v2210_v41, %v2214_v44  ;;  %v11545_v42 = vcombine.low %v2211_v36, %v2215_v30  ;;  %v11555_v41 = vcombine.low %v2218_v22, %v2222_v15 }
 0x216   :  { %v11557_v44 = vcombine.low %v2219_v10, %v2223_v35  ;;  %v11561_v36 = vcombine.high %v2226_v57, %v2230_v28 }
 0x217   :  { %v2184_v5 = vpack.c.bf16 %v2181_v1, %v2181_v1  ;;  %13383 = vst [vmem:[#allocation84_spill] sm:$0xff] %v11543_v40  ;;  %13384 = vst [vmem:[#allocation85_spill] sm:$0xff] %v11545_v42  ;;  %v11549_v1 = vcombine.high %v2218_v22, %v2222_v15  ;;  %v11567_v22 = vcombine.low %v2226_v57, %v2230_v28 }
 0x218   :  { %13387 = vst [vmem:[#allocation88_spill] sm:$0xff] %v11555_v41  ;;  %13388 = vst [vmem:[#allocation89_spill] sm:$0xff] %v11557_v44 }
 0x219   :  { %2190 = vst [vmem:[#allocation16 + $0x1c] sm:$0xf] %v2184_v5  ;;  %2999 = vmatprep.mubr.bf16.mxu0 %v2184_v5  ;;  %3040 = vmatprep.mubr.bf16.mxu1 %v2184_v5  ;;  %13385 = vst [vmem:[#allocation86_spill] sm:$0xff] %v11549_v1 }
 0x21a   :  { %3000 = vmatmul.mubr.bf16.vlgmr.msra.gmra.mrb[40].mxu0 %v11513_v20  ;;  %3041 = vmatmul.mubr.bf16.vlgmr.msra.gmra.mrb[40].mxu1 %v11513_v20  ;;  %13389 = vst [vmem:[#allocation90_spill] sm:$0xff] %v11561_v36  ;;  %13391 = vst [vmem:[#allocation92_spill] sm:$0xff] %v11567_v22 }
 0x21b   :  { %3050 = vmatpush1.bf16.msra.mxu0 %v11498_v33  ;;  %3091 = vmatpush1.bf16.msra.mxu1 %v11500_v45 }
 0x21c   :  { %3081 = vmatprep.mubr.bf16.mxu0 %v2184_v5  ;;  %3122 = vmatprep.mubr.bf16.mxu1 %v2184_v5  ;;  %v2231_v5 = vld [vmem:[#allocation14 + $0x138] sm:$0xff] }
 0x21d   :  { %3051 = vmatprep.subr.bf16.mxu0 %v11523_v23  ;;  %3092 = vmatprep.subr.bf16.mxu1 %v11525_v24  ;;  %v11563_v30 = vcombine.high %v2227_v12, %v2231_v5  ;;  %v11569_v15 = vcombine.low %v2227_v12, %v2231_v5 }
 0x21f   :  { %3052 = vmatpush1.bf16.msra.mxu0 %v11531_v27  ;;  %3093 = vmatpush1.bf16.msra.mxu1 %v11533_v43  ;;  %13390 = vst [vmem:[#allocation91_spill] sm:$0xff] %v11563_v30  ;;  %v2235_v43 = vld [vmem:[#allocation14 + $0x158] sm:$0xff]  ;;  %13392 = vst [vmem:[#allocation93_spill] sm:$0xff] %v11569_v15 }
 0x220   :  { %3053 = vmatprep.subr.bf16.mxu0 %v11535_v31  ;;  %3094 = vmatprep.subr.bf16.mxu1 %v11537_v17  ;;  %v2234_v17 = vld [vmem:[#allocation14 + $0x150] sm:$0xff]  ;;  %v2239_v27 = vld [vmem:[#allocation14 + $0x178] sm:$0xff] }
 0x221   :  { %v2238_v31 = vld [vmem:[#allocation14 + $0x170] sm:$0xff]  ;;  %v11575_v35 = vcombine.high %v2235_v43, %v2239_v27  ;;  %v11581_v28 = vcombine.low %v2235_v43, %v2239_v27 }
 0x222   :  { %v11573_v10 = vcombine.high %v2234_v17, %v2238_v31  ;;  %v11579_v57 = vcombine.low %v2234_v17, %v2238_v31 }
 0x223   :  { %3054 = vmatpush1.bf16.msra.mxu0 %v11543_v40  ;;  %3095 = vmatpush1.bf16.msra.mxu1 %v11545_v42  ;;  %13394 = vst [vmem:[#allocation95_spill] sm:$0xff] %v11575_v35  ;;  %v2243_v42 = vld [vmem:[#allocation14 + $0x198] sm:$0xff]  ;;  %13396 = vst [vmem:[#allocation97_spill] sm:$0xff] %v11581_v28 }
 0x224   :  { %3055 = vmatprep.subr.bf16.mxu0 %v11549_v1  ;;  %3096 = vmatprep.subr.bf16.mxu1 %v11551_v55  ;;  %13393 = vst [vmem:[#allocation94_spill] sm:$0xff] %v11573_v10  ;;  %v2242_v55 = vld [vmem:[#allocation14 + $0x190] sm:$0xff]  ;;  %v2247_v40 = vld [vmem:[#allocation14 + $0x1b8] sm:$0xff]  ;;  %13395 = vst [vmem:[#allocation96_spill] sm:$0xff] %v11579_v57 }
 0x225   :  { %v2246_v1 = vld [vmem:[#allocation14 + $0x1b0] sm:$0xff]  ;;  %v11587_v5 = vcombine.high %v2243_v42, %v2247_v40  ;;  %v11593_v27 = vcombine.low %v2243_v42, %v2247_v40 }
 0x226   :  { %v11585_v12 = vcombine.high %v2242_v55, %v2246_v1  ;;  %v11591_v31 = vcombine.low %v2242_v55, %v2246_v1 }
 0x227   :  { %3056 = vmatpush1.bf16.msra.mxu0 %v11555_v41  ;;  %3097 = vmatpush1.bf16.msra.mxu1 %v11557_v44  ;;  %13398 = vst [vmem:[#allocation99_spill] sm:$0xff] %v11587_v5  ;;  %v2251_v44 = vld [vmem:[#allocation14 + $0x1d8] sm:$0xff]  ;;  %13400 = vst [vmem:[#allocation101_spill] sm:$0xff] %v11593_v27 }
 0x228   :  { %3057 = vmatprep.subr.bf16.mxu0 %v11561_v36  ;;  %3098 = vmatprep.subr.bf16.mxu1 %v11563_v30  ;;  %13397 = vst [vmem:[#allocation98_spill] sm:$0xff] %v11585_v12  ;;  %v2250_v30 = vld [vmem:[#allocation14 + $0x1d0] sm:$0xff]  ;;  %v2255_v41 = vld [vmem:[#allocation14 + $0x1f8] sm:$0xff]  ;;  %13399 = vst [vmem:[#allocation100_spill] sm:$0xff] %v11591_v31 }
 0x229   :  { %v2254_v36 = vld [vmem:[#allocation14 + $0x1f0] sm:$0xff]  ;;  %v11599_v17 = vcombine.high %v2251_v44, %v2255_v41  ;;  %v11605_v40 = vcombine.low %v2251_v44, %v2255_v41 }
 0x22a   :  { %v11597_v43 = vcombine.high %v2250_v30, %v2254_v36  ;;  %v11603_v1 = vcombine.low %v2250_v30, %v2254_v36 }
 0x22b   :  { %3058 = vmatpush1.bf16.msra.mxu0 %v11567_v22  ;;  %3099 = vmatpush1.bf16.msra.mxu1 %v11569_v15  ;;  %13402 = vst [vmem:[#allocation103_spill] sm:$0xff] %v11599_v17  ;;  %v2259_v15 = vld [vmem:[#allocation14 + $0x218] sm:$0xff]  ;;  %13404 = vst [vmem:[#allocation105_spill] sm:$0xff] %v11605_v40 }
 0x22c   :  { %3059 = vmatprep.subr.bf16.mxu0 %v11573_v10  ;;  %3100 = vmatprep.subr.bf16.mxu1 %v11575_v35  ;;  %13401 = vst [vmem:[#allocation102_spill] sm:$0xff] %v11597_v43  ;;  %v2258_v35 = vld [vmem:[#allocation14 + $0x210] sm:$0xff]  ;;  %v2263_v22 = vld [vmem:[#allocation14 + $0x238] sm:$0xff]  ;;  %13403 = vst [vmem:[#allocation104_spill] sm:$0xff] %v11603_v1 }
 0x22d   :  { %v2262_v10 = vld [vmem:[#allocation14 + $0x230] sm:$0xff]  ;;  %v11611_v55 = vcombine.high %v2259_v15, %v2263_v22  ;;  %v11617_v41 = vcombine.low %v2259_v15, %v2263_v22 }
 0x22e   :  { %v11609_v42 = vcombine.high %v2258_v35, %v2262_v10  ;;  %v11615_v36 = vcombine.low %v2258_v35, %v2262_v10 }
 0x22f   :  { %3060 = vmatpush1.bf16.msra.mxu0 %v11579_v57  ;;  %3101 = vmatpush1.bf16.msra.mxu1 %v11581_v28  ;;  %13406 = vst [vmem:[#allocation107_spill] sm:$0xff] %v11611_v55  ;;  %v2267_v28 = vld [vmem:[#allocation14 + $0x258] sm:$0xff]  ;;  %13408 = vst [vmem:[#allocation109_spill] sm:$0xff] %v11617_v41 }
 0x230   :  { %3061 = vmatprep.subr.bf16.mxu0 %v11585_v12  ;;  %3102 = vmatprep.subr.bf16.mxu1 %v11587_v5  ;;  %13405 = vst [vmem:[#allocation106_spill] sm:$0xff] %v11609_v42  ;;  %v2266_v5 = vld [vmem:[#allocation14 + $0x250] sm:$0xff]  ;;  %v2271_v57 = vld [vmem:[#allocation14 + $0x278] sm:$0xff]  ;;  %13407 = vst [vmem:[#allocation108_spill] sm:$0xff] %v11615_v36 }
 0x231   :  { %v2270_v12 = vld [vmem:[#allocation14 + $0x270] sm:$0xff]  ;;  %v11623_v30 = vcombine.high %v2267_v28, %v2271_v57  ;;  %v11629_v22 = vcombine.low %v2267_v28, %v2271_v57 }
 0x232   :  { %v11621_v44 = vcombine.high %v2266_v5, %v2270_v12  ;;  %v11627_v10 = vcombine.low %v2266_v5, %v2270_v12 }
 0x233   :  { %3062 = vmatpush1.bf16.msra.mxu0 %v11591_v31  ;;  %3103 = vmatpush1.bf16.msra.mxu1 %v11593_v27  ;;  %13410 = vst [vmem:[#allocation111_spill] sm:$0xff] %v11623_v30  ;;  %v2275_v27 = vld [vmem:[#allocation14 + $0x298] sm:$0xff]  ;;  %13412 = vst [vmem:[#allocation113_spill] sm:$0xff] %v11629_v22 }
 0x234   :  { %3063 = vmatprep.subr.bf16.mxu0 %v11597_v43  ;;  %3104 = vmatprep.subr.bf16.mxu1 %v11599_v17  ;;  %13409 = vst [vmem:[#allocation110_spill] sm:$0xff] %v11621_v44  ;;  %v2274_v17 = vld [vmem:[#allocation14 + $0x290] sm:$0xff]  ;;  %v2279_v31 = vld [vmem:[#allocation14 + $0x2b8] sm:$0xff]  ;;  %13411 = vst [vmem:[#allocation112_spill] sm:$0xff] %v11627_v10 }
 0x235   :  { %v2278_v43 = vld [vmem:[#allocation14 + $0x2b0] sm:$0xff]  ;;  %v11635_v35 = vcombine.high %v2275_v27, %v2279_v31  ;;  %v11641_v57 = vcombine.low %v2275_v27, %v2279_v31 }
 0x236   :  { %v11633_v15 = vcombine.high %v2274_v17, %v2278_v43  ;;  %v11639_v12 = vcombine.low %v2274_v17, %v2278_v43 }
 0x237   :  { %3064 = vmatpush1.bf16.msra.mxu0 %v11603_v1  ;;  %3105 = vmatpush1.bf16.msra.mxu1 %v11605_v40  ;;  %13414 = vst [vmem:[#allocation115_spill] sm:$0xff] %v11635_v35  ;;  %v2283_v40 = vld [vmem:[#allocation14 + $0x2d8] sm:$0xff]  ;;  %13416 = vst [vmem:[#allocation117_spill] sm:$0xff] %v11641_v57 }
 0x238   :  { %3065 = vmatprep.subr.bf16.mxu0 %v11609_v42  ;;  %3106 = vmatprep.subr.bf16.mxu1 %v11611_v55  ;;  %13413 = vst [vmem:[#allocation114_spill] sm:$0xff] %v11633_v15  ;;  %v2282_v55 = vld [vmem:[#allocation14 + $0x2d0] sm:$0xff]  ;;  %v2287_v1 = vld [vmem:[#allocation14 + $0x2f8] sm:$0xff]  ;;  %13415 = vst [vmem:[#allocation116_spill] sm:$0xff] %v11639_v12 }
 0x239   :  { %v2286_v42 = vld [vmem:[#allocation14 + $0x2f0] sm:$0xff]  ;;  %v11647_v5 = vcombine.high %v2283_v40, %v2287_v1  ;;  %v11653_v31 = vcombine.low %v2283_v40, %v2287_v1 }
 0x23a   :  { %v11645_v28 = vcombine.high %v2282_v55, %v2286_v42  ;;  %v11651_v43 = vcombine.low %v2282_v55, %v2286_v42 }
 0x23b   :  { %3066 = vmatpush1.bf16.msra.mxu0 %v11615_v36  ;;  %3107 = vmatpush1.bf16.msra.mxu1 %v11617_v41  ;;  %13418 = vst [vmem:[#allocation119_spill] sm:$0xff] %v11647_v5  ;;  %v2291_v41 = vld [vmem:[#allocation14 + $0x318] sm:$0xff]  ;;  %13420 = vst [vmem:[#allocation121_spill] sm:$0xff] %v11653_v31 }
 0x23c   :  { %3067 = vmatprep.subr.bf16.mxu0 %v11621_v44  ;;  %3108 = vmatprep.subr.bf16.mxu1 %v11623_v30  ;;  %13417 = vst [vmem:[#allocation118_spill] sm:$0xff] %v11645_v28  ;;  %v2290_v30 = vld [vmem:[#allocation14 + $0x310] sm:$0xff]  ;;  %v2295_v36 = vld [vmem:[#allocation14 + $0x338] sm:$0xff]  ;;  %13419 = vst [vmem:[#allocation120_spill] sm:$0xff] %v11651_v43 }
 0x23d   :  { %v2294_v44 = vld [vmem:[#allocation14 + $0x330] sm:$0xff]  ;;  %v11659_v17 = vcombine.high %v2291_v41, %v2295_v36  ;;  %v11665_v1 = vcombine.low %v2291_v41, %v2295_v36 }
 0x23e   :  { %v11657_v27 = vcombine.high %v2290_v30, %v2294_v44  ;;  %v11663_v42 = vcombine.low %v2290_v30, %v2294_v44 }
 0x23f   :  { %3068 = vmatpush1.bf16.msra.mxu0 %v11627_v10  ;;  %3109 = vmatpush1.bf16.msra.mxu1 %v11629_v22  ;;  %13422 = vst [vmem:[#allocation123_spill] sm:$0xff] %v11659_v17  ;;  %v2299_v22 = vld [vmem:[#allocation14 + $0x358] sm:$0xff] }
 0x240   :  { %3069 = vmatprep.subr.bf16.mxu0 %v11633_v15  ;;  %3110 = vmatprep.subr.bf16.mxu1 %v11635_v35  ;;  %13421 = vst [vmem:[#allocation122_spill] sm:$0xff] %v11657_v27  ;;  %v2298_v35 = vld [vmem:[#allocation14 + $0x350] sm:$0xff]  ;;  %v2303_v10 = vld [vmem:[#allocation14 + $0x378] sm:$0xff] }
 0x241   :  { %v2302_v15 = vld [vmem:[#allocation14 + $0x370] sm:$0xff]  ;;  %v11671_v55 = vcombine.high %v2299_v22, %v2303_v10  ;;  %v11677_v36 = vcombine.low %v2299_v22, %v2303_v10 }
 0x242   :  { %v11669_v40 = vcombine.high %v2298_v35, %v2302_v15  ;;  %v11675_v44 = vcombine.low %v2298_v35, %v2302_v15 }
 0x243   :  { %3070 = vmatpush1.bf16.msra.mxu0 %v11639_v12  ;;  %3111 = vmatpush1.bf16.msra.mxu1 %v11641_v57  ;;  %13423 = vst [vmem:[#allocation124_spill] sm:$0xff] %v11671_v55  ;;  %v2307_v57 = vld [vmem:[#allocation14 + $0x398] sm:$0xff] }
 0x244   :  { %3071 = vmatprep.subr.bf16.mxu0 %v11645_v28  ;;  %3112 = vmatprep.subr.bf16.mxu1 %v11647_v5  ;;  %v2306_v5 = vld [vmem:[#allocation14 + $0x390] sm:$0xff]  ;;  %v2311_v12 = vld [vmem:[#allocation14 + $0x3b8] sm:$0xff]  ;;  %13424 = vst [vmem:[#allocation125_spill] sm:$0xff] %v11675_v44 }
 0x245   :  { %v2310_v28 = vld [vmem:[#allocation14 + $0x3b0] sm:$0xff]  ;;  %v11683_v30 = vcombine.high %v2307_v57, %v2311_v12  ;;  %v11689_v10 = vcombine.low %v2307_v57, %v2311_v12 }
 0x246   :  { %v11681_v41 = vcombine.high %v2306_v5, %v2310_v28  ;;  %v11687_v15 = vcombine.low %v2306_v5, %v2310_v28 }
 0x247   :  { %3072 = vmatpush1.bf16.msra.mxu0 %v11651_v43  ;;  %3113 = vmatpush1.bf16.msra.mxu1 %v11653_v31  ;;  %v2315_v31 = vld [vmem:[#allocation14 + $0x3d8] sm:$0xff] }
 0x248   :  { %3073 = vmatprep.subr.bf16.mxu0 %v11657_v27  ;;  %3114 = vmatprep.subr.bf16.mxu1 %v11659_v17  ;;  %v2314_v17 = vld [vmem:[#allocation14 + $0x3d0] sm:$0xff]  ;;  %v2319_v43 = vld [vmem:[#allocation14 + $0x3f8] sm:$0xff] }
 0x249   :  { %v2318_v27 = vld [vmem:[#allocation14 + $0x3f0] sm:$0xff]  ;;  %v11695_v35 = vcombine.high %v2315_v31, %v2319_v43 }
 0x24a   :  { %v11693_v22 = vcombine.high %v2314_v17, %v2318_v27 }
 0x24b   :  { %3074 = vmatpush1.bf16.msra.mxu0 %v11663_v42  ;;  %3115 = vmatpush1.bf16.msra.mxu1 %v11665_v1 }
 0x24c   :  { %3075 = vmatprep.subr.bf16.mxu0 %v11669_v40  ;;  %3116 = vmatprep.subr.bf16.mxu1 %v11671_v55  ;;  %v11699_v55 = vcombine.low %v2314_v17, %v2318_v27 }
 0x24f   :  { %3076 = vmatpush1.bf16.msra.mxu0 %v11675_v44  ;;  %3117 = vmatpush1.bf16.msra.mxu1 %v11677_v36  ;;  %v11701_v44 = vcombine.low %v2315_v31, %v2319_v43 }
 0x250   :  { %3077 = vmatprep.subr.bf16.mxu0 %v11681_v41  ;;  %3118 = vmatprep.subr.bf16.mxu1 %v11683_v30 }
 0x253   :  { %3078 = vmatpush1.bf16.msra.mxu0 %v11687_v15  ;;  %3119 = vmatpush1.bf16.msra.mxu1 %v11689_v10 }
 0x254   :  { %3079 = vmatprep.subr.bf16.mxu0 %v11693_v22  ;;  %3120 = vmatprep.subr.bf16.mxu1 %v11695_v35 }
 0x257   :  { %3080 = vmatpush1.bf16.msra.mxu0 %v11699_v55  ;;  %3121 = vmatpush1.bf16.msra.mxu1 %v11701_v44 }
 0x258   :  { %3977 = vmatprep.subr.bf16.mxu0 %v11173_v49  ;;  %4018 = vmatprep.subr.bf16.mxu1 %v11179_v54  ;;  %v13425_v49 = vld [vmem:[#allocation41_spill] sm:$0xff] }
 0x259   :  { %v13428_v54 = vld [vmem:[#allocation45_spill] sm:$0xff] }
 0x25a   :  { %3082 = vmatmul.mubr.bf16.vlgmr.msra.gmra.mrb[44].mxu0 %v11513_v20  ;;  %3123 = vmatmul.mubr.bf16.vlgmr.msra.gmra.mrb[44].mxu1 %v11513_v20 }
 0x25b   :  { %3978 = vmatpush1.bf16.msra.mxu0 %v11175_v52  ;;  %4019 = vmatpush1.bf16.msra.mxu1 %v11177_v53  ;;  %v13426_v52 = vld [vmem:[#allocation46_spill] sm:$0xff]  ;;  %v13427_v53 = vld [vmem:[#allocation44_spill] sm:$0xff] }
 0x25c   :  { %3979 = vmatprep.subr.bf16.mxu0 %v11186_v63  ;;  %4020 = vmatprep.subr.bf16.mxu1 %v11198_v16  ;;  %v13430_v63 = vld [vmem:[#allocation51_spill] sm:$0xff]  ;;  %v13432_v16 = vld [vmem:[#allocation52_spill] sm:$0xff] }
 0x25f   :  { %3980 = vmatpush1.bf16.msra.mxu0 %v11184_v62  ;;  %4021 = vmatpush1.bf16.msra.mxu1 %v11192_v7  ;;  %v13429_v62 = vld [vmem:[#allocation49_spill] sm:$0xff]  ;;  %v13431_v7 = vld [vmem:[#allocation50_spill] sm:$0xff] }
 0x260   :  { %3981 = vmatprep.subr.bf16.mxu0 %v11207_v32  ;;  %4022 = vmatprep.subr.bf16.mxu1 %v11209_v0  ;;  %v13433_v32 = vld [vmem:[#allocation57_spill] sm:$0xff]  ;;  %v13434_v0 = vld [vmem:[#allocation55_spill] sm:$0xff] }
 0x263   :  { %3982 = vmatpush1.bf16.msra.mxu0 %v11216_v37  ;;  %4023 = vmatpush1.bf16.msra.mxu1 %v11220_v38  ;;  %v13435_v37 = vld [vmem:[#allocation56_spill] sm:$0xff] }
 0x264   :  { %3983 = vmatprep.subr.bf16.mxu0 %v11222_v39  ;;  %4024 = vmatprep.subr.bf16.mxu1 %v11225_v48  ;;  %v13436_v38 = vld [vmem:[#allocation60_spill] sm:$0xff]  ;;  %v13437_v39 = vld [vmem:[#allocation63_spill] sm:$0xff]  ;;  %v13438_v48 = vld [vmem:[#allocation61_spill] sm:$0xff] }
 0x267   :  { %3984 = vmatpush1.bf16.msra.mxu0 %v11229_v58  ;;  %4025 = vmatpush1.bf16.msra.mxu1 %v11234_v2  ;;  %v13439_v58 = vld [vmem:[#allocation62_spill] sm:$0xff]  ;;  %v13440_v2 = vld [vmem:[#allocation64_spill] sm:$0xff] }
 0x268   :  { %3985 = vmatprep.subr.bf16.mxu0 %v11236_v3  ;;  %4026 = vmatprep.subr.bf16.mxu1 %v11242_v9  ;;  %v13441_v3 = vld [vmem:[#allocation69_spill] sm:$0xff]  ;;  %v13442_v9 = vld [vmem:[#allocation67_spill] sm:$0xff] }
 0x26b   :  { %3986 = vmatpush1.bf16.msra.mxu0 %v11256_v34  ;;  %4027 = vmatpush1.bf16.msra.mxu1 %v11260_v46  ;;  %v13443_v34 = vld [vmem:[#allocation68_spill] sm:$0xff]  ;;  %v13444_v46 = vld [vmem:[#allocation70_spill] sm:$0xff] }
 0x26c   :  { %3987 = vmatprep.subr.bf16.mxu0 %v11262_v47  ;;  %4028 = vmatprep.subr.bf16.mxu1 %v11265_v56  ;;  %v13445_v47 = vld [vmem:[#allocation73_spill] sm:$0xff]  ;;  %v13446_v56 = vld [vmem:[#allocation71_spill] sm:$0xff] }
 0x26f   :  { %3988 = vmatpush1.bf16.msra.mxu0 %v11275_v4  ;;  %4029 = vmatpush1.bf16.msra.mxu1 %v11281_v14  ;;  %v13447_v4 = vld [vmem:[#allocation72_spill] sm:$0xff]  ;;  %v13448_v14 = vld [vmem:[#allocation74_spill] sm:$0xff] }
 0x270   :  { %3989 = vmatprep.subr.bf16.mxu0 %v11312_v19  ;;  %4030 = vmatprep.subr.bf16.mxu1 %v11318_v50  ;;  %v13450_v19 = vld [vmem:[#allocation75_spill] sm:$0xff] }
 0x271   :  { %v13453_v50 = vld [vmem:[#allocation79_spill] sm:$0xff] }
 0x273   :  { %3990 = vmatpush1.bf16.msra.mxu0 %v11314_v61  ;;  %4031 = vmatpush1.bf16.msra.mxu1 %v11316_v21  ;;  %v13451_v61 = vld [vmem:[#allocation76_spill] sm:$0xff]  ;;  %v13452_v21 = vld [vmem:[#allocation78_spill] sm:$0xff] }
 0x274   :  { %3991 = vmatprep.subr.bf16.mxu0 %v11330_v60  ;;  %4032 = vmatprep.subr.bf16.mxu1 %v11343_v11  ;;  %v13454_v60 = vld [vmem:[#allocation23_spill] sm:$0xff]  ;;  %v13455_v11 = vld [vmem:[#allocation24_spill] sm:$0xff] }
 0x277   :  { %3992 = vmatpush1.bf16.msra.mxu0 %v11338_v51  ;;  %4033 = vmatpush1.bf16.msra.mxu1 %v11341_v6  ;;  %v13449_v51 = vld [vmem:[#allocation77_spill] sm:$0xff]  ;;  %v3134_v6 = vunpack.c.l.bf16 %v13454_v60 }
 0x278   :  { %3993 = vmatprep.subr.bf16.mxu0 %v11351_v13  ;;  %4034 = vmatprep.subr.bf16.mxu1 %v11358_v59  ;;  %v3136_v13 = vunpack.c.l.bf16 %v13455_v11  ;;  %v3135_v59 = vunpack.c.h.bf16 %v13454_v60 }
 0x27b   :  { %3994 = vmatpush1.bf16.msra.mxu0 %v11354_v18  ;;  %4035 = vmatpush1.bf16.msra.mxu1 %v11356_v29 }
 0x27c   :  { %3995 = vmatprep.subr.bf16.mxu0 %v13425_v49  ;;  %4036 = vmatprep.subr.bf16.mxu1 %v13426_v52 }
 0x27f   :  { %3996 = vmatpush1.bf16.msra.mxu0 %v13427_v53  ;;  %4037 = vmatpush1.bf16.msra.mxu1 %v13428_v54 }
 0x280   :  { %3997 = vmatprep.subr.bf16.mxu0 %v13429_v62  ;;  %4038 = vmatprep.subr.bf16.mxu1 %v13430_v63 }
 0x283   :  { %3998 = vmatpush1.bf16.msra.mxu0 %v13431_v7  ;;  %4039 = vmatpush1.bf16.msra.mxu1 %v11396_v8  ;;  %v3137_v8 = vunpack.c.h.bf16 %v13455_v11 }
 0x284   :  { %3999 = vmatprep.subr.bf16.mxu0 %v13432_v16  ;;  %4040 = vmatprep.subr.bf16.mxu1 %v13433_v32 }
 0x287   :  { %4000 = vmatpush1.bf16.msra.mxu0 %v13434_v0  ;;  %4041 = vmatpush1.bf16.msra.mxu1 %v13435_v37 }
 0x288   :  { %4001 = vmatprep.subr.bf16.mxu0 %v13436_v38  ;;  %4042 = vmatprep.subr.bf16.mxu1 %v13437_v39 }
 0x28b   :  { %4002 = vmatpush1.bf16.msra.mxu0 %v13438_v48  ;;  %4043 = vmatpush1.bf16.msra.mxu1 %v13439_v58 }
 0x28c   :  { %4003 = vmatprep.subr.bf16.mxu0 %v13440_v2  ;;  %4044 = vmatprep.subr.bf16.mxu1 %v13441_v3 }
 0x28f   :  { %4004 = vmatpush1.bf16.msra.mxu0 %v13442_v9  ;;  %4045 = vmatpush1.bf16.msra.mxu1 %v13443_v34 }
 0x290   :  { %4005 = vmatprep.subr.bf16.mxu0 %v13444_v46  ;;  %4046 = vmatprep.subr.bf16.mxu1 %v13445_v47  ;;  %v13456_v47 = vld [vmem:[#allocation65_spill] sm:$0xff] }
 0x293   :  { %4006 = vmatpush1.bf16.msra.mxu0 %v13446_v56  ;;  %4047 = vmatpush1.bf16.msra.mxu1 %v13447_v4  ;;  %v3145_v56 = vunpack.c.l.bf16 %v13456_v47  ;;  %v13457_v4 = vld [vmem:[#allocation66_spill] sm:$0xff] }
 0x294   :  { %4007 = vmatprep.subr.bf16.mxu0 %v13448_v14  ;;  %4048 = vmatprep.subr.bf16.mxu1 %v13449_v51  ;;  %v3147_v14 = vunpack.c.l.bf16 %v13457_v4 }
 0x297   :  { %4008 = vmatpush1.bf16.msra.mxu0 %v13450_v19  ;;  %4049 = vmatpush1.bf16.msra.mxu1 %v13451_v61  ;;  %v3148_v61 = vunpack.c.h.bf16 %v13457_v4  ;;  %v13473_v4 = vld [vmem:[#allocation95_spill] sm:$0xff] }
 0x298   :  { %4059 = vmatprep.subr.bf16.mxu0 %v13452_v21  ;;  %4100 = vmatprep.subr.bf16.mxu1 %v13453_v50 }
 0x2ed   :  { %v3001_v18 = vpop.f32.mrb[40].mxu0  ;;  %v3042_v29 = vpop.f32.mrb[40].mxu1 }
 0x2ee   :  { %v3138_v20 = vadd.f32 %v3134_v6, %v3001_v18  ;;  %v3140_v12 = vadd.f32 %v3136_v13, %v3042_v29  ;;  %v3003_v57 = vpop.f32.mrb[41].mxu0  ;;  %v3044_v28 = vpop.f32.mrb[41].mxu1 }
 0x2ef   :  { %v3139_v5 = vadd.f32 %v3135_v59, %v3003_v57  ;;  %v3141_v43 = vadd.f32 %v3137_v8, %v3044_v28  ;;  %v3005_v31 = vpop.f32.mrb[42].mxu0  ;;  %v3046_v27 = vpop.f32.mrb[42].mxu1 }
 0x2f0   :  { %v3154_v17 = vmul.f32 0.5, %v3138_v20  ;;  %v3006_v49 = vpop.f32.mrb[43].mxu0  ;;  %v3047_v52 = vpop.f32.mrb[43].mxu1 }
 0x2f1   :  { %v3158_v53 = vmul.f32 0.5, %v3139_v5  ;;  %v3163_v54 = vmul.f32 0.5, %v3141_v43 }
 0x2f2   :  { %10670 = vtanh.f32 %v3154_v17 }
 0x2f3   :  { %10672 = vtanh.f32 %v3158_v53 }
 0x2f4   :  { %10674 = vtanh.f32 %v3140_v12 }
 0x2f5   :  { %10676 = vtanh.f32 %v3163_v54 }
 0x2fc   :  { %v10671_v62 = vpop.eup %10670 }
 0x2fd   :  { %v10673_v63 = vpop.eup %10672  ;;  %v3156_v7 = vmul.f32 0.5, %v10671_v62 }
 0x2fe   :  { %v3160_v16 = vmul.f32 0.5, %v10673_v63  ;;  %v10675_v0 = vpop.eup %10674 }
 0x2ff   :  { %v3157_v32 = vadd.f32 0.5, %v3156_v7  ;;  %v10677_v58 = vpop.eup %10676 }
 0x300   :  { %v3161_v37 = vadd.f32 0.5, %v3160_v16  ;;  %v3165_v2 = vmul.f32 0.5, %v10677_v58  ;;  %v13462_v58 = vld [vmem:[#allocation84_spill] sm:$0xff] }
 0x301   :  { %v3168_v38 = vmul.f32 %v10675_v0, %v3157_v32 }
 0x302   :  { %v3167_v39 = vmul.f32 %v3161_v37, %v11510_v26  ;;  %v3166_v3 = vadd.f32 0.5, %v3165_v2  ;;  %v3146_v26 = vunpack.c.h.bf16 %v13456_v47  ;;  %v13459_v37 = vld [vmem:[#allocation81_spill] sm:$0xff] }
 0x303   :  { %v13463_v2 = vld [vmem:[#allocation85_spill] sm:$0xff] }
 0x304   :  { %v11780_v48 = vadd.f32 %v3168_v38, %v3167_v39  ;;  %v13460_v38 = vld [vmem:[#allocation82_spill] sm:$0xff]  ;;  %v13461_v39 = vld [vmem:[#allocation83_spill] sm:$0xff]  ;;  %v13471_v47 = vld [vmem:[#allocation93_spill] sm:$0xff] }
 0x306   :  { %10678 = vtanh.f32 %v11780_v48 }
 0x310   :  { %v10679_v9 = vpop.eup %10678 }
 0x311   :  { %v3171_v34 = vmul.f32 %v10679_v9, %v3166_v3  ;;  %v13466_v3 = vld [vmem:[#allocation88_spill] sm:$0xff]  ;;  %v13469_v9 = vld [vmem:[#allocation91_spill] sm:$0xff] }
 0x313   :  { %v11783_v46 = vpack.c.bf16 %v3171_v34, %v3171_v34  ;;  %v13470_v34 = vld [vmem:[#allocation92_spill] sm:$0xff] }
 0x315   :  { %3198 = vst [vmem:[#allocation15 + $0x4] sm:$0xf] %v11783_v46 }
 0x32d   :  { %v3083_v51 = vpop.f32.mrb[44].mxu0  ;;  %v3124_v19 = vpop.f32.mrb[44].mxu1 }
 0x32e   :  { %v3149_v21 = vadd.f32 %v3145_v56, %v3083_v51  ;;  %v3151_v50 = vadd.f32 %v3147_v14, %v3124_v19  ;;  %v3085_v60 = vpop.f32.mrb[45].mxu0  ;;  %v3126_v6 = vpop.f32.mrb[45].mxu1  ;;  %v13472_v56 = vld [vmem:[#allocation94_spill] sm:$0xff]  ;;  %v13474_v14 = vld [vmem:[#allocation96_spill] sm:$0xff]  ;;  %v13475_v51 = vld [vmem:[#allocation97_spill] sm:$0xff] }
 0x32f   :  { %v3150_v11 = vadd.f32 %v3146_v26, %v3085_v60  ;;  %v3152_v13 = vadd.f32 %v3148_v61, %v3126_v6  ;;  %v3087_v18 = vpop.f32.mrb[46].mxu0  ;;  %v3128_v29 = vpop.f32.mrb[46].mxu1  ;;  %v13476_v19 = vld [vmem:[#allocation98_spill] sm:$0xff]  ;;  %v13477_v26 = vld [vmem:[#allocation99_spill] sm:$0xff]  ;;  %v13478_v61 = vld [vmem:[#allocation100_spill] sm:$0xff] }
 0x330   :  { %v3173_v59 = vmul.f32 0.5, %v3149_v21  ;;  %v3088_v8 = vpop.f32.mrb[47].mxu0  ;;  %v3129_v20 = vpop.f32.mrb[47].mxu1  ;;  %v13479_v21 = vld [vmem:[#allocation101_spill] sm:$0xff]  ;;  %v13481_v60 = vld [vmem:[#allocation103_spill] sm:$0xff]  ;;  %v13482_v6 = vld [vmem:[#allocation104_spill] sm:$0xff] }
 0x331   :  { %v3177_v12 = vmul.f32 0.5, %v3150_v11  ;;  %v3182_v57 = vmul.f32 0.5, %v3152_v13  ;;  %v13483_v11 = vld [vmem:[#allocation105_spill] sm:$0xff]  ;;  %v13484_v13 = vld [vmem:[#allocation106_spill] sm:$0xff]  ;;  %v13485_v18 = vld [vmem:[#allocation107_spill] sm:$0xff] }
 0x332   :  { %10680 = vtanh.f32 %v3173_v59  ;;  %v13486_v29 = vld [vmem:[#allocation108_spill] sm:$0xff]  ;;  %v13487_v59 = vld [vmem:[#allocation109_spill] sm:$0xff]  ;;  %v13488_v8 = vld [vmem:[#allocation110_spill] sm:$0xff] }
 0x333   :  { %10682 = vtanh.f32 %v3177_v12  ;;  %v13489_v20 = vld [vmem:[#allocation111_spill] sm:$0xff]  ;;  %v13490_v12 = vld [vmem:[#allocation112_spill] sm:$0xff] }
 0x334   :  { %10684 = vtanh.f32 %v3151_v50  ;;  %v13480_v50 = vld [vmem:[#allocation102_spill] sm:$0xff] }
 0x335   :  { %10686 = vtanh.f32 %v3182_v57  ;;  %v13491_v57 = vld [vmem:[#allocation113_spill] sm:$0xff] }
 0x33c   :  { %v10681_v28 = vpop.eup %10680 }
 0x33d   :  { %v10683_v5 = vpop.eup %10682  ;;  %v3175_v43 = vmul.f32 0.5, %v10681_v28  ;;  %v13492_v28 = vld [vmem:[#allocation114_spill] sm:$0xff] }
 0x33e   :  { %v3179_v31 = vmul.f32 0.5, %v10683_v5  ;;  %v10685_v17 = vpop.eup %10684  ;;  %v13493_v5 = vld [vmem:[#allocation115_spill] sm:$0xff] }
 0x33f   :  { %v3176_v27 = vadd.f32 0.5, %v3175_v43  ;;  %v10687_v62 = vpop.eup %10686  ;;  %v13494_v43 = vld [vmem:[#allocation116_spill] sm:$0xff] }
 0x340   :  { %v3180_v49 = vadd.f32 0.5, %v3179_v31  ;;  %v3184_v63 = vmul.f32 0.5, %v10687_v62  ;;  %v13495_v31 = vld [vmem:[#allocation117_spill] sm:$0xff]  ;;  %v13501_v62 = vld [vmem:[#allocation123_spill] sm:$0xff] }
 0x341   :  { %v3187_v52 = vmul.f32 %v10685_v17, %v3176_v27  ;;  %v13496_v27 = vld [vmem:[#allocation118_spill] sm:$0xff]  ;;  %v13497_v17 = vld [vmem:[#allocation119_spill] sm:$0xff] }
 0x342   :  { %v3186_v53 = vmul.f32 %v3180_v49, %v11520_v25  ;;  %v3185_v7 = vadd.f32 0.5, %v3184_v63  ;;  %v13458_v25 = vld [vmem:[#allocation80_spill] sm:$0xff] }
 0x343   :  { %v13498_v49 = vld [vmem:[#allocation120_spill] sm:$0xff] }
 0x344   :  { %v11791_v54 = vadd.f32 %v3187_v52, %v3186_v53  ;;  %v13499_v52 = vld [vmem:[#allocation121_spill] sm:$0xff]  ;;  %v13500_v53 = vld [vmem:[#allocation122_spill] sm:$0xff]  ;;  %v13502_v63 = vld [vmem:[#allocation124_spill] sm:$0xff] }
 0x346   :  { %10688 = vtanh.f32 %v11791_v54 }
 0x350   :  { %v10689_v16 = vpop.eup %10688 }
 0x351   :  { %v3190_v32 = vmul.f32 %v10689_v16, %v3185_v7  ;;  %v13503_v7 = vld [vmem:[#allocation125_spill] sm:$0xff]  ;;  %v4225_v16 = vld [vmem:[#allocation14 + $0x68] sm:$0xff] }
 0x353   :  { %v3193_v0 = vpack.c.bf16 %v3190_v32, %v3190_v32  ;;  %v4228_v32 = vld [vmem:[#allocation14 + $0x80] sm:$0xff] }
 0x355   :  { %3200 = vst [vmem:[#allocation16 + $0x18] sm:$0xf] %v3193_v0  ;;  %4009 = vmatprep.mubr.bf16.mxu0 %v3193_v0  ;;  %4050 = vmatprep.mubr.bf16.mxu1 %v3193_v0 }
 0x356   :  { %4010 = vmatmul.mubr.bf16.vlgmr.msra.gmra.mrb[48].mxu0 %v11783_v46  ;;  %4051 = vmatmul.mubr.bf16.vlgmr.msra.gmra.mrb[48].mxu1 %v11783_v46 }
 0x357   :  { %4060 = vmatpush1.bf16.msra.mxu0 %v11498_v33  ;;  %4101 = vmatpush1.bf16.msra.mxu1 %v11500_v45  ;;  %v13464_v33 = vld [vmem:[#allocation86_spill] sm:$0xff]  ;;  %v13465_v45 = vld [vmem:[#allocation87_spill] sm:$0xff] }
 0x358   :  { %4091 = vmatprep.mubr.bf16.mxu0 %v3193_v0  ;;  %4132 = vmatprep.mubr.bf16.mxu1 %v3193_v0  ;;  %v4232_v0 = vld [vmem:[#allocation14 + $0xa0] sm:$0xff] }
 0x359   :  { %4061 = vmatprep.subr.bf16.mxu0 %v11523_v23  ;;  %4102 = vmatprep.subr.bf16.mxu1 %v11525_v24  ;;  %v13467_v23 = vld [vmem:[#allocation89_spill] sm:$0xff]  ;;  %v13468_v24 = vld [vmem:[#allocation90_spill] sm:$0xff] }
 0x35b   :  { %4062 = vmatpush1.bf16.msra.mxu0 %v13458_v25  ;;  %4103 = vmatpush1.bf16.msra.mxu1 %v13459_v37  ;;  %v4229_v25 = vld [vmem:[#allocation14 + $0x88] sm:$0xff] }
 0x35c   :  { %4063 = vmatprep.subr.bf16.mxu0 %v13460_v38  ;;  %4104 = vmatprep.subr.bf16.mxu1 %v13461_v39  ;;  %v4233_v37 = vld [vmem:[#allocation14 + $0xa8] sm:$0xff] }
 0x35f   :  { %4064 = vmatpush1.bf16.msra.mxu0 %v13462_v58  ;;  %4105 = vmatpush1.bf16.msra.mxu1 %v13463_v2  ;;  %v11881_v58 = vcombine.high %v4228_v32, %v4232_v0  ;;  %v11884_v2 = vcombine.high %v4229_v25, %v4233_v37 }
 0x360   :  { %4065 = vmatprep.subr.bf16.mxu0 %v13464_v33  ;;  %4106 = vmatprep.subr.bf16.mxu1 %v13465_v45  ;;  %v4236_v33 = vld [vmem:[#allocation14 + $0xc0] sm:$0xff] }
 0x361   :  { %v4240_v45 = vld [vmem:[#allocation14 + $0xe0] sm:$0xff] }
 0x363   :  { %4066 = vmatpush1.bf16.msra.mxu0 %v13466_v3  ;;  %4107 = vmatpush1.bf16.msra.mxu1 %v13467_v23  ;;  %v4237_v3 = vld [vmem:[#allocation14 + $0xc8] sm:$0xff] }
 0x364   :  { %4067 = vmatprep.subr.bf16.mxu0 %v13468_v24  ;;  %4108 = vmatprep.subr.bf16.mxu1 %v13469_v9  ;;  %v4241_v23 = vld [vmem:[#allocation14 + $0xe8] sm:$0xff]  ;;  %v11887_v24 = vcombine.low %v4228_v32, %v4232_v0  ;;  %v11891_v9 = vcombine.low %v4229_v25, %v4233_v37  ;;  %v4284_v25 = vld [vmem:[#allocation14 + $0x240] sm:$0xff] }
 0x365   :  { %v4288_v37 = vld [vmem:[#allocation14 + $0x260] sm:$0xff] }
 0x367   :  { %4068 = vmatpush1.bf16.msra.mxu0 %v13470_v34  ;;  %4109 = vmatpush1.bf16.msra.mxu1 %v13471_v47  ;;  %v11893_v34 = vcombine.high %v4236_v33, %v4240_v45  ;;  %v11896_v47 = vcombine.high %v4237_v3, %v4241_v23 }
 0x368   :  { %4069 = vmatprep.subr.bf16.mxu0 %v13472_v56  ;;  %4110 = vmatprep.subr.bf16.mxu1 %v13473_v4  ;;  %v4244_v56 = vld [vmem:[#allocation14 + $0x100] sm:$0xff] }
 0x369   :  { %v4248_v4 = vld [vmem:[#allocation14 + $0x120] sm:$0xff] }
 0x36b   :  { %4070 = vmatpush1.bf16.msra.mxu0 %v13474_v14  ;;  %4111 = vmatpush1.bf16.msra.mxu1 %v13475_v51  ;;  %v4245_v14 = vld [vmem:[#allocation14 + $0x108] sm:$0xff] }
 0x36c   :  { %4071 = vmatprep.subr.bf16.mxu0 %v13476_v19  ;;  %4112 = vmatprep.subr.bf16.mxu1 %v13477_v26  ;;  %v4249_v51 = vld [vmem:[#allocation14 + $0x128] sm:$0xff]  ;;  %v11899_v19 = vcombine.low %v4236_v33, %v4240_v45  ;;  %v11903_v26 = vcombine.low %v4237_v3, %v4241_v23  ;;  %v11968_v45 = vcombine.high %v4284_v25, %v4288_v37 }
 0x36d   :  { %v4285_v33 = vld [vmem:[#allocation14 + $0x248] sm:$0xff]  ;;  %v11970_v23 = vcombine.low %v4284_v25, %v4288_v37 }
 0x36e   :  { %v4289_v3 = vld [vmem:[#allocation14 + $0x268] sm:$0xff] }
 0x36f   :  { %4072 = vmatpush1.bf16.msra.mxu0 %v13478_v61  ;;  %4113 = vmatpush1.bf16.msra.mxu1 %v13479_v21  ;;  %v11905_v61 = vcombine.high %v4244_v56, %v4248_v4  ;;  %v11908_v21 = vcombine.high %v4245_v14, %v4249_v51  ;;  %13504 = vst [vmem:[#allocation41_spill] sm:$0xff] %v11970_v23  ;;  %v4309_v25 = vld [vmem:[#allocation14 + $0x308] sm:$0xff] }
 0x370   :  { %4073 = vmatprep.subr.bf16.mxu0 %v13480_v50  ;;  %4114 = vmatprep.subr.bf16.mxu1 %v13481_v60  ;;  %v4252_v50 = vld [vmem:[#allocation14 + $0x140] sm:$0xff] }
 0x371   :  { %v4256_v60 = vld [vmem:[#allocation14 + $0x160] sm:$0xff] }
 0x373   :  { %4074 = vmatpush1.bf16.msra.mxu0 %v13482_v6  ;;  %4115 = vmatpush1.bf16.msra.mxu1 %v13483_v11  ;;  %v4253_v6 = vld [vmem:[#allocation14 + $0x148] sm:$0xff] }
 0x374   :  { %4075 = vmatprep.subr.bf16.mxu0 %v13484_v13  ;;  %4116 = vmatprep.subr.bf16.mxu1 %v13485_v18  ;;  %v4257_v11 = vld [vmem:[#allocation14 + $0x168] sm:$0xff]  ;;  %v11911_v13 = vcombine.low %v4244_v56, %v4248_v4  ;;  %v11915_v18 = vcombine.low %v4245_v14, %v4249_v51  ;;  %v11972_v56 = vcombine.low %v4285_v33, %v4289_v3  ;;  %v4292_v14 = vld [vmem:[#allocation14 + $0x280] sm:$0xff] }
 0x375   :  { %v11974_v4 = vcombine.high %v4285_v33, %v4289_v3  ;;  %v4296_v51 = vld [vmem:[#allocation14 + $0x2a0] sm:$0xff]  ;;  %v4313_v33 = vld [vmem:[#allocation14 + $0x328] sm:$0xff] }
 0x376   :  { %13505 = vst [vmem:[#allocation46_spill] sm:$0xff] %v11972_v56 }
 0x377   :  { %4076 = vmatpush1.bf16.msra.mxu0 %v13486_v29  ;;  %4117 = vmatpush1.bf16.msra.mxu1 %v13487_v59  ;;  %v11917_v29 = vcombine.high %v4252_v50, %v4256_v60  ;;  %v11920_v59 = vcombine.high %v4253_v6, %v4257_v11  ;;  %13506 = vst [vmem:[#allocation44_spill] sm:$0xff] %v11974_v4 }
 0x378   :  { %4077 = vmatprep.subr.bf16.mxu0 %v13488_v8  ;;  %4118 = vmatprep.subr.bf16.mxu1 %v13489_v20  ;;  %v11923_v8 = vcombine.low %v4252_v50, %v4256_v60  ;;  %v11927_v20 = vcombine.low %v4253_v6, %v4257_v11  ;;  %v4293_v50 = vld [vmem:[#allocation14 + $0x288] sm:$0xff]  ;;  %v11980_v60 = vcombine.high %v4292_v14, %v4296_v51 }
 0x379   :  { %v4297_v6 = vld [vmem:[#allocation14 + $0x2a8] sm:$0xff]  ;;  %v11982_v11 = vcombine.low %v4292_v14, %v4296_v51  ;;  %v12008_v14 = vcombine.low %v4309_v25, %v4313_v33  ;;  %v12010_v51 = vcombine.high %v4309_v25, %v4313_v33  ;;  %v4324_v25 = vld [vmem:[#allocation14 + $0x380] sm:$0xff] }
 0x37a   :  { %13507 = vst [vmem:[#allocation45_spill] sm:$0xff] %v11980_v60  ;;  %v4328_v33 = vld [vmem:[#allocation14 + $0x3a0] sm:$0xff] }
 0x37b   :  { %4078 = vmatpush1.bf16.msra.mxu0 %v13490_v12  ;;  %4119 = vmatpush1.bf16.msra.mxu1 %v13491_v57  ;;  %v4260_v12 = vld [vmem:[#allocation14 + $0x180] sm:$0xff]  ;;  %13508 = vst [vmem:[#allocation49_spill] sm:$0xff] %v11982_v11  ;;  %13517 = vst [vmem:[#allocation61_spill] sm:$0xff] %v12008_v14 }
 0x37c   :  { %4079 = vmatprep.subr.bf16.mxu0 %v13492_v28  ;;  %4120 = vmatprep.subr.bf16.mxu1 %v13493_v5  ;;  %v4264_v57 = vld [vmem:[#allocation14 + $0x1a0] sm:$0xff]  ;;  %v4261_v28 = vld [vmem:[#allocation14 + $0x188] sm:$0xff]  ;;  %13518 = vst [vmem:[#allocation62_spill] sm:$0xff] %v12010_v51 }
 0x37d   :  { %v11932_v5 = vcombine.high %v4260_v12, %v4264_v57 }
 0x37f   :  { %4080 = vmatpush1.bf16.msra.mxu0 %v13494_v43  ;;  %4121 = vmatpush1.bf16.msra.mxu1 %v13495_v31  ;;  %v4265_v43 = vld [vmem:[#allocation14 + $0x1a8] sm:$0xff]  ;;  %v11934_v31 = vcombine.low %v4260_v12, %v4264_v57  ;;  %v11984_v12 = vcombine.low %v4293_v50, %v4297_v6  ;;  %v11986_v57 = vcombine.high %v4293_v50, %v4297_v6  ;;  %v4316_v50 = vld [vmem:[#allocation14 + $0x340] sm:$0xff] }
 0x380   :  { %4081 = vmatprep.subr.bf16.mxu0 %v13496_v27  ;;  %4122 = vmatprep.subr.bf16.mxu1 %v13497_v17  ;;  %v11936_v27 = vcombine.low %v4261_v28, %v4265_v43  ;;  %v11938_v17 = vcombine.high %v4261_v28, %v4265_v43  ;;  %v4300_v28 = vld [vmem:[#allocation14 + $0x2c0] sm:$0xff] }
 0x381   :  { %13509 = vst [vmem:[#allocation51_spill] sm:$0xff] %v11984_v12  ;;  %13510 = vst [vmem:[#allocation50_spill] sm:$0xff] %v11986_v57  ;;  %v4304_v43 = vld [vmem:[#allocation14 + $0x2e0] sm:$0xff] }
 0x382   :  { %v4320_v6 = vld [vmem:[#allocation14 + $0x360] sm:$0xff] }
 0x383   :  { %4082 = vmatpush1.bf16.msra.mxu0 %v13498_v49  ;;  %4123 = vmatpush1.bf16.msra.mxu1 %v13499_v52  ;;  %v4268_v49 = vld [vmem:[#allocation14 + $0x1c0] sm:$0xff] }
 0x384   :  { %4083 = vmatprep.subr.bf16.mxu0 %v13500_v53  ;;  %4124 = vmatprep.subr.bf16.mxu1 %v13501_v62  ;;  %v4272_v52 = vld [vmem:[#allocation14 + $0x1e0] sm:$0xff]  ;;  %v4269_v53 = vld [vmem:[#allocation14 + $0x1c8] sm:$0xff] }
 0x385   :  { %v11944_v62 = vcombine.high %v4268_v49, %v4272_v52 }
 0x387   :  { %4084 = vmatpush1.bf16.msra.mxu0 %v11663_v42  ;;  %4125 = vmatpush1.bf16.msra.mxu1 %v11665_v1  ;;  %v4212_v42 = vld [vmem:[#allocation14] sm:$0xff] }
 0x388   :  { %4085 = vmatprep.subr.bf16.mxu0 %v11669_v40  ;;  %4126 = vmatprep.subr.bf16.mxu1 %v13502_v63  ;;  %v4216_v1 = vld [vmem:[#allocation14 + $0x20] sm:$0xff]  ;;  %v4213_v40 = vld [vmem:[#allocation14 + $0x8] sm:$0xff] }
 0x389   :  { %v4273_v63 = vld [vmem:[#allocation14 + $0x1e8] sm:$0xff] }
 0x38b   :  { %4086 = vmatpush1.bf16.msra.mxu0 %v13503_v7  ;;  %4127 = vmatpush1.bf16.msra.mxu1 %v11677_v36  ;;  %v11860_v36 = vcombine.low %v4212_v42, %v4216_v1  ;;  %v11946_v7 = vcombine.low %v4268_v49, %v4272_v52  ;;  %v4301_v49 = vld [vmem:[#allocation14 + $0x2c8] sm:$0xff]  ;;  %v11992_v52 = vcombine.high %v4300_v28, %v4304_v43 }
 0x38c   :  { %4087 = vmatprep.subr.bf16.mxu0 %v11681_v41  ;;  %4128 = vmatprep.subr.bf16.mxu1 %v11683_v30  ;;  %v11862_v41 = vcombine.high %v4212_v42, %v4216_v1  ;;  %v4217_v30 = vld [vmem:[#allocation14 + $0x28] sm:$0xff]  ;;  %v11948_v42 = vcombine.low %v4269_v53, %v4273_v63  ;;  %v11950_v1 = vcombine.high %v4269_v53, %v4273_v63 }
 0x38d   :  { %13511 = vst [vmem:[#allocation52_spill] sm:$0xff] %v11992_v52  ;;  %v4305_v53 = vld [vmem:[#allocation14 + $0x2e8] sm:$0xff]  ;;  %v11994_v63 = vcombine.low %v4300_v28, %v4304_v43  ;;  %v12016_v43 = vcombine.high %v4316_v50, %v4320_v6 }
 0x38e   :  { %v4317_v28 = vld [vmem:[#allocation14 + $0x348] sm:$0xff] }
 0x38f   :  { %4088 = vmatpush1.bf16.msra.mxu0 %v11687_v15  ;;  %4129 = vmatpush1.bf16.msra.mxu1 %v11689_v10  ;;  %v4220_v15 = vld [vmem:[#allocation14 + $0x40] sm:$0xff]  ;;  %13512 = vst [vmem:[#allocation57_spill] sm:$0xff] %v11994_v63  ;;  %13519 = vst [vmem:[#allocation64_spill] sm:$0xff] %v12016_v43 }
 0x390   :  { %4089 = vmatprep.subr.bf16.mxu0 %v11693_v22  ;;  %4130 = vmatprep.subr.bf16.mxu1 %v11695_v35  ;;  %v4224_v10 = vld [vmem:[#allocation14 + $0x60] sm:$0xff]  ;;  %v11864_v22 = vcombine.low %v4213_v40, %v4217_v30  ;;  %v11866_v35 = vcombine.high %v4213_v40, %v4217_v30 }
 0x391   :  { %v11875_v38 = vcombine.low %v4220_v15, %v4224_v10  ;;  %v4276_v40 = vld [vmem:[#allocation14 + $0x200] sm:$0xff] }
 0x392   :  { %v4280_v30 = vld [vmem:[#allocation14 + $0x220] sm:$0xff] }
 0x393   :  { %4090 = vmatpush1.bf16.msra.mxu0 %v11699_v55  ;;  %4131 = vmatpush1.bf16.msra.mxu1 %v11701_v44  ;;  %v11868_v55 = vcombine.high %v4220_v15, %v4224_v10  ;;  %v4221_v44 = vld [vmem:[#allocation14 + $0x48] sm:$0xff]  ;;  %v11956_v10 = vcombine.high %v4276_v40, %v4280_v30 }
 0x394   :  { %4987 = vmatprep.subr.bf16.mxu0 %v11862_v41  ;;  %5028 = vmatprep.subr.bf16.mxu1 %v11866_v35  ;;  %v11879_v39 = vcombine.low %v4221_v44, %v4225_v16  ;;  %v4277_v15 = vld [vmem:[#allocation14 + $0x208] sm:$0xff] }
 0x396   :  { %4092 = vmatmul.mubr.bf16.vlgmr.msra.gmra.mrb[52].mxu0 %v11783_v46  ;;  %4133 = vmatmul.mubr.bf16.vlgmr.msra.gmra.mrb[52].mxu1 %v11783_v46  ;;  %v11871_v46 = vcombine.high %v4221_v44, %v4225_v16  ;;  %v4281_v44 = vld [vmem:[#allocation14 + $0x228] sm:$0xff]  ;;  %v11958_v16 = vcombine.low %v4276_v40, %v4280_v30  ;;  %v11996_v40 = vcombine.low %v4301_v49, %v4305_v53 }
 0x397   :  { %4988 = vmatpush1.bf16.msra.mxu0 %v11860_v36  ;;  %5029 = vmatpush1.bf16.msra.mxu1 %v11864_v22  ;;  %v11960_v32 = vcombine.low %v4277_v15, %v4281_v44  ;;  %v11962_v0 = vcombine.high %v4277_v15, %v4281_v44  ;;  %v11998_v30 = vcombine.high %v4301_v49, %v4305_v53  ;;  %v4308_v15 = vld [vmem:[#allocation14 + $0x300] sm:$0xff]  ;;  %v4321_v49 = vld [vmem:[#allocation14 + $0x368] sm:$0xff] }
 0x398   :  { %4989 = vmatprep.subr.bf16.mxu0 %v11868_v55  ;;  %5030 = vmatprep.subr.bf16.mxu1 %v11871_v46  ;;  %13513 = vst [vmem:[#allocation55_spill] sm:$0xff] %v11996_v40  ;;  %v4312_v44 = vld [vmem:[#allocation14 + $0x320] sm:$0xff]  ;;  %v12018_v53 = vcombine.low %v4316_v50, %v4320_v6  ;;  %v12030_v50 = vcombine.low %v4324_v25, %v4328_v33 }
 0x399   :  { %13514 = vst [vmem:[#allocation56_spill] sm:$0xff] %v11998_v30  ;;  %v12004_v37 = vcombine.high %v4308_v15, %v4312_v44  ;;  %v12006_v3 = vcombine.low %v4308_v15, %v4312_v44  ;;  %v12020_v15 = vcombine.low %v4317_v28, %v4321_v49  ;;  %v12022_v44 = vcombine.high %v4317_v28, %v4321_v49  ;;  %v4332_v49 = vld [vmem:[#allocation14 + $0x3c0] sm:$0xff] }
 0x39a   :  { %13520 = vst [vmem:[#allocation69_spill] sm:$0xff] %v12018_v53  ;;  %13524 = vst [vmem:[#allocation73_spill] sm:$0xff] %v12030_v50 }
 0x39b   :  { %4990 = vmatpush1.bf16.msra.mxu0 %v11875_v38  ;;  %5031 = vmatpush1.bf16.msra.mxu1 %v11879_v39  ;;  %13515 = vst [vmem:[#allocation60_spill] sm:$0xff] %v12004_v37  ;;  %13516 = vst [vmem:[#allocation63_spill] sm:$0xff] %v12006_v3 }
 0x39c   :  { %4991 = vmatprep.subr.bf16.mxu0 %v11881_v58  ;;  %5032 = vmatprep.subr.bf16.mxu1 %v11884_v2  ;;  %13521 = vst [vmem:[#allocation67_spill] sm:$0xff] %v12020_v15  ;;  %13522 = vst [vmem:[#allocation68_spill] sm:$0xff] %v12022_v44 }
 0x39f   :  { %4992 = vmatpush1.bf16.msra.mxu0 %v11887_v24  ;;  %5033 = vmatpush1.bf16.msra.mxu1 %v11891_v9 }
 0x3a0   :  { %4993 = vmatprep.subr.bf16.mxu0 %v11893_v34  ;;  %5034 = vmatprep.subr.bf16.mxu1 %v11896_v47 }
 0x3a3   :  { %4994 = vmatpush1.bf16.msra.mxu0 %v11899_v19  ;;  %5035 = vmatpush1.bf16.msra.mxu1 %v11903_v26 }
 0x3a4   :  { %4995 = vmatprep.subr.bf16.mxu0 %v11905_v61  ;;  %5036 = vmatprep.subr.bf16.mxu1 %v11908_v21 }
 0x3a7   :  { %4996 = vmatpush1.bf16.msra.mxu0 %v11911_v13  ;;  %5037 = vmatpush1.bf16.msra.mxu1 %v11915_v18 }
 0x3a8   :  { %4997 = vmatprep.subr.bf16.mxu0 %v11917_v29  ;;  %5038 = vmatprep.subr.bf16.mxu1 %v11920_v59 }
 0x3ab   :  { %4998 = vmatpush1.bf16.msra.mxu0 %v11923_v8  ;;  %5039 = vmatpush1.bf16.msra.mxu1 %v11927_v20 }
 0x3ac   :  { %4999 = vmatprep.subr.bf16.mxu0 %v11932_v5  ;;  %5040 = vmatprep.subr.bf16.mxu1 %v11938_v17 }
 0x3af   :  { %5000 = vmatpush1.bf16.msra.mxu0 %v11934_v31  ;;  %5041 = vmatpush1.bf16.msra.mxu1 %v11936_v27 }
 0x3b0   :  { %5001 = vmatprep.subr.bf16.mxu0 %v11944_v62  ;;  %5042 = vmatprep.subr.bf16.mxu1 %v11950_v1 }
 0x3b3   :  { %5002 = vmatpush1.bf16.msra.mxu0 %v11946_v7  ;;  %5043 = vmatpush1.bf16.msra.mxu1 %v11948_v42 }
 0x3b4   :  { %5003 = vmatprep.subr.bf16.mxu0 %v11956_v10  ;;  %5044 = vmatprep.subr.bf16.mxu1 %v11962_v0 }
 0x3b7   :  { %5004 = vmatpush1.bf16.msra.mxu0 %v11958_v16  ;;  %5045 = vmatpush1.bf16.msra.mxu1 %v11960_v32 }
 0x3b8   :  { %5005 = vmatprep.subr.bf16.mxu0 %v11968_v45  ;;  %5046 = vmatprep.subr.bf16.mxu1 %v11974_v4 }
 0x3bb   :  { %5006 = vmatpush1.bf16.msra.mxu0 %v11970_v23  ;;  %5047 = vmatpush1.bf16.msra.mxu1 %v11972_v56 }
 0x3bc   :  { %5007 = vmatprep.subr.bf16.mxu0 %v11980_v60  ;;  %5048 = vmatprep.subr.bf16.mxu1 %v11986_v57 }
 0x3bf   :  { %5008 = vmatpush1.bf16.msra.mxu0 %v11982_v11  ;;  %5049 = vmatpush1.bf16.msra.mxu1 %v11984_v12 }
 0x3c0   :  { %5009 = vmatprep.subr.bf16.mxu0 %v11992_v52  ;;  %5050 = vmatprep.subr.bf16.mxu1 %v11998_v30 }
 0x3c3   :  { %5010 = vmatpush1.bf16.msra.mxu0 %v11994_v63  ;;  %5051 = vmatpush1.bf16.msra.mxu1 %v11996_v40 }
 0x3c4   :  { %5011 = vmatprep.subr.bf16.mxu0 %v12004_v37  ;;  %5052 = vmatprep.subr.bf16.mxu1 %v12010_v51  ;;  %v4329_v51 = vld [vmem:[#allocation14 + $0x3a8] sm:$0xff] }
 0x3c7   :  { %5012 = vmatpush1.bf16.msra.mxu0 %v12006_v3  ;;  %5053 = vmatpush1.bf16.msra.mxu1 %v12008_v14  ;;  %v4325_v3 = vld [vmem:[#allocation14 + $0x388] sm:$0xff]  ;;  %v12028_v14 = vcombine.high %v4324_v25, %v4328_v33 }
 0x3c8   :  { %5013 = vmatprep.subr.bf16.mxu0 %v12016_v43  ;;  %5054 = vmatprep.subr.bf16.mxu1 %v12022_v44  ;;  %v12032_v6 = vcombine.low %v4325_v3, %v4329_v51  ;;  %v12034_v28 = vcombine.high %v4325_v3, %v4329_v51  ;;  %v4333_v44 = vld [vmem:[#allocation14 + $0x3c8] sm:$0xff]  ;;  %v4214_v51 = vld [vmem:[#allocation14 + $0x10] sm:$0xff] }
 0x3c9   :  { %13523 = vst [vmem:[#allocation70_spill] sm:$0xff] %v12028_v14  ;;  %v4337_v43 = vld [vmem:[#allocation14 + $0x3e8] sm:$0xff] }
 0x3ca   :  { %13525 = vst [vmem:[#allocation71_spill] sm:$0xff] %v12032_v6  ;;  %13526 = vst [vmem:[#allocation72_spill] sm:$0xff] %v12034_v28  ;;  %v12044_v33 = vcombine.low %v4333_v44, %v4337_v43  ;;  %v12046_v3 = vcombine.high %v4333_v44, %v4337_v43  ;;  %v13533_v44 = vld [vmem:[#allocation25_spill] sm:$0xff] }
 0x3cb   :  { %5014 = vmatpush1.bf16.msra.mxu0 %v12018_v53  ;;  %5055 = vmatpush1.bf16.msra.mxu1 %v12020_v15  ;;  %v4336_v53 = vld [vmem:[#allocation14 + $0x3e0] sm:$0xff] }
 0x3cc   :  { %5015 = vmatprep.subr.bf16.mxu0 %v12028_v14  ;;  %5056 = vmatprep.subr.bf16.mxu1 %v12034_v28  ;;  %v12040_v15 = vcombine.high %v4332_v49, %v4336_v53  ;;  %v12042_v25 = vcombine.low %v4332_v49, %v4336_v53  ;;  %13529 = vst [vmem:[#allocation75_spill] sm:$0xff] %v12044_v33  ;;  %13530 = vst [vmem:[#allocation76_spill] sm:$0xff] %v12046_v3  ;;  %v4215_v28 = vld [vmem:[#allocation14 + $0x18] sm:$0xff] }
 0x3cd   :  { %v4219_v53 = vld [vmem:[#allocation14 + $0x38] sm:$0xff] }
 0x3ce   :  { %13527 = vst [vmem:[#allocation74_spill] sm:$0xff] %v12040_v15  ;;  %13528 = vst [vmem:[#allocation77_spill] sm:$0xff] %v12042_v25  ;;  %v12056_v49 = vcombine.low %v4215_v28, %v4219_v53  ;;  %v12058_v43 = vcombine.high %v4215_v28, %v4219_v53 }
 0x3cf   :  { %5016 = vmatpush1.bf16.msra.mxu0 %v12030_v50  ;;  %5057 = vmatpush1.bf16.msra.mxu1 %v12032_v6  ;;  %v4218_v50 = vld [vmem:[#allocation14 + $0x30] sm:$0xff] }
 0x3d0   :  { %5017 = vmatprep.subr.bf16.mxu0 %v12040_v15  ;;  %5058 = vmatprep.subr.bf16.mxu1 %v12046_v3  ;;  %v12052_v6 = vcombine.low %v4214_v51, %v4218_v50  ;;  %v12054_v14 = vcombine.high %v4214_v51, %v4218_v50  ;;  %13532 = vst [vmem:[#allocation79_spill] sm:$0xff] %v12058_v43  ;;  %v13534_v3 = vld [vmem:[#allocation26_spill] sm:$0xff] }
 0x3d1   :  { %v4146_v15 = vunpack.c.l.bf16 %v13534_v3  ;;  %v4147_v50 = vunpack.c.h.bf16 %v13534_v3 }
 0x3d2   :  { %13531 = vst [vmem:[#allocation78_spill] sm:$0xff] %v12054_v14 }
 0x3d3   :  { %5018 = vmatpush1.bf16.msra.mxu0 %v12042_v25  ;;  %5059 = vmatpush1.bf16.msra.mxu1 %v12044_v33  ;;  %v4144_v25 = vunpack.c.l.bf16 %v13533_v44  ;;  %v4145_v33 = vunpack.c.h.bf16 %v13533_v44 }
 0x3d4   :  { %5069 = vmatprep.subr.bf16.mxu0 %v12054_v14  ;;  %5110 = vmatprep.subr.bf16.mxu1 %v12058_v43 }
 0x429   :  { %v4011_v37 = vpop.f32.mrb[48].mxu0  ;;  %v4052_v40 = vpop.f32.mrb[48].mxu1 }
 0x42a   :  { %v4148_v51 = vadd.f32 %v4144_v25, %v4011_v37  ;;  %v4150_v63 = vadd.f32 %v4146_v15, %v4052_v40  ;;  %v4013_v30 = vpop.f32.mrb[49].mxu0  ;;  %v4054_v52 = vpop.f32.mrb[49].mxu1 }
 0x42b   :  { %v4149_v28 = vadd.f32 %v4145_v33, %v4013_v30  ;;  %v4151_v53 = vadd.f32 %v4147_v50, %v4054_v52  ;;  %v4015_v12 = vpop.f32.mrb[50].mxu0  ;;  %v4056_v14 = vpop.f32.mrb[50].mxu1 }
 0x42c   :  { %v4164_v11 = vmul.f32 0.5, %v4148_v51  ;;  %v4016_v43 = vpop.f32.mrb[51].mxu0  ;;  %v4057_v57 = vpop.f32.mrb[51].mxu1 }
 0x42d   :  { %v4168_v60 = vmul.f32 0.5, %v4149_v28  ;;  %v4173_v56 = vmul.f32 0.5, %v4151_v53 }
 0x42e   :  { %10690 = vtanh.f32 %v4164_v11 }
 0x42f   :  { %10692 = vtanh.f32 %v4168_v60 }
 0x430   :  { %10694 = vtanh.f32 %v4150_v63 }
 0x431   :  { %10696 = vtanh.f32 %v4173_v56 }
 0x438   :  { %v10691_v23 = vpop.eup %10690 }
 0x439   :  { %v10693_v44 = vpop.eup %10692  ;;  %v4166_v4 = vmul.f32 0.5, %v10691_v23  ;;  %v13536_v23 = vld [vmem:[#allocation58_spill] sm:$0xff] }
 0x43a   :  { %v4170_v3 = vmul.f32 0.5, %v10693_v44  ;;  %v10695_v37 = vpop.eup %10694  ;;  %v4155_v56 = vunpack.c.l.bf16 %v13536_v23 }
 0x43b   :  { %v4167_v40 = vadd.f32 0.5, %v4166_v4  ;;  %v10697_v57 = vpop.eup %10696  ;;  %v13537_v4 = vld [vmem:[#allocation59_spill] sm:$0xff] }
 0x43c   :  { %v4171_v15 = vadd.f32 0.5, %v4170_v3  ;;  %v4175_v11 = vmul.f32 0.5, %v10697_v57  ;;  %v4157_v33 = vunpack.c.l.bf16 %v13537_v4  ;;  %v4158_v51 = vunpack.c.h.bf16 %v13537_v4 }
 0x43d   :  { %v4178_v30 = vmul.f32 %v10695_v37, %v4167_v40 }
 0x43e   :  { %v4177_v12 = vmul.f32 %v4171_v15, %v11780_v48  ;;  %v4176_v60 = vadd.f32 0.5, %v4175_v11  ;;  %v4156_v48 = vunpack.c.h.bf16 %v13536_v23 }
 0x440   :  { %v12067_v52 = vadd.f32 %v4178_v30, %v4177_v12 }
 0x442   :  { %13535 = vst [vmem:[#allocation23_spill] sm:$0xff] %v12067_v52  ;;  %10698 = vtanh.f32 %v12067_v52 }
 0x44c   :  { %v10699_v63 = vpop.eup %10698 }
 0x44d   :  { %v4181_v14 = vmul.f32 %v10699_v63, %v4176_v60 }
 0x44f   :  { %v12070_v25 = vpack.c.bf16 %v4181_v14, %v4181_v14 }
 0x451   :  { %4208 = vst [vmem:[#allocation15 + $0x8] sm:$0xf] %v12070_v25 }
 0x469   :  { %v4093_v43 = vpop.f32.mrb[52].mxu0  ;;  %v4134_v50 = vpop.f32.mrb[52].mxu1 }
 0x46a   :  { %v4159_v28 = vadd.f32 %v4155_v56, %v4093_v43  ;;  %v4161_v53 = vadd.f32 %v4157_v33, %v4134_v50  ;;  %v4095_v44 = vpop.f32.mrb[53].mxu0  ;;  %v4136_v3 = vpop.f32.mrb[53].mxu1 }
 0x46b   :  { %v4160_v40 = vadd.f32 %v4156_v48, %v4095_v44  ;;  %v4162_v37 = vadd.f32 %v4158_v51, %v4136_v3  ;;  %v4097_v15 = vpop.f32.mrb[54].mxu0  ;;  %v4138_v30 = vpop.f32.mrb[54].mxu1 }
 0x46c   :  { %v4183_v12 = vmul.f32 0.5, %v4159_v28  ;;  %v4098_v57 = vpop.f32.mrb[55].mxu0  ;;  %v4139_v11 = vpop.f32.mrb[55].mxu1  ;;  %v4226_v15 = vld [vmem:[#allocation14 + $0x70] sm:$0xff]  ;;  %v4223_v30 = vld [vmem:[#allocation14 + $0x58] sm:$0xff] }
 0x46d   :  { %v4187_v60 = vmul.f32 0.5, %v4160_v40  ;;  %v4192_v63 = vmul.f32 0.5, %v4162_v37  ;;  %v4222_v37 = vld [vmem:[#allocation14 + $0x50] sm:$0xff] }
 0x46e   :  { %10700 = vtanh.f32 %v4183_v12  ;;  %v4227_v12 = vld [vmem:[#allocation14 + $0x78] sm:$0xff]  ;;  %v12081_v11 = vcombine.high %v4222_v37, %v4226_v15 }
 0x46f   :  { %10702 = vtanh.f32 %v4187_v60  ;;  %v4234_v60 = vld [vmem:[#allocation14 + $0xb0] sm:$0xff] }
 0x470   :  { %10704 = vtanh.f32 %v4161_v53 }
 0x471   :  { %10706 = vtanh.f32 %v4192_v63  ;;  %v4231_v63 = vld [vmem:[#allocation14 + $0x98] sm:$0xff] }
 0x478   :  { %v10701_v14 = vpop.eup %10700 }
 0x479   :  { %v10703_v23 = vpop.eup %10702  ;;  %v4185_v52 = vmul.f32 0.5, %v10701_v14  ;;  %v4235_v14 = vld [vmem:[#allocation14 + $0xb8] sm:$0xff] }
 0x47a   :  { %v4189_v4 = vmul.f32 0.5, %v10703_v23  ;;  %v10705_v33 = vpop.eup %10704  ;;  %v12089_v23 = vcombine.low %v4222_v37, %v4226_v15  ;;  %v4246_v37 = vld [vmem:[#allocation14 + $0x110] sm:$0xff] }
 0x47b   :  { %v4186_v56 = vadd.f32 0.5, %v4185_v52  ;;  %v10707_v28 = vpop.eup %10706  ;;  %v4230_v52 = vld [vmem:[#allocation14 + $0x90] sm:$0xff] }
 0x47c   :  { %v4190_v43 = vadd.f32 0.5, %v4189_v4  ;;  %v4194_v44 = vmul.f32 0.5, %v10707_v28  ;;  %v12091_v4 = vcombine.low %v4223_v30, %v4227_v12  ;;  %v4243_v28 = vld [vmem:[#allocation14 + $0xf8] sm:$0xff]  ;;  %v4250_v15 = vld [vmem:[#allocation14 + $0x130] sm:$0xff] }
 0x47d   :  { %v4197_v50 = vmul.f32 %v10705_v33, %v4186_v56  ;;  %v12093_v56 = vcombine.high %v4230_v52, %v4234_v60  ;;  %v12095_v33 = vcombine.high %v4231_v63, %v4235_v14 }
 0x47e   :  { %v4196_v48 = vmul.f32 %v4190_v43, %v11791_v54  ;;  %v4195_v3 = vadd.f32 0.5, %v4194_v44  ;;  %v12083_v54 = vcombine.high %v4223_v30, %v4227_v12  ;;  %13538 = vst [vmem:[#allocation24_spill] sm:$0xff] %v12091_v4  ;;  %v4238_v43 = vld [vmem:[#allocation14 + $0xd0] sm:$0xff]  ;;  %v12101_v44 = vcombine.low %v4230_v52, %v4234_v60  ;;  %v4247_v30 = vld [vmem:[#allocation14 + $0x118] sm:$0xff] }
 0x47f   :  { %13539 = vst [vmem:[#allocation65_spill] sm:$0xff] %v12093_v56  ;;  %13540 = vst [vmem:[#allocation66_spill] sm:$0xff] %v12095_v33  ;;  %v4251_v12 = vld [vmem:[#allocation14 + $0x138] sm:$0xff]  ;;  %v12119_v60 = vcombine.high %v4246_v37, %v4250_v15 }
 0x480   :  { %v12078_v51 = vadd.f32 %v4197_v50, %v4196_v48  ;;  %v4242_v50 = vld [vmem:[#allocation14 + $0xf0] sm:$0xff]  ;;  %v4239_v48 = vld [vmem:[#allocation14 + $0xd8] sm:$0xff]  ;;  %13541 = vst [vmem:[#allocation80_spill] sm:$0xff] %v12101_v44 }
 0x481   :  { %v12115_v52 = vcombine.low %v4239_v48, %v4243_v28  ;;  %13547 = vst [vmem:[#allocation86_spill] sm:$0xff] %v12119_v60 }
 0x482   :  { %10708 = vtanh.f32 %v12078_v51 }
 0x483   :  { %13546 = vst [vmem:[#allocation85_spill] sm:$0xff] %v12115_v52 }
 0x48c   :  { %v10709_v53 = vpop.eup %10708 }
 0x48d   :  { %v4200_v40 = vmul.f32 %v10709_v53, %v4195_v3  ;;  %v12103_v3 = vcombine.low %v4231_v63, %v4235_v14  ;;  %v12107_v53 = vcombine.high %v4238_v43, %v4242_v50  ;;  %v12121_v63 = vcombine.high %v4247_v30, %v4251_v12  ;;  %v4254_v14 = vld [vmem:[#allocation14 + $0x150] sm:$0xff] }
 0x48f   :  { %v4203_v57 = vpack.c.bf16 %v4200_v40, %v4200_v40  ;;  %13542 = vst [vmem:[#allocation81_spill] sm:$0xff] %v12103_v3  ;;  %13543 = vst [vmem:[#allocation82_spill] sm:$0xff] %v12107_v53  ;;  %v12109_v40 = vcombine.high %v4239_v48, %v4243_v28 }
 0x490   :  { %13548 = vst [vmem:[#allocation87_spill] sm:$0xff] %v12121_v63 }
 0x491   :  { %4210 = vst [vmem:[#allocation16 + $0x14] sm:$0xf] %v4203_v57  ;;  %5019 = vmatprep.mubr.bf16.mxu0 %v4203_v57  ;;  %5060 = vmatprep.mubr.bf16.mxu1 %v4203_v57  ;;  %13544 = vst [vmem:[#allocation83_spill] sm:$0xff] %v12109_v40 }
 0x492   :  { %5020 = vmatmul.mubr.bf16.vlgmr.msra.gmra.mrb[56].mxu0 %v12070_v25  ;;  %5061 = vmatmul.mubr.bf16.vlgmr.msra.gmra.mrb[56].mxu1 %v12070_v25 }
 0x493   :  { %5070 = vmatpush1.bf16.msra.mxu0 %v12052_v6  ;;  %5111 = vmatpush1.bf16.msra.mxu1 %v12056_v49 }
 0x494   :  { %5101 = vmatprep.mubr.bf16.mxu0 %v4203_v57  ;;  %5142 = vmatprep.mubr.bf16.mxu1 %v4203_v57  ;;  %v12113_v57 = vcombine.low %v4238_v43, %v4242_v50  ;;  %v12125_v43 = vcombine.low %v4246_v37, %v4250_v15  ;;  %v12127_v50 = vcombine.low %v4247_v30, %v4251_v12 }
 0x495   :  { %5071 = vmatprep.subr.bf16.mxu0 %v12081_v11  ;;  %5112 = vmatprep.subr.bf16.mxu1 %v12083_v54 }
 0x496   :  { %13545 = vst [vmem:[#allocation84_spill] sm:$0xff] %v12113_v57  ;;  %13549 = vst [vmem:[#allocation88_spill] sm:$0xff] %v12125_v43 }
 0x497   :  { %5072 = vmatpush1.bf16.msra.mxu0 %v12089_v23  ;;  %5113 = vmatpush1.bf16.msra.mxu1 %v12091_v4  ;;  %v4259_v4 = vld [vmem:[#allocation14 + $0x178] sm:$0xff]  ;;  %13550 = vst [vmem:[#allocation89_spill] sm:$0xff] %v12127_v50 }
 0x498   :  { %5073 = vmatprep.subr.bf16.mxu0 %v12093_v56  ;;  %5114 = vmatprep.subr.bf16.mxu1 %v12095_v33  ;;  %v4258_v33 = vld [vmem:[#allocation14 + $0x170] sm:$0xff]  ;;  %v4255_v56 = vld [vmem:[#allocation14 + $0x158] sm:$0xff] }
 0x499   :  { %v12131_v48 = vcombine.high %v4254_v14, %v4258_v33  ;;  %v12133_v28 = vcombine.high %v4255_v56, %v4259_v4  ;;  %v12137_v37 = vcombine.low %v4254_v14, %v4258_v33  ;;  %v12139_v15 = vcombine.low %v4255_v56, %v4259_v4 }
 0x49b   :  { %5074 = vmatpush1.bf16.msra.mxu0 %v12101_v44  ;;  %5115 = vmatpush1.bf16.msra.mxu1 %v12103_v3  ;;  %13551 = vst [vmem:[#allocation90_spill] sm:$0xff] %v12131_v48  ;;  %13552 = vst [vmem:[#allocation91_spill] sm:$0xff] %v12133_v28  ;;  %v4263_v3 = vld [vmem:[#allocation14 + $0x198] sm:$0xff] }
 0x49c   :  { %5075 = vmatprep.subr.bf16.mxu0 %v12107_v53  ;;  %5116 = vmatprep.subr.bf16.mxu1 %v12109_v40  ;;  %v4262_v40 = vld [vmem:[#allocation14 + $0x190] sm:$0xff]  ;;  %v4267_v44 = vld [vmem:[#allocation14 + $0x1b8] sm:$0xff]  ;;  %13553 = vst [vmem:[#allocation92_spill] sm:$0xff] %v12137_v37  ;;  %13554 = vst [vmem:[#allocation93_spill] sm:$0xff] %v12139_v15 }
 0x49d   :  { %v4266_v53 = vld [vmem:[#allocation14 + $0x1b0] sm:$0xff]  ;;  %v12145_v12 = vcombine.high %v4263_v3, %v4267_v44  ;;  %v12151_v4 = vcombine.low %v4263_v3, %v4267_v44 }
 0x49e   :  { %v12143_v30 = vcombine.high %v4262_v40, %v4266_v53  ;;  %v12149_v33 = vcombine.low %v4262_v40, %v4266_v53 }
 0x49f   :  { %5076 = vmatpush1.bf16.msra.mxu0 %v12113_v57  ;;  %5117 = vmatpush1.bf16.msra.mxu1 %v12115_v52  ;;  %13556 = vst [vmem:[#allocation95_spill] sm:$0xff] %v12145_v12  ;;  %v4271_v52 = vld [vmem:[#allocation14 + $0x1d8] sm:$0xff]  ;;  %13558 = vst [vmem:[#allocation97_spill] sm:$0xff] %v12151_v4 }
 0x4a0   :  { %5077 = vmatprep.subr.bf16.mxu0 %v12119_v60  ;;  %5118 = vmatprep.subr.bf16.mxu1 %v12121_v63  ;;  %13555 = vst [vmem:[#allocation94_spill] sm:$0xff] %v12143_v30  ;;  %v4270_v63 = vld [vmem:[#allocation14 + $0x1d0] sm:$0xff]  ;;  %v4275_v57 = vld [vmem:[#allocation14 + $0x1f8] sm:$0xff]  ;;  %13557 = vst [vmem:[#allocation96_spill] sm:$0xff] %v12149_v33 }
 0x4a1   :  { %v4274_v60 = vld [vmem:[#allocation14 + $0x1f0] sm:$0xff]  ;;  %v12157_v14 = vcombine.high %v4271_v52, %v4275_v57  ;;  %v12163_v44 = vcombine.low %v4271_v52, %v4275_v57 }
 0x4a2   :  { %v12155_v56 = vcombine.high %v4270_v63, %v4274_v60  ;;  %v12161_v53 = vcombine.low %v4270_v63, %v4274_v60 }
 0x4a3   :  { %5078 = vmatpush1.bf16.msra.mxu0 %v12125_v43  ;;  %5119 = vmatpush1.bf16.msra.mxu1 %v12127_v50  ;;  %13560 = vst [vmem:[#allocation99_spill] sm:$0xff] %v12157_v14  ;;  %v4279_v50 = vld [vmem:[#allocation14 + $0x218] sm:$0xff]  ;;  %13562 = vst [vmem:[#allocation101_spill] sm:$0xff] %v12163_v44 }
 0x4a4   :  { %5079 = vmatprep.subr.bf16.mxu0 %v12131_v48  ;;  %5120 = vmatprep.subr.bf16.mxu1 %v12133_v28  ;;  %13559 = vst [vmem:[#allocation98_spill] sm:$0xff] %v12155_v56  ;;  %v4278_v28 = vld [vmem:[#allocation14 + $0x210] sm:$0xff]  ;;  %v4283_v43 = vld [vmem:[#allocation14 + $0x238] sm:$0xff]  ;;  %13561 = vst [vmem:[#allocation100_spill] sm:$0xff] %v12161_v53 }
 0x4a5   :  { %v4282_v48 = vld [vmem:[#allocation14 + $0x230] sm:$0xff]  ;;  %v12169_v40 = vcombine.high %v4279_v50, %v4283_v43  ;;  %v12175_v57 = vcombine.low %v4279_v50, %v4283_v43 }
 0x4a6   :  { %v12167_v3 = vcombine.high %v4278_v28, %v4282_v48  ;;  %v12173_v60 = vcombine.low %v4278_v28, %v4282_v48 }
 0x4a7   :  { %5080 = vmatpush1.bf16.msra.mxu0 %v12137_v37  ;;  %5121 = vmatpush1.bf16.msra.mxu1 %v12139_v15  ;;  %13564 = vst [vmem:[#allocation103_spill] sm:$0xff] %v12169_v40  ;;  %v4287_v15 = vld [vmem:[#allocation14 + $0x258] sm:$0xff]  ;;  %13566 = vst [vmem:[#allocation105_spill] sm:$0xff] %v12175_v57 }
 0x4a8   :  { %5081 = vmatprep.subr.bf16.mxu0 %v12143_v30  ;;  %5122 = vmatprep.subr.bf16.mxu1 %v12145_v12  ;;  %13563 = vst [vmem:[#allocation102_spill] sm:$0xff] %v12167_v3  ;;  %v4286_v12 = vld [vmem:[#allocation14 + $0x250] sm:$0xff]  ;;  %v4291_v37 = vld [vmem:[#allocation14 + $0x278] sm:$0xff]  ;;  %13565 = vst [vmem:[#allocation104_spill] sm:$0xff] %v12173_v60 }
 0x4a9   :  { %v4290_v30 = vld [vmem:[#allocation14 + $0x270] sm:$0xff]  ;;  %v12181_v63 = vcombine.high %v4287_v15, %v4291_v37  ;;  %v12187_v43 = vcombine.low %v4287_v15, %v4291_v37 }
 0x4aa   :  { %v12179_v52 = vcombine.high %v4286_v12, %v4290_v30  ;;  %v12185_v48 = vcombine.low %v4286_v12, %v4290_v30 }
 0x4ab   :  { %5082 = vmatpush1.bf16.msra.mxu0 %v12149_v33  ;;  %5123 = vmatpush1.bf16.msra.mxu1 %v12151_v4  ;;  %13568 = vst [vmem:[#allocation107_spill] sm:$0xff] %v12181_v63  ;;  %v4295_v4 = vld [vmem:[#allocation14 + $0x298] sm:$0xff]  ;;  %13570 = vst [vmem:[#allocation109_spill] sm:$0xff] %v12187_v43 }
 0x4ac   :  { %5083 = vmatprep.subr.bf16.mxu0 %v12155_v56  ;;  %5124 = vmatprep.subr.bf16.mxu1 %v12157_v14  ;;  %13567 = vst [vmem:[#allocation106_spill] sm:$0xff] %v12179_v52  ;;  %v4294_v14 = vld [vmem:[#allocation14 + $0x290] sm:$0xff]  ;;  %v4299_v33 = vld [vmem:[#allocation14 + $0x2b8] sm:$0xff]  ;;  %13569 = vst [vmem:[#allocation108_spill] sm:$0xff] %v12185_v48 }
 0x4ad   :  { %v4298_v56 = vld [vmem:[#allocation14 + $0x2b0] sm:$0xff]  ;;  %v12193_v28 = vcombine.high %v4295_v4, %v4299_v33  ;;  %v12199_v37 = vcombine.low %v4295_v4, %v4299_v33 }
 0x4ae   :  { %v12191_v50 = vcombine.high %v4294_v14, %v4298_v56  ;;  %v12197_v30 = vcombine.low %v4294_v14, %v4298_v56 }
 0x4af   :  { %5084 = vmatpush1.bf16.msra.mxu0 %v12161_v53  ;;  %5125 = vmatpush1.bf16.msra.mxu1 %v12163_v44  ;;  %13572 = vst [vmem:[#allocation111_spill] sm:$0xff] %v12193_v28  ;;  %v4303_v44 = vld [vmem:[#allocation14 + $0x2d8] sm:$0xff]  ;;  %13574 = vst [vmem:[#allocation113_spill] sm:$0xff] %v12199_v37 }
 0x4b0   :  { %5085 = vmatprep.subr.bf16.mxu0 %v12167_v3  ;;  %5126 = vmatprep.subr.bf16.mxu1 %v12169_v40  ;;  %13571 = vst [vmem:[#allocation110_spill] sm:$0xff] %v12191_v50  ;;  %v4302_v40 = vld [vmem:[#allocation14 + $0x2d0] sm:$0xff]  ;;  %v4307_v53 = vld [vmem:[#allocation14 + $0x2f8] sm:$0xff]  ;;  %13573 = vst [vmem:[#allocation112_spill] sm:$0xff] %v12197_v30 }
 0x4b1   :  { %v4306_v3 = vld [vmem:[#allocation14 + $0x2f0] sm:$0xff]  ;;  %v12205_v12 = vcombine.high %v4303_v44, %v4307_v53  ;;  %v12211_v33 = vcombine.low %v4303_v44, %v4307_v53 }
 0x4b2   :  { %v12203_v15 = vcombine.high %v4302_v40, %v4306_v3  ;;  %v12209_v56 = vcombine.low %v4302_v40, %v4306_v3 }
 0x4b3   :  { %5086 = vmatpush1.bf16.msra.mxu0 %v12173_v60  ;;  %5127 = vmatpush1.bf16.msra.mxu1 %v12175_v57  ;;  %13576 = vst [vmem:[#allocation115_spill] sm:$0xff] %v12205_v12  ;;  %v4311_v57 = vld [vmem:[#allocation14 + $0x318] sm:$0xff]  ;;  %13578 = vst [vmem:[#allocation117_spill] sm:$0xff] %v12211_v33 }
 0x4b4   :  { %5087 = vmatprep.subr.bf16.mxu0 %v12179_v52  ;;  %5128 = vmatprep.subr.bf16.mxu1 %v12181_v63  ;;  %13575 = vst [vmem:[#allocation114_spill] sm:$0xff] %v12203_v15  ;;  %v4310_v63 = vld [vmem:[#allocation14 + $0x310] sm:$0xff]  ;;  %v4315_v60 = vld [vmem:[#allocation14 + $0x338] sm:$0xff]  ;;  %13577 = vst [vmem:[#allocation116_spill] sm:$0xff] %v12209_v56 }
 0x4b5   :  { %v4314_v52 = vld [vmem:[#allocation14 + $0x330] sm:$0xff]  ;;  %v12217_v14 = vcombine.high %v4311_v57, %v4315_v60  ;;  %v12223_v53 = vcombine.low %v4311_v57, %v4315_v60 }
 0x4b6   :  { %v12215_v4 = vcombine.high %v4310_v63, %v4314_v52  ;;  %v12221_v3 = vcombine.low %v4310_v63, %v4314_v52 }
 0x4b7   :  { %5088 = vmatpush1.bf16.msra.mxu0 %v12185_v48  ;;  %5129 = vmatpush1.bf16.msra.mxu1 %v12187_v43  ;;  %13580 = vst [vmem:[#allocation119_spill] sm:$0xff] %v12217_v14  ;;  %v4319_v43 = vld [vmem:[#allocation14 + $0x358] sm:$0xff] }
 0x4b8   :  { %5089 = vmatprep.subr.bf16.mxu0 %v12191_v50  ;;  %5130 = vmatprep.subr.bf16.mxu1 %v12193_v28  ;;  %13579 = vst [vmem:[#allocation118_spill] sm:$0xff] %v12215_v4  ;;  %v4318_v28 = vld [vmem:[#allocation14 + $0x350] sm:$0xff]  ;;  %v4323_v48 = vld [vmem:[#allocation14 + $0x378] sm:$0xff] }
 0x4b9   :  { %v4322_v50 = vld [vmem:[#allocation14 + $0x370] sm:$0xff]  ;;  %v12229_v40 = vcombine.high %v4319_v43, %v4323_v48  ;;  %v12235_v60 = vcombine.low %v4319_v43, %v4323_v48 }
 0x4ba   :  { %v12227_v44 = vcombine.high %v4318_v28, %v4322_v50  ;;  %v12233_v52 = vcombine.low %v4318_v28, %v4322_v50 }
 0x4bb   :  { %5090 = vmatpush1.bf16.msra.mxu0 %v12197_v30  ;;  %5131 = vmatpush1.bf16.msra.mxu1 %v12199_v37  ;;  %13581 = vst [vmem:[#allocation120_spill] sm:$0xff] %v12229_v40  ;;  %v4327_v37 = vld [vmem:[#allocation14 + $0x398] sm:$0xff] }
 0x4bc   :  { %5091 = vmatprep.subr.bf16.mxu0 %v12203_v15  ;;  %5132 = vmatprep.subr.bf16.mxu1 %v12205_v12  ;;  %v4326_v12 = vld [vmem:[#allocation14 + $0x390] sm:$0xff]  ;;  %v4331_v30 = vld [vmem:[#allocation14 + $0x3b8] sm:$0xff]  ;;  %13582 = vst [vmem:[#allocation121_spill] sm:$0xff] %v12233_v52 }
 0x4bd   :  { %v4330_v15 = vld [vmem:[#allocation14 + $0x3b0] sm:$0xff]  ;;  %v12241_v63 = vcombine.high %v4327_v37, %v4331_v30  ;;  %v12247_v48 = vcombine.low %v4327_v37, %v4331_v30 }
 0x4be   :  { %v12239_v57 = vcombine.high %v4326_v12, %v4330_v15  ;;  %v12245_v50 = vcombine.low %v4326_v12, %v4330_v15 }
 0x4bf   :  { %5092 = vmatpush1.bf16.msra.mxu0 %v12209_v56  ;;  %5133 = vmatpush1.bf16.msra.mxu1 %v12211_v33  ;;  %v4335_v33 = vld [vmem:[#allocation14 + $0x3d8] sm:$0xff] }
 0x4c0   :  { %5093 = vmatprep.subr.bf16.mxu0 %v12215_v4  ;;  %5134 = vmatprep.subr.bf16.mxu1 %v12217_v14  ;;  %v4334_v14 = vld [vmem:[#allocation14 + $0x3d0] sm:$0xff]  ;;  %v4339_v56 = vld [vmem:[#allocation14 + $0x3f8] sm:$0xff] }
 0x4c1   :  { %v4338_v4 = vld [vmem:[#allocation14 + $0x3f0] sm:$0xff]  ;;  %v12253_v28 = vcombine.high %v4335_v33, %v4339_v56 }
 0x4c2   :  { %v12251_v43 = vcombine.high %v4334_v14, %v4338_v4 }
 0x4c3   :  { %5094 = vmatpush1.bf16.msra.mxu0 %v12221_v3  ;;  %5135 = vmatpush1.bf16.msra.mxu1 %v12223_v53 }
 0x4c4   :  { %5095 = vmatprep.subr.bf16.mxu0 %v12227_v44  ;;  %5136 = vmatprep.subr.bf16.mxu1 %v12229_v40  ;;  %v12257_v40 = vcombine.low %v4334_v14, %v4338_v4 }
 0x4c7   :  { %5096 = vmatpush1.bf16.msra.mxu0 %v12233_v52  ;;  %5137 = vmatpush1.bf16.msra.mxu1 %v12235_v60  ;;  %v12259_v52 = vcombine.low %v4335_v33, %v4339_v56 }
 0x4c8   :  { %5097 = vmatprep.subr.bf16.mxu0 %v12239_v57  ;;  %5138 = vmatprep.subr.bf16.mxu1 %v12241_v63 }
 0x4cb   :  { %5098 = vmatpush1.bf16.msra.mxu0 %v12245_v50  ;;  %5139 = vmatpush1.bf16.msra.mxu1 %v12247_v48 }
 0x4cc   :  { %5099 = vmatprep.subr.bf16.mxu0 %v12251_v43  ;;  %5140 = vmatprep.subr.bf16.mxu1 %v12253_v28 }
 0x4cf   :  { %5100 = vmatpush1.bf16.msra.mxu0 %v12257_v40  ;;  %5141 = vmatpush1.bf16.msra.mxu1 %v12259_v52 }
 0x4d0   :  { %5997 = vmatprep.subr.bf16.mxu0 %v11862_v41  ;;  %6038 = vmatprep.subr.bf16.mxu1 %v11866_v35  ;;  %v13584_v41 = vld [vmem:[#allocation41_spill] sm:$0xff] }
 0x4d1   :  { %v13586_v35 = vld [vmem:[#allocation45_spill] sm:$0xff] }
 0x4d2   :  { %5102 = vmatmul.mubr.bf16.vlgmr.msra.gmra.mrb[60].mxu0 %v12070_v25  ;;  %5143 = vmatmul.mubr.bf16.vlgmr.msra.gmra.mrb[60].mxu1 %v12070_v25 }
 0x4d3   :  { %5998 = vmatpush1.bf16.msra.mxu0 %v11860_v36  ;;  %6039 = vmatpush1.bf16.msra.mxu1 %v11864_v22  ;;  %v13583_v36 = vld [vmem:[#allocation44_spill] sm:$0xff]  ;;  %v13585_v22 = vld [vmem:[#allocation46_spill] sm:$0xff] }
 0x4d4   :  { %5999 = vmatprep.subr.bf16.mxu0 %v11868_v55  ;;  %6040 = vmatprep.subr.bf16.mxu1 %v11871_v46  ;;  %v13587_v55 = vld [vmem:[#allocation50_spill] sm:$0xff]  ;;  %v13588_v46 = vld [vmem:[#allocation49_spill] sm:$0xff] }
 0x4d7   :  { %6000 = vmatpush1.bf16.msra.mxu0 %v11875_v38  ;;  %6041 = vmatpush1.bf16.msra.mxu1 %v11879_v39  ;;  %v13589_v38 = vld [vmem:[#allocation51_spill] sm:$0xff]  ;;  %v13590_v39 = vld [vmem:[#allocation52_spill] sm:$0xff] }
 0x4d8   :  { %6001 = vmatprep.subr.bf16.mxu0 %v11881_v58  ;;  %6042 = vmatprep.subr.bf16.mxu1 %v11884_v2  ;;  %v13591_v58 = vld [vmem:[#allocation56_spill] sm:$0xff]  ;;  %v13592_v2 = vld [vmem:[#allocation57_spill] sm:$0xff] }
 0x4db   :  { %6002 = vmatpush1.bf16.msra.mxu0 %v11887_v24  ;;  %6043 = vmatpush1.bf16.msra.mxu1 %v11891_v9  ;;  %v13593_v24 = vld [vmem:[#allocation55_spill] sm:$0xff]  ;;  %v13594_v9 = vld [vmem:[#allocation60_spill] sm:$0xff] }
 0x4dc   :  { %6003 = vmatprep.subr.bf16.mxu0 %v11893_v34  ;;  %6044 = vmatprep.subr.bf16.mxu1 %v11896_v47  ;;  %v13595_v34 = vld [vmem:[#allocation62_spill] sm:$0xff]  ;;  %v13596_v47 = vld [vmem:[#allocation63_spill] sm:$0xff] }
 0x4df   :  { %6004 = vmatpush1.bf16.msra.mxu0 %v11899_v19  ;;  %6045 = vmatpush1.bf16.msra.mxu1 %v11903_v26  ;;  %v13597_v19 = vld [vmem:[#allocation61_spill] sm:$0xff]  ;;  %v13598_v26 = vld [vmem:[#allocation64_spill] sm:$0xff] }
 0x4e0   :  { %6005 = vmatprep.subr.bf16.mxu0 %v11905_v61  ;;  %6046 = vmatprep.subr.bf16.mxu1 %v11908_v21  ;;  %v13599_v61 = vld [vmem:[#allocation68_spill] sm:$0xff]  ;;  %v13600_v21 = vld [vmem:[#allocation69_spill] sm:$0xff] }
 0x4e3   :  { %6006 = vmatpush1.bf16.msra.mxu0 %v11911_v13  ;;  %6047 = vmatpush1.bf16.msra.mxu1 %v11915_v18  ;;  %v13601_v13 = vld [vmem:[#allocation67_spill] sm:$0xff]  ;;  %v13602_v18 = vld [vmem:[#allocation70_spill] sm:$0xff] }
 0x4e4   :  { %6007 = vmatprep.subr.bf16.mxu0 %v11917_v29  ;;  %6048 = vmatprep.subr.bf16.mxu1 %v11920_v59  ;;  %v13603_v29 = vld [vmem:[#allocation72_spill] sm:$0xff]  ;;  %v13604_v59 = vld [vmem:[#allocation73_spill] sm:$0xff] }
 0x4e7   :  { %6008 = vmatpush1.bf16.msra.mxu0 %v11923_v8  ;;  %6049 = vmatpush1.bf16.msra.mxu1 %v11927_v20  ;;  %v13605_v8 = vld [vmem:[#allocation71_spill] sm:$0xff]  ;;  %v13606_v20 = vld [vmem:[#allocation74_spill] sm:$0xff] }
 0x4e8   :  { %6009 = vmatprep.subr.bf16.mxu0 %v11932_v5  ;;  %6050 = vmatprep.subr.bf16.mxu1 %v11938_v17  ;;  %v13607_v5 = vld [vmem:[#allocation76_spill] sm:$0xff]  ;;  %v13610_v17 = vld [vmem:[#allocation78_spill] sm:$0xff] }
 0x4eb   :  { %6010 = vmatpush1.bf16.msra.mxu0 %v11934_v31  ;;  %6051 = vmatpush1.bf16.msra.mxu1 %v11936_v27  ;;  %v13608_v31 = vld [vmem:[#allocation77_spill] sm:$0xff]  ;;  %v13609_v27 = vld [vmem:[#allocation75_spill] sm:$0xff] }
 0x4ec   :  { %6011 = vmatprep.subr.bf16.mxu0 %v11944_v62  ;;  %6052 = vmatprep.subr.bf16.mxu1 %v11950_v1  ;;  %v13611_v62 = vld [vmem:[#allocation79_spill] sm:$0xff]  ;;  %v13613_v1 = vld [vmem:[#allocation28_spill] sm:$0xff] }
 0x4ef   :  { %6012 = vmatpush1.bf16.msra.mxu0 %v11946_v7  ;;  %6053 = vmatpush1.bf16.msra.mxu1 %v11948_v42  ;;  %v13612_v7 = vld [vmem:[#allocation27_spill] sm:$0xff] }
 0x4f0   :  { %6013 = vmatprep.subr.bf16.mxu0 %v11956_v10  ;;  %6054 = vmatprep.subr.bf16.mxu1 %v11962_v0  ;;  %v5154_v42 = vunpack.c.l.bf16 %v13612_v7  ;;  %v5156_v10 = vunpack.c.l.bf16 %v13613_v1  ;;  %v5155_v0 = vunpack.c.h.bf16 %v13612_v7 }
 0x4f3   :  { %6014 = vmatpush1.bf16.msra.mxu0 %v11958_v16  ;;  %6055 = vmatpush1.bf16.msra.mxu1 %v11960_v32 }
 0x4f4   :  { %6015 = vmatprep.subr.bf16.mxu0 %v11968_v45  ;;  %6056 = vmatprep.subr.bf16.mxu1 %v13583_v36  ;;  %v5157_v45 = vunpack.c.h.bf16 %v13613_v1 }
 0x4f7   :  { %6016 = vmatpush1.bf16.msra.mxu0 %v13584_v41  ;;  %6057 = vmatpush1.bf16.msra.mxu1 %v13585_v22 }
 0x4f8   :  { %6017 = vmatprep.subr.bf16.mxu0 %v13586_v35  ;;  %6058 = vmatprep.subr.bf16.mxu1 %v13587_v55 }
 0x4fb   :  { %6018 = vmatpush1.bf16.msra.mxu0 %v13588_v46  ;;  %6059 = vmatpush1.bf16.msra.mxu1 %v13589_v38 }
 0x4fc   :  { %6019 = vmatprep.subr.bf16.mxu0 %v13590_v39  ;;  %6060 = vmatprep.subr.bf16.mxu1 %v13591_v58 }
 0x4ff   :  { %6020 = vmatpush1.bf16.msra.mxu0 %v13592_v2  ;;  %6061 = vmatpush1.bf16.msra.mxu1 %v13593_v24 }
 0x500   :  { %6021 = vmatprep.subr.bf16.mxu0 %v13594_v9  ;;  %6062 = vmatprep.subr.bf16.mxu1 %v13595_v34  ;;  %v13614_v34 = vld [vmem:[#allocation23_spill] sm:$0xff] }
 0x503   :  { %6022 = vmatpush1.bf16.msra.mxu0 %v13596_v47  ;;  %6063 = vmatpush1.bf16.msra.mxu1 %v13597_v19 }
 0x504   :  { %6023 = vmatprep.subr.bf16.mxu0 %v13598_v26  ;;  %6064 = vmatprep.subr.bf16.mxu1 %v13599_v61 }
 0x507   :  { %6024 = vmatpush1.bf16.msra.mxu0 %v13600_v21  ;;  %6065 = vmatpush1.bf16.msra.mxu1 %v13601_v13 }
 0x508   :  { %6025 = vmatprep.subr.bf16.mxu0 %v13602_v18  ;;  %6066 = vmatprep.subr.bf16.mxu1 %v13603_v29 }
 0x50b   :  { %6026 = vmatpush1.bf16.msra.mxu0 %v13604_v59  ;;  %6067 = vmatpush1.bf16.msra.mxu1 %v13605_v8  ;;  %v13615_v59 = vld [vmem:[#allocation53_spill] sm:$0xff] }
 0x50c   :  { %6027 = vmatprep.subr.bf16.mxu0 %v13606_v20  ;;  %6068 = vmatprep.subr.bf16.mxu1 %v13607_v5  ;;  %v5165_v8 = vunpack.c.l.bf16 %v13615_v59  ;;  %v13616_v20 = vld [vmem:[#allocation54_spill] sm:$0xff] }
 0x50d   :  { %v5167_v5 = vunpack.c.l.bf16 %v13616_v20 }
 0x50f   :  { %6028 = vmatpush1.bf16.msra.mxu0 %v13608_v31  ;;  %6069 = vmatpush1.bf16.msra.mxu1 %v13609_v27 }
 0x510   :  { %6079 = vmatprep.subr.bf16.mxu0 %v13610_v17  ;;  %6120 = vmatprep.subr.bf16.mxu1 %v13611_v62  ;;  %v5166_v17 = vunpack.c.h.bf16 %v13615_v59  ;;  %v5168_v62 = vunpack.c.h.bf16 %v13616_v20  ;;  %v13630_v59 = vld [vmem:[#allocation90_spill] sm:$0xff]  ;;  %v13632_v20 = vld [vmem:[#allocation92_spill] sm:$0xff] }
 0x565   :  { %v5021_v16 = vpop.f32.mrb[56].mxu0  ;;  %v5062_v32 = vpop.f32.mrb[56].mxu1 }
 0x566   :  { %v5158_v25 = vadd.f32 %v5154_v42, %v5021_v16  ;;  %v5160_v30 = vadd.f32 %v5156_v10, %v5062_v32  ;;  %v5023_v37 = vpop.f32.mrb[57].mxu0  ;;  %v5064_v15 = vpop.f32.mrb[57].mxu1 }
 0x567   :  { %v5159_v12 = vadd.f32 %v5155_v0, %v5023_v37  ;;  %v5161_v56 = vadd.f32 %v5157_v45, %v5064_v15  ;;  %v5025_v33 = vpop.f32.mrb[58].mxu0  ;;  %v5066_v4 = vpop.f32.mrb[58].mxu1 }
 0x568   :  { %v5174_v14 = vmul.f32 0.5, %v5158_v25  ;;  %v5026_v36 = vpop.f32.mrb[59].mxu0  ;;  %v5067_v41 = vpop.f32.mrb[59].mxu1 }
 0x569   :  { %v5178_v22 = vmul.f32 0.5, %v5159_v12  ;;  %v5183_v35 = vmul.f32 0.5, %v5161_v56 }
 0x56a   :  { %10710 = vtanh.f32 %v5174_v14 }
 0x56b   :  { %10712 = vtanh.f32 %v5178_v22 }
 0x56c   :  { %10714 = vtanh.f32 %v5160_v30 }
 0x56d   :  { %10716 = vtanh.f32 %v5183_v35 }
 0x574   :  { %v10711_v55 = vpop.eup %10710 }
 0x575   :  { %v10713_v46 = vpop.eup %10712  ;;  %v5176_v38 = vmul.f32 0.5, %v10711_v55 }
 0x576   :  { %v5180_v39 = vmul.f32 0.5, %v10713_v46  ;;  %v10715_v2 = vpop.eup %10714 }
 0x577   :  { %v5177_v58 = vadd.f32 0.5, %v5176_v38  ;;  %v10717_v26 = vpop.eup %10716 }
 0x578   :  { %v5181_v24 = vadd.f32 0.5, %v5180_v39  ;;  %v5185_v61 = vmul.f32 0.5, %v10717_v26  ;;  %v13620_v26 = vld [vmem:[#allocation80_spill] sm:$0xff] }
 0x579   :  { %v5188_v9 = vmul.f32 %v10715_v2, %v5177_v58 }
 0x57a   :  { %v5187_v47 = vmul.f32 %v5181_v24, %v13614_v34  ;;  %v5186_v21 = vadd.f32 0.5, %v5185_v61  ;;  %v13618_v34 = vld [vmem:[#allocation65_spill] sm:$0xff] }
 0x57b   :  { %v13621_v61 = vld [vmem:[#allocation81_spill] sm:$0xff] }
 0x57c   :  { %v12338_v19 = vadd.f32 %v5188_v9, %v5187_v47  ;;  %v13619_v47 = vld [vmem:[#allocation66_spill] sm:$0xff] }
 0x57e   :  { %10718 = vtanh.f32 %v12338_v19 }
 0x588   :  { %v10719_v13 = vpop.eup %10718 }
 0x589   :  { %v5191_v18 = vmul.f32 %v10719_v13, %v5186_v21  ;;  %v13624_v21 = vld [vmem:[#allocation84_spill] sm:$0xff] }
 0x58a   :  { %v13628_v13 = vld [vmem:[#allocation88_spill] sm:$0xff] }
 0x58b   :  { %v12341_v29 = vpack.c.bf16 %v5191_v18, %v5191_v18  ;;  %v13629_v18 = vld [vmem:[#allocation89_spill] sm:$0xff] }
 0x58d   :  { %5218 = vst [vmem:[#allocation15 + $0xc] sm:$0xf] %v12341_v29 }
 0x5a5   :  { %v5103_v31 = vpop.f32.mrb[60].mxu0  ;;  %v5144_v27 = vpop.f32.mrb[60].mxu1 }
 0x5a6   :  { %v5169_v7 = vadd.f32 %v5165_v8, %v5103_v31  ;;  %v5171_v42 = vadd.f32 %v5167_v5, %v5144_v27  ;;  %v5105_v1 = vpop.f32.mrb[61].mxu0  ;;  %v5146_v10 = vpop.f32.mrb[61].mxu1  ;;  %v13631_v8 = vld [vmem:[#allocation91_spill] sm:$0xff]  ;;  %v13633_v5 = vld [vmem:[#allocation93_spill] sm:$0xff]  ;;  %v13634_v31 = vld [vmem:[#allocation94_spill] sm:$0xff] }
 0x5a7   :  { %v5170_v16 = vadd.f32 %v5166_v17, %v5105_v1  ;;  %v5172_v32 = vadd.f32 %v5168_v62, %v5146_v10  ;;  %v5107_v0 = vpop.f32.mrb[62].mxu0  ;;  %v5148_v45 = vpop.f32.mrb[62].mxu1  ;;  %v13635_v27 = vld [vmem:[#allocation95_spill] sm:$0xff]  ;;  %v13636_v17 = vld [vmem:[#allocation96_spill] sm:$0xff]  ;;  %v13637_v62 = vld [vmem:[#allocation97_spill] sm:$0xff] }
 0x5a8   :  { %v5193_v25 = vmul.f32 0.5, %v5169_v7  ;;  %v5108_v30 = vpop.f32.mrb[63].mxu0  ;;  %v5149_v37 = vpop.f32.mrb[63].mxu1  ;;  %v13638_v7 = vld [vmem:[#allocation98_spill] sm:$0xff]  ;;  %v13640_v1 = vld [vmem:[#allocation100_spill] sm:$0xff]  ;;  %v13641_v10 = vld [vmem:[#allocation101_spill] sm:$0xff] }
 0x5a9   :  { %v5197_v15 = vmul.f32 0.5, %v5170_v16  ;;  %v5202_v12 = vmul.f32 0.5, %v5172_v32  ;;  %v13642_v16 = vld [vmem:[#allocation102_spill] sm:$0xff]  ;;  %v13643_v32 = vld [vmem:[#allocation103_spill] sm:$0xff]  ;;  %v13644_v0 = vld [vmem:[#allocation104_spill] sm:$0xff] }
 0x5aa   :  { %10720 = vtanh.f32 %v5193_v25  ;;  %v13645_v45 = vld [vmem:[#allocation105_spill] sm:$0xff]  ;;  %v13646_v25 = vld [vmem:[#allocation106_spill] sm:$0xff]  ;;  %v13647_v30 = vld [vmem:[#allocation107_spill] sm:$0xff] }
 0x5ab   :  { %10722 = vtanh.f32 %v5197_v15  ;;  %v13648_v37 = vld [vmem:[#allocation108_spill] sm:$0xff]  ;;  %v13649_v15 = vld [vmem:[#allocation109_spill] sm:$0xff] }
 0x5ac   :  { %10724 = vtanh.f32 %v5171_v42  ;;  %v13639_v42 = vld [vmem:[#allocation99_spill] sm:$0xff] }
 0x5ad   :  { %10726 = vtanh.f32 %v5202_v12  ;;  %v13650_v12 = vld [vmem:[#allocation110_spill] sm:$0xff] }
 0x5b4   :  { %v10721_v56 = vpop.eup %10720 }
 0x5b5   :  { %v10723_v33 = vpop.eup %10722  ;;  %v5195_v4 = vmul.f32 0.5, %v10721_v56  ;;  %v13651_v56 = vld [vmem:[#allocation111_spill] sm:$0xff] }
 0x5b6   :  { %v5199_v14 = vmul.f32 0.5, %v10723_v33  ;;  %v10725_v41 = vpop.eup %10724  ;;  %v13652_v33 = vld [vmem:[#allocation112_spill] sm:$0xff] }
 0x5b7   :  { %v5196_v36 = vadd.f32 0.5, %v5195_v4  ;;  %v10727_v38 = vpop.eup %10726  ;;  %v13653_v4 = vld [vmem:[#allocation113_spill] sm:$0xff] }
 0x5b8   :  { %v5200_v22 = vadd.f32 0.5, %v5199_v14  ;;  %v5204_v39 = vmul.f32 0.5, %v10727_v38  ;;  %v13654_v14 = vld [vmem:[#allocation114_spill] sm:$0xff]  ;;  %v13660_v38 = vld [vmem:[#allocation120_spill] sm:$0xff] }
 0x5b9   :  { %v5207_v35 = vmul.f32 %v10725_v41, %v5196_v36  ;;  %v13655_v36 = vld [vmem:[#allocation115_spill] sm:$0xff]  ;;  %v13656_v41 = vld [vmem:[#allocation116_spill] sm:$0xff] }
 0x5ba   :  { %v5206_v55 = vmul.f32 %v5200_v22, %v12078_v51  ;;  %v5205_v58 = vadd.f32 0.5, %v5204_v39  ;;  %v13617_v51 = vld [vmem:[#allocation24_spill] sm:$0xff]  ;;  %v13657_v22 = vld [vmem:[#allocation117_spill] sm:$0xff] }
 0x5bb   :  { %v13661_v39 = vld [vmem:[#allocation121_spill] sm:$0xff] }
 0x5bc   :  { %v12349_v46 = vadd.f32 %v5207_v35, %v5206_v55  ;;  %v13658_v35 = vld [vmem:[#allocation118_spill] sm:$0xff]  ;;  %v13659_v55 = vld [vmem:[#allocation119_spill] sm:$0xff] }
 0x5be   :  { %10728 = vtanh.f32 %v12349_v46 }
 0x5c8   :  { %v10729_v2 = vpop.eup %10728 }
 0x5c9   :  { %v5210_v24 = vmul.f32 %v10729_v2, %v5205_v58  ;;  %v6248_v58 = vld [vmem:[#allocation14 + $0x80] sm:$0xff] }
 0x5ca   :  { %v6252_v2 = vld [vmem:[#allocation14 + $0xa0] sm:$0xff] }
 0x5cb   :  { %v5213_v9 = vpack.c.bf16 %v5210_v24, %v5210_v24 }
 0x5cd   :  { %5220 = vst [vmem:[#allocation16 + $0x10] sm:$0xf] %v5213_v9  ;;  %6029 = vmatprep.mubr.bf16.mxu0 %v5213_v9  ;;  %6070 = vmatprep.mubr.bf16.mxu1 %v5213_v9 }
 0x5ce   :  { %6030 = vmatmul.mubr.bf16.vlgmr.msra.gmra.mrb[64].mxu0 %v12341_v29  ;;  %6071 = vmatmul.mubr.bf16.vlgmr.msra.gmra.mrb[64].mxu1 %v12341_v29 }
 0x5cf   :  { %6080 = vmatpush1.bf16.msra.mxu0 %v12052_v6  ;;  %6121 = vmatpush1.bf16.msra.mxu1 %v12056_v49  ;;  %v13622_v6 = vld [vmem:[#allocation82_spill] sm:$0xff]  ;;  %v13623_v49 = vld [vmem:[#allocation83_spill] sm:$0xff] }
 0x5d0   :  { %6111 = vmatprep.mubr.bf16.mxu0 %v5213_v9  ;;  %6152 = vmatprep.mubr.bf16.mxu1 %v5213_v9 }
 0x5d1   :  { %6081 = vmatprep.subr.bf16.mxu0 %v12081_v11  ;;  %6122 = vmatprep.subr.bf16.mxu1 %v12083_v54  ;;  %v13625_v11 = vld [vmem:[#allocation85_spill] sm:$0xff]  ;;  %v13626_v54 = vld [vmem:[#allocation86_spill] sm:$0xff] }
 0x5d3   :  { %6082 = vmatpush1.bf16.msra.mxu0 %v12089_v23  ;;  %6123 = vmatpush1.bf16.msra.mxu1 %v13617_v51  ;;  %v13627_v23 = vld [vmem:[#allocation87_spill] sm:$0xff]  ;;  %v6249_v51 = vld [vmem:[#allocation14 + $0x88] sm:$0xff] }
 0x5d4   :  { %6083 = vmatprep.subr.bf16.mxu0 %v13618_v34  ;;  %6124 = vmatprep.subr.bf16.mxu1 %v13619_v47  ;;  %v6253_v34 = vld [vmem:[#allocation14 + $0xa8] sm:$0xff] }
 0x5d7   :  { %6084 = vmatpush1.bf16.msra.mxu0 %v13620_v26  ;;  %6125 = vmatpush1.bf16.msra.mxu1 %v13621_v61  ;;  %v12439_v26 = vcombine.high %v6248_v58, %v6252_v2  ;;  %v12442_v61 = vcombine.high %v6249_v51, %v6253_v34 }
 0x5d8   :  { %6085 = vmatprep.subr.bf16.mxu0 %v13622_v6  ;;  %6126 = vmatprep.subr.bf16.mxu1 %v13623_v49  ;;  %v6256_v6 = vld [vmem:[#allocation14 + $0xc0] sm:$0xff] }
 0x5d9   :  { %v6260_v49 = vld [vmem:[#allocation14 + $0xe0] sm:$0xff] }
 0x5db   :  { %6086 = vmatpush1.bf16.msra.mxu0 %v13624_v21  ;;  %6127 = vmatpush1.bf16.msra.mxu1 %v13625_v11  ;;  %v6257_v21 = vld [vmem:[#allocation14 + $0xc8] sm:$0xff] }
 0x5dc   :  { %6087 = vmatprep.subr.bf16.mxu0 %v13626_v54  ;;  %6128 = vmatprep.subr.bf16.mxu1 %v13627_v23  ;;  %v6261_v11 = vld [vmem:[#allocation14 + $0xe8] sm:$0xff]  ;;  %v12445_v54 = vcombine.low %v6248_v58, %v6252_v2  ;;  %v12449_v23 = vcombine.low %v6249_v51, %v6253_v34  ;;  %v6304_v51 = vld [vmem:[#allocation14 + $0x240] sm:$0xff] }
 0x5dd   :  { %v6308_v34 = vld [vmem:[#allocation14 + $0x260] sm:$0xff] }
 0x5df   :  { %6088 = vmatpush1.bf16.msra.mxu0 %v13628_v13  ;;  %6129 = vmatpush1.bf16.msra.mxu1 %v13629_v18  ;;  %v12451_v13 = vcombine.high %v6256_v6, %v6260_v49  ;;  %v12454_v18 = vcombine.high %v6257_v21, %v6261_v11 }
 0x5e0   :  { %6089 = vmatprep.subr.bf16.mxu0 %v13630_v59  ;;  %6130 = vmatprep.subr.bf16.mxu1 %v13631_v8  ;;  %v6264_v59 = vld [vmem:[#allocation14 + $0x100] sm:$0xff] }
 0x5e1   :  { %v6268_v8 = vld [vmem:[#allocation14 + $0x120] sm:$0xff] }
 0x5e3   :  { %6090 = vmatpush1.bf16.msra.mxu0 %v13632_v20  ;;  %6131 = vmatpush1.bf16.msra.mxu1 %v13633_v5  ;;  %v6265_v20 = vld [vmem:[#allocation14 + $0x108] sm:$0xff] }
 0x5e4   :  { %6091 = vmatprep.subr.bf16.mxu0 %v13634_v31  ;;  %6132 = vmatprep.subr.bf16.mxu1 %v13635_v27  ;;  %v6269_v5 = vld [vmem:[#allocation14 + $0x128] sm:$0xff]  ;;  %v12457_v31 = vcombine.low %v6256_v6, %v6260_v49  ;;  %v12461_v27 = vcombine.low %v6257_v21, %v6261_v11  ;;  %v12526_v49 = vcombine.high %v6304_v51, %v6308_v34 }
 0x5e5   :  { %v6305_v6 = vld [vmem:[#allocation14 + $0x248] sm:$0xff]  ;;  %v12528_v11 = vcombine.low %v6304_v51, %v6308_v34 }
 0x5e6   :  { %v6309_v21 = vld [vmem:[#allocation14 + $0x268] sm:$0xff] }
 0x5e7   :  { %6092 = vmatpush1.bf16.msra.mxu0 %v13636_v17  ;;  %6133 = vmatpush1.bf16.msra.mxu1 %v13637_v62  ;;  %v12463_v17 = vcombine.high %v6264_v59, %v6268_v8  ;;  %v12466_v62 = vcombine.high %v6265_v20, %v6269_v5  ;;  %13662 = vst [vmem:[#allocation122_spill] sm:$0xff] %v12528_v11  ;;  %v6329_v51 = vld [vmem:[#allocation14 + $0x308] sm:$0xff] }
 0x5e8   :  { %6093 = vmatprep.subr.bf16.mxu0 %v13638_v7  ;;  %6134 = vmatprep.subr.bf16.mxu1 %v13639_v42  ;;  %v6272_v7 = vld [vmem:[#allocation14 + $0x140] sm:$0xff] }
 0x5e9   :  { %v6276_v42 = vld [vmem:[#allocation14 + $0x160] sm:$0xff] }
 0x5eb   :  { %6094 = vmatpush1.bf16.msra.mxu0 %v13640_v1  ;;  %6135 = vmatpush1.bf16.msra.mxu1 %v13641_v10  ;;  %v6273_v1 = vld [vmem:[#allocation14 + $0x148] sm:$0xff] }
 0x5ec   :  { %6095 = vmatprep.subr.bf16.mxu0 %v13642_v16  ;;  %6136 = vmatprep.subr.bf16.mxu1 %v13643_v32  ;;  %v6277_v10 = vld [vmem:[#allocation14 + $0x168] sm:$0xff]  ;;  %v12469_v16 = vcombine.low %v6264_v59, %v6268_v8  ;;  %v12473_v32 = vcombine.low %v6265_v20, %v6269_v5  ;;  %v12530_v59 = vcombine.low %v6305_v6, %v6309_v21  ;;  %v6312_v20 = vld [vmem:[#allocation14 + $0x280] sm:$0xff] }
 0x5ed   :  { %v12532_v8 = vcombine.high %v6305_v6, %v6309_v21  ;;  %v6316_v5 = vld [vmem:[#allocation14 + $0x2a0] sm:$0xff]  ;;  %v6333_v6 = vld [vmem:[#allocation14 + $0x328] sm:$0xff] }
 0x5ee   :  { %13663 = vst [vmem:[#allocation123_spill] sm:$0xff] %v12530_v59 }
 0x5ef   :  { %6096 = vmatpush1.bf16.msra.mxu0 %v13644_v0  ;;  %6137 = vmatpush1.bf16.msra.mxu1 %v13645_v45  ;;  %v12475_v0 = vcombine.high %v6272_v7, %v6276_v42  ;;  %v12478_v45 = vcombine.high %v6273_v1, %v6277_v10  ;;  %13664 = vst [vmem:[#allocation124_spill] sm:$0xff] %v12532_v8 }
 0x5f0   :  { %6097 = vmatprep.subr.bf16.mxu0 %v13646_v25  ;;  %6138 = vmatprep.subr.bf16.mxu1 %v13647_v30  ;;  %v12481_v25 = vcombine.low %v6272_v7, %v6276_v42  ;;  %v12485_v30 = vcombine.low %v6273_v1, %v6277_v10  ;;  %v6313_v7 = vld [vmem:[#allocation14 + $0x288] sm:$0xff]  ;;  %v12538_v42 = vcombine.high %v6312_v20, %v6316_v5 }
 0x5f1   :  { %v6317_v1 = vld [vmem:[#allocation14 + $0x2a8] sm:$0xff]  ;;  %v12540_v10 = vcombine.low %v6312_v20, %v6316_v5  ;;  %v12566_v20 = vcombine.low %v6329_v51, %v6333_v6  ;;  %v12568_v5 = vcombine.high %v6329_v51, %v6333_v6  ;;  %v6344_v51 = vld [vmem:[#allocation14 + $0x380] sm:$0xff] }
 0x5f2   :  { %13665 = vst [vmem:[#allocation125_spill] sm:$0xff] %v12538_v42  ;;  %v6348_v6 = vld [vmem:[#allocation14 + $0x3a0] sm:$0xff] }
 0x5f3   :  { %6098 = vmatpush1.bf16.msra.mxu0 %v13648_v37  ;;  %6139 = vmatpush1.bf16.msra.mxu1 %v13649_v15  ;;  %v6280_v37 = vld [vmem:[#allocation14 + $0x180] sm:$0xff]  ;;  %13666 = vst [vmem:[#allocation25_spill] sm:$0xff] %v12540_v10  ;;  %13675 = vst [vmem:[#allocation49_spill] sm:$0xff] %v12566_v20 }
 0x5f4   :  { %6099 = vmatprep.subr.bf16.mxu0 %v13650_v12  ;;  %6140 = vmatprep.subr.bf16.mxu1 %v13651_v56  ;;  %v6284_v15 = vld [vmem:[#allocation14 + $0x1a0] sm:$0xff]  ;;  %v6281_v12 = vld [vmem:[#allocation14 + $0x188] sm:$0xff]  ;;  %13676 = vst [vmem:[#allocation51_spill] sm:$0xff] %v12568_v5 }
 0x5f5   :  { %v12490_v56 = vcombine.high %v6280_v37, %v6284_v15 }
 0x5f7   :  { %6100 = vmatpush1.bf16.msra.mxu0 %v13652_v33  ;;  %6141 = vmatpush1.bf16.msra.mxu1 %v13653_v4  ;;  %v6285_v33 = vld [vmem:[#allocation14 + $0x1a8] sm:$0xff]  ;;  %v12492_v4 = vcombine.low %v6280_v37, %v6284_v15  ;;  %v12542_v37 = vcombine.low %v6313_v7, %v6317_v1  ;;  %v12544_v15 = vcombine.high %v6313_v7, %v6317_v1  ;;  %v6336_v7 = vld [vmem:[#allocation14 + $0x340] sm:$0xff] }
 0x5f8   :  { %6101 = vmatprep.subr.bf16.mxu0 %v13654_v14  ;;  %6142 = vmatprep.subr.bf16.mxu1 %v13655_v36  ;;  %v12494_v14 = vcombine.low %v6281_v12, %v6285_v33  ;;  %v12496_v36 = vcombine.high %v6281_v12, %v6285_v33  ;;  %v6320_v12 = vld [vmem:[#allocation14 + $0x2c0] sm:$0xff] }
 0x5f9   :  { %13667 = vst [vmem:[#allocation26_spill] sm:$0xff] %v12542_v37  ;;  %13668 = vst [vmem:[#allocation58_spill] sm:$0xff] %v12544_v15  ;;  %v6324_v33 = vld [vmem:[#allocation14 + $0x2e0] sm:$0xff] }
 0x5fa   :  { %v6340_v1 = vld [vmem:[#allocation14 + $0x360] sm:$0xff] }
 0x5fb   :  { %6102 = vmatpush1.bf16.msra.mxu0 %v13656_v41  ;;  %6143 = vmatpush1.bf16.msra.mxu1 %v13657_v22  ;;  %v6288_v41 = vld [vmem:[#allocation14 + $0x1c0] sm:$0xff] }
 0x5fc   :  { %6103 = vmatprep.subr.bf16.mxu0 %v13658_v35  ;;  %6144 = vmatprep.subr.bf16.mxu1 %v13659_v55  ;;  %v6292_v22 = vld [vmem:[#allocation14 + $0x1e0] sm:$0xff]  ;;  %v6289_v35 = vld [vmem:[#allocation14 + $0x1c8] sm:$0xff] }
 0x5fd   :  { %v12502_v55 = vcombine.high %v6288_v41, %v6292_v22 }
 0x5ff   :  { %6104 = vmatpush1.bf16.msra.mxu0 %v12221_v3  ;;  %6145 = vmatpush1.bf16.msra.mxu1 %v12223_v53  ;;  %v6232_v3 = vld [vmem:[#allocation14] sm:$0xff] }
 0x600   :  { %6105 = vmatprep.subr.bf16.mxu0 %v12227_v44  ;;  %6146 = vmatprep.subr.bf16.mxu1 %v13660_v38  ;;  %v6236_v53 = vld [vmem:[#allocation14 + $0x20] sm:$0xff]  ;;  %v6233_v44 = vld [vmem:[#allocation14 + $0x8] sm:$0xff] }
 0x601   :  { %v6293_v38 = vld [vmem:[#allocation14 + $0x1e8] sm:$0xff] }
 0x603   :  { %6106 = vmatpush1.bf16.msra.mxu0 %v13661_v39  ;;  %6147 = vmatpush1.bf16.msra.mxu1 %v12235_v60  ;;  %v12418_v60 = vcombine.high %v6232_v3, %v6236_v53  ;;  %v12504_v39 = vcombine.low %v6288_v41, %v6292_v22  ;;  %v6321_v41 = vld [vmem:[#allocation14 + $0x2c8] sm:$0xff]  ;;  %v12550_v22 = vcombine.high %v6320_v12, %v6324_v33 }
 0x604   :  { %6107 = vmatprep.subr.bf16.mxu0 %v12239_v57  ;;  %6148 = vmatprep.subr.bf16.mxu1 %v12241_v63  ;;  %v6237_v57 = vld [vmem:[#allocation14 + $0x28] sm:$0xff]  ;;  %v12420_v63 = vcombine.low %v6232_v3, %v6236_v53  ;;  %v12506_v3 = vcombine.low %v6289_v35, %v6293_v38  ;;  %v12508_v53 = vcombine.high %v6289_v35, %v6293_v38 }
 0x605   :  { %13669 = vst [vmem:[#allocation59_spill] sm:$0xff] %v12550_v22  ;;  %v6325_v35 = vld [vmem:[#allocation14 + $0x2e8] sm:$0xff]  ;;  %v12552_v38 = vcombine.low %v6320_v12, %v6324_v33  ;;  %v12574_v33 = vcombine.high %v6336_v7, %v6340_v1 }
 0x606   :  { %v6337_v12 = vld [vmem:[#allocation14 + $0x348] sm:$0xff] }
 0x607   :  { %6108 = vmatpush1.bf16.msra.mxu0 %v12245_v50  ;;  %6149 = vmatpush1.bf16.msra.mxu1 %v12247_v48  ;;  %v12422_v50 = vcombine.low %v6233_v44, %v6237_v57  ;;  %v12424_v48 = vcombine.high %v6233_v44, %v6237_v57  ;;  %v6296_v44 = vld [vmem:[#allocation14 + $0x200] sm:$0xff]  ;;  %13670 = vst [vmem:[#allocation44_spill] sm:$0xff] %v12552_v38  ;;  %13677 = vst [vmem:[#allocation52_spill] sm:$0xff] %v12574_v33 }
 0x608   :  { %6109 = vmatprep.subr.bf16.mxu0 %v12251_v43  ;;  %6150 = vmatprep.subr.bf16.mxu1 %v12253_v28  ;;  %v6240_v43 = vld [vmem:[#allocation14 + $0x40] sm:$0xff]  ;;  %v6241_v28 = vld [vmem:[#allocation14 + $0x48] sm:$0xff] }
 0x609   :  { %v6300_v57 = vld [vmem:[#allocation14 + $0x220] sm:$0xff] }
 0x60b   :  { %6110 = vmatpush1.bf16.msra.mxu0 %v12257_v40  ;;  %6151 = vmatpush1.bf16.msra.mxu1 %v12259_v52  ;;  %v6244_v40 = vld [vmem:[#allocation14 + $0x60] sm:$0xff] }
 0x60c   :  { %7007 = vmatprep.subr.bf16.mxu0 %v12418_v60  ;;  %v12427_v52 = vcombine.high %v6240_v43, %v6244_v40  ;;  %7048 = vmatprep.subr.bf16.mxu1 %v12424_v48  ;;  %v12431_v24 = vcombine.low %v6240_v43, %v6244_v40  ;;  %v6297_v43 = vld [vmem:[#allocation14 + $0x208] sm:$0xff]  ;;  %v12514_v40 = vcombine.high %v6296_v44, %v6300_v57 }
 0x60e   :  { %6112 = vmatmul.mubr.bf16.vlgmr.msra.gmra.mrb[68].mxu0 %v12341_v29  ;;  %6153 = vmatmul.mubr.bf16.vlgmr.msra.gmra.mrb[68].mxu1 %v12341_v29  ;;  %v6245_v29 = vld [vmem:[#allocation14 + $0x68] sm:$0xff] }
 0x60f   :  { %7008 = vmatpush1.bf16.msra.mxu0 %v12420_v63  ;;  %v12433_v9 = vcombine.high %v6241_v28, %v6245_v29  ;;  %7049 = vmatpush1.bf16.msra.mxu1 %v12422_v50  ;;  %v12437_v47 = vcombine.low %v6241_v28, %v6245_v29  ;;  %v6301_v28 = vld [vmem:[#allocation14 + $0x228] sm:$0xff]  ;;  %v12516_v29 = vcombine.low %v6296_v44, %v6300_v57 }
 0x610   :  { %7009 = vmatprep.subr.bf16.mxu0 %v12427_v52  ;;  %v12518_v58 = vcombine.low %v6297_v43, %v6301_v28  ;;  %v12520_v2 = vcombine.high %v6297_v43, %v6301_v28  ;;  %v12554_v44 = vcombine.low %v6321_v41, %v6325_v35  ;;  %v12556_v57 = vcombine.high %v6321_v41, %v6325_v35  ;;  %v6328_v43 = vld [vmem:[#allocation14 + $0x300] sm:$0xff]  ;;  %v6341_v41 = vld [vmem:[#allocation14 + $0x368] sm:$0xff] }
 0x611   :  { %7050 = vmatprep.subr.bf16.mxu1 %v12433_v9  ;;  %v6332_v28 = vld [vmem:[#allocation14 + $0x320] sm:$0xff]  ;;  %v12576_v35 = vcombine.low %v6336_v7, %v6340_v1  ;;  %v12588_v7 = vcombine.low %v6344_v51, %v6348_v6 }
 0x612   :  { %13671 = vst [vmem:[#allocation41_spill] sm:$0xff] %v12554_v44  ;;  %13672 = vst [vmem:[#allocation46_spill] sm:$0xff] %v12556_v57  ;;  %v12562_v34 = vcombine.high %v6328_v43, %v6332_v28  ;;  %v12564_v21 = vcombine.low %v6328_v43, %v6332_v28  ;;  %v12578_v43 = vcombine.low %v6337_v12, %v6341_v41 }
 0x613   :  { %7010 = vmatpush1.bf16.msra.mxu0 %v12431_v24  ;;  %7051 = vmatpush1.bf16.msra.mxu1 %v12437_v47  ;;  %13678 = vst [vmem:[#allocation56_spill] sm:$0xff] %v12576_v35  ;;  %v12580_v28 = vcombine.high %v6337_v12, %v6341_v41  ;;  %13682 = vst [vmem:[#allocation62_spill] sm:$0xff] %v12588_v7  ;;  %v6352_v41 = vld [vmem:[#allocation14 + $0x3c0] sm:$0xff] }
 0x614   :  { %7011 = vmatprep.subr.bf16.mxu0 %v12439_v26  ;;  %7052 = vmatprep.subr.bf16.mxu1 %v12442_v61  ;;  %13673 = vst [vmem:[#allocation45_spill] sm:$0xff] %v12562_v34  ;;  %13674 = vst [vmem:[#allocation50_spill] sm:$0xff] %v12564_v21 }
 0x615   :  { %13679 = vst [vmem:[#allocation57_spill] sm:$0xff] %v12578_v43  ;;  %13680 = vst [vmem:[#allocation55_spill] sm:$0xff] %v12580_v28 }
 0x617   :  { %7012 = vmatpush1.bf16.msra.mxu0 %v12445_v54  ;;  %7053 = vmatpush1.bf16.msra.mxu1 %v12449_v23 }
 0x618   :  { %7013 = vmatprep.subr.bf16.mxu0 %v12451_v13  ;;  %7054 = vmatprep.subr.bf16.mxu1 %v12454_v18 }
 0x61b   :  { %7014 = vmatpush1.bf16.msra.mxu0 %v12457_v31  ;;  %7055 = vmatpush1.bf16.msra.mxu1 %v12461_v27 }
 0x61c   :  { %7015 = vmatprep.subr.bf16.mxu0 %v12463_v17  ;;  %7056 = vmatprep.subr.bf16.mxu1 %v12466_v62 }
 0x61f   :  { %7016 = vmatpush1.bf16.msra.mxu0 %v12469_v16  ;;  %7057 = vmatpush1.bf16.msra.mxu1 %v12473_v32 }
 0x620   :  { %7017 = vmatprep.subr.bf16.mxu0 %v12475_v0  ;;  %7058 = vmatprep.subr.bf16.mxu1 %v12478_v45 }
 0x623   :  { %7018 = vmatpush1.bf16.msra.mxu0 %v12481_v25  ;;  %7059 = vmatpush1.bf16.msra.mxu1 %v12485_v30 }
 0x624   :  { %7019 = vmatprep.subr.bf16.mxu0 %v12490_v56  ;;  %7060 = vmatprep.subr.bf16.mxu1 %v12496_v36 }
 0x627   :  { %7020 = vmatpush1.bf16.msra.mxu0 %v12492_v4  ;;  %7061 = vmatpush1.bf16.msra.mxu1 %v12494_v14 }
 0x628   :  { %7021 = vmatprep.subr.bf16.mxu0 %v12502_v55  ;;  %7062 = vmatprep.subr.bf16.mxu1 %v12508_v53 }
 0x62b   :  { %7022 = vmatpush1.bf16.msra.mxu0 %v12504_v39  ;;  %7063 = vmatpush1.bf16.msra.mxu1 %v12506_v3 }
 0x62c   :  { %7023 = vmatprep.subr.bf16.mxu0 %v12514_v40  ;;  %7064 = vmatprep.subr.bf16.mxu1 %v12520_v2 }
 0x62f   :  { %7024 = vmatpush1.bf16.msra.mxu0 %v12516_v29  ;;  %7065 = vmatpush1.bf16.msra.mxu1 %v12518_v58 }
 0x630   :  { %7025 = vmatprep.subr.bf16.mxu0 %v12526_v49  ;;  %7066 = vmatprep.subr.bf16.mxu1 %v12532_v8 }
 0x633   :  { %7026 = vmatpush1.bf16.msra.mxu0 %v12528_v11  ;;  %7067 = vmatpush1.bf16.msra.mxu1 %v12530_v59 }
 0x634   :  { %7027 = vmatprep.subr.bf16.mxu0 %v12538_v42  ;;  %7068 = vmatprep.subr.bf16.mxu1 %v12544_v15 }
 0x637   :  { %7028 = vmatpush1.bf16.msra.mxu0 %v12540_v10  ;;  %7069 = vmatpush1.bf16.msra.mxu1 %v12542_v37 }
 0x638   :  { %7029 = vmatprep.subr.bf16.mxu0 %v12550_v22  ;;  %7070 = vmatprep.subr.bf16.mxu1 %v12556_v57 }
 0x63b   :  { %7030 = vmatpush1.bf16.msra.mxu0 %v12552_v38  ;;  %7071 = vmatpush1.bf16.msra.mxu1 %v12554_v44 }
 0x63c   :  { %7031 = vmatprep.subr.bf16.mxu0 %v12562_v34  ;;  %7072 = vmatprep.subr.bf16.mxu1 %v12568_v5  ;;  %v6349_v5 = vld [vmem:[#allocation14 + $0x3a8] sm:$0xff] }
 0x63f   :  { %7032 = vmatpush1.bf16.msra.mxu0 %v12564_v21  ;;  %7073 = vmatpush1.bf16.msra.mxu1 %v12566_v20  ;;  %v6345_v21 = vld [vmem:[#allocation14 + $0x388] sm:$0xff]  ;;  %v12586_v20 = vcombine.high %v6344_v51, %v6348_v6 }
 0x640   :  { %7033 = vmatprep.subr.bf16.mxu0 %v12574_v33  ;;  %7074 = vmatprep.subr.bf16.mxu1 %v12580_v28  ;;  %v12590_v1 = vcombine.low %v6345_v21, %v6349_v5  ;;  %v12592_v12 = vcombine.high %v6345_v21, %v6349_v5  ;;  %v6353_v28 = vld [vmem:[#allocation14 + $0x3c8] sm:$0xff]  ;;  %v6234_v5 = vld [vmem:[#allocation14 + $0x10] sm:$0xff] }
 0x641   :  { %13681 = vst [vmem:[#allocation60_spill] sm:$0xff] %v12586_v20  ;;  %v6357_v33 = vld [vmem:[#allocation14 + $0x3e8] sm:$0xff] }
 0x642   :  { %13683 = vst [vmem:[#allocation63_spill] sm:$0xff] %v12590_v1  ;;  %13684 = vst [vmem:[#allocation61_spill] sm:$0xff] %v12592_v12  ;;  %v12602_v6 = vcombine.low %v6353_v28, %v6357_v33  ;;  %v12604_v21 = vcombine.high %v6353_v28, %v6357_v33  ;;  %v13691_v28 = vld [vmem:[#allocation29_spill] sm:$0xff] }
 0x643   :  { %7034 = vmatpush1.bf16.msra.mxu0 %v12576_v35  ;;  %7075 = vmatpush1.bf16.msra.mxu1 %v12578_v43  ;;  %v6356_v35 = vld [vmem:[#allocation14 + $0x3e0] sm:$0xff] }
 0x644   :  { %7035 = vmatprep.subr.bf16.mxu0 %v12586_v20  ;;  %7076 = vmatprep.subr.bf16.mxu1 %v12592_v12  ;;  %v12598_v43 = vcombine.high %v6352_v41, %v6356_v35  ;;  %v12600_v51 = vcombine.low %v6352_v41, %v6356_v35  ;;  %13687 = vst [vmem:[#allocation69_spill] sm:$0xff] %v12602_v6  ;;  %13688 = vst [vmem:[#allocation67_spill] sm:$0xff] %v12604_v21  ;;  %v6235_v12 = vld [vmem:[#allocation14 + $0x18] sm:$0xff] }
 0x645   :  { %v6239_v20 = vld [vmem:[#allocation14 + $0x38] sm:$0xff] }
 0x646   :  { %13685 = vst [vmem:[#allocation64_spill] sm:$0xff] %v12598_v43  ;;  %13686 = vst [vmem:[#allocation68_spill] sm:$0xff] %v12600_v51  ;;  %v12614_v41 = vcombine.low %v6235_v12, %v6239_v20  ;;  %v12616_v33 = vcombine.high %v6235_v12, %v6239_v20 }
 0x647   :  { %7036 = vmatpush1.bf16.msra.mxu0 %v12588_v7  ;;  %7077 = vmatpush1.bf16.msra.mxu1 %v12590_v1  ;;  %v6238_v7 = vld [vmem:[#allocation14 + $0x30] sm:$0xff] }
 0x648   :  { %7037 = vmatprep.subr.bf16.mxu0 %v12598_v43  ;;  %7078 = vmatprep.subr.bf16.mxu1 %v12604_v21  ;;  %v12610_v1 = vcombine.high %v6234_v5, %v6238_v7  ;;  %v12612_v35 = vcombine.low %v6234_v5, %v6238_v7  ;;  %13690 = vst [vmem:[#allocation72_spill] sm:$0xff] %v12616_v33  ;;  %v13692_v21 = vld [vmem:[#allocation30_spill] sm:$0xff] }
 0x649   :  { %v6166_v43 = vunpack.c.l.bf16 %v13692_v21  ;;  %v6167_v38 = vunpack.c.h.bf16 %v13692_v21 }
 0x64a   :  { %13689 = vst [vmem:[#allocation70_spill] sm:$0xff] %v12610_v1 }
 0x64b   :  { %7038 = vmatpush1.bf16.msra.mxu0 %v12600_v51  ;;  %7079 = vmatpush1.bf16.msra.mxu1 %v12602_v6  ;;  %v6164_v51 = vunpack.c.l.bf16 %v13691_v28  ;;  %v6165_v6 = vunpack.c.h.bf16 %v13691_v28 }
 0x64c   :  { %7089 = vmatprep.subr.bf16.mxu0 %v12610_v1  ;;  %7130 = vmatprep.subr.bf16.mxu1 %v12616_v33 }
 0x6a1   :  { %v6031_v34 = vpop.f32.mrb[64].mxu0  ;;  %v6072_v44 = vpop.f32.mrb[64].mxu1 }
 0x6a2   :  { %v6168_v7 = vadd.f32 %v6164_v51, %v6031_v34  ;;  %v6170_v5 = vadd.f32 %v6166_v43, %v6072_v44  ;;  %v6033_v57 = vpop.f32.mrb[65].mxu0  ;;  %v6074_v22 = vpop.f32.mrb[65].mxu1 }
 0x6a3   :  { %v6169_v20 = vadd.f32 %v6165_v6, %v6033_v57  ;;  %v6171_v12 = vadd.f32 %v6167_v38, %v6074_v22  ;;  %v6035_v37 = vpop.f32.mrb[66].mxu0  ;;  %v6076_v1 = vpop.f32.mrb[66].mxu1 }
 0x6a4   :  { %v6184_v10 = vmul.f32 0.5, %v6168_v7  ;;  %v6036_v33 = vpop.f32.mrb[67].mxu0  ;;  %v6077_v15 = vpop.f32.mrb[67].mxu1 }
 0x6a5   :  { %v6188_v42 = vmul.f32 0.5, %v6169_v20  ;;  %v6193_v59 = vmul.f32 0.5, %v6171_v12 }
 0x6a6   :  { %10730 = vtanh.f32 %v6184_v10 }
 0x6a7   :  { %10732 = vtanh.f32 %v6188_v42 }
 0x6a8   :  { %10734 = vtanh.f32 %v6170_v5 }
 0x6a9   :  { %10736 = vtanh.f32 %v6193_v59 }
 0x6b0   :  { %v10731_v11 = vpop.eup %10730 }
 0x6b1   :  { %v10733_v28 = vpop.eup %10732  ;;  %v6186_v8 = vmul.f32 0.5, %v10731_v11  ;;  %v13694_v11 = vld [vmem:[#allocation47_spill] sm:$0xff] }
 0x6b2   :  { %v6190_v21 = vmul.f32 0.5, %v10733_v28  ;;  %v10735_v34 = vpop.eup %10734  ;;  %v6175_v59 = vunpack.c.l.bf16 %v13694_v11 }
 0x6b3   :  { %v6187_v44 = vadd.f32 0.5, %v6186_v8  ;;  %v10737_v15 = vpop.eup %10736  ;;  %v13695_v8 = vld [vmem:[#allocation48_spill] sm:$0xff] }
 0x6b4   :  { %v6191_v43 = vadd.f32 0.5, %v6190_v21  ;;  %v6195_v10 = vmul.f32 0.5, %v10737_v15  ;;  %v6177_v6 = vunpack.c.l.bf16 %v13695_v8  ;;  %v6178_v5 = vunpack.c.h.bf16 %v13695_v8 }
 0x6b5   :  { %v6198_v57 = vmul.f32 %v10735_v34, %v6187_v44 }
 0x6b6   :  { %v6197_v37 = vmul.f32 %v6191_v43, %v12338_v19  ;;  %v6196_v42 = vadd.f32 0.5, %v6195_v10  ;;  %v6176_v19 = vunpack.c.h.bf16 %v13694_v11 }
 0x6b8   :  { %v12625_v22 = vadd.f32 %v6198_v57, %v6197_v37 }
 0x6ba   :  { %13693 = vst [vmem:[#allocation73_spill] sm:$0xff] %v12625_v22  ;;  %10738 = vtanh.f32 %v12625_v22 }
 0x6c4   :  { %v10739_v38 = vpop.eup %10738 }
 0x6c5   :  { %v6201_v1 = vmul.f32 %v10739_v38, %v6196_v42 }
 0x6c7   :  { %v12628_v51 = vpack.c.bf16 %v6201_v1, %v6201_v1 }
 0x6c9   :  { %6228 = vst [vmem:[#allocation15 + $0x10] sm:$0xf] %v12628_v51 }
 0x6e1   :  { %v6113_v33 = vpop.f32.mrb[68].mxu0  ;;  %v6154_v7 = vpop.f32.mrb[68].mxu1 }
 0x6e2   :  { %v6179_v20 = vadd.f32 %v6175_v59, %v6113_v33  ;;  %v6181_v12 = vadd.f32 %v6177_v6, %v6154_v7  ;;  %v6115_v28 = vpop.f32.mrb[69].mxu0  ;;  %v6156_v21 = vpop.f32.mrb[69].mxu1 }
 0x6e3   :  { %v6180_v44 = vadd.f32 %v6176_v19, %v6115_v28  ;;  %v6182_v34 = vadd.f32 %v6178_v5, %v6156_v21  ;;  %v6117_v43 = vpop.f32.mrb[70].mxu0  ;;  %v6158_v57 = vpop.f32.mrb[70].mxu1 }
 0x6e4   :  { %v6203_v37 = vmul.f32 0.5, %v6179_v20  ;;  %v6118_v15 = vpop.f32.mrb[71].mxu0  ;;  %v6159_v10 = vpop.f32.mrb[71].mxu1  ;;  %v6246_v43 = vld [vmem:[#allocation14 + $0x70] sm:$0xff]  ;;  %v6243_v57 = vld [vmem:[#allocation14 + $0x58] sm:$0xff] }
 0x6e5   :  { %v6207_v42 = vmul.f32 0.5, %v6180_v44  ;;  %v6212_v38 = vmul.f32 0.5, %v6182_v34  ;;  %v6242_v34 = vld [vmem:[#allocation14 + $0x50] sm:$0xff] }
 0x6e6   :  { %10740 = vtanh.f32 %v6203_v37  ;;  %v6247_v37 = vld [vmem:[#allocation14 + $0x78] sm:$0xff]  ;;  %v12639_v10 = vcombine.high %v6242_v34, %v6246_v43 }
 0x6e7   :  { %10742 = vtanh.f32 %v6207_v42  ;;  %v6254_v42 = vld [vmem:[#allocation14 + $0xb0] sm:$0xff] }
 0x6e8   :  { %10744 = vtanh.f32 %v6181_v12 }
 0x6e9   :  { %10746 = vtanh.f32 %v6212_v38  ;;  %v6251_v38 = vld [vmem:[#allocation14 + $0x98] sm:$0xff] }
 0x6f0   :  { %v10741_v1 = vpop.eup %10740 }
 0x6f1   :  { %v10743_v11 = vpop.eup %10742  ;;  %v6205_v22 = vmul.f32 0.5, %v10741_v1  ;;  %v6255_v1 = vld [vmem:[#allocation14 + $0xb8] sm:$0xff] }
 0x6f2   :  { %v6209_v8 = vmul.f32 0.5, %v10743_v11  ;;  %v10745_v6 = vpop.eup %10744  ;;  %v12647_v11 = vcombine.low %v6242_v34, %v6246_v43  ;;  %v6266_v34 = vld [vmem:[#allocation14 + $0x110] sm:$0xff] }
 0x6f3   :  { %v6206_v59 = vadd.f32 0.5, %v6205_v22  ;;  %v10747_v20 = vpop.eup %10746  ;;  %v6250_v22 = vld [vmem:[#allocation14 + $0x90] sm:$0xff] }
 0x6f4   :  { %v6210_v33 = vadd.f32 0.5, %v6209_v8  ;;  %v6214_v28 = vmul.f32 0.5, %v10747_v20  ;;  %v12649_v8 = vcombine.low %v6243_v57, %v6247_v37  ;;  %v6263_v20 = vld [vmem:[#allocation14 + $0xf8] sm:$0xff]  ;;  %v6270_v43 = vld [vmem:[#allocation14 + $0x130] sm:$0xff] }
 0x6f5   :  { %v6217_v7 = vmul.f32 %v10745_v6, %v6206_v59  ;;  %v12651_v59 = vcombine.high %v6250_v22, %v6254_v42  ;;  %v12653_v6 = vcombine.high %v6251_v38, %v6255_v1 }
 0x6f6   :  { %v6216_v19 = vmul.f32 %v6210_v33, %v12349_v46  ;;  %v6215_v21 = vadd.f32 0.5, %v6214_v28  ;;  %v12641_v46 = vcombine.high %v6243_v57, %v6247_v37  ;;  %13696 = vst [vmem:[#allocation71_spill] sm:$0xff] %v12649_v8  ;;  %v6258_v33 = vld [vmem:[#allocation14 + $0xd0] sm:$0xff]  ;;  %v12659_v28 = vcombine.low %v6250_v22, %v6254_v42  ;;  %v6267_v57 = vld [vmem:[#allocation14 + $0x118] sm:$0xff] }
 0x6f7   :  { %13697 = vst [vmem:[#allocation74_spill] sm:$0xff] %v12651_v59  ;;  %13698 = vst [vmem:[#allocation76_spill] sm:$0xff] %v12653_v6  ;;  %v6271_v37 = vld [vmem:[#allocation14 + $0x138] sm:$0xff]  ;;  %v12677_v42 = vcombine.high %v6266_v34, %v6270_v43 }
 0x6f8   :  { %v12636_v5 = vadd.f32 %v6217_v7, %v6216_v19  ;;  %v6262_v7 = vld [vmem:[#allocation14 + $0xf0] sm:$0xff]  ;;  %v6259_v19 = vld [vmem:[#allocation14 + $0xd8] sm:$0xff]  ;;  %13699 = vst [vmem:[#allocation77_spill] sm:$0xff] %v12659_v28 }
 0x6f9   :  { %v12673_v22 = vcombine.low %v6259_v19, %v6263_v20  ;;  %13705 = vst [vmem:[#allocation23_spill] sm:$0xff] %v12677_v42 }
 0x6fa   :  { %10748 = vtanh.f32 %v12636_v5 }
 0x6fb   :  { %13704 = vst [vmem:[#allocation28_spill] sm:$0xff] %v12673_v22 }
 0x704   :  { %v10749_v12 = vpop.eup %10748 }
 0x705   :  { %v6220_v44 = vmul.f32 %v10749_v12, %v6215_v21  ;;  %v12661_v21 = vcombine.low %v6251_v38, %v6255_v1  ;;  %v12665_v12 = vcombine.high %v6258_v33, %v6262_v7  ;;  %v12679_v38 = vcombine.high %v6267_v57, %v6271_v37  ;;  %v6274_v1 = vld [vmem:[#allocation14 + $0x150] sm:$0xff] }
 0x707   :  { %v6223_v15 = vpack.c.bf16 %v6220_v44, %v6220_v44  ;;  %13700 = vst [vmem:[#allocation75_spill] sm:$0xff] %v12661_v21  ;;  %13701 = vst [vmem:[#allocation78_spill] sm:$0xff] %v12665_v12  ;;  %v12667_v44 = vcombine.high %v6259_v19, %v6263_v20 }
 0x708   :  { %13706 = vst [vmem:[#allocation53_spill] sm:$0xff] %v12679_v38 }
 0x709   :  { %6230 = vst [vmem:[#allocation16 + $0xc] sm:$0xf] %v6223_v15  ;;  %7039 = vmatprep.mubr.bf16.mxu0 %v6223_v15  ;;  %7080 = vmatprep.mubr.bf16.mxu1 %v6223_v15  ;;  %13702 = vst [vmem:[#allocation79_spill] sm:$0xff] %v12667_v44 }
 0x70a   :  { %7040 = vmatmul.mubr.bf16.vlgmr.msra.gmra.mrb[72].mxu0 %v12628_v51  ;;  %7081 = vmatmul.mubr.bf16.vlgmr.msra.gmra.mrb[72].mxu1 %v12628_v51 }
 0x70b   :  { %7090 = vmatpush1.bf16.msra.mxu0 %v12612_v35  ;;  %7131 = vmatpush1.bf16.msra.mxu1 %v12614_v41 }
 0x70c   :  { %7121 = vmatprep.mubr.bf16.mxu0 %v6223_v15  ;;  %7162 = vmatprep.mubr.bf16.mxu1 %v6223_v15  ;;  %v12671_v15 = vcombine.low %v6258_v33, %v6262_v7  ;;  %v12683_v33 = vcombine.low %v6266_v34, %v6270_v43  ;;  %v12685_v7 = vcombine.low %v6267_v57, %v6271_v37 }
 0x70d   :  { %7091 = vmatprep.subr.bf16.mxu0 %v12639_v10  ;;  %7132 = vmatprep.subr.bf16.mxu1 %v12641_v46 }
 0x70e   :  { %13703 = vst [vmem:[#allocation27_spill] sm:$0xff] %v12671_v15  ;;  %13707 = vst [vmem:[#allocation54_spill] sm:$0xff] %v12683_v33 }
 0x70f   :  { %7092 = vmatpush1.bf16.msra.mxu0 %v12647_v11  ;;  %7133 = vmatpush1.bf16.msra.mxu1 %v12649_v8  ;;  %v6279_v8 = vld [vmem:[#allocation14 + $0x178] sm:$0xff]  ;;  %13708 = vst [vmem:[#allocation24_spill] sm:$0xff] %v12685_v7 }
 0x710   :  { %7093 = vmatprep.subr.bf16.mxu0 %v12651_v59  ;;  %7134 = vmatprep.subr.bf16.mxu1 %v12653_v6  ;;  %v6278_v6 = vld [vmem:[#allocation14 + $0x170] sm:$0xff]  ;;  %v6275_v59 = vld [vmem:[#allocation14 + $0x158] sm:$0xff] }
 0x711   :  { %v12689_v19 = vcombine.high %v6274_v1, %v6278_v6  ;;  %v12691_v20 = vcombine.high %v6275_v59, %v6279_v8  ;;  %v12695_v34 = vcombine.low %v6274_v1, %v6278_v6  ;;  %v12697_v43 = vcombine.low %v6275_v59, %v6279_v8 }
 0x713   :  { %7094 = vmatpush1.bf16.msra.mxu0 %v12659_v28  ;;  %7135 = vmatpush1.bf16.msra.mxu1 %v12661_v21  ;;  %13709 = vst [vmem:[#allocation65_spill] sm:$0xff] %v12689_v19  ;;  %13710 = vst [vmem:[#allocation66_spill] sm:$0xff] %v12691_v20  ;;  %v6283_v21 = vld [vmem:[#allocation14 + $0x198] sm:$0xff] }
 0x714   :  { %7095 = vmatprep.subr.bf16.mxu0 %v12665_v12  ;;  %7136 = vmatprep.subr.bf16.mxu1 %v12667_v44  ;;  %v6282_v44 = vld [vmem:[#allocation14 + $0x190] sm:$0xff]  ;;  %v6287_v28 = vld [vmem:[#allocation14 + $0x1b8] sm:$0xff]  ;;  %13711 = vst [vmem:[#allocation80_spill] sm:$0xff] %v12695_v34  ;;  %13712 = vst [vmem:[#allocation81_spill] sm:$0xff] %v12697_v43 }
 0x715   :  { %v6286_v12 = vld [vmem:[#allocation14 + $0x1b0] sm:$0xff]  ;;  %v12703_v37 = vcombine.high %v6283_v21, %v6287_v28  ;;  %v12709_v8 = vcombine.low %v6283_v21, %v6287_v28 }
 0x716   :  { %v12701_v57 = vcombine.high %v6282_v44, %v6286_v12  ;;  %v12707_v6 = vcombine.low %v6282_v44, %v6286_v12 }
 0x717   :  { %7096 = vmatpush1.bf16.msra.mxu0 %v12671_v15  ;;  %7137 = vmatpush1.bf16.msra.mxu1 %v12673_v22  ;;  %13714 = vst [vmem:[#allocation83_spill] sm:$0xff] %v12703_v37  ;;  %v6291_v22 = vld [vmem:[#allocation14 + $0x1d8] sm:$0xff]  ;;  %13716 = vst [vmem:[#allocation85_spill] sm:$0xff] %v12709_v8 }
 0x718   :  { %7097 = vmatprep.subr.bf16.mxu0 %v12677_v42  ;;  %7138 = vmatprep.subr.bf16.mxu1 %v12679_v38  ;;  %13713 = vst [vmem:[#allocation82_spill] sm:$0xff] %v12701_v57  ;;  %v6290_v38 = vld [vmem:[#allocation14 + $0x1d0] sm:$0xff]  ;;  %v6295_v15 = vld [vmem:[#allocation14 + $0x1f8] sm:$0xff]  ;;  %13715 = vst [vmem:[#allocation84_spill] sm:$0xff] %v12707_v6 }
 0x719   :  { %v6294_v42 = vld [vmem:[#allocation14 + $0x1f0] sm:$0xff]  ;;  %v12715_v1 = vcombine.high %v6291_v22, %v6295_v15  ;;  %v12721_v28 = vcombine.low %v6291_v22, %v6295_v15 }
 0x71a   :  { %v12713_v59 = vcombine.high %v6290_v38, %v6294_v42  ;;  %v12719_v12 = vcombine.low %v6290_v38, %v6294_v42 }
 0x71b   :  { %7098 = vmatpush1.bf16.msra.mxu0 %v12683_v33  ;;  %7139 = vmatpush1.bf16.msra.mxu1 %v12685_v7  ;;  %13718 = vst [vmem:[#allocation87_spill] sm:$0xff] %v12715_v1  ;;  %v6299_v7 = vld [vmem:[#allocation14 + $0x218] sm:$0xff]  ;;  %13720 = vst [vmem:[#allocation89_spill] sm:$0xff] %v12721_v28 }
 0x71c   :  { %7099 = vmatprep.subr.bf16.mxu0 %v12689_v19  ;;  %7140 = vmatprep.subr.bf16.mxu1 %v12691_v20  ;;  %13717 = vst [vmem:[#allocation86_spill] sm:$0xff] %v12713_v59  ;;  %v6298_v20 = vld [vmem:[#allocation14 + $0x210] sm:$0xff]  ;;  %v6303_v33 = vld [vmem:[#allocation14 + $0x238] sm:$0xff]  ;;  %13719 = vst [vmem:[#allocation88_spill] sm:$0xff] %v12719_v12 }
 0x71d   :  { %v6302_v19 = vld [vmem:[#allocation14 + $0x230] sm:$0xff]  ;;  %v12727_v44 = vcombine.high %v6299_v7, %v6303_v33  ;;  %v12733_v15 = vcombine.low %v6299_v7, %v6303_v33 }
 0x71e   :  { %v12725_v21 = vcombine.high %v6298_v20, %v6302_v19  ;;  %v12731_v42 = vcombine.low %v6298_v20, %v6302_v19 }
 0x71f   :  { %7100 = vmatpush1.bf16.msra.mxu0 %v12695_v34  ;;  %7141 = vmatpush1.bf16.msra.mxu1 %v12697_v43  ;;  %13722 = vst [vmem:[#allocation91_spill] sm:$0xff] %v12727_v44  ;;  %v6307_v43 = vld [vmem:[#allocation14 + $0x258] sm:$0xff]  ;;  %13724 = vst [vmem:[#allocation93_spill] sm:$0xff] %v12733_v15 }
 0x720   :  { %7101 = vmatprep.subr.bf16.mxu0 %v12701_v57  ;;  %7142 = vmatprep.subr.bf16.mxu1 %v12703_v37  ;;  %13721 = vst [vmem:[#allocation90_spill] sm:$0xff] %v12725_v21  ;;  %v6306_v37 = vld [vmem:[#allocation14 + $0x250] sm:$0xff]  ;;  %v6311_v34 = vld [vmem:[#allocation14 + $0x278] sm:$0xff]  ;;  %13723 = vst [vmem:[#allocation92_spill] sm:$0xff] %v12731_v42 }
 0x721   :  { %v6310_v57 = vld [vmem:[#allocation14 + $0x270] sm:$0xff]  ;;  %v12739_v38 = vcombine.high %v6307_v43, %v6311_v34  ;;  %v12745_v33 = vcombine.low %v6307_v43, %v6311_v34 }
 0x722   :  { %v12737_v22 = vcombine.high %v6306_v37, %v6310_v57  ;;  %v12743_v19 = vcombine.low %v6306_v37, %v6310_v57 }
 0x723   :  { %7102 = vmatpush1.bf16.msra.mxu0 %v12707_v6  ;;  %7143 = vmatpush1.bf16.msra.mxu1 %v12709_v8  ;;  %13726 = vst [vmem:[#allocation95_spill] sm:$0xff] %v12739_v38  ;;  %v6315_v8 = vld [vmem:[#allocation14 + $0x298] sm:$0xff]  ;;  %13728 = vst [vmem:[#allocation97_spill] sm:$0xff] %v12745_v33 }
 0x724   :  { %7103 = vmatprep.subr.bf16.mxu0 %v12713_v59  ;;  %7144 = vmatprep.subr.bf16.mxu1 %v12715_v1  ;;  %13725 = vst [vmem:[#allocation94_spill] sm:$0xff] %v12737_v22  ;;  %v6314_v1 = vld [vmem:[#allocation14 + $0x290] sm:$0xff]  ;;  %v6319_v6 = vld [vmem:[#allocation14 + $0x2b8] sm:$0xff]  ;;  %13727 = vst [vmem:[#allocation96_spill] sm:$0xff] %v12743_v19 }
 0x725   :  { %v6318_v59 = vld [vmem:[#allocation14 + $0x2b0] sm:$0xff]  ;;  %v12751_v20 = vcombine.high %v6315_v8, %v6319_v6  ;;  %v12757_v34 = vcombine.low %v6315_v8, %v6319_v6 }
 0x726   :  { %v12749_v7 = vcombine.high %v6314_v1, %v6318_v59  ;;  %v12755_v57 = vcombine.low %v6314_v1, %v6318_v59 }
 0x727   :  { %7104 = vmatpush1.bf16.msra.mxu0 %v12719_v12  ;;  %7145 = vmatpush1.bf16.msra.mxu1 %v12721_v28  ;;  %13730 = vst [vmem:[#allocation99_spill] sm:$0xff] %v12751_v20  ;;  %v6323_v28 = vld [vmem:[#allocation14 + $0x2d8] sm:$0xff]  ;;  %13732 = vst [vmem:[#allocation101_spill] sm:$0xff] %v12757_v34 }
 0x728   :  { %7105 = vmatprep.subr.bf16.mxu0 %v12725_v21  ;;  %7146 = vmatprep.subr.bf16.mxu1 %v12727_v44  ;;  %13729 = vst [vmem:[#allocation98_spill] sm:$0xff] %v12749_v7  ;;  %v6322_v44 = vld [vmem:[#allocation14 + $0x2d0] sm:$0xff]  ;;  %v6327_v12 = vld [vmem:[#allocation14 + $0x2f8] sm:$0xff]  ;;  %13731 = vst [vmem:[#allocation100_spill] sm:$0xff] %v12755_v57 }
 0x729   :  { %v6326_v21 = vld [vmem:[#allocation14 + $0x2f0] sm:$0xff]  ;;  %v12763_v37 = vcombine.high %v6323_v28, %v6327_v12  ;;  %v12769_v6 = vcombine.low %v6323_v28, %v6327_v12 }
 0x72a   :  { %v12761_v43 = vcombine.high %v6322_v44, %v6326_v21  ;;  %v12767_v59 = vcombine.low %v6322_v44, %v6326_v21 }
 0x72b   :  { %7106 = vmatpush1.bf16.msra.mxu0 %v12731_v42  ;;  %7147 = vmatpush1.bf16.msra.mxu1 %v12733_v15  ;;  %13734 = vst [vmem:[#allocation103_spill] sm:$0xff] %v12763_v37  ;;  %v6331_v15 = vld [vmem:[#allocation14 + $0x318] sm:$0xff]  ;;  %13736 = vst [vmem:[#allocation105_spill] sm:$0xff] %v12769_v6 }
 0x72c   :  { %7107 = vmatprep.subr.bf16.mxu0 %v12737_v22  ;;  %7148 = vmatprep.subr.bf16.mxu1 %v12739_v38  ;;  %13733 = vst [vmem:[#allocation102_spill] sm:$0xff] %v12761_v43  ;;  %v6330_v38 = vld [vmem:[#allocation14 + $0x310] sm:$0xff]  ;;  %v6335_v42 = vld [vmem:[#allocation14 + $0x338] sm:$0xff]  ;;  %13735 = vst [vmem:[#allocation104_spill] sm:$0xff] %v12767_v59 }
 0x72d   :  { %v6334_v22 = vld [vmem:[#allocation14 + $0x330] sm:$0xff]  ;;  %v12775_v1 = vcombine.high %v6331_v15, %v6335_v42  ;;  %v12781_v12 = vcombine.low %v6331_v15, %v6335_v42 }
 0x72e   :  { %v12773_v8 = vcombine.high %v6330_v38, %v6334_v22  ;;  %v12779_v21 = vcombine.low %v6330_v38, %v6334_v22 }
 0x72f   :  { %7108 = vmatpush1.bf16.msra.mxu0 %v12743_v19  ;;  %7149 = vmatpush1.bf16.msra.mxu1 %v12745_v33  ;;  %13738 = vst [vmem:[#allocation107_spill] sm:$0xff] %v12775_v1  ;;  %v6339_v33 = vld [vmem:[#allocation14 + $0x358] sm:$0xff] }
 0x730   :  { %7109 = vmatprep.subr.bf16.mxu0 %v12749_v7  ;;  %7150 = vmatprep.subr.bf16.mxu1 %v12751_v20  ;;  %13737 = vst [vmem:[#allocation106_spill] sm:$0xff] %v12773_v8  ;;  %v6338_v20 = vld [vmem:[#allocation14 + $0x350] sm:$0xff]  ;;  %v6343_v19 = vld [vmem:[#allocation14 + $0x378] sm:$0xff] }
 0x731   :  { %v6342_v7 = vld [vmem:[#allocation14 + $0x370] sm:$0xff]  ;;  %v12787_v44 = vcombine.high %v6339_v33, %v6343_v19  ;;  %v12793_v42 = vcombine.low %v6339_v33, %v6343_v19 }
 0x732   :  { %v12785_v28 = vcombine.high %v6338_v20, %v6342_v7  ;;  %v12791_v22 = vcombine.low %v6338_v20, %v6342_v7 }
 0x733   :  { %7110 = vmatpush1.bf16.msra.mxu0 %v12755_v57  ;;  %7151 = vmatpush1.bf16.msra.mxu1 %v12757_v34  ;;  %13739 = vst [vmem:[#allocation108_spill] sm:$0xff] %v12787_v44  ;;  %v6347_v34 = vld [vmem:[#allocation14 + $0x398] sm:$0xff] }
 0x734   :  { %7111 = vmatprep.subr.bf16.mxu0 %v12761_v43  ;;  %7152 = vmatprep.subr.bf16.mxu1 %v12763_v37  ;;  %v6346_v37 = vld [vmem:[#allocation14 + $0x390] sm:$0xff]  ;;  %v6351_v57 = vld [vmem:[#allocation14 + $0x3b8] sm:$0xff]  ;;  %13740 = vst [vmem:[#allocation109_spill] sm:$0xff] %v12791_v22 }
 0x735   :  { %v6350_v43 = vld [vmem:[#allocation14 + $0x3b0] sm:$0xff]  ;;  %v12799_v38 = vcombine.high %v6347_v34, %v6351_v57  ;;  %v12805_v19 = vcombine.low %v6347_v34, %v6351_v57 }
 0x736   :  { %v12797_v15 = vcombine.high %v6346_v37, %v6350_v43  ;;  %v12803_v7 = vcombine.low %v6346_v37, %v6350_v43 }
 0x737   :  { %7112 = vmatpush1.bf16.msra.mxu0 %v12767_v59  ;;  %7153 = vmatpush1.bf16.msra.mxu1 %v12769_v6  ;;  %v6355_v6 = vld [vmem:[#allocation14 + $0x3d8] sm:$0xff] }
 0x738   :  { %7113 = vmatprep.subr.bf16.mxu0 %v12773_v8  ;;  %7154 = vmatprep.subr.bf16.mxu1 %v12775_v1  ;;  %v6354_v1 = vld [vmem:[#allocation14 + $0x3d0] sm:$0xff]  ;;  %v6359_v59 = vld [vmem:[#allocation14 + $0x3f8] sm:$0xff] }
 0x739   :  { %v6358_v8 = vld [vmem:[#allocation14 + $0x3f0] sm:$0xff]  ;;  %v12811_v20 = vcombine.high %v6355_v6, %v6359_v59 }
 0x73a   :  { %v12809_v33 = vcombine.high %v6354_v1, %v6358_v8 }
 0x73b   :  { %7114 = vmatpush1.bf16.msra.mxu0 %v12779_v21  ;;  %7155 = vmatpush1.bf16.msra.mxu1 %v12781_v12 }
 0x73c   :  { %7115 = vmatprep.subr.bf16.mxu0 %v12785_v28  ;;  %7156 = vmatprep.subr.bf16.mxu1 %v12787_v44  ;;  %v12815_v44 = vcombine.low %v6354_v1, %v6358_v8 }
 0x73f   :  { %7116 = vmatpush1.bf16.msra.mxu0 %v12791_v22  ;;  %7157 = vmatpush1.bf16.msra.mxu1 %v12793_v42  ;;  %v12817_v22 = vcombine.low %v6355_v6, %v6359_v59 }
 0x740   :  { %7117 = vmatprep.subr.bf16.mxu0 %v12797_v15  ;;  %7158 = vmatprep.subr.bf16.mxu1 %v12799_v38 }
 0x743   :  { %7118 = vmatpush1.bf16.msra.mxu0 %v12803_v7  ;;  %7159 = vmatpush1.bf16.msra.mxu1 %v12805_v19 }
 0x744   :  { %7119 = vmatprep.subr.bf16.mxu0 %v12809_v33  ;;  %7160 = vmatprep.subr.bf16.mxu1 %v12811_v20 }
 0x747   :  { %7120 = vmatpush1.bf16.msra.mxu0 %v12815_v44  ;;  %7161 = vmatpush1.bf16.msra.mxu1 %v12817_v22 }
 0x748   :  { %8017 = vmatprep.subr.bf16.mxu0 %v12418_v60  ;;  %8058 = vmatprep.subr.bf16.mxu1 %v12424_v48  ;;  %v13741_v60 = vld [vmem:[#allocation124_spill] sm:$0xff]  ;;  %v13744_v48 = vld [vmem:[#allocation125_spill] sm:$0xff] }
 0x74a   :  { %7122 = vmatmul.mubr.bf16.vlgmr.msra.gmra.mrb[76].mxu0 %v12628_v51  ;;  %7163 = vmatmul.mubr.bf16.vlgmr.msra.gmra.mrb[76].mxu1 %v12628_v51 }
 0x74b   :  { %8018 = vmatpush1.bf16.msra.mxu0 %v12420_v63  ;;  %8059 = vmatpush1.bf16.msra.mxu1 %v12422_v50  ;;  %v13742_v63 = vld [vmem:[#allocation122_spill] sm:$0xff]  ;;  %v13743_v50 = vld [vmem:[#allocation123_spill] sm:$0xff] }
 0x74c   :  { %8019 = vmatprep.subr.bf16.mxu0 %v12427_v52  ;;  %8060 = vmatprep.subr.bf16.mxu1 %v12433_v9  ;;  %v13745_v52 = vld [vmem:[#allocation58_spill] sm:$0xff] }
 0x74d   :  { %v13747_v9 = vld [vmem:[#allocation26_spill] sm:$0xff] }
 0x74f   :  { %8020 = vmatpush1.bf16.msra.mxu0 %v12431_v24  ;;  %8061 = vmatpush1.bf16.msra.mxu1 %v12437_v47  ;;  %v13746_v24 = vld [vmem:[#allocation25_spill] sm:$0xff]  ;;  %v13748_v47 = vld [vmem:[#allocation59_spill] sm:$0xff] }
 0x750   :  { %8021 = vmatprep.subr.bf16.mxu0 %v12439_v26  ;;  %8062 = vmatprep.subr.bf16.mxu1 %v12442_v61  ;;  %v13749_v26 = vld [vmem:[#allocation46_spill] sm:$0xff]  ;;  %v13750_v61 = vld [vmem:[#allocation44_spill] sm:$0xff] }
 0x753   :  { %8022 = vmatpush1.bf16.msra.mxu0 %v12445_v54  ;;  %8063 = vmatpush1.bf16.msra.mxu1 %v12449_v23  ;;  %v13751_v54 = vld [vmem:[#allocation41_spill] sm:$0xff] }
 0x754   :  { %8023 = vmatprep.subr.bf16.mxu0 %v12451_v13  ;;  %8064 = vmatprep.subr.bf16.mxu1 %v12454_v18  ;;  %v13752_v23 = vld [vmem:[#allocation45_spill] sm:$0xff]  ;;  %v13753_v13 = vld [vmem:[#allocation51_spill] sm:$0xff]  ;;  %v13754_v18 = vld [vmem:[#allocation50_spill] sm:$0xff] }
 0x757   :  { %8024 = vmatpush1.bf16.msra.mxu0 %v12457_v31  ;;  %8065 = vmatpush1.bf16.msra.mxu1 %v12461_v27  ;;  %v13755_v31 = vld [vmem:[#allocation49_spill] sm:$0xff]  ;;  %v13756_v27 = vld [vmem:[#allocation52_spill] sm:$0xff] }
 0x758   :  { %8025 = vmatprep.subr.bf16.mxu0 %v12463_v17  ;;  %8066 = vmatprep.subr.bf16.mxu1 %v12466_v62  ;;  %v13757_v17 = vld [vmem:[#allocation55_spill] sm:$0xff]  ;;  %v13758_v62 = vld [vmem:[#allocation56_spill] sm:$0xff] }
 0x75b   :  { %8026 = vmatpush1.bf16.msra.mxu0 %v12469_v16  ;;  %8067 = vmatpush1.bf16.msra.mxu1 %v12473_v32  ;;  %v13759_v16 = vld [vmem:[#allocation57_spill] sm:$0xff]  ;;  %v13760_v32 = vld [vmem:[#allocation60_spill] sm:$0xff] }
 0x75c   :  { %8027 = vmatprep.subr.bf16.mxu0 %v12475_v0  ;;  %8068 = vmatprep.subr.bf16.mxu1 %v12478_v45  ;;  %v13761_v0 = vld [vmem:[#allocation61_spill] sm:$0xff]  ;;  %v13762_v45 = vld [vmem:[#allocation62_spill] sm:$0xff] }
 0x75f   :  { %8028 = vmatpush1.bf16.msra.mxu0 %v12481_v25  ;;  %8069 = vmatpush1.bf16.msra.mxu1 %v12485_v30  ;;  %v13763_v25 = vld [vmem:[#allocation63_spill] sm:$0xff]  ;;  %v13764_v30 = vld [vmem:[#allocation64_spill] sm:$0xff] }
 0x760   :  { %8029 = vmatprep.subr.bf16.mxu0 %v12490_v56  ;;  %8070 = vmatprep.subr.bf16.mxu1 %v12496_v36  ;;  %v13765_v56 = vld [vmem:[#allocation67_spill] sm:$0xff]  ;;  %v13768_v36 = vld [vmem:[#allocation70_spill] sm:$0xff] }
 0x763   :  { %8030 = vmatpush1.bf16.msra.mxu0 %v12492_v4  ;;  %8071 = vmatpush1.bf16.msra.mxu1 %v12494_v14  ;;  %v13766_v4 = vld [vmem:[#allocation68_spill] sm:$0xff]  ;;  %v13767_v14 = vld [vmem:[#allocation69_spill] sm:$0xff] }
 0x764   :  { %8031 = vmatprep.subr.bf16.mxu0 %v12502_v55  ;;  %8072 = vmatprep.subr.bf16.mxu1 %v12508_v53  ;;  %v13769_v55 = vld [vmem:[#allocation72_spill] sm:$0xff] }
 0x765   :  { %v13771_v53 = vld [vmem:[#allocation32_spill] sm:$0xff] }
 0x767   :  { %8032 = vmatpush1.bf16.msra.mxu0 %v12504_v39  ;;  %8073 = vmatpush1.bf16.msra.mxu1 %v12506_v3  ;;  %v13770_v39 = vld [vmem:[#allocation31_spill] sm:$0xff] }
 0x768   :  { %8033 = vmatprep.subr.bf16.mxu0 %v12514_v40  ;;  %8074 = vmatprep.subr.bf16.mxu1 %v12520_v2  ;;  %v7174_v3 = vunpack.c.l.bf16 %v13770_v39  ;;  %v7176_v40 = vunpack.c.l.bf16 %v13771_v53  ;;  %v7175_v2 = vunpack.c.h.bf16 %v13770_v39 }
 0x76b   :  { %8034 = vmatpush1.bf16.msra.mxu0 %v12516_v29  ;;  %8075 = vmatpush1.bf16.msra.mxu1 %v12518_v58 }
 0x76c   :  { %8035 = vmatprep.subr.bf16.mxu0 %v12526_v49  ;;  %8076 = vmatprep.subr.bf16.mxu1 %v13741_v60  ;;  %v7177_v49 = vunpack.c.h.bf16 %v13771_v53 }
 0x76f   :  { %8036 = vmatpush1.bf16.msra.mxu0 %v13742_v63  ;;  %8077 = vmatpush1.bf16.msra.mxu1 %v13743_v50 }
 0x770   :  { %8037 = vmatprep.subr.bf16.mxu0 %v13744_v48  ;;  %8078 = vmatprep.subr.bf16.mxu1 %v13745_v52 }
 0x773   :  { %8038 = vmatpush1.bf16.msra.mxu0 %v13746_v24  ;;  %8079 = vmatpush1.bf16.msra.mxu1 %v13747_v9 }
 0x774   :  { %8039 = vmatprep.subr.bf16.mxu0 %v13748_v47  ;;  %8080 = vmatprep.subr.bf16.mxu1 %v13749_v26 }
 0x777   :  { %8040 = vmatpush1.bf16.msra.mxu0 %v13750_v61  ;;  %8081 = vmatpush1.bf16.msra.mxu1 %v13751_v54 }
 0x778   :  { %8041 = vmatprep.subr.bf16.mxu0 %v13752_v23  ;;  %8082 = vmatprep.subr.bf16.mxu1 %v13753_v13  ;;  %v13772_v13 = vld [vmem:[#allocation73_spill] sm:$0xff] }
 0x77b   :  { %8042 = vmatpush1.bf16.msra.mxu0 %v13754_v18  ;;  %8083 = vmatpush1.bf16.msra.mxu1 %v13755_v31 }
 0x77c   :  { %8043 = vmatprep.subr.bf16.mxu0 %v13756_v27  ;;  %8084 = vmatprep.subr.bf16.mxu1 %v13757_v17 }
 0x77f   :  { %8044 = vmatpush1.bf16.msra.mxu0 %v13758_v62  ;;  %8085 = vmatpush1.bf16.msra.mxu1 %v13759_v16 }
 0x780   :  { %8045 = vmatprep.subr.bf16.mxu0 %v13760_v32  ;;  %8086 = vmatprep.subr.bf16.mxu1 %v13761_v0 }
 0x783   :  { %8046 = vmatpush1.bf16.msra.mxu0 %v13762_v45  ;;  %8087 = vmatpush1.bf16.msra.mxu1 %v13763_v25  ;;  %v13773_v45 = vld [vmem:[#allocation42_spill] sm:$0xff] }
 0x784   :  { %8047 = vmatprep.subr.bf16.mxu0 %v13764_v30  ;;  %8088 = vmatprep.subr.bf16.mxu1 %v13765_v56  ;;  %v7185_v25 = vunpack.c.l.bf16 %v13773_v45  ;;  %v13774_v30 = vld [vmem:[#allocation43_spill] sm:$0xff] }
 0x785   :  { %v7187_v56 = vunpack.c.l.bf16 %v13774_v30 }
 0x787   :  { %8048 = vmatpush1.bf16.msra.mxu0 %v13766_v4  ;;  %8089 = vmatpush1.bf16.msra.mxu1 %v13767_v14 }
 0x788   :  { %8099 = vmatprep.subr.bf16.mxu0 %v13768_v36  ;;  %8140 = vmatprep.subr.bf16.mxu1 %v13769_v55  ;;  %v7186_v36 = vunpack.c.h.bf16 %v13773_v45  ;;  %v7188_v55 = vunpack.c.h.bf16 %v13774_v30  ;;  %v13788_v45 = vld [vmem:[#allocation65_spill] sm:$0xff]  ;;  %v13790_v30 = vld [vmem:[#allocation80_spill] sm:$0xff] }
 0x7dd   :  { %v7041_v29 = vpop.f32.mrb[72].mxu0  ;;  %v7082_v58 = vpop.f32.mrb[72].mxu1 }
 0x7de   :  { %v7178_v51 = vadd.f32 %v7174_v3, %v7041_v29  ;;  %v7180_v57 = vadd.f32 %v7176_v40, %v7082_v58  ;;  %v7043_v34 = vpop.f32.mrb[73].mxu0  ;;  %v7084_v43 = vpop.f32.mrb[73].mxu1 }
 0x7df   :  { %v7179_v37 = vadd.f32 %v7175_v2, %v7043_v34  ;;  %v7181_v59 = vadd.f32 %v7177_v49, %v7084_v43  ;;  %v7045_v6 = vpop.f32.mrb[74].mxu0  ;;  %v7086_v8 = vpop.f32.mrb[74].mxu1 }
 0x7e0   :  { %v7194_v1 = vmul.f32 0.5, %v7178_v51  ;;  %v7046_v60 = vpop.f32.mrb[75].mxu0  ;;  %v7087_v63 = vpop.f32.mrb[75].mxu1 }
 0x7e1   :  { %v7198_v50 = vmul.f32 0.5, %v7179_v37  ;;  %v7203_v48 = vmul.f32 0.5, %v7181_v59 }
 0x7e2   :  { %10750 = vtanh.f32 %v7194_v1 }
 0x7e3   :  { %10752 = vtanh.f32 %v7198_v50 }
 0x7e4   :  { %10754 = vtanh.f32 %v7180_v57 }
 0x7e5   :  { %10756 = vtanh.f32 %v7203_v48 }
 0x7ec   :  { %v10751_v52 = vpop.eup %10750 }
 0x7ed   :  { %v10753_v24 = vpop.eup %10752  ;;  %v7196_v9 = vmul.f32 0.5, %v10751_v52 }
 0x7ee   :  { %v7200_v47 = vmul.f32 0.5, %v10753_v24  ;;  %v10755_v61 = vpop.eup %10754 }
 0x7ef   :  { %v7197_v26 = vadd.f32 0.5, %v7196_v9  ;;  %v10757_v27 = vpop.eup %10756 }
 0x7f0   :  { %v7201_v54 = vadd.f32 0.5, %v7200_v47  ;;  %v7205_v17 = vmul.f32 0.5, %v10757_v27  ;;  %v13778_v27 = vld [vmem:[#allocation77_spill] sm:$0xff] }
 0x7f1   :  { %v7208_v23 = vmul.f32 %v10755_v61, %v7197_v26 }
 0x7f2   :  { %v7207_v18 = vmul.f32 %v7201_v54, %v13772_v13  ;;  %v7206_v62 = vadd.f32 0.5, %v7205_v17  ;;  %v13776_v13 = vld [vmem:[#allocation74_spill] sm:$0xff]  ;;  %v13779_v17 = vld [vmem:[#allocation75_spill] sm:$0xff] }
 0x7f4   :  { %v12896_v31 = vadd.f32 %v7208_v23, %v7207_v18  ;;  %v13777_v18 = vld [vmem:[#allocation76_spill] sm:$0xff] }
 0x7f6   :  { %10758 = vtanh.f32 %v12896_v31 }
 0x800   :  { %v10759_v16 = vpop.eup %10758 }
 0x801   :  { %v7211_v32 = vmul.f32 %v10759_v16, %v7206_v62  ;;  %v13782_v62 = vld [vmem:[#allocation27_spill] sm:$0xff]  ;;  %v13786_v16 = vld [vmem:[#allocation54_spill] sm:$0xff] }
 0x803   :  { %v12899_v0 = vpack.c.bf16 %v7211_v32, %v7211_v32  ;;  %v13787_v32 = vld [vmem:[#allocation24_spill] sm:$0xff] }
 0x805   :  { %7238 = vst [vmem:[#allocation15 + $0x14] sm:$0xf] %v12899_v0 }
 0x81d   :  { %v7123_v4 = vpop.f32.mrb[76].mxu0  ;;  %v7164_v14 = vpop.f32.mrb[76].mxu1 }
 0x81e   :  { %v7189_v39 = vadd.f32 %v7185_v25, %v7123_v4  ;;  %v7191_v3 = vadd.f32 %v7187_v56, %v7164_v14  ;;  %v7125_v53 = vpop.f32.mrb[77].mxu0  ;;  %v7166_v40 = vpop.f32.mrb[77].mxu1  ;;  %v13789_v25 = vld [vmem:[#allocation66_spill] sm:$0xff]  ;;  %v13791_v56 = vld [vmem:[#allocation81_spill] sm:$0xff]  ;;  %v13793_v14 = vld [vmem:[#allocation83_spill] sm:$0xff] }
 0x81f   :  { %v7190_v29 = vadd.f32 %v7186_v36, %v7125_v53  ;;  %v7192_v58 = vadd.f32 %v7188_v55, %v7166_v40  ;;  %v7127_v2 = vpop.f32.mrb[78].mxu0  ;;  %v7168_v49 = vpop.f32.mrb[78].mxu1  ;;  %v13792_v4 = vld [vmem:[#allocation82_spill] sm:$0xff]  ;;  %v13794_v36 = vld [vmem:[#allocation84_spill] sm:$0xff]  ;;  %v13795_v55 = vld [vmem:[#allocation85_spill] sm:$0xff] }
 0x820   :  { %v7213_v51 = vmul.f32 0.5, %v7189_v39  ;;  %v7128_v57 = vpop.f32.mrb[79].mxu0  ;;  %v7169_v34 = vpop.f32.mrb[79].mxu1  ;;  %v13796_v39 = vld [vmem:[#allocation86_spill] sm:$0xff]  ;;  %v13798_v53 = vld [vmem:[#allocation88_spill] sm:$0xff]  ;;  %v13799_v40 = vld [vmem:[#allocation89_spill] sm:$0xff] }
 0x821   :  { %v7217_v43 = vmul.f32 0.5, %v7190_v29  ;;  %v7222_v37 = vmul.f32 0.5, %v7192_v58  ;;  %v13800_v29 = vld [vmem:[#allocation90_spill] sm:$0xff]  ;;  %v13801_v58 = vld [vmem:[#allocation91_spill] sm:$0xff]  ;;  %v13802_v2 = vld [vmem:[#allocation92_spill] sm:$0xff] }
 0x822   :  { %10760 = vtanh.f32 %v7213_v51  ;;  %v13803_v49 = vld [vmem:[#allocation93_spill] sm:$0xff]  ;;  %v13804_v51 = vld [vmem:[#allocation94_spill] sm:$0xff]  ;;  %v13805_v57 = vld [vmem:[#allocation95_spill] sm:$0xff] }
 0x823   :  { %10762 = vtanh.f32 %v7217_v43  ;;  %v13806_v34 = vld [vmem:[#allocation96_spill] sm:$0xff]  ;;  %v13807_v43 = vld [vmem:[#allocation97_spill] sm:$0xff] }
 0x824   :  { %10764 = vtanh.f32 %v7191_v3  ;;  %v13797_v3 = vld [vmem:[#allocation87_spill] sm:$0xff] }
 0x825   :  { %10766 = vtanh.f32 %v7222_v37  ;;  %v13808_v37 = vld [vmem:[#allocation98_spill] sm:$0xff] }
 0x82c   :  { %v10761_v59 = vpop.eup %10760 }
 0x82d   :  { %v10763_v6 = vpop.eup %10762  ;;  %v7215_v8 = vmul.f32 0.5, %v10761_v59  ;;  %v13809_v59 = vld [vmem:[#allocation99_spill] sm:$0xff] }
 0x82e   :  { %v7219_v1 = vmul.f32 0.5, %v10763_v6  ;;  %v10765_v63 = vpop.eup %10764  ;;  %v13810_v6 = vld [vmem:[#allocation100_spill] sm:$0xff] }
 0x82f   :  { %v7216_v60 = vadd.f32 0.5, %v7215_v8  ;;  %v10767_v9 = vpop.eup %10766  ;;  %v13811_v8 = vld [vmem:[#allocation101_spill] sm:$0xff] }
 0x830   :  { %v7220_v50 = vadd.f32 0.5, %v7219_v1  ;;  %v7224_v47 = vmul.f32 0.5, %v10767_v9  ;;  %v13812_v1 = vld [vmem:[#allocation102_spill] sm:$0xff]  ;;  %v13818_v9 = vld [vmem:[#allocation108_spill] sm:$0xff] }
 0x831   :  { %v7227_v48 = vmul.f32 %v10765_v63, %v7216_v60  ;;  %v13813_v60 = vld [vmem:[#allocation103_spill] sm:$0xff]  ;;  %v13814_v63 = vld [vmem:[#allocation104_spill] sm:$0xff] }
 0x832   :  { %v7226_v52 = vmul.f32 %v7220_v50, %v12636_v5  ;;  %v7225_v26 = vadd.f32 0.5, %v7224_v47  ;;  %v13775_v5 = vld [vmem:[#allocation71_spill] sm:$0xff]  ;;  %v13815_v50 = vld [vmem:[#allocation105_spill] sm:$0xff] }
 0x833   :  { %v13819_v47 = vld [vmem:[#allocation109_spill] sm:$0xff] }
 0x834   :  { %v12907_v24 = vadd.f32 %v7227_v48, %v7226_v52  ;;  %v13816_v48 = vld [vmem:[#allocation106_spill] sm:$0xff]  ;;  %v13817_v52 = vld [vmem:[#allocation107_spill] sm:$0xff] }
 0x836   :  { %10768 = vtanh.f32 %v12907_v24 }
 0x840   :  { %v10769_v61 = vpop.eup %10768 }
 0x841   :  { %v7230_v54 = vmul.f32 %v10769_v61, %v7225_v26  ;;  %v8264_v26 = vld [vmem:[#allocation14 + $0x60] sm:$0xff]  ;;  %v8265_v61 = vld [vmem:[#allocation14 + $0x68] sm:$0xff] }
 0x843   :  { %v7233_v23 = vpack.c.bf16 %v7230_v54, %v7230_v54  ;;  %v8268_v54 = vld [vmem:[#allocation14 + $0x80] sm:$0xff] }
 0x845   :  { %7240 = vst [vmem:[#allocation16 + $0x8] sm:$0xf] %v7233_v23  ;;  %8049 = vmatprep.mubr.bf16.mxu0 %v7233_v23  ;;  %8090 = vmatprep.mubr.bf16.mxu1 %v7233_v23 }
 0x846   :  { %8050 = vmatmul.mubr.bf16.vlgmr.msra.gmra.mrb[80].mxu0 %v12899_v0  ;;  %8091 = vmatmul.mubr.bf16.vlgmr.msra.gmra.mrb[80].mxu1 %v12899_v0 }
 0x847   :  { %8100 = vmatpush1.bf16.msra.mxu0 %v12612_v35  ;;  %8141 = vmatpush1.bf16.msra.mxu1 %v12614_v41  ;;  %v13780_v35 = vld [vmem:[#allocation78_spill] sm:$0xff]  ;;  %v13781_v41 = vld [vmem:[#allocation79_spill] sm:$0xff] }
 0x848   :  { %8131 = vmatprep.mubr.bf16.mxu0 %v7233_v23  ;;  %8172 = vmatprep.mubr.bf16.mxu1 %v7233_v23  ;;  %v8272_v23 = vld [vmem:[#allocation14 + $0xa0] sm:$0xff] }
 0x849   :  { %8101 = vmatprep.subr.bf16.mxu0 %v12639_v10  ;;  %8142 = vmatprep.subr.bf16.mxu1 %v12641_v46  ;;  %v13783_v10 = vld [vmem:[#allocation28_spill] sm:$0xff]  ;;  %v13784_v46 = vld [vmem:[#allocation23_spill] sm:$0xff] }
 0x84b   :  { %8102 = vmatpush1.bf16.msra.mxu0 %v12647_v11  ;;  %8143 = vmatpush1.bf16.msra.mxu1 %v13775_v5  ;;  %v13785_v11 = vld [vmem:[#allocation53_spill] sm:$0xff] }
 0x84c   :  { %8103 = vmatprep.subr.bf16.mxu0 %v13776_v13  ;;  %8144 = vmatprep.subr.bf16.mxu1 %v13777_v18  ;;  %v10335_v13 = vcombine.high %v8268_v54, %v8272_v23  ;;  %v8269_v18 = vld [vmem:[#allocation14 + $0x88] sm:$0xff] }
 0x84f   :  { %8104 = vmatpush1.bf16.msra.mxu0 %v13778_v27  ;;  %8145 = vmatpush1.bf16.msra.mxu1 %v13779_v17  ;;  %v8273_v27 = vld [vmem:[#allocation14 + $0xa8] sm:$0xff] }
 0x850   :  { %8105 = vmatprep.subr.bf16.mxu0 %v13780_v35  ;;  %8146 = vmatprep.subr.bf16.mxu1 %v13781_v41  ;;  %v10337_v17 = vcombine.high %v8269_v18, %v8273_v27  ;;  %v8276_v35 = vld [vmem:[#allocation14 + $0xc0] sm:$0xff] }
 0x851   :  { %v8280_v41 = vld [vmem:[#allocation14 + $0xe0] sm:$0xff] }
 0x853   :  { %8106 = vmatpush1.bf16.msra.mxu0 %v13782_v62  ;;  %8147 = vmatpush1.bf16.msra.mxu1 %v13783_v10  ;;  %v8277_v62 = vld [vmem:[#allocation14 + $0xc8] sm:$0xff] }
 0x854   :  { %8107 = vmatprep.subr.bf16.mxu0 %v13784_v46  ;;  %8148 = vmatprep.subr.bf16.mxu1 %v13785_v11  ;;  %v8281_v10 = vld [vmem:[#allocation14 + $0xe8] sm:$0xff]  ;;  %v10334_v46 = vcombine.low %v8268_v54, %v8272_v23  ;;  %v10336_v11 = vcombine.low %v8269_v18, %v8273_v27  ;;  %v8336_v18 = vld [vmem:[#allocation14 + $0x2a0] sm:$0xff] }
 0x855   :  { %v8329_v54 = vld [vmem:[#allocation14 + $0x268] sm:$0xff] }
 0x856   :  { %v8333_v27 = vld [vmem:[#allocation14 + $0x288] sm:$0xff] }
 0x857   :  { %8108 = vmatpush1.bf16.msra.mxu0 %v13786_v16  ;;  %8149 = vmatpush1.bf16.msra.mxu1 %v13787_v32  ;;  %v10343_v16 = vcombine.high %v8276_v35, %v8280_v41  ;;  %v10345_v32 = vcombine.high %v8277_v62, %v8281_v10 }
 0x858   :  { %8109 = vmatprep.subr.bf16.mxu0 %v13788_v45  ;;  %8150 = vmatprep.subr.bf16.mxu1 %v13789_v25  ;;  %v8284_v45 = vld [vmem:[#allocation14 + $0x100] sm:$0xff] }
 0x859   :  { %v8288_v25 = vld [vmem:[#allocation14 + $0x120] sm:$0xff] }
 0x85b   :  { %8110 = vmatpush1.bf16.msra.mxu0 %v13790_v30  ;;  %8151 = vmatpush1.bf16.msra.mxu1 %v13791_v56  ;;  %v8285_v30 = vld [vmem:[#allocation14 + $0x108] sm:$0xff] }
 0x85c   :  { %8111 = vmatprep.subr.bf16.mxu0 %v13792_v4  ;;  %8152 = vmatprep.subr.bf16.mxu1 %v13793_v14  ;;  %v8289_v56 = vld [vmem:[#allocation14 + $0x128] sm:$0xff]  ;;  %v10342_v4 = vcombine.low %v8276_v35, %v8280_v41  ;;  %v10344_v14 = vcombine.low %v8277_v62, %v8281_v10 }
 0x85d   :  { %v8337_v35 = vld [vmem:[#allocation14 + $0x2a8] sm:$0xff] }
 0x85e   :  { %v10400_v62 = vcombine.low %v8333_v27, %v8337_v35  ;;  %v10401_v10 = vcombine.high %v8333_v27, %v8337_v35 }
 0x85f   :  { %8112 = vmatpush1.bf16.msra.mxu0 %v13794_v36  ;;  %8153 = vmatpush1.bf16.msra.mxu1 %v13795_v55  ;;  %v10351_v36 = vcombine.high %v8284_v45, %v8288_v25  ;;  %v10353_v55 = vcombine.high %v8285_v30, %v8289_v56 }
 0x860   :  { %8113 = vmatprep.subr.bf16.mxu0 %v13796_v39  ;;  %8154 = vmatprep.subr.bf16.mxu1 %v13797_v3  ;;  %v8292_v39 = vld [vmem:[#allocation14 + $0x140] sm:$0xff] }
 0x861   :  { %v8296_v3 = vld [vmem:[#allocation14 + $0x160] sm:$0xff] }
 0x863   :  { %8114 = vmatpush1.bf16.msra.mxu0 %v13798_v53  ;;  %8155 = vmatpush1.bf16.msra.mxu1 %v13799_v40  ;;  %v8293_v53 = vld [vmem:[#allocation14 + $0x148] sm:$0xff] }
 0x864   :  { %8115 = vmatprep.subr.bf16.mxu0 %v13800_v29  ;;  %8156 = vmatprep.subr.bf16.mxu1 %v13801_v58  ;;  %v8297_v40 = vld [vmem:[#allocation14 + $0x168] sm:$0xff]  ;;  %v10350_v29 = vcombine.low %v8284_v45, %v8288_v25  ;;  %v10352_v58 = vcombine.low %v8285_v30, %v8289_v56 }
 0x865   :  { %v8345_v45 = vld [vmem:[#allocation14 + $0x2e8] sm:$0xff] }
 0x867   :  { %8116 = vmatpush1.bf16.msra.mxu0 %v13802_v2  ;;  %8157 = vmatpush1.bf16.msra.mxu1 %v13803_v49  ;;  %v10359_v2 = vcombine.high %v8292_v39, %v8296_v3  ;;  %v10361_v49 = vcombine.high %v8293_v53, %v8297_v40 }
 0x868   :  { %8117 = vmatprep.subr.bf16.mxu0 %v13804_v51  ;;  %8158 = vmatprep.subr.bf16.mxu1 %v13805_v57  ;;  %v10358_v51 = vcombine.low %v8292_v39, %v8296_v3  ;;  %v10360_v57 = vcombine.low %v8293_v53, %v8297_v40  ;;  %v8353_v39 = vld [vmem:[#allocation14 + $0x328] sm:$0xff] }
 0x86b   :  { %8118 = vmatpush1.bf16.msra.mxu0 %v13806_v34  ;;  %8159 = vmatpush1.bf16.msra.mxu1 %v13807_v43  ;;  %v8300_v34 = vld [vmem:[#allocation14 + $0x180] sm:$0xff] }
 0x86c   :  { %8119 = vmatprep.subr.bf16.mxu0 %v13808_v37  ;;  %8160 = vmatprep.subr.bf16.mxu1 %v13809_v59  ;;  %v8304_v43 = vld [vmem:[#allocation14 + $0x1a0] sm:$0xff]  ;;  %v8301_v37 = vld [vmem:[#allocation14 + $0x188] sm:$0xff] }
 0x86d   :  { %v10367_v59 = vcombine.high %v8300_v34, %v8304_v43 }
 0x86f   :  { %8120 = vmatpush1.bf16.msra.mxu0 %v13810_v6  ;;  %8161 = vmatpush1.bf16.msra.mxu1 %v13811_v8  ;;  %v8305_v6 = vld [vmem:[#allocation14 + $0x1a8] sm:$0xff]  ;;  %v10366_v8 = vcombine.low %v8300_v34, %v8304_v43 }
 0x870   :  { %8121 = vmatprep.subr.bf16.mxu0 %v13812_v1  ;;  %8162 = vmatprep.subr.bf16.mxu1 %v13813_v60  ;;  %v10368_v1 = vcombine.low %v8301_v37, %v8305_v6  ;;  %v10369_v60 = vcombine.high %v8301_v37, %v8305_v6  ;;  %v8364_v37 = vld [vmem:[#allocation14 + $0x380] sm:$0xff]  ;;  %v8365_v6 = vld [vmem:[#allocation14 + $0x388] sm:$0xff] }
 0x873   :  { %8122 = vmatpush1.bf16.msra.mxu0 %v13814_v63  ;;  %8163 = vmatpush1.bf16.msra.mxu1 %v13815_v50  ;;  %v8308_v63 = vld [vmem:[#allocation14 + $0x1c0] sm:$0xff] }
 0x874   :  { %8123 = vmatprep.subr.bf16.mxu0 %v13816_v48  ;;  %8164 = vmatprep.subr.bf16.mxu1 %v13817_v52  ;;  %v8312_v50 = vld [vmem:[#allocation14 + $0x1e0] sm:$0xff]  ;;  %v8309_v48 = vld [vmem:[#allocation14 + $0x1c8] sm:$0xff] }
 0x875   :  { %v10375_v52 = vcombine.high %v8308_v63, %v8312_v50 }
 0x877   :  { %8124 = vmatpush1.bf16.msra.mxu0 %v12779_v21  ;;  %8165 = vmatpush1.bf16.msra.mxu1 %v12781_v12  ;;  %v8252_v21 = vld [vmem:[#allocation14] sm:$0xff] }
 0x878   :  { %8125 = vmatprep.subr.bf16.mxu0 %v12785_v28  ;;  %8166 = vmatprep.subr.bf16.mxu1 %v13818_v9  ;;  %v8256_v12 = vld [vmem:[#allocation14 + $0x20] sm:$0xff]  ;;  %v8253_v28 = vld [vmem:[#allocation14 + $0x8] sm:$0xff] }
 0x879   :  { %v8313_v9 = vld [vmem:[#allocation14 + $0x1e8] sm:$0xff] }
 0x87b   :  { %8126 = vmatpush1.bf16.msra.mxu0 %v13819_v47  ;;  %8167 = vmatpush1.bf16.msra.mxu1 %v12793_v42  ;;  %v10319_v42 = vcombine.high %v8252_v21, %v8256_v12  ;;  %v10374_v47 = vcombine.low %v8308_v63, %v8312_v50 }
 0x87c   :  { %8127 = vmatprep.subr.bf16.mxu0 %v12797_v15  ;;  %8168 = vmatprep.subr.bf16.mxu1 %v12799_v38  ;;  %v8257_v15 = vld [vmem:[#allocation14 + $0x28] sm:$0xff]  ;;  %v10318_v38 = vcombine.low %v8252_v21, %v8256_v12  ;;  %v10376_v21 = vcombine.low %v8309_v48, %v8313_v9  ;;  %v10377_v12 = vcombine.high %v8309_v48, %v8313_v9  ;;  %v8372_v48 = vld [vmem:[#allocation14 + $0x3c0] sm:$0xff] }
 0x87d   :  { %v8373_v9 = vld [vmem:[#allocation14 + $0x3c8] sm:$0xff] }
 0x87f   :  { %8128 = vmatpush1.bf16.msra.mxu0 %v12803_v7  ;;  %8169 = vmatpush1.bf16.msra.mxu1 %v12805_v19  ;;  %v10320_v7 = vcombine.low %v8253_v28, %v8257_v15  ;;  %v10321_v19 = vcombine.high %v8253_v28, %v8257_v15  ;;  %v8316_v28 = vld [vmem:[#allocation14 + $0x200] sm:$0xff]  ;;  %v8317_v15 = vld [vmem:[#allocation14 + $0x208] sm:$0xff] }
 0x880   :  { %8129 = vmatprep.subr.bf16.mxu0 %v12809_v33  ;;  %8170 = vmatprep.subr.bf16.mxu1 %v12811_v20  ;;  %v8260_v33 = vld [vmem:[#allocation14 + $0x40] sm:$0xff]  ;;  %v8261_v20 = vld [vmem:[#allocation14 + $0x48] sm:$0xff] }
 0x881   :  { %v10329_v5 = vcombine.high %v8261_v20, %v8265_v61 }
 0x883   :  { %8130 = vmatpush1.bf16.msra.mxu0 %v12815_v44  ;;  %8171 = vmatpush1.bf16.msra.mxu1 %v12817_v22  ;;  %v10326_v44 = vcombine.low %v8260_v33, %v8264_v26  ;;  %v10327_v22 = vcombine.high %v8260_v33, %v8264_v26 }
 0x884   :  { %9027 = vmatprep.subr.bf16.mxu0 %v10319_v42  ;;  %9068 = vmatprep.subr.bf16.mxu1 %v10321_v19  ;;  %v8320_v42 = vld [vmem:[#allocation14 + $0x220] sm:$0xff] }
 0x885   :  { %v10382_v19 = vcombine.low %v8316_v28, %v8320_v42 }
 0x886   :  { %8132 = vmatmul.mubr.bf16.vlgmr.msra.gmra.mrb[84].mxu0 %v12899_v0  ;;  %8173 = vmatmul.mubr.bf16.vlgmr.msra.gmra.mrb[84].mxu1 %v12899_v0  ;;  %v10328_v0 = vcombine.low %v8261_v20, %v8265_v61  ;;  %v8324_v20 = vld [vmem:[#allocation14 + $0x240] sm:$0xff] }
 0x887   :  { %9028 = vmatpush1.bf16.msra.mxu0 %v10318_v38  ;;  %9069 = vmatpush1.bf16.msra.mxu1 %v10320_v7  ;;  %v10383_v38 = vcombine.high %v8316_v28, %v8320_v42  ;;  %v8321_v7 = vld [vmem:[#allocation14 + $0x228] sm:$0xff] }
 0x888   :  { %9029 = vmatprep.subr.bf16.mxu0 %v10327_v22  ;;  %9070 = vmatprep.subr.bf16.mxu1 %v10329_v5  ;;  %v10384_v33 = vcombine.low %v8317_v15, %v8321_v7  ;;  %v10385_v26 = vcombine.high %v8317_v15, %v8321_v7  ;;  %v8325_v22 = vld [vmem:[#allocation14 + $0x248] sm:$0xff]  ;;  %v12976_v15 = vld [vmem:[#allocation14 + $0x10] sm:$0xff]  ;;  %v12980_v7 = vld [vmem:[#allocation14 + $0x18] sm:$0xff] }
 0x889   :  { %v10393_v5 = vcombine.high %v8325_v22, %v8329_v54 }
 0x88b   :  { %9030 = vmatpush1.bf16.msra.mxu0 %v10326_v44  ;;  %9071 = vmatpush1.bf16.msra.mxu1 %v10328_v0  ;;  %v8328_v44 = vld [vmem:[#allocation14 + $0x260] sm:$0xff]  ;;  %v10392_v0 = vcombine.low %v8325_v22, %v8329_v54  ;;  %v13820_v22 = vld [vmem:[#allocation33_spill] sm:$0xff]  ;;  %v13821_v54 = vld [vmem:[#allocation34_spill] sm:$0xff] }
 0x88c   :  { %9031 = vmatprep.subr.bf16.mxu0 %v10335_v13  ;;  %9072 = vmatprep.subr.bf16.mxu1 %v10337_v17  ;;  %v10391_v61 = vcombine.high %v8324_v20, %v8328_v44  ;;  %v10390_v23 = vcombine.low %v8324_v20, %v8328_v44  ;;  %v8332_v13 = vld [vmem:[#allocation14 + $0x280] sm:$0xff] }
 0x88d   :  { %v10399_v17 = vcombine.high %v8332_v13, %v8336_v18  ;;  %v10398_v41 = vcombine.low %v8332_v13, %v8336_v18  ;;  %v8185_v13 = vunpack.c.h.bf16 %v13820_v22  ;;  %v8187_v18 = vunpack.c.h.bf16 %v13821_v54 }
 0x88f   :  { %9032 = vmatpush1.bf16.msra.mxu0 %v10334_v46  ;;  %9073 = vmatpush1.bf16.msra.mxu1 %v10336_v11  ;;  %v8340_v46 = vld [vmem:[#allocation14 + $0x2c0] sm:$0xff] }
 0x890   :  { %9033 = vmatprep.subr.bf16.mxu0 %v10343_v16  ;;  %9074 = vmatprep.subr.bf16.mxu1 %v10345_v32  ;;  %v8344_v11 = vld [vmem:[#allocation14 + $0x2e0] sm:$0xff]  ;;  %v8341_v16 = vld [vmem:[#allocation14 + $0x2c8] sm:$0xff] }
 0x891   :  { %v10407_v32 = vcombine.high %v8340_v46, %v8344_v11  ;;  %v10406_v25 = vcombine.low %v8340_v46, %v8344_v11  ;;  %v10408_v30 = vcombine.low %v8341_v16, %v8345_v45  ;;  %v10409_v56 = vcombine.high %v8341_v16, %v8345_v45 }
 0x893   :  { %9034 = vmatpush1.bf16.msra.mxu0 %v10342_v4  ;;  %9075 = vmatpush1.bf16.msra.mxu1 %v10344_v14  ;;  %v8348_v4 = vld [vmem:[#allocation14 + $0x300] sm:$0xff] }
 0x894   :  { %9035 = vmatprep.subr.bf16.mxu0 %v10351_v36  ;;  %9076 = vmatprep.subr.bf16.mxu1 %v10353_v55  ;;  %v8352_v14 = vld [vmem:[#allocation14 + $0x320] sm:$0xff]  ;;  %v8349_v36 = vld [vmem:[#allocation14 + $0x308] sm:$0xff] }
 0x895   :  { %v10415_v55 = vcombine.high %v8348_v4, %v8352_v14  ;;  %v10414_v3 = vcombine.low %v8348_v4, %v8352_v14  ;;  %v10416_v53 = vcombine.low %v8349_v36, %v8353_v39  ;;  %v10417_v40 = vcombine.high %v8349_v36, %v8353_v39 }
 0x897   :  { %9036 = vmatpush1.bf16.msra.mxu0 %v10350_v29  ;;  %9077 = vmatpush1.bf16.msra.mxu1 %v10352_v58  ;;  %v8356_v29 = vld [vmem:[#allocation14 + $0x340] sm:$0xff] }
 0x898   :  { %9037 = vmatprep.subr.bf16.mxu0 %v10359_v2  ;;  %9078 = vmatprep.subr.bf16.mxu1 %v10361_v49  ;;  %v8360_v58 = vld [vmem:[#allocation14 + $0x360] sm:$0xff]  ;;  %v8357_v2 = vld [vmem:[#allocation14 + $0x348] sm:$0xff] }
 0x899   :  { %v10423_v49 = vcombine.high %v8356_v29, %v8360_v58 }
 0x89b   :  { %9038 = vmatpush1.bf16.msra.mxu0 %v10358_v51  ;;  %9079 = vmatpush1.bf16.msra.mxu1 %v10360_v57  ;;  %v8361_v51 = vld [vmem:[#allocation14 + $0x368] sm:$0xff]  ;;  %v10422_v57 = vcombine.low %v8356_v29, %v8360_v58 }
 0x89c   :  { %9039 = vmatprep.subr.bf16.mxu0 %v10367_v59  ;;  %9080 = vmatprep.subr.bf16.mxu1 %v10369_v60  ;;  %v10424_v34 = vcombine.low %v8357_v2, %v8361_v51  ;;  %v10425_v43 = vcombine.high %v8357_v2, %v8361_v51  ;;  %v8368_v59 = vld [vmem:[#allocation14 + $0x3a0] sm:$0xff] }
 0x89d   :  { %v10430_v60 = vcombine.low %v8364_v37, %v8368_v59 }
 0x89f   :  { %9040 = vmatpush1.bf16.msra.mxu0 %v10366_v8  ;;  %9081 = vmatpush1.bf16.msra.mxu1 %v10368_v1  ;;  %v10431_v8 = vcombine.high %v8364_v37, %v8368_v59  ;;  %v8369_v1 = vld [vmem:[#allocation14 + $0x3a8] sm:$0xff] }
 0x8a0   :  { %9041 = vmatprep.subr.bf16.mxu0 %v10375_v52  ;;  %9082 = vmatprep.subr.bf16.mxu1 %v10377_v12  ;;  %v10432_v63 = vcombine.low %v8365_v6, %v8369_v1  ;;  %v10433_v50 = vcombine.high %v8365_v6, %v8369_v1  ;;  %v8376_v52 = vld [vmem:[#allocation14 + $0x3e0] sm:$0xff]  ;;  %v13823_v59 = vld [vmem:[#allocation40_spill] sm:$0xff] }
 0x8a1   :  { %v10438_v12 = vcombine.low %v8372_v48, %v8376_v52  ;;  %v8197_v6 = vunpack.c.l.bf16 %v13823_v59 }
 0x8a3   :  { %9042 = vmatpush1.bf16.msra.mxu0 %v10374_v47  ;;  %9083 = vmatpush1.bf16.msra.mxu1 %v10376_v21  ;;  %v10439_v47 = vcombine.high %v8372_v48, %v8376_v52  ;;  %v8377_v21 = vld [vmem:[#allocation14 + $0x3e8] sm:$0xff] }
 0x8a4   :  { %9043 = vmatprep.subr.bf16.mxu0 %v10383_v38  ;;  %9084 = vmatprep.subr.bf16.mxu1 %v10385_v26  ;;  %v10440_v28 = vcombine.low %v8373_v9, %v8377_v21  ;;  %v10441_v42 = vcombine.high %v8373_v9, %v8377_v21  ;;  %v12978_v38 = vld [vmem:[#allocation14 + $0x30] sm:$0xff] }
 0x8a5   :  { %v10322_v26 = vcombine.low %v12976_v15, %v12978_v38 }
 0x8a7   :  { %9044 = vmatpush1.bf16.msra.mxu0 %v10382_v19  ;;  %9085 = vmatpush1.bf16.msra.mxu1 %v10384_v33  ;;  %v10323_v19 = vcombine.high %v12976_v15, %v12978_v38  ;;  %v12984_v33 = vld [vmem:[#allocation14 + $0x38] sm:$0xff] }
 0x8a8   :  { %9045 = vmatprep.subr.bf16.mxu0 %v10391_v61  ;;  %9086 = vmatprep.subr.bf16.mxu1 %v10393_v5  ;;  %v10324_v20 = vcombine.low %v12980_v7, %v12984_v33  ;;  %v10325_v44 = vcombine.high %v12980_v7, %v12984_v33  ;;  %v8184_v61 = vunpack.c.l.bf16 %v13820_v22 }
 0x8ab   :  { %9046 = vmatpush1.bf16.msra.mxu0 %v10390_v23  ;;  %9087 = vmatpush1.bf16.msra.mxu1 %v10392_v0  ;;  %v8186_v23 = vunpack.c.l.bf16 %v13821_v54 }
 0x8ac   :  { %9047 = vmatprep.subr.bf16.mxu0 %v10399_v17  ;;  %9088 = vmatprep.subr.bf16.mxu1 %v10401_v10 }
 0x8af   :  { %9048 = vmatpush1.bf16.msra.mxu0 %v10398_v41  ;;  %9089 = vmatpush1.bf16.msra.mxu1 %v10400_v62 }
 0x8b0   :  { %9049 = vmatprep.subr.bf16.mxu0 %v10407_v32  ;;  %9090 = vmatprep.subr.bf16.mxu1 %v10409_v56 }
 0x8b3   :  { %9050 = vmatpush1.bf16.msra.mxu0 %v10406_v25  ;;  %9091 = vmatpush1.bf16.msra.mxu1 %v10408_v30 }
 0x8b4   :  { %9051 = vmatprep.subr.bf16.mxu0 %v10415_v55  ;;  %9092 = vmatprep.subr.bf16.mxu1 %v10417_v40 }
 0x8b7   :  { %9052 = vmatpush1.bf16.msra.mxu0 %v10414_v3  ;;  %9093 = vmatpush1.bf16.msra.mxu1 %v10416_v53 }
 0x8b8   :  { %9053 = vmatprep.subr.bf16.mxu0 %v10423_v49  ;;  %9094 = vmatprep.subr.bf16.mxu1 %v10425_v43  ;;  %v13822_v43 = vld [vmem:[#allocation39_spill] sm:$0xff] }
 0x8b9   :  { %v8195_v37 = vunpack.c.l.bf16 %v13822_v43 }
 0x8bb   :  { %9054 = vmatpush1.bf16.msra.mxu0 %v10422_v57  ;;  %9095 = vmatpush1.bf16.msra.mxu1 %v10424_v34 }
 0x8bc   :  { %9055 = vmatprep.subr.bf16.mxu0 %v10431_v8  ;;  %9096 = vmatprep.subr.bf16.mxu1 %v10433_v50 }
 0x8bf   :  { %9056 = vmatpush1.bf16.msra.mxu0 %v10430_v60  ;;  %9097 = vmatpush1.bf16.msra.mxu1 %v10432_v63  ;;  %v8198_v60 = vunpack.c.h.bf16 %v13823_v59 }
 0x8c0   :  { %9057 = vmatprep.subr.bf16.mxu0 %v10439_v47  ;;  %9098 = vmatprep.subr.bf16.mxu1 %v10441_v42 }
 0x8c3   :  { %9058 = vmatpush1.bf16.msra.mxu0 %v10438_v12  ;;  %9099 = vmatpush1.bf16.msra.mxu1 %v10440_v28 }
 0x8c4   :  { %9109 = vmatprep.subr.bf16.mxu0 %v10323_v19  ;;  %9150 = vmatprep.subr.bf16.mxu1 %v10325_v44 }
 0x919   :  { %v8051_v0 = vpop.f32.mrb[80].mxu0  ;;  %v8092_v5 = vpop.f32.mrb[80].mxu1 }
 0x91a   :  { %v8188_v27 = vadd.f32 %v8184_v61, %v8051_v0  ;;  %v8190_v17 = vadd.f32 %v8186_v23, %v8092_v5  ;;  %v8053_v35 = vpop.f32.mrb[81].mxu0  ;;  %v8094_v41 = vpop.f32.mrb[81].mxu1 }
 0x91b   :  { %v8189_v62 = vadd.f32 %v8185_v13, %v8053_v35  ;;  %v8191_v10 = vadd.f32 %v8187_v18, %v8094_v41  ;;  %v8055_v46 = vpop.f32.mrb[82].mxu0  ;;  %v8096_v11 = vpop.f32.mrb[82].mxu1 }
 0x91c   :  { %v8204_v16 = vmul.f32 0.5, %v8188_v27  ;;  %v8056_v32 = vpop.f32.mrb[83].mxu0  ;;  %v8097_v45 = vpop.f32.mrb[83].mxu1 }
 0x91d   :  { %v8208_v25 = vmul.f32 0.5, %v8189_v62  ;;  %v8213_v30 = vmul.f32 0.5, %v8191_v10  ;;  %v8266_v32 = vld [vmem:[#allocation14 + $0x70] sm:$0xff]  ;;  %v8263_v45 = vld [vmem:[#allocation14 + $0x58] sm:$0xff] }
 0x91e   :  { %10770 = vtanh.f32 %v8204_v16  ;;  %v8262_v16 = vld [vmem:[#allocation14 + $0x50] sm:$0xff] }
 0x91f   :  { %10772 = vtanh.f32 %v8208_v25  ;;  %v8267_v25 = vld [vmem:[#allocation14 + $0x78] sm:$0xff] }
 0x920   :  { %10774 = vtanh.f32 %v8190_v17 }
 0x921   :  { %10776 = vtanh.f32 %v8213_v30 }
 0x928   :  { %v10771_v56 = vpop.eup %10770 }
 0x929   :  { %v10773_v4 = vpop.eup %10772  ;;  %v8206_v14 = vmul.f32 0.5, %v10771_v56  ;;  %v8270_v56 = vld [vmem:[#allocation14 + $0x90] sm:$0xff] }
 0x92a   :  { %v8210_v36 = vmul.f32 0.5, %v10773_v4  ;;  %v10775_v39 = vpop.eup %10774  ;;  %v10331_v4 = vcombine.high %v8262_v16, %v8266_v32 }
 0x92b   :  { %v8207_v55 = vadd.f32 0.5, %v8206_v14  ;;  %v10777_v58 = vpop.eup %10776  ;;  %v8274_v14 = vld [vmem:[#allocation14 + $0xb0] sm:$0xff] }
 0x92c   :  { %v8211_v3 = vadd.f32 0.5, %v8210_v36  ;;  %v8215_v2 = vmul.f32 0.5, %v10777_v58  ;;  %v8271_v36 = vld [vmem:[#allocation14 + $0x98] sm:$0xff]  ;;  %v8278_v58 = vld [vmem:[#allocation14 + $0xd0] sm:$0xff]  ;;  %v10338_v15 = vcombine.low %v8270_v56, %v8274_v14 }
 0x92d   :  { %v8218_v53 = vmul.f32 %v10775_v39, %v8207_v55  ;;  %v8275_v55 = vld [vmem:[#allocation14 + $0xb8] sm:$0xff]  ;;  %v10330_v39 = vcombine.low %v8262_v16, %v8266_v32 }
 0x92e   :  { %v8217_v40 = vmul.f32 %v8211_v3, %v12896_v31  ;;  %v8216_v49 = vadd.f32 0.5, %v8215_v2  ;;  %v8196_v31 = vunpack.c.h.bf16 %v13822_v43  ;;  %v10332_v3 = vcombine.low %v8263_v45, %v8267_v25  ;;  %v8282_v2 = vld [vmem:[#allocation14 + $0xf0] sm:$0xff]  ;;  %v8291_v43 = vld [vmem:[#allocation14 + $0x138] sm:$0xff] }
 0x92f   :  { %v10340_v38 = vcombine.low %v8271_v36, %v8275_v55  ;;  %v10347_v7 = vcombine.high %v8278_v58, %v8282_v2 }
 0x930   :  { %v12997_v29 = vadd.f32 %v8218_v53, %v8217_v40  ;;  %v10339_v53 = vcombine.high %v8270_v56, %v8274_v14  ;;  %v10341_v40 = vcombine.high %v8271_v36, %v8275_v55  ;;  %v8331_v56 = vld [vmem:[#allocation14 + $0x278] sm:$0xff]  ;;  %v8334_v55 = vld [vmem:[#allocation14 + $0x290] sm:$0xff] }
 0x932   :  { %10778 = vtanh.f32 %v12997_v29 }
 0x93c   :  { %v10779_v51 = vpop.eup %10778 }
 0x93d   :  { %v8221_v57 = vmul.f32 %v10779_v51, %v8216_v49  ;;  %v8279_v49 = vld [vmem:[#allocation14 + $0xd8] sm:$0xff] }
 0x93e   :  { %v8283_v51 = vld [vmem:[#allocation14 + $0xf8] sm:$0xff] }
 0x93f   :  { %v13000_v34 = vpack.c.bf16 %v8221_v57, %v8221_v57  ;;  %v10349_v33 = vcombine.high %v8279_v49, %v8283_v51  ;;  %v8287_v57 = vld [vmem:[#allocation14 + $0x118] sm:$0xff]  ;;  %v10348_v59 = vcombine.low %v8279_v49, %v8283_v51  ;;  %v8342_v51 = vld [vmem:[#allocation14 + $0x2d0] sm:$0xff] }
 0x941   :  { %8248 = vst [vmem:[#allocation15 + $0x18] sm:$0xf] %v13000_v34 }
 0x959   :  { %v8133_v8 = vpop.f32.mrb[84].mxu0  ;;  %v8174_v1 = vpop.f32.mrb[84].mxu1 }
 0x95a   :  { %v8199_v63 = vadd.f32 %v8195_v37, %v8133_v8  ;;  %v8201_v50 = vadd.f32 %v8197_v6, %v8174_v1  ;;  %v8135_v48 = vpop.f32.mrb[85].mxu0  ;;  %v8176_v52 = vpop.f32.mrb[85].mxu1  ;;  %v10346_v37 = vcombine.low %v8278_v58, %v8282_v2  ;;  %v10357_v8 = vcombine.high %v8287_v57, %v8291_v43  ;;  %v8294_v1 = vld [vmem:[#allocation14 + $0x150] sm:$0xff] }
 0x95b   :  { %v8200_v9 = vadd.f32 %v8196_v31, %v8135_v48  ;;  %v8202_v47 = vadd.f32 %v8198_v60, %v8176_v52  ;;  %v8137_v21 = vpop.f32.mrb[86].mxu0  ;;  %v8178_v12 = vpop.f32.mrb[86].mxu1  ;;  %v8298_v31 = vld [vmem:[#allocation14 + $0x170] sm:$0xff]  ;;  %v8295_v60 = vld [vmem:[#allocation14 + $0x158] sm:$0xff]  ;;  %v10356_v48 = vcombine.low %v8287_v57, %v8291_v43 }
 0x95c   :  { %v8223_v28 = vmul.f32 0.5, %v8199_v63  ;;  %v8138_v42 = vpop.f32.mrb[87].mxu0  ;;  %v8179_v19 = vpop.f32.mrb[87].mxu1  ;;  %v8299_v63 = vld [vmem:[#allocation14 + $0x178] sm:$0xff]  ;;  %v10363_v52 = vcombine.high %v8294_v1, %v8298_v31  ;;  %v8306_v21 = vld [vmem:[#allocation14 + $0x1b0] sm:$0xff] }
 0x95d   :  { %v8227_v44 = vmul.f32 0.5, %v8200_v9  ;;  %v8232_v22 = vmul.f32 0.5, %v8202_v47  ;;  %v10365_v9 = vcombine.high %v8295_v60, %v8299_v63  ;;  %v8302_v47 = vld [vmem:[#allocation14 + $0x190] sm:$0xff]  ;;  %v8303_v12 = vld [vmem:[#allocation14 + $0x198] sm:$0xff]  ;;  %v10362_v42 = vcombine.low %v8294_v1, %v8298_v31 }
 0x95e   :  { %10780 = vtanh.f32 %v8223_v28  ;;  %v8307_v28 = vld [vmem:[#allocation14 + $0x1b8] sm:$0xff]  ;;  %v10364_v19 = vcombine.low %v8295_v60, %v8299_v63  ;;  %v8350_v43 = vld [vmem:[#allocation14 + $0x310] sm:$0xff] }
 0x95f   :  { %10782 = vtanh.f32 %v8227_v44  ;;  %v10371_v44 = vcombine.high %v8302_v47, %v8306_v21  ;;  %v8358_v63 = vld [vmem:[#allocation14 + $0x350] sm:$0xff] }
 0x960   :  { %10784 = vtanh.f32 %v8201_v50 }
 0x961   :  { %10786 = vtanh.f32 %v8232_v22  ;;  %v10373_v22 = vcombine.high %v8303_v12, %v8307_v28 }
 0x968   :  { %v10781_v61 = vpop.eup %10780 }
 0x969   :  { %v10783_v54 = vpop.eup %10782  ;;  %v8225_v23 = vmul.f32 0.5, %v10781_v61  ;;  %v8310_v61 = vld [vmem:[#allocation14 + $0x1d0] sm:$0xff] }
 0x96a   :  { %v8229_v0 = vmul.f32 0.5, %v10783_v54  ;;  %v10785_v13 = vpop.eup %10784  ;;  %v8314_v54 = vld [vmem:[#allocation14 + $0x1f0] sm:$0xff] }
 0x96b   :  { %v8226_v5 = vadd.f32 0.5, %v8225_v23  ;;  %v10787_v41 = vpop.eup %10786  ;;  %v8311_v23 = vld [vmem:[#allocation14 + $0x1d8] sm:$0xff] }
 0x96c   :  { %v8230_v18 = vadd.f32 0.5, %v8229_v0  ;;  %v8234_v62 = vmul.f32 0.5, %v10787_v41  ;;  %v8315_v0 = vld [vmem:[#allocation14 + $0x1f8] sm:$0xff]  ;;  %v8322_v41 = vld [vmem:[#allocation14 + $0x230] sm:$0xff] }
 0x96d   :  { %v8237_v27 = vmul.f32 %v10785_v13, %v8226_v5  ;;  %v10370_v5 = vcombine.low %v8302_v47, %v8306_v21  ;;  %v10372_v13 = vcombine.low %v8303_v12, %v8307_v28  ;;  %v8366_v28 = vld [vmem:[#allocation14 + $0x390] sm:$0xff] }
 0x96e   :  { %v8236_v17 = vmul.f32 %v8230_v18, %v12907_v24  ;;  %v8235_v10 = vadd.f32 0.5, %v8234_v62  ;;  %v10333_v24 = vcombine.high %v8263_v45, %v8267_v25  ;;  %v10379_v18 = vcombine.high %v8310_v61, %v8314_v54  ;;  %v8319_v62 = vld [vmem:[#allocation14 + $0x218] sm:$0xff]  ;;  %v8326_v45 = vld [vmem:[#allocation14 + $0x250] sm:$0xff] }
 0x96f   :  { %v8330_v25 = vld [vmem:[#allocation14 + $0x270] sm:$0xff] }
 0x970   :  { %v13008_v35 = vadd.f32 %v8237_v27, %v8236_v17  ;;  %v10381_v27 = vcombine.high %v8311_v23, %v8315_v0  ;;  %v8318_v17 = vld [vmem:[#allocation14 + $0x210] sm:$0xff]  ;;  %v10395_v14 = vcombine.high %v8326_v45, %v8330_v25 }
 0x971   :  { %v10387_v16 = vcombine.high %v8318_v17, %v8322_v41 }
 0x972   :  { %10788 = vtanh.f32 %v13008_v35 }
 0x97c   :  { %v10789_v46 = vpop.eup %10788 }
 0x97d   :  { %v8240_v11 = vmul.f32 %v10789_v46, %v8235_v10  ;;  %v8323_v10 = vld [vmem:[#allocation14 + $0x238] sm:$0xff]  ;;  %v10378_v46 = vcombine.low %v8310_v61, %v8314_v54 }
 0x97e   :  { %v10389_v32 = vcombine.high %v8319_v62, %v8323_v10 }
 0x97f   :  { %v8243_v30 = vpack.c.bf16 %v8240_v11, %v8240_v11  ;;  %v10380_v11 = vcombine.low %v8311_v23, %v8315_v0  ;;  %v8374_v0 = vld [vmem:[#allocation14 + $0x3d0] sm:$0xff] }
 0x981   :  { %8250 = vst [vmem:[#allocation16 + $0x4] sm:$0xf] %v8243_v30  ;;  %9059 = vmatprep.mubr.bf16.mxu0 %v8243_v30  ;;  %9100 = vmatprep.mubr.bf16.mxu1 %v8243_v30 }
 0x982   :  { %9060 = vmatmul.mubr.bf16.vlgmr.msra.gmra.mrb[88].mxu0 %v13000_v34  ;;  %9101 = vmatmul.mubr.bf16.vlgmr.msra.gmra.mrb[88].mxu1 %v13000_v34 }
 0x983   :  { %9110 = vmatpush1.bf16.msra.mxu0 %v10322_v26  ;;  %9151 = vmatpush1.bf16.msra.mxu1 %v10324_v20  ;;  %v8286_v26 = vld [vmem:[#allocation14 + $0x110] sm:$0xff] }
 0x984   :  { %9141 = vmatprep.mubr.bf16.mxu0 %v8243_v30  ;;  %9182 = vmatprep.mubr.bf16.mxu1 %v8243_v30  ;;  %v8290_v20 = vld [vmem:[#allocation14 + $0x130] sm:$0xff]  ;;  %v8327_v30 = vld [vmem:[#allocation14 + $0x258] sm:$0xff] }
 0x985   :  { %9111 = vmatprep.subr.bf16.mxu0 %v10331_v4  ;;  %9152 = vmatprep.subr.bf16.mxu1 %v10333_v24  ;;  %v10355_v6 = vcombine.high %v8286_v26, %v8290_v20  ;;  %v10354_v50 = vcombine.low %v8286_v26, %v8290_v20  ;;  %v10386_v4 = vcombine.low %v8318_v17, %v8322_v41 }
 0x986   :  { %v10388_v24 = vcombine.low %v8319_v62, %v8323_v10  ;;  %v10397_v36 = vcombine.high %v8327_v30, %v8331_v56  ;;  %v10396_v58 = vcombine.low %v8327_v30, %v8331_v56 }
 0x987   :  { %9112 = vmatpush1.bf16.msra.mxu0 %v10330_v39  ;;  %9153 = vmatpush1.bf16.msra.mxu1 %v10332_v3  ;;  %v8338_v39 = vld [vmem:[#allocation14 + $0x2b0] sm:$0xff]  ;;  %v8335_v3 = vld [vmem:[#allocation14 + $0x298] sm:$0xff] }
 0x988   :  { %9113 = vmatprep.subr.bf16.mxu0 %v10339_v53  ;;  %9154 = vmatprep.subr.bf16.mxu1 %v10341_v40  ;;  %v8339_v53 = vld [vmem:[#allocation14 + $0x2b8] sm:$0xff]  ;;  %v10394_v40 = vcombine.low %v8326_v45, %v8330_v25  ;;  %v10403_v2 = vcombine.high %v8334_v55, %v8338_v39 }
 0x989   :  { %v10405_v49 = vcombine.high %v8335_v3, %v8339_v53  ;;  %v10404_v26 = vcombine.low %v8335_v3, %v8339_v53 }
 0x98b   :  { %9114 = vmatpush1.bf16.msra.mxu0 %v10338_v15  ;;  %9155 = vmatpush1.bf16.msra.mxu1 %v10340_v38  ;;  %v8346_v15 = vld [vmem:[#allocation14 + $0x2f0] sm:$0xff]  ;;  %v8343_v38 = vld [vmem:[#allocation14 + $0x2d8] sm:$0xff] }
 0x98c   :  { %9115 = vmatprep.subr.bf16.mxu0 %v10347_v7  ;;  %9156 = vmatprep.subr.bf16.mxu1 %v10349_v33  ;;  %v8347_v7 = vld [vmem:[#allocation14 + $0x2f8] sm:$0xff]  ;;  %v10402_v33 = vcombine.low %v8334_v55, %v8338_v39  ;;  %v10411_v20 = vcombine.high %v8342_v51, %v8346_v15 }
 0x98d   :  { %v10413_v57 = vcombine.high %v8343_v38, %v8347_v7  ;;  %v10412_v1 = vcombine.low %v8343_v38, %v8347_v7 }
 0x98f   :  { %9116 = vmatpush1.bf16.msra.mxu0 %v10346_v37  ;;  %9157 = vmatpush1.bf16.msra.mxu1 %v10348_v59  ;;  %v8354_v37 = vld [vmem:[#allocation14 + $0x330] sm:$0xff]  ;;  %v8351_v59 = vld [vmem:[#allocation14 + $0x318] sm:$0xff] }
 0x990   :  { %9117 = vmatprep.subr.bf16.mxu0 %v10355_v6  ;;  %9158 = vmatprep.subr.bf16.mxu1 %v10357_v8  ;;  %v8355_v6 = vld [vmem:[#allocation14 + $0x338] sm:$0xff]  ;;  %v10410_v8 = vcombine.low %v8342_v51, %v8346_v15  ;;  %v10419_v31 = vcombine.high %v8350_v43, %v8354_v37 }
 0x991   :  { %v10421_v60 = vcombine.high %v8351_v59, %v8355_v6  ;;  %v10420_v47 = vcombine.low %v8351_v59, %v8355_v6 }
 0x993   :  { %9118 = vmatpush1.bf16.msra.mxu0 %v10354_v50  ;;  %9159 = vmatpush1.bf16.msra.mxu1 %v10356_v48  ;;  %v8362_v50 = vld [vmem:[#allocation14 + $0x370] sm:$0xff]  ;;  %v8359_v48 = vld [vmem:[#allocation14 + $0x358] sm:$0xff] }
 0x994   :  { %9119 = vmatprep.subr.bf16.mxu0 %v10363_v52  ;;  %9160 = vmatprep.subr.bf16.mxu1 %v10365_v9  ;;  %v8363_v52 = vld [vmem:[#allocation14 + $0x378] sm:$0xff]  ;;  %v10418_v9 = vcombine.low %v8350_v43, %v8354_v37  ;;  %v10427_v21 = vcombine.high %v8358_v63, %v8362_v50 }
 0x995   :  { %v10429_v12 = vcombine.high %v8359_v48, %v8363_v52  ;;  %v10428_v61 = vcombine.low %v8359_v48, %v8363_v52 }
 0x997   :  { %9120 = vmatpush1.bf16.msra.mxu0 %v10362_v42  ;;  %9161 = vmatpush1.bf16.msra.mxu1 %v10364_v19  ;;  %v8370_v42 = vld [vmem:[#allocation14 + $0x3b0] sm:$0xff]  ;;  %v8367_v19 = vld [vmem:[#allocation14 + $0x398] sm:$0xff] }
 0x998   :  { %9121 = vmatprep.subr.bf16.mxu0 %v10371_v44  ;;  %9162 = vmatprep.subr.bf16.mxu1 %v10373_v22  ;;  %v8371_v44 = vld [vmem:[#allocation14 + $0x3b8] sm:$0xff]  ;;  %v10426_v22 = vcombine.low %v8358_v63, %v8362_v50  ;;  %v10435_v54 = vcombine.high %v8366_v28, %v8370_v42 }
 0x999   :  { %v10437_v23 = vcombine.high %v8367_v19, %v8371_v44  ;;  %v10436_v17 = vcombine.low %v8367_v19, %v8371_v44 }
 0x99b   :  { %9122 = vmatpush1.bf16.msra.mxu0 %v10370_v5  ;;  %9163 = vmatpush1.bf16.msra.mxu1 %v10372_v13  ;;  %v8378_v5 = vld [vmem:[#allocation14 + $0x3f0] sm:$0xff]  ;;  %v8375_v13 = vld [vmem:[#allocation14 + $0x3d8] sm:$0xff] }
 0x99c   :  { %9123 = vmatprep.subr.bf16.mxu0 %v10379_v18  ;;  %9164 = vmatprep.subr.bf16.mxu1 %v10381_v27  ;;  %v8379_v18 = vld [vmem:[#allocation14 + $0x3f8] sm:$0xff]  ;;  %v10434_v27 = vcombine.low %v8366_v28, %v8370_v42  ;;  %v10443_v41 = vcombine.high %v8374_v0, %v8378_v5  ;;  %v10442_v10 = vcombine.low %v8374_v0, %v8378_v5 }
 0x99d   :  { %v10445_v62 = vcombine.high %v8375_v13, %v8379_v18 }
 0x99f   :  { %9124 = vmatpush1.bf16.msra.mxu0 %v10378_v46  ;;  %9165 = vmatpush1.bf16.msra.mxu1 %v10380_v11  ;;  %v10444_v46 = vcombine.low %v8375_v13, %v8379_v18  ;;  %v13824_v11 = vld [vmem:[#allocation35_spill] sm:$0xff] }
 0x9a0   :  { %9125 = vmatprep.subr.bf16.mxu0 %v10387_v16  ;;  %9166 = vmatprep.subr.bf16.mxu1 %v10389_v32  ;;  %v9194_v16 = vunpack.c.l.bf16 %v13824_v11  ;;  %v13825_v32 = vld [vmem:[#allocation36_spill] sm:$0xff]  ;;  %v9195_v56 = vunpack.c.h.bf16 %v13824_v11 }
 0x9a1   :  { %v9196_v45 = vunpack.c.l.bf16 %v13825_v32 }
 0x9a3   :  { %9126 = vmatpush1.bf16.msra.mxu0 %v10386_v4  ;;  %9167 = vmatpush1.bf16.msra.mxu1 %v10388_v24  ;;  %v9197_v4 = vunpack.c.h.bf16 %v13825_v32 }
 0x9a4   :  { %9127 = vmatprep.subr.bf16.mxu0 %v10395_v14  ;;  %9168 = vmatprep.subr.bf16.mxu1 %v10397_v36 }
 0x9a7   :  { %9128 = vmatpush1.bf16.msra.mxu0 %v10394_v40  ;;  %9169 = vmatpush1.bf16.msra.mxu1 %v10396_v58 }
 0x9a8   :  { %9129 = vmatprep.subr.bf16.mxu0 %v10403_v2  ;;  %9170 = vmatprep.subr.bf16.mxu1 %v10405_v49 }
 0x9ab   :  { %9130 = vmatpush1.bf16.msra.mxu0 %v10402_v33  ;;  %9171 = vmatpush1.bf16.msra.mxu1 %v10404_v26 }
 0x9ac   :  { %9131 = vmatprep.subr.bf16.mxu0 %v10411_v20  ;;  %9172 = vmatprep.subr.bf16.mxu1 %v10413_v57 }
 0x9af   :  { %9132 = vmatpush1.bf16.msra.mxu0 %v10410_v8  ;;  %9173 = vmatpush1.bf16.msra.mxu1 %v10412_v1 }
 0x9b0   :  { %9133 = vmatprep.subr.bf16.mxu0 %v10419_v31  ;;  %9174 = vmatprep.subr.bf16.mxu1 %v10421_v60 }
 0x9b3   :  { %9134 = vmatpush1.bf16.msra.mxu0 %v10418_v9  ;;  %9175 = vmatpush1.bf16.msra.mxu1 %v10420_v47 }
 0x9b4   :  { %9135 = vmatprep.subr.bf16.mxu0 %v10427_v21  ;;  %9176 = vmatprep.subr.bf16.mxu1 %v10429_v12 }
 0x9b7   :  { %9136 = vmatpush1.bf16.msra.mxu0 %v10426_v22  ;;  %9177 = vmatpush1.bf16.msra.mxu1 %v10428_v61 }
 0x9b8   :  { %9137 = vmatprep.subr.bf16.mxu0 %v10435_v54  ;;  %9178 = vmatprep.subr.bf16.mxu1 %v10437_v23 }
 0x9bb   :  { %9138 = vmatpush1.bf16.msra.mxu0 %v10434_v27  ;;  %9179 = vmatpush1.bf16.msra.mxu1 %v10436_v17 }
 0x9bc   :  { %9139 = vmatprep.subr.bf16.mxu0 %v10443_v41  ;;  %9180 = vmatprep.subr.bf16.mxu1 %v10445_v62 }
 0x9bf   :  { %9140 = vmatpush1.bf16.msra.mxu0 %v10442_v10  ;;  %9181 = vmatpush1.bf16.msra.mxu1 %v10444_v46 }
 0x9c2   :  { %9142 = vmatmul.mubr.bf16.vlgmr.msra.gmra.mrb[92].mxu0 %v13000_v34  ;;  %9183 = vmatmul.mubr.bf16.vlgmr.msra.gmra.mrb[92].mxu1 %v13000_v34 }
 0xa55   :  { %v9061_v25 = vpop.f32.mrb[88].mxu0  ;;  %v9102_v30 = vpop.f32.mrb[88].mxu1 }
 0xa56   :  { %v9198_v24 = vadd.f32 %v9194_v16, %v9061_v25  ;;  %v9200_v14 = vadd.f32 %v9196_v45, %v9102_v30  ;;  %v9063_v36 = vpop.f32.mrb[89].mxu0  ;;  %v9104_v55 = vpop.f32.mrb[89].mxu1 }
 0xa57   :  { %v9199_v39 = vadd.f32 %v9195_v56, %v9063_v36  ;;  %v9201_v3 = vadd.f32 %v9197_v4, %v9104_v55  ;;  %v9065_v53 = vpop.f32.mrb[90].mxu0  ;;  %v9106_v40 = vpop.f32.mrb[90].mxu1 }
 0xa58   :  { %v9213_v58 = vmul.f32 0.5, %v9198_v24  ;;  %v9066_v34 = vpop.f32.mrb[91].mxu0  ;;  %v9107_v2 = vpop.f32.mrb[91].mxu1 }
 0xa59   :  { %v9217_v49 = vmul.f32 0.5, %v9199_v39  ;;  %v9222_v51 = vmul.f32 0.5, %v9201_v3 }
 0xa5a   :  { %10790 = vtanh.f32 %v9213_v58 }
 0xa5b   :  { %10792 = vtanh.f32 %v9217_v49 }
 0xa5c   :  { %10794 = vtanh.f32 %v9200_v14 }
 0xa5d   :  { %10796 = vtanh.f32 %v9222_v51 }
 0xa64   :  { %v10791_v15 = vpop.eup %10790 }
 0xa65   :  { %v10793_v38 = vpop.eup %10792  ;;  %v9215_v7 = vmul.f32 0.5, %v10791_v15 }
 0xa66   :  { %v9219_v33 = vmul.f32 0.5, %v10793_v38  ;;  %v10795_v20 = vpop.eup %10794 }
 0xa67   :  { %v9216_v26 = vadd.f32 0.5, %v9215_v7  ;;  %v10797_v6 = vpop.eup %10796 }
 0xa68   :  { %v9220_v57 = vadd.f32 0.5, %v9219_v33  ;;  %v9224_v8 = vmul.f32 0.5, %v10797_v6 }
 0xa69   :  { %v9227_v43 = vmul.f32 %v10795_v20, %v9216_v26 }
 0xa6a   :  { %v9226_v37 = vmul.f32 %v9220_v57, %v12997_v29  ;;  %v9225_v1 = vadd.f32 0.5, %v9224_v8 }
 0xa6c   :  { %v9228_v59 = vadd.f32 %v9227_v43, %v9226_v37 }
 0xa6e   :  { %10798 = vtanh.f32 %v9228_v59 }
 0xa78   :  { %v10799_v31 = vpop.eup %10798 }
 0xa79   :  { %v9230_v60 = vmul.f32 %v10799_v31, %v9225_v1 }
 0xa7b   :  { %v9250_v63 = vpack.c.bf16 %v9230_v60, %v9230_v60 }
 0xa7d   :  { %9257 = vst [vmem:[#allocation15 + $0x1c] sm:$0xf] %v9250_v63 }
 0xa7e   :  { %10931 = shalt.err (!%p10928_p2)
}
 0xa7f   :  { %s10932_s28 = scalar_lea.hbm %s13067_s6, 512 }
 0xa80   :  { %p10933_p3 = scmp.ne.s32.totalorder %s13067_s6, %s10932_s28  ;;  %p10936_p4 = scmp.lt.u32.totalorder %s10932_s28, %s13067_s6 }
 0xa82   :  { %p10938_p5 = pnand %p10936_p4, %p10933_p3 }
 0xa84   :  { %10941 = shalt.err (!%p10938_p5)
}
 0xa85   :  { %9270 = dma.vmem_to_hbm [thread:$0]  %s9265_s23, 512, %s13067_s6, [#allocation8], %s10975_s11, %s10975_s11, %s10976_s12   ;;  %v13826_v29 = vld [vmem:[#allocation37_spill] sm:$0xff]  ;;  %v13827_v48 = vld [vmem:[#allocation38_spill] sm:$0xff] }
 0xa86   :  { %v9204_v50 = vunpack.c.l.bf16 %v13826_v29  ;;  %v9206_v52 = vunpack.c.l.bf16 %v13827_v48  ;;  %v9205_v21 = vunpack.c.h.bf16 %v13826_v29  ;;  %v9207_v12 = vunpack.c.h.bf16 %v13827_v48  ;;  %s10987_s6 = smov [#allocation16]  }
 0xa87   :  { %s9280_s10 = sshll.u32 %s10987_s6, 4  ;;  %s9281_s10 = int_to_ptr.vmem [resolvable:$true] %s9280_s10 }
 0xa88   :  { %s10942_s13 = scalar_lea.vmem %s9281_s10, 512  ;;  %p10947_p7 = scmp.lt.s32.totalorder %s9281_s10, %s9281_s10 }
 0xa89   :  { %p10943_p6 = scmp.ne.s32.totalorder %s9281_s10, %s10942_s13  ;;  %p10948_p8 = scmp.lt.s32.totalorder %s10942_s13, %s10942_s13 }
 0xa8b   :  { %p10949_p9 = por %p10948_p8, %p10947_p7 }
 0xa8d   :  { %p10950_p10 = pnand %p10949_p9, %p10943_p6 }
 0xa95   :  { %v9143_v9 = vpop.f32.mrb[92].mxu0  ;;  %v9184_v47 = vpop.f32.mrb[92].mxu1 }
 0xa96   :  { %v9208_v28 = vadd.f32 %v9204_v50, %v9143_v9  ;;  %v9210_v42 = vadd.f32 %v9206_v52, %v9184_v47  ;;  %v9145_v19 = vpop.f32.mrb[93].mxu0  ;;  %v9186_v44 = vpop.f32.mrb[93].mxu1 }
 0xa97   :  { %v9209_v22 = vadd.f32 %v9205_v21, %v9145_v19  ;;  %v9211_v61 = vadd.f32 %v9207_v12, %v9186_v44  ;;  %v9147_v54 = vpop.f32.mrb[94].mxu0  ;;  %v9188_v23 = vpop.f32.mrb[94].mxu1 }
 0xa98   :  { %v9232_v0 = vmul.f32 0.5, %v9208_v28  ;;  %v9148_v5 = vpop.f32.mrb[95].mxu0  ;;  %v9189_v13 = vpop.f32.mrb[95].mxu1 }
 0xa99   :  { %v9236_v18 = vmul.f32 0.5, %v9209_v22  ;;  %v9241_v27 = vmul.f32 0.5, %v9211_v61 }
 0xa9a   :  { %10800 = vtanh.f32 %v9232_v0 }
 0xa9b   :  { %10802 = vtanh.f32 %v9236_v18 }
 0xa9c   :  { %10804 = vtanh.f32 %v9210_v42 }
 0xa9d   :  { %10806 = vtanh.f32 %v9241_v27 }
 0xaa4   :  { %v10801_v17 = vpop.eup %10800 }
 0xaa5   :  { %v10803_v41 = vpop.eup %10802  ;;  %v9234_v62 = vmul.f32 0.5, %v10801_v17 }
 0xaa6   :  { %v9238_v10 = vmul.f32 0.5, %v10803_v41  ;;  %v10805_v11 = vpop.eup %10804 }
 0xaa7   :  { %v9235_v46 = vadd.f32 0.5, %v9234_v62  ;;  %v10807_v30 = vpop.eup %10806 }
 0xaa8   :  { %v9239_v16 = vadd.f32 0.5, %v9238_v10  ;;  %v9243_v56 = vmul.f32 0.5, %v10807_v30 }
 0xaa9   :  { %v9246_v32 = vmul.f32 %v10805_v11, %v9235_v46 }
 0xaaa   :  { %v9245_v45 = vmul.f32 %v9239_v16, %v13008_v35  ;;  %v9244_v4 = vadd.f32 0.5, %v9243_v56 }
 0xaac   :  { %v9247_v25 = vadd.f32 %v9246_v32, %v9245_v45 }
 0xaae   :  { %10808 = vtanh.f32 %v9247_v25 }
 0xab8   :  { %v10809_v24 = vpop.eup %10808 }
 0xab9   :  { %v9249_v14 = vmul.f32 %v10809_v24, %v9244_v4 }
 0xabb   :  { %v9252_v36 = vpack.c.bf16 %v9249_v14, %v9249_v14 }
 0xabd   :  { %9258 = vst [vmem:[#allocation16] sm:$0xf] %v9252_v36 }
 0xabe   :  { %10953 = shalt.err (!%p10950_p10)
}
 0xabf   :  { %s10954_s17 = scalar_lea.hbm %s13068_s7, 512 }
 0xac0   :  { %p10955_p11 = scmp.ne.s32.totalorder %s13068_s7, %s10954_s17  ;;  %p10958_p12 = scmp.lt.u32.totalorder %s10954_s17, %s13068_s7 }
 0xac2   :  { %p10960_p13 = pnand %p10958_p12, %p10955_p11 }
 0xac4   :  { %10963 = shalt.err (!%p10960_p13)
}
 0xac5   :  { %9286 = dma.vmem_to_hbm [thread:$0]  %s9281_s10, 512, %s13068_s7, [#allocation17], %s10975_s11, %s10975_s11, %s10976_s12  }
 0xac6   :  { %10970 = dma.done.wait [#allocation8], 512  }
 0xac7   :  { %10971 = vsyncadd [#allocation8], 4294966784 }
 0xac8   :  { %10972 = dma.done.wait [#allocation17], 512  }
 0xac9   :  { %10973 = vsyncadd [#allocation17], 4294966784 }
 0xaca   :  { %9293 = vsyncpa [#allocation7], 1 }
 0xacb   :  { %9294 = vsyncpa [#allocation10], 1 }
 0xacc   :  { %9295 = vsyncpa [#allocation13], 1 }
 0xacd   :  { %9296 = vsyncpa [#allocation8], 1 }
 0xace   :  { %9297 = vsyncpa [#allocation17], 1 }

</bundles_post_ra>
